<compile_context>
chip_gen: v7x
topology: tpu7x:2x2x1
jax: 0.10.0
libtpu: 0.0.40
codegen_flags: <defaults>
</compile_context>

<pallas_src>
import jax
import jax.numpy as jnp
from jax.experimental import pallas as pl
from jax.experimental.pallas import tpu as pltpu

_LPAD = 8  # sublane-aligned left halo width of the in-kernel padded buffers


# ------------------------------ Pallas kernel ------------------------------ #

def _unet_up_kernel(x1_ref, sp_ref, wd_ref, bd_ref, w1_ref, b1_ref, w2_ref, b2_ref,
                    o_ref, cat_ref, h_ref):
    """Fused unetUp forward for one batch element (NHWC, f32).

    x1_ref : (1, Ho, Wo, C1)          skip connection (already offset-padded)
    sp_ref : (1, Ho+3, Wo+3, C2)      zero-stuffed + halo-padded inputs2
    wd_ref : (16*C2, Cout)            flipped ConvTranspose2d kernel, im2col rows
    w1_ref : (9*(C1+Cout), Cout)      conv1 kernel, im2col rows
    w2_ref : (9*Cout, Cout)           conv2 kernel, im2col rows
    b*_ref : (1, Cout)
    o_ref  : (1, Ho, Wo, Cout)
    cat_ref: (Ho+2, _LPAD+Wo+1, C1+Cout)  VMEM scratch — padded concat buffer
    h_ref  : (Ho+2, _LPAD+Wo+1, Cout)     VMEM scratch — padded conv1 output
    """
    _, Ho, Wo, C1 = x1_ref.shape
    C2 = sp_ref.shape[-1]
    Cout = o_ref.shape[-1]
    Cc = C1 + Cout
    M = Ho * Wo
    f32 = jnp.float32

    # Zero the scratch buffers: their untouched border rows/cols provide the
    # zero halo that implements the `same` (pad=1) behaviour of both 3x3 convs.
    cat_ref[...] = jnp.zeros_like(cat_ref)
    h_ref[...] = jnp.zeros_like(h_ref)

    def im2col(load_win, taps, cin):
        # Gather taps x taps shifted windows and concatenate along the lane
        # (channel) axis -> one (M, taps*taps*cin) patch feeding a single
        # large-K MXU matmul.
        cols = []
        for dy in range(taps):
            for dx in range(taps):
                cols.append(load_win(dy, dx).reshape(M, cin))
        return jnp.concatenate(cols, axis=-1)

    # -- ConvTranspose2d(C2, Cout, 4, 2, 1): one (M, 16*C2) @ (16*C2, Cout) matmul
    patch = im2col(lambda dy, dx: sp_ref[0, dy:dy + Ho, dx:dx + Wo, :], 4, C2)
    up = jnp.dot(patch, wd_ref[...], preferred_element_type=f32) + bd_ref[...]

    # -- torch.cat([outputs1, outputs2], C), staged (with halo) in VMEM --------
    cat = jnp.concatenate([x1_ref[0].astype(f32), up.reshape(Ho, Wo, Cout)], axis=-1)
    cat_ref[1:Ho + 1, _LPAD:_LPAD + Wo, :] = cat          # aligned interior store

    # -- conv1: 3x3, pad 1, ReLU — one (M, 9*Cc) @ (9*Cc, Cout) matmul ---------
    c0 = _LPAD - 1
    patch = im2col(lambda dy, dx: cat_ref[dy:dy + Ho, c0 + dx:c0 + dx + Wo, :], 3, Cc)
    h = jnp.dot(patch, w1_ref[...], preferred_element_type=f32) + b1_ref[...]
    h = jnp.maximum(h, 0.0)
    h_ref[1:Ho + 1, _LPAD:_LPAD + Wo, :] = h.reshape(Ho, Wo, Cout)

    # -- conv2: 3x3, pad 1, ReLU — one (M, 9*Cout) @ (9*Cout, Cout) matmul -----
    patch = im2col(lambda dy, dx: h_ref[dy:dy + Ho, c0 + dx:c0 + dx + Wo, :], 3, Cout)
    y = jnp.dot(patch, w2_ref[...], preferred_element_type=f32) + b2_ref[...]
    y = jnp.maximum(y, 0.0)
    o_ref[0] = y.reshape(Ho, Wo, Cout).astype(o_ref.dtype)


# --------------------------------- wrapper --------------------------------- #

def unet_up_forward(params, inputs1, inputs2):
    """inputs1: (N, C1, 2*H, 2*W) NCHW skip; inputs2: (N, in_size, H, W) NCHW."""
    x1 = jnp.transpose(inputs1, (0, 2, 3, 1))            # NCHW -> NHWC
    x2 = jnp.transpose(inputs2, (0, 2, 3, 1))
    N, H, W, C2 = x2.shape
    Ho, Wo = 2 * H, 2 * W
    Cout = params['bd'].shape[-1]

    # offset padding of inputs1 (F.pad with [off//2]*4); zero when shapes match.
    p = (Ho - x1.shape[1]) // 2
    if p:
        x1 = jnp.pad(x1, ((0, 0), (p, p), (p, p), (0, 0)))
    C1 = x1.shape[-1]
    assert params['w1m'].shape[0] == 9 * (C1 + Cout), "channel mismatch"

    # ConvTranspose2d == plain 4x4 conv (flipped kernel) of the zero-stuffed,
    # halo-padded (k-1-p = 2) input.  The stuffing stays in XLA glue for now.
    sp = jnp.zeros((N, Ho - 1, Wo - 1, C2), x2.dtype).at[:, ::2, ::2, :].set(x2)
    sp = jnp.pad(sp, ((0, 0), (2, 2), (2, 2), (0, 0)))   # (N, Ho+3, Wo+3, C2)

    out = pl.pallas_call(
        _unet_up_kernel,
        out_shape=jax.ShapeDtypeStruct((N, Ho, Wo, Cout), jnp.float32),
        grid=(N,),
        in_specs=[
            pl.BlockSpec((1, Ho, Wo, C1), lambda n: (n, 0, 0, 0)),
            pl.BlockSpec((1, Ho + 3, Wo + 3, C2), lambda n: (n, 0, 0, 0)),
            pl.BlockSpec((16 * C2, Cout), lambda n: (0, 0)),
            pl.BlockSpec((1, Cout), lambda n: (0, 0)),
            pl.BlockSpec((9 * (C1 + Cout), Cout), lambda n: (0, 0)),
            pl.BlockSpec((1, Cout), lambda n: (0, 0)),
            pl.BlockSpec((9 * Cout, Cout), lambda n: (0, 0)),
            pl.BlockSpec((1, Cout), lambda n: (0, 0)),
        ],
        out_specs=pl.BlockSpec((1, Ho, Wo, Cout), lambda n: (n, 0, 0, 0)),
        scratch_shapes=[
            pltpu.VMEM((Ho + 2, _LPAD + Wo + 1, C1 + Cout), jnp.float32),
            pltpu.VMEM((Ho + 2, _LPAD + Wo + 1, Cout), jnp.float32),
        ],
        compiler_params=pltpu.CompilerParams(dimension_semantics=("parallel",)),
    )(x1, sp, params['wd'], params['bd'], params['w1m'], params['b1'],
      params['w2m'], params['b2'])

    return jnp.transpose(out, (0, 3, 1, 2))              # NHWC -> NCHW


# ---------------------------- params & reference --------------------------- #

def init_torch_params(key, in_size, out_size):
    """Random parameters in the PyTorch layouts of unetUp(in, out, is_deconv=True).
    (kaiming-normal-style scales; not bit-identical to torch's RNG.)"""
    k1, k2, k3, k4, k5, k6 = jax.random.split(key, 6)
    normal = lambda k, s, std: jax.random.normal(k, s, jnp.float32) * std
    wt = normal(k1, (in_size, out_size, 4, 4), (2.0 / (in_size * 16)) ** 0.5)
    bt = normal(k2, (out_size,), 0.05)
    w1 = normal(k3, (out_size, in_size, 3, 3), (2.0 / (in_size * 9)) ** 0.5)
    b1 = normal(k4, (out_size,), 0.05)
    w2 = normal(k5, (out_size, out_size, 3, 3), (2.0 / (out_size * 9)) ** 0.5)
    b2 = normal(k6, (out_size,), 0.05)
    return dict(wt=wt, bt=bt, w1=w1, b1=b1, w2=w2, b2=b2)


def pack_params(tp):
    """Repack PyTorch-layout weights into the fused kernel's im2col layouts."""
    in_size, out_size = tp['wt'].shape[0], tp['wt'].shape[1]
    # ConvTranspose2d -> plain conv on the stuffed input: flip spatially, move to
    # (kh, kw, Cin, Cout), flatten taps (row order = dy, dx, cin — matches im2col).
    wflip = jnp.transpose(tp['wt'][:, :, ::-1, ::-1], (2, 3, 0, 1))
    wd = wflip.reshape(16 * in_size, out_size)
    w1m = jnp.transpose(tp['w1'], (2, 3, 1, 0)).reshape(9 * in_size, out_size)
    w2m = jnp.transpose(tp['w2'], (2, 3, 1, 0)).reshape(9 * out_size, out_size)
    return dict(wd=wd, bd=tp['bt'].reshape(1, -1), w1m=w1m, b1=tp['b1'].reshape(1, -1),
                w2m=w2m, b2=tp['b2'].reshape(1, -1))


def unet_up_reference(tp, inputs1, inputs2):
    """Pure-JAX (XLA, f32/HIGHEST) NCHW reference of the PyTorch unetUp forward."""
    dn = ('NCHW', 'OIHW', 'NCHW')
    hi = jax.lax.Precision.HIGHEST
    w_up = jnp.transpose(tp['wt'], (1, 0, 2, 3))[:, :, ::-1, ::-1]
    up = jax.lax.conv_general_dilated(inputs2, w_up, (1, 1), [(2, 2), (2, 2)],
                                      lhs_dilation=(2, 2), dimension_numbers=dn,
                                      precision=hi) + tp['bt'].reshape(1, -1, 1, 1)
    p = (up.shape[2] - inputs1.shape[2]) // 2
    x1 = jnp.pad(inputs1, ((0, 0), (0, 0), (p, p), (p, p)))
    x = jnp.concatenate([x1, up], axis=1)
    h = jax.lax.conv_general_dilated(x, tp['w1'], (1, 1), [(1, 1), (1, 1)],
                                     dimension_numbers=dn, precision=hi)
    h = jnp.maximum(h + tp['b1'].reshape(1, -1, 1, 1), 0.0)
    y = jax.lax.conv_general_dilated(h, tp['w2'], (1, 1), [(1, 1), (1, 1)],
                                     dimension_numbers=dn, precision=hi)
    return jnp.maximum(y + tp['b2'].reshape(1, -1, 1, 1), 0.0)


# ----------------------------------- main ----------------------------------- #

if __name__ == "__main__":
    in_size, out_size = 8, 4            # unetUp(in_size=8, out_size=4, is_deconv=True)
    N, H2, W2 = 2, 8, 8                 # inputs2 spatial; skip connection is 2x

    key = jax.random.PRNGKey(0)
    kp, ka, kb = jax.random.split(key, 3)
    tparams = init_torch_params(kp, in_size, out_size)
    params = pack_params(tparams)

    inputs1 = jax.random.normal(ka, (N, in_size - out_size, 2 * H2, 2 * W2), jnp.float32)
    inputs2 = jax.random.normal(kb, (N, in_size, H2, W2), jnp.float32)

    out = jax.jit(unet_up_forward)(params, inputs1, inputs2)
    out = jax.block_until_ready(out)
    assert out.shape == (N, out_size, 2 * H2, 2 * W2)
    assert bool(jnp.all(jnp.isfinite(out)))

    ref = unet_up_reference(tparams, inputs1, inputs2)
    err = float(jnp.max(jnp.abs(out - ref)))
    assert err < 5e-2, f"kernel/reference mismatch: max abs err = {err}"
    print("KERNEL_OK")
</pallas_src>

<mosaic_0001>
module attributes {stable_mosaic.version = 11 : i64} {
  func.func @_unet_up_kernel(%arg0: i32, %arg1: memref<1x16x16x4xf32, #tpu.memory_space<vmem>>, %arg2: memref<1x19x19x8xf32, #tpu.memory_space<vmem>>, %arg3: memref<128x4xf32, #tpu.memory_space<vmem>>, %arg4: memref<1x4xf32, #tpu.memory_space<vmem>>, %arg5: memref<72x4xf32, #tpu.memory_space<vmem>>, %arg6: memref<1x4xf32, #tpu.memory_space<vmem>>, %arg7: memref<36x4xf32, #tpu.memory_space<vmem>>, %arg8: memref<1x4xf32, #tpu.memory_space<vmem>>, %arg9: memref<1x16x16x4xf32, #tpu.memory_space<vmem>>, %arg10: memref<18x25x8xf32, #tpu.memory_space<vmem>>, %arg11: memref<18x25x4xf32, #tpu.memory_space<vmem>>) attributes {dimension_semantics = [#tpu.dimension_semantics<parallel>], iteration_bounds = array<i64: 2>, scalar_prefetch = 0 : i64, scratch_operands = 2 : i64, tpu.core_type = #tpu.core_type<tc>, window_params = [{transform_indices = @transform_0, window_bounds = array<i64: 1, 16, 16, 4>}, {transform_indices = @transform_1, window_bounds = array<i64: 1, 19, 19, 8>}, {pipeline_mode = #tpu.pipeline_mode<synchronous>, transform_indices = @transform_2, window_bounds = array<i64: 128, 4>}, {pipeline_mode = #tpu.pipeline_mode<synchronous>, transform_indices = @transform_3, window_bounds = array<i64: 1, 4>}, {pipeline_mode = #tpu.pipeline_mode<synchronous>, transform_indices = @transform_4, window_bounds = array<i64: 72, 4>}, {pipeline_mode = #tpu.pipeline_mode<synchronous>, transform_indices = @transform_5, window_bounds = array<i64: 1, 4>}, {pipeline_mode = #tpu.pipeline_mode<synchronous>, transform_indices = @transform_6, window_bounds = array<i64: 36, 4>}, {pipeline_mode = #tpu.pipeline_mode<synchronous>, transform_indices = @transform_7, window_bounds = array<i64: 1, 4>}, {transform_indices = @transform_8, window_bounds = array<i64: 1, 16, 16, 4>}]} {
    %cst = arith.constant 0.000000e+00 : f32
    %0 = vector.broadcast %cst : f32 to vector<18x25x8xf32>
    %c0 = arith.constant 0 : index
    %c0_0 = arith.constant 0 : index
    %c0_1 = arith.constant 0 : index
    %1 = vector.load %arg10[%c0, %c0_0, %c0_1] : memref<18x25x8xf32, #tpu.memory_space<vmem>>, vector<18x25x8xf32>
    tpu.vector_store %arg10[%c0, %c0_0, %c0_1], %0 {strides = array<i32>} : memref<18x25x8xf32, #tpu.memory_space<vmem>>, vector<18x25x8xf32>,
    %cst_2 = arith.constant 0.000000e+00 : f32
    %2 = vector.broadcast %cst_2 : f32 to vector<18x25x4xf32>
    %c0_3 = arith.constant 0 : index
    %c0_4 = arith.constant 0 : index
    %c0_5 = arith.constant 0 : index
    %3 = vector.load %arg11[%c0_3, %c0_4, %c0_5] : memref<18x25x4xf32, #tpu.memory_space<vmem>>, vector<18x25x4xf32>
    tpu.vector_store %arg11[%c0_3, %c0_4, %c0_5], %2 {strides = array<i32>} : memref<18x25x4xf32, #tpu.memory_space<vmem>>, vector<18x25x4xf32>,
    %c0_6 = arith.constant 0 : index
    %c0_7 = arith.constant 0 : index
    %c0_8 = arith.constant 0 : index
    %c0_9 = arith.constant 0 : index
    %4 = vector.load %arg2[%c0_6, %c0_7, %c0_8, %c0_9] : memref<1x19x19x8xf32, #tpu.memory_space<vmem>>, vector<1x16x16x8xf32>
    %5 = vector.shape_cast %4 : vector<1x16x16x8xf32> to vector<16x16x8xf32>
    %6 = vector.shape_cast %5 : vector<16x16x8xf32> to vector<256x8xf32>
    %c0_10 = arith.constant 0 : index
    %c0_11 = arith.constant 0 : index
    %c1 = arith.constant 1 : index
    %c0_12 = arith.constant 0 : index
    %7 = vector.load %arg2[%c0_10, %c0_11, %c1, %c0_12] : memref<1x19x19x8xf32, #tpu.memory_space<vmem>>, vector<1x16x16x8xf32>
    %8 = vector.shape_cast %7 : vector<1x16x16x8xf32> to vector<16x16x8xf32>
    %9 = vector.shape_cast %8 : vector<16x16x8xf32> to vector<256x8xf32>
    %c0_13 = arith.constant 0 : index
    %c0_14 = arith.constant 0 : index
    %c2 = arith.constant 2 : index
    %c0_15 = arith.constant 0 : index
    %10 = vector.load %arg2[%c0_13, %c0_14, %c2, %c0_15] : memref<1x19x19x8xf32, #tpu.memory_space<vmem>>, vector<1x16x16x8xf32>
    %11 = vector.shape_cast %10 : vector<1x16x16x8xf32> to vector<16x16x8xf32>
    %12 = vector.shape_cast %11 : vector<16x16x8xf32> to vector<256x8xf32>
    %c0_16 = arith.constant 0 : index
    %c0_17 = arith.constant 0 : index
    %c3 = arith.constant 3 : index
    %c0_18 = arith.constant 0 : index
    %13 = vector.load %arg2[%c0_16, %c0_17, %c3, %c0_18] : memref<1x19x19x8xf32, #tpu.memory_space<vmem>>, vector<1x16x16x8xf32>
    %14 = vector.shape_cast %13 : vector<1x16x16x8xf32> to vector<16x16x8xf32>
    %15 = vector.shape_cast %14 : vector<16x16x8xf32> to vector<256x8xf32>
    %c0_19 = arith.constant 0 : index
    %c1_20 = arith.constant 1 : index
    %c0_21 = arith.constant 0 : index
    %c0_22 = arith.constant 0 : index
    %16 = vector.load %arg2[%c0_19, %c1_20, %c0_21, %c0_22] : memref<1x19x19x8xf32, #tpu.memory_space<vmem>>, vector<1x16x16x8xf32>
    %17 = vector.shape_cast %16 : vector<1x16x16x8xf32> to vector<16x16x8xf32>
    %18 = vector.shape_cast %17 : vector<16x16x8xf32> to vector<256x8xf32>
    %c0_23 = arith.constant 0 : index
    %c1_24 = arith.constant 1 : index
    %c1_25 = arith.constant 1 : index
    %c0_26 = arith.constant 0 : index
    %19 = vector.load %arg2[%c0_23, %c1_24, %c1_25, %c0_26] : memref<1x19x19x8xf32, #tpu.memory_space<vmem>>, vector<1x16x16x8xf32>
    %20 = vector.shape_cast %19 : vector<1x16x16x8xf32> to vector<16x16x8xf32>
    %21 = vector.shape_cast %20 : vector<16x16x8xf32> to vector<256x8xf32>
    %c0_27 = arith.constant 0 : index
    %c1_28 = arith.constant 1 : index
    %c2_29 = arith.constant 2 : index
    %c0_30 = arith.constant 0 : index
    %22 = vector.load %arg2[%c0_27, %c1_28, %c2_29, %c0_30] : memref<1x19x19x8xf32, #tpu.memory_space<vmem>>, vector<1x16x16x8xf32>
    %23 = vector.shape_cast %22 : vector<1x16x16x8xf32> to vector<16x16x8xf32>
    %24 = vector.shape_cast %23 : vector<16x16x8xf32> to vector<256x8xf32>
    %c0_31 = arith.constant 0 : index
    %c1_32 = arith.constant 1 : index
    %c3_33 = arith.constant 3 : index
    %c0_34 = arith.constant 0 : index
    %25 = vector.load %arg2[%c0_31, %c1_32, %c3_33, %c0_34] : memref<1x19x19x8xf32, #tpu.memory_space<vmem>>, vector<1x16x16x8xf32>
    %26 = vector.shape_cast %25 : vector<1x16x16x8xf32> to vector<16x16x8xf32>
    %27 = vector.shape_cast %26 : vector<16x16x8xf32> to vector<256x8xf32>
    %c0_35 = arith.constant 0 : index
    %c2_36 = arith.constant 2 : index
    %c0_37 = arith.constant 0 : index
    %c0_38 = arith.constant 0 : index
    %28 = vector.load %arg2[%c0_35, %c2_36, %c0_37, %c0_38] : memref<1x19x19x8xf32, #tpu.memory_space<vmem>>, vector<1x16x16x8xf32>
    %29 = vector.shape_cast %28 : vector<1x16x16x8xf32> to vector<16x16x8xf32>
    %30 = vector.shape_cast %29 : vector<16x16x8xf32> to vector<256x8xf32>
    %c0_39 = arith.constant 0 : index
    %c2_40 = arith.constant 2 : index
    %c1_41 = arith.constant 1 : index
    %c0_42 = arith.constant 0 : index
    %31 = vector.load %arg2[%c0_39, %c2_40, %c1_41, %c0_42] : memref<1x19x19x8xf32, #tpu.memory_space<vmem>>, vector<1x16x16x8xf32>
    %32 = vector.shape_cast %31 : vector<1x16x16x8xf32> to vector<16x16x8xf32>
    %33 = vector.shape_cast %32 : vector<16x16x8xf32> to vector<256x8xf32>
    %c0_43 = arith.constant 0 : index
    %c2_44 = arith.constant 2 : index
    %c2_45 = arith.constant 2 : index
    %c0_46 = arith.constant 0 : index
    %34 = vector.load %arg2[%c0_43, %c2_44, %c2_45, %c0_46] : memref<1x19x19x8xf32, #tpu.memory_space<vmem>>, vector<1x16x16x8xf32>
    %35 = vector.shape_cast %34 : vector<1x16x16x8xf32> to vector<16x16x8xf32>
    %36 = vector.shape_cast %35 : vector<16x16x8xf32> to vector<256x8xf32>
    %c0_47 = arith.constant 0 : index
    %c2_48 = arith.constant 2 : index
    %c3_49 = arith.constant 3 : index
    %c0_50 = arith.constant 0 : index
    %37 = vector.load %arg2[%c0_47, %c2_48, %c3_49, %c0_50] : memref<1x19x19x8xf32, #tpu.memory_space<vmem>>, vector<1x16x16x8xf32>
    %38 = vector.shape_cast %37 : vector<1x16x16x8xf32> to vector<16x16x8xf32>
    %39 = vector.shape_cast %38 : vector<16x16x8xf32> to vector<256x8xf32>
    %c0_51 = arith.constant 0 : index
    %c3_52 = arith.constant 3 : index
    %c0_53 = arith.constant 0 : index
    %c0_54 = arith.constant 0 : index
    %40 = vector.load %arg2[%c0_51, %c3_52, %c0_53, %c0_54] : memref<1x19x19x8xf32, #tpu.memory_space<vmem>>, vector<1x16x16x8xf32>
    %41 = vector.shape_cast %40 : vector<1x16x16x8xf32> to vector<16x16x8xf32>
    %42 = vector.shape_cast %41 : vector<16x16x8xf32> to vector<256x8xf32>
    %c0_55 = arith.constant 0 : index
    %c3_56 = arith.constant 3 : index
    %c1_57 = arith.constant 1 : index
    %c0_58 = arith.constant 0 : index
    %43 = vector.load %arg2[%c0_55, %c3_56, %c1_57, %c0_58] : memref<1x19x19x8xf32, #tpu.memory_space<vmem>>, vector<1x16x16x8xf32>
    %44 = vector.shape_cast %43 : vector<1x16x16x8xf32> to vector<16x16x8xf32>
    %45 = vector.shape_cast %44 : vector<16x16x8xf32> to vector<256x8xf32>
    %c0_59 = arith.constant 0 : index
    %c3_60 = arith.constant 3 : index
    %c2_61 = arith.constant 2 : index
    %c0_62 = arith.constant 0 : index
    %46 = vector.load %arg2[%c0_59, %c3_60, %c2_61, %c0_62] : memref<1x19x19x8xf32, #tpu.memory_space<vmem>>, vector<1x16x16x8xf32>
    %47 = vector.shape_cast %46 : vector<1x16x16x8xf32> to vector<16x16x8xf32>
    %48 = vector.shape_cast %47 : vector<16x16x8xf32> to vector<256x8xf32>
    %c0_63 = arith.constant 0 : index
    %c3_64 = arith.constant 3 : index
    %c3_65 = arith.constant 3 : index
    %c0_66 = arith.constant 0 : index
    %49 = vector.load %arg2[%c0_63, %c3_64, %c3_65, %c0_66] : memref<1x19x19x8xf32, #tpu.memory_space<vmem>>, vector<1x16x16x8xf32>
    %50 = vector.shape_cast %49 : vector<1x16x16x8xf32> to vector<16x16x8xf32>
    %51 = vector.shape_cast %50 : vector<16x16x8xf32> to vector<256x8xf32>
    %52 = tpu.concatenate %6, %9, %12, %15, %18, %21, %24, %27, %30, %33, %36, %39, %42, %45, %48, %51 in 1 : vector<256x8xf32>, vector<256x8xf32>, vector<256x8xf32>, vector<256x8xf32>, vector<256x8xf32>, vector<256x8xf32>, vector<256x8xf32>, vector<256x8xf32>, vector<256x8xf32>, vector<256x8xf32>, vector<256x8xf32>, vector<256x8xf32>, vector<256x8xf32>, vector<256x8xf32>, vector<256x8xf32>, vector<256x8xf32> -> vector<256x128xf32>
    %c0_67 = arith.constant 0 : index
    %c0_68 = arith.constant 0 : index
    %53 = vector.load %arg3[%c0_67, %c0_68] : memref<128x4xf32, #tpu.memory_space<vmem>>, vector<128x4xf32>
    %cst_69 = arith.constant dense<0.000000e+00> : vector<256x4xf32>
    %54 = tpu.matmul %52, %53, %cst_69 {dimension_numbers = #tpu.dot_dimension_numbers<[1], [0], [0], [1], [0, 0, 1, 1], [], []>} : vector<256x128xf32>, vector<128x4xf32>, vector<256x4xf32> -> vector<256x4xf32>
    %c0_70 = arith.constant 0 : index
    %c0_71 = arith.constant 0 : index
    %55 = vector.load %arg4[%c0_70, %c0_71] : memref<1x4xf32, #tpu.memory_space<vmem>>, vector<1x4xf32>
    %56 = vector.broadcast %55 : vector<1x4xf32> to vector<256x4xf32>
    %57 = arith.addf %54, %56 : vector<256x4xf32>
    %c0_72 = arith.constant 0 : index
    %c0_73 = arith.constant 0 : index
    %c0_74 = arith.constant 0 : index
    %c0_75 = arith.constant 0 : index
    %58 = vector.load %arg1[%c0_72, %c0_73, %c0_74, %c0_75] : memref<1x16x16x4xf32, #tpu.memory_space<vmem>>, vector<1x16x16x4xf32>
    %59 = vector.shape_cast %58 : vector<1x16x16x4xf32> to vector<16x16x4xf32>
    %60 = vector.shape_cast %57 : vector<256x4xf32> to vector<16x16x4xf32>
    %61 = tpu.concatenate %59, %60 in 2 : vector<16x16x4xf32>, vector<16x16x4xf32> -> vector<16x16x8xf32>
    %c1_76 = arith.constant 1 : index
    %c8 = arith.constant 8 : index
    %c0_77 = arith.constant 0 : index
    %62 = vector.load %arg10[%c1_76, %c8, %c0_77] : memref<18x25x8xf32, #tpu.memory_space<vmem>>, vector<16x16x8xf32>
    tpu.vector_store %arg10[%c1_76, %c8, %c0_77], %61 {strides = array<i32>} : memref<18x25x8xf32, #tpu.memory_space<vmem>>, vector<16x16x8xf32>,
    %c0_78 = arith.constant 0 : index
    %c7 = arith.constant 7 : index
    %c0_79 = arith.constant 0 : index
    %63 = vector.load %arg10[%c0_78, %c7, %c0_79] : memref<18x25x8xf32, #tpu.memory_space<vmem>>, vector<16x16x8xf32>
    %64 = vector.shape_cast %63 : vector<16x16x8xf32> to vector<256x8xf32>
    %c0_80 = arith.constant 0 : index
    %c8_81 = arith.constant 8 : index
    %c0_82 = arith.constant 0 : index
    %65 = vector.load %arg10[%c0_80, %c8_81, %c0_82] : memref<18x25x8xf32, #tpu.memory_space<vmem>>, vector<16x16x8xf32>
    %66 = vector.shape_cast %65 : vector<16x16x8xf32> to vector<256x8xf32>
    %c0_83 = arith.constant 0 : index
    %c9 = arith.constant 9 : index
    %c0_84 = arith.constant 0 : index
    %67 = vector.load %arg10[%c0_83, %c9, %c0_84] : memref<18x25x8xf32, #tpu.memory_space<vmem>>, vector<16x16x8xf32>
    %68 = vector.shape_cast %67 : vector<16x16x8xf32> to vector<256x8xf32>
    %c1_85 = arith.constant 1 : index
    %c7_86 = arith.constant 7 : index
    %c0_87 = arith.constant 0 : index
    %69 = vector.load %arg10[%c1_85, %c7_86, %c0_87] : memref<18x25x8xf32, #tpu.memory_space<vmem>>, vector<16x16x8xf32>
    %70 = vector.shape_cast %69 : vector<16x16x8xf32> to vector<256x8xf32>
    %c1_88 = arith.constant 1 : index
    %c8_89 = arith.constant 8 : index
    %c0_90 = arith.constant 0 : index
    %71 = vector.load %arg10[%c1_88, %c8_89, %c0_90] : memref<18x25x8xf32, #tpu.memory_space<vmem>>, vector<16x16x8xf32>
    %72 = vector.shape_cast %71 : vector<16x16x8xf32> to vector<256x8xf32>
    %c1_91 = arith.constant 1 : index
    %c9_92 = arith.constant 9 : index
    %c0_93 = arith.constant 0 : index
    %73 = vector.load %arg10[%c1_91, %c9_92, %c0_93] : memref<18x25x8xf32, #tpu.memory_space<vmem>>, vector<16x16x8xf32>
    %74 = vector.shape_cast %73 : vector<16x16x8xf32> to vector<256x8xf32>
    %c2_94 = arith.constant 2 : index
    %c7_95 = arith.constant 7 : index
    %c0_96 = arith.constant 0 : index
    %75 = vector.load %arg10[%c2_94, %c7_95, %c0_96] : memref<18x25x8xf32, #tpu.memory_space<vmem>>, vector<16x16x8xf32>
    %76 = vector.shape_cast %75 : vector<16x16x8xf32> to vector<256x8xf32>
    %c2_97 = arith.constant 2 : index
    %c8_98 = arith.constant 8 : index
    %c0_99 = arith.constant 0 : index
    %77 = vector.load %arg10[%c2_97, %c8_98, %c0_99] : memref<18x25x8xf32, #tpu.memory_space<vmem>>, vector<16x16x8xf32>
    %78 = vector.shape_cast %77 : vector<16x16x8xf32> to vector<256x8xf32>
    %c2_100 = arith.constant 2 : index
    %c9_101 = arith.constant 9 : index
    %c0_102 = arith.constant 0 : index
    %79 = vector.load %arg10[%c2_100, %c9_101, %c0_102] : memref<18x25x8xf32, #tpu.memory_space<vmem>>, vector<16x16x8xf32>
    %80 = vector.shape_cast %79 : vector<16x16x8xf32> to vector<256x8xf32>
    %81 = tpu.concatenate %64, %66, %68, %70, %72, %74, %76, %78, %80 in 1 : vector<256x8xf32>, vector<256x8xf32>, vector<256x8xf32>, vector<256x8xf32>, vector<256x8xf32>, vector<256x8xf32>, vector<256x8xf32>, vector<256x8xf32>, vector<256x8xf32> -> vector<256x72xf32>
    %c0_103 = arith.constant 0 : index
    %c0_104 = arith.constant 0 : index
    %82 = vector.load %arg5[%c0_103, %c0_104] : memref<72x4xf32, #tpu.memory_space<vmem>>, vector<72x4xf32>
    %cst_105 = arith.constant dense<0.000000e+00> : vector<256x4xf32>
    %83 = tpu.matmul %81, %82, %cst_105 {dimension_numbers = #tpu.dot_dimension_numbers<[1], [0], [0], [1], [0, 0, 1, 1], [], []>} : vector<256x72xf32>, vector<72x4xf32>, vector<256x4xf32> -> vector<256x4xf32>
    %c0_106 = arith.constant 0 : index
    %c0_107 = arith.constant 0 : index
    %84 = vector.load %arg6[%c0_106, %c0_107] : memref<1x4xf32, #tpu.memory_space<vmem>>, vector<1x4xf32>
    %85 = vector.broadcast %84 : vector<1x4xf32> to vector<256x4xf32>
    %86 = arith.addf %83, %85 : vector<256x4xf32>
    %cst_108 = arith.constant 0.000000e+00 : f32
    %87 = vector.broadcast %cst_108 : f32 to vector<256x4xf32>
    %88 = arith.maximumf %86, %87 : vector<256x4xf32>
    %89 = vector.shape_cast %88 : vector<256x4xf32> to vector<16x16x4xf32>
    %c1_109 = arith.constant 1 : index
    %c8_110 = arith.constant 8 : index
    %c0_111 = arith.constant 0 : index
    %90 = vector.load %arg11[%c1_109, %c8_110, %c0_111] : memref<18x25x4xf32, #tpu.memory_space<vmem>>, vector<16x16x4xf32>
    tpu.vector_store %arg11[%c1_109, %c8_110, %c0_111], %89 {strides = array<i32>} : memref<18x25x4xf32, #tpu.memory_space<vmem>>, vector<16x16x4xf32>,
    %c0_112 = arith.constant 0 : index
    %c7_113 = arith.constant 7 : index
    %c0_114 = arith.constant 0 : index
    %91 = vector.load %arg11[%c0_112, %c7_113, %c0_114] : memref<18x25x4xf32, #tpu.memory_space<vmem>>, vector<16x16x4xf32>
    %92 = vector.shape_cast %91 : vector<16x16x4xf32> to vector<256x4xf32>
    %c0_115 = arith.constant 0 : index
    %c8_116 = arith.constant 8 : index
    %c0_117 = arith.constant 0 : index
    %93 = vector.load %arg11[%c0_115, %c8_116, %c0_117] : memref<18x25x4xf32, #tpu.memory_space<vmem>>, vector<16x16x4xf32>
    %94 = vector.shape_cast %93 : vector<16x16x4xf32> to vector<256x4xf32>
    %c0_118 = arith.constant 0 : index
    %c9_119 = arith.constant 9 : index
    %c0_120 = arith.constant 0 : index
    %95 = vector.load %arg11[%c0_118, %c9_119, %c0_120] : memref<18x25x4xf32, #tpu.memory_space<vmem>>, vector<16x16x4xf32>
    %96 = vector.shape_cast %95 : vector<16x16x4xf32> to vector<256x4xf32>
    %c1_121 = arith.constant 1 : index
    %c7_122 = arith.constant 7 : index
    %c0_123 = arith.constant 0 : index
    %97 = vector.load %arg11[%c1_121, %c7_122, %c0_123] : memref<18x25x4xf32, #tpu.memory_space<vmem>>, vector<16x16x4xf32>
    %98 = vector.shape_cast %97 : vector<16x16x4xf32> to vector<256x4xf32>
    %c1_124 = arith.constant 1 : index
    %c8_125 = arith.constant 8 : index
    %c0_126 = arith.constant 0 : index
    %99 = vector.load %arg11[%c1_124, %c8_125, %c0_126] : memref<18x25x4xf32, #tpu.memory_space<vmem>>, vector<16x16x4xf32>
    %100 = vector.shape_cast %99 : vector<16x16x4xf32> to vector<256x4xf32>
    %c1_127 = arith.constant 1 : index
    %c9_128 = arith.constant 9 : index
    %c0_129 = arith.constant 0 : index
    %101 = vector.load %arg11[%c1_127, %c9_128, %c0_129] : memref<18x25x4xf32, #tpu.memory_space<vmem>>, vector<16x16x4xf32>
    %102 = vector.shape_cast %101 : vector<16x16x4xf32> to vector<256x4xf32>
    %c2_130 = arith.constant 2 : index
    %c7_131 = arith.constant 7 : index
    %c0_132 = arith.constant 0 : index
    %103 = vector.load %arg11[%c2_130, %c7_131, %c0_132] : memref<18x25x4xf32, #tpu.memory_space<vmem>>, vector<16x16x4xf32>
    %104 = vector.shape_cast %103 : vector<16x16x4xf32> to vector<256x4xf32>
    %c2_133 = arith.constant 2 : index
    %c8_134 = arith.constant 8 : index
    %c0_135 = arith.constant 0 : index
    %105 = vector.load %arg11[%c2_133, %c8_134, %c0_135] : memref<18x25x4xf32, #tpu.memory_space<vmem>>, vector<16x16x4xf32>
    %106 = vector.shape_cast %105 : vector<16x16x4xf32> to vector<256x4xf32>
    %c2_136 = arith.constant 2 : index
    %c9_137 = arith.constant 9 : index
    %c0_138 = arith.constant 0 : index
    %107 = vector.load %arg11[%c2_136, %c9_137, %c0_138] : memref<18x25x4xf32, #tpu.memory_space<vmem>>, vector<16x16x4xf32>
    %108 = vector.shape_cast %107 : vector<16x16x4xf32> to vector<256x4xf32>
    %109 = tpu.concatenate %92, %94, %96, %98, %100, %102, %104, %106, %108 in 1 : vector<256x4xf32>, vector<256x4xf32>, vector<256x4xf32>, vector<256x4xf32>, vector<256x4xf32>, vector<256x4xf32>, vector<256x4xf32>, vector<256x4xf32>, vector<256x4xf32> -> vector<256x36xf32>
    %c0_139 = arith.constant 0 : index
    %c0_140 = arith.constant 0 : index
    %110 = vector.load %arg7[%c0_139, %c0_140] : memref<36x4xf32, #tpu.memory_space<vmem>>, vector<36x4xf32>
    %cst_141 = arith.constant dense<0.000000e+00> : vector<256x4xf32>
    %111 = tpu.matmul %109, %110, %cst_141 {dimension_numbers = #tpu.dot_dimension_numbers<[1], [0], [0], [1], [0, 0, 1, 1], [], []>} : vector<256x36xf32>, vector<36x4xf32>, vector<256x4xf32> -> vector<256x4xf32>
    %c0_142 = arith.constant 0 : index
    %c0_143 = arith.constant 0 : index
    %112 = vector.load %arg8[%c0_142, %c0_143] : memref<1x4xf32, #tpu.memory_space<vmem>>, vector<1x4xf32>
    %113 = vector.broadcast %112 : vector<1x4xf32> to vector<256x4xf32>
    %114 = arith.addf %111, %113 : vector<256x4xf32>
    %cst_144 = arith.constant 0.000000e+00 : f32
    %115 = vector.broadcast %cst_144 : f32 to vector<256x4xf32>
    %116 = arith.maximumf %114, %115 : vector<256x4xf32>
    %117 = vector.shape_cast %116 : vector<256x4xf32> to vector<16x16x4xf32>
    %c0_145 = arith.constant 0 : index
    %c0_146 = arith.constant 0 : index
    %c0_147 = arith.constant 0 : index
    %c0_148 = arith.constant 0 : index
    %118 = vector.load %arg9[%c0_145, %c0_146, %c0_147, %c0_148] : memref<1x16x16x4xf32, #tpu.memory_space<vmem>>, vector<1x16x16x4xf32>
    %119 = vector.shape_cast %118 : vector<1x16x16x4xf32> to vector<16x16x4xf32>
    %120 = vector.shape_cast %117 : vector<16x16x4xf32> to vector<1x16x16x4xf32>
    tpu.vector_store %arg9[%c0_145, %c0_146, %c0_147, %c0_148], %120 {strides = array<i32>} : memref<1x16x16x4xf32, #tpu.memory_space<vmem>>, vector<1x16x16x4xf32>,
    return
  }
  func.func @transform_0(%arg0: i32) -> (i32, i32, i32, i32) {
    %c0_i32 = arith.constant 0 : i32
    %c0_i32_0 = arith.constant 0 : i32
    %c0_i32_1 = arith.constant 0 : i32
    %c0_i32_2 = arith.constant 0 : i32
    return %arg0, %c0_i32, %c0_i32_0, %c0_i32_1 : i32, i32, i32, i32
  }
  func.func @transform_1(%arg0: i32) -> (i32, i32, i32, i32) {
    %c0_i32 = arith.constant 0 : i32
    %c0_i32_0 = arith.constant 0 : i32
    %c0_i32_1 = arith.constant 0 : i32
    %c0_i32_2 = arith.constant 0 : i32
    return %arg0, %c0_i32, %c0_i32_0, %c0_i32_1 : i32, i32, i32, i32
  }
  func.func @transform_2(%arg0: i32) -> (i32, i32) {
    %c0_i32 = arith.constant 0 : i32
    %c0_i32_0 = arith.constant 0 : i32
    %c0_i32_1 = arith.constant 0 : i32
    return %c0_i32, %c0_i32_0 : i32, i32
  }
  func.func @transform_3(%arg0: i32) -> (i32, i32) {
    %c0_i32 = arith.constant 0 : i32
    %c0_i32_0 = arith.constant 0 : i32
    %c0_i32_1 = arith.constant 0 : i32
    return %c0_i32, %c0_i32_0 : i32, i32
  }
  func.func @transform_4(%arg0: i32) -> (i32, i32) {
    %c0_i32 = arith.constant 0 : i32
    %c0_i32_0 = arith.constant 0 : i32
    %c0_i32_1 = arith.constant 0 : i32
    return %c0_i32, %c0_i32_0 : i32, i32
  }
  func.func @transform_5(%arg0: i32) -> (i32, i32) {
    %c0_i32 = arith.constant 0 : i32
    %c0_i32_0 = arith.constant 0 : i32
    %c0_i32_1 = arith.constant 0 : i32
    return %c0_i32, %c0_i32_0 : i32, i32
  }
  func.func @transform_6(%arg0: i32) -> (i32, i32) {
    %c0_i32 = arith.constant 0 : i32
    %c0_i32_0 = arith.constant 0 : i32
    %c0_i32_1 = arith.constant 0 : i32
    return %c0_i32, %c0_i32_0 : i32, i32
  }
  func.func @transform_7(%arg0: i32) -> (i32, i32) {
    %c0_i32 = arith.constant 0 : i32
    %c0_i32_0 = arith.constant 0 : i32
    %c0_i32_1 = arith.constant 0 : i32
    return %c0_i32, %c0_i32_0 : i32, i32
  }
  func.func @transform_8(%arg0: i32) -> (i32, i32, i32, i32) {
    %c0_i32 = arith.constant 0 : i32
    %c0_i32_0 = arith.constant 0 : i32
    %c0_i32_1 = arith.constant 0 : i32
    %c0_i32_2 = arith.constant 0 : i32
    return %arg0, %c0_i32, %c0_i32_0, %c0_i32_1 : i32, i32, i32, i32
  }
}

</mosaic_0001>

<bundles_post_ra>
// kernel: unet_up_forward.1
= control target key start
LH: loop header
LB: loop body
LE: loop exit
PB: predicated region body
PF: predicated region fallthrough
CT: control target
= control target key end

     0   :  { %s10119_s27 = smov 0   ;;  %s16667_s0 = inlined_call_operand.vmem [shape: f32[2,16,16,4], index: 0, kind: input, shape index: {}]   ;;  %s16668_s1 = inlined_call_operand.vmem [shape: f32[2,19,19,8], index: 1, kind: input, shape index: {}]   ;;  %s16669_s2 = inlined_call_operand.vmem [shape: f32[128,4], index: 2, kind: input, shape index: {}]   ;;  %s16670_s3 = inlined_call_operand.vmem [shape: f32[1,4], index: 3, kind: input, shape index: {}]   ;;  %s16671_s4 = inlined_call_operand.vmem [shape: f32[72,4], index: 4, kind: input, shape index: {}]   ;;  %s16672_s5 = inlined_call_operand.vmem [shape: f32[1,4], index: 5, kind: input, shape index: {}]   ;;  %s16673_s6 = inlined_call_operand.vmem [shape: f32[36,4], index: 6, kind: input, shape index: {}]   ;;  %s16674_s7 = inlined_call_operand.vmem [shape: f32[1,4], index: 7, kind: input, shape index: {}]   ;;  %s16675_s8 = inlined_call_operand.vmem [shape: f32[2,16,16,4], index: 8, kind: output, shape index: {}]  }
   0x1 LB: > { %s7888_s28 = sadd.s32 4294967295, %s10052_s27   ;;  %p7892_p0 = scmp.ge.s32.totalorder %s10052_s27, 1  ;;  %s10052_s27 = sphi %s10119_s27, %s18_s27  }
   0x2   : > { %p272_p1 = scmp.lt.s32.totalorder %s10052_s27, 3 }
   0x4   : > { %p273_p2 = pnand %p7892_p0, %p272_p1 }
   0x6   : > { %276 = sbr.rel (%p273_p2) target bundleno = 2550 (0x9f6), region = 52 }
   0xd   : > { %p311_p3 = scmp.lt.s32.totalorder %s7888_s28, 1  ;;  %s10054_s11 = smov 8   ;;  %vm326_vm0 = vcmask 64512   ;;  %vm2941_vm1 = vcmask 130048   ;;  %vm2974_vm2 = vcmask 195584   ;;  %vm3007_vm3 = vcmask 261120  }
   0xe   : > { %s10055_s12 = smov 16   ;;  %s10056_s13 = smov 24   ;;  %vm3040_vm4 = vcmask 326656   ;;  %vm3073_vm5 = vcmask 392192   ;;  %vm3106_vm6 = vcmask 457728   ;;  %vm3139_vm7 = vcmask 523264  }
   0xf   : > { %s17731_s28 = smov (!%p311_p3, %s7888_s28), 1  ;;  %s10057_s14 = smov 32   ;;  %vm3172_vm8 = vcmask 588800   ;;  %vm3205_vm9 = vcmask 654336   ;;  %vm3238_vm10 = vcmask 719872   ;;  %vm3271_vm11 = vcmask 785408  }
  0x10   : > { %s8750_s29 = smul.u32 456, %s17731_s28  ;;  %s10058_s15 = smov 40   ;;  %vm3304_vm12 = vcmask 850944   ;;  %vm3337_vm13 = vcmask 916480   ;;  %vm3370_vm14 = vcmask 982016   ;;  %vm400_vm15 = vcmask 31744  }
  0x11   : > { %s10059_s16 = smov 48   ;;  %s10060_s17 = smov 56  }
  0x12   : > { %s10133_s10 = scalar_lea.vmem %s16668_s1, %s8750_s29  ;;  %s10061_s18 = smov 64  }
  0x13   : > { %v510_v0 = vld [vmem:[%s10133_s10 + $0x31] sm:$0xff]  ;;  %v511_v1 = vld [vmem:[%s10133_s10 + $0x39] sm:$0xff]  ;;  %v506_v2 = vld [vmem:[%s10133_s10 + $0x1] sm:$0xff]  ;;  %s10062_s19 = smov 72   ;;  %s10063_s20 = smov 80  }
  0x14   : > { %v10138_v3 = vpack.i.bf16 %v511_v1, %v510_v0  ;;  %v507_v4 = vld [vmem:[%s10133_s10 + $0x9] sm:$0xff]  ;;  %v513_v6 = vld [vmem:[%s10133_s10 + $0x51] sm:$0xff]  ;;  %v508_v8 = vld [vmem:[%s10133_s10 + $0x19] sm:$0xff]  ;;  %s10064_s21 = smov 88   ;;  %s10065_s22 = smov 96  }
  0x15   : > { %v512_v5 = vld [vmem:[%s10133_s10 + $0x49] sm:$0xff]  ;;  %v8779_v7 = vpack.i.bf16 %v507_v4, %v506_v2  ;;  %v509_v9 = vld [vmem:[%s10133_s10 + $0x21] sm:$0xff]  ;;  %v516_v12 = vld [vmem:[%s10133_s10 + $0x79] sm:$0xff]  ;;  %s10066_s23 = smov 104   ;;  %s10070_s29 = smov 4  }
  0x16   : > { %8790 = vrot.lane.b32.xlu1 %v10138_v3, %s10054_s11  ;;  %v10147_v10 = vpack.i.bf16 %v513_v6, %v512_v5  ;;  %v10150_v11 = vpack.i.bf16 %v509_v9, %v508_v8  ;;  %v517_v13 = vld [vmem:[%s10133_s10 + $0x81] sm:$0xff]  ;;  %v515_v15 = vld [vmem:[%s10133_s10 + $0x69] sm:$0xff]  ;;  %v521_v19 = vld [vmem:[%s10133_s10 + $0xb1] sm:$0xff]  ;;  %s8352_s30 = sshll.u32 %s17731_s28, 8 }
  0x17   : > { %8780 = vrot.lane.b32.xlu0 %v8779_v7, %s10054_s11  ;;  %v514_v14 = vld [vmem:[%s10133_s10 + $0x61] sm:$0xff]  ;;  %v10158_v16 = vpack.i.bf16 %v517_v13, %v516_v12  ;;  %v520_v18 = vld [vmem:[%s10133_s10 + $0xa9] sm:$0xff]  ;;  %v518_v20 = vld [vmem:[%s10133_s10 + $0x91] sm:$0xff] }
  0x18   : > { %v10162_v17 = vpack.i.bf16 %v515_v15, %v514_v14  ;;  %v519_v21 = vld [vmem:[%s10133_s10 + $0x99] sm:$0xff]  ;;  %v10170_v22 = vpack.i.bf16 %v521_v19, %v520_v18  ;;  %v525_v25 = vld [vmem:[%s10133_s10 + $0xe1] sm:$0xff]  ;;  %v523_v27 = vld [vmem:[%s10133_s10 + $0xc9] sm:$0xff] }
  0x19   : > { %v10174_v23 = vpack.i.bf16 %v519_v21, %v518_v20  ;;  %v524_v24 = vld [vmem:[%s10133_s10 + $0xd9] sm:$0xff]  ;;  %v522_v26 = vld [vmem:[%s10133_s10 + $0xc1] sm:$0xff]  ;;  %v528_v30 = vld [vmem:[%s10133_s10 + $0x109] sm:$0xff] }
  0x1a   : > { %8795 = vrot.lane.b32.xlu1 %v10147_v10, %s10054_s11  ;;  %v10182_v28 = vpack.i.bf16 %v525_v25, %v524_v24  ;;  %v10186_v29 = vpack.i.bf16 %v523_v27, %v522_v26  ;;  %v529_v31 = vld [vmem:[%s10133_s10 + $0x111] sm:$0xff]  ;;  %v527_v33 = vld [vmem:[%s10133_s10 + $0xf9] sm:$0xff]  ;;  %v533_v37 = vld [vmem:[%s10133_s10 + $0x141] sm:$0xff] }
  0x1b   : > { %8785 = vrot.lane.b32.xlu0 %v10150_v11, %s10054_s11  ;;  %v526_v32 = vld [vmem:[%s10133_s10 + $0xf1] sm:$0xff]  ;;  %v10194_v34 = vpack.i.bf16 %v529_v31, %v528_v30  ;;  %v532_v36 = vld [vmem:[%s10133_s10 + $0x139] sm:$0xff]  ;;  %v530_v38 = vld [vmem:[%s10133_s10 + $0x121] sm:$0xff] }
  0x1c   : > { %v10198_v35 = vpack.i.bf16 %v527_v33, %v526_v32  ;;  %v531_v39 = vld [vmem:[%s10133_s10 + $0x129] sm:$0xff]  ;;  %v10206_v40 = vpack.i.bf16 %v533_v37, %v532_v36  ;;  %v537_v43 = vld [vmem:[%s10133_s10 + $0x171] sm:$0xff]  ;;  %v535_v45 = vld [vmem:[%s10133_s10 + $0x159] sm:$0xff] }
  0x1d   : > { %v10210_v41 = vpack.i.bf16 %v531_v39, %v530_v38  ;;  %v536_v42 = vld [vmem:[%s10133_s10 + $0x169] sm:$0xff]  ;;  %v534_v44 = vld [vmem:[%s10133_s10 + $0x151] sm:$0xff]  ;;  %v540_v48 = vld [vmem:[%s10133_s10 + $0x1a] sm:$0xff] }
  0x1e   : > { %8805 = vrot.lane.b32.xlu1 %v10158_v16, %s10054_s11  ;;  %v10218_v46 = vpack.i.bf16 %v537_v43, %v536_v42  ;;  %v10222_v47 = vpack.i.bf16 %v535_v45, %v534_v44  ;;  %v541_v49 = vld [vmem:[%s10133_s10 + $0x22] sm:$0xff]  ;;  %v539_v51 = vld [vmem:[%s10133_s10 + $0xa] sm:$0xff]  ;;  %v545_v55 = vld [vmem:[%s10133_s10 + $0x52] sm:$0xff] }
  0x1f   : > { %8800 = vrot.lane.b32.xlu0 %v10162_v17, %s10054_s11  ;;  %v538_v50 = vld [vmem:[%s10133_s10 + $0x2] sm:$0xff]  ;;  %v10230_v52 = vpack.i.bf16 %v541_v49, %v540_v48  ;;  %v544_v54 = vld [vmem:[%s10133_s10 + $0x4a] sm:$0xff]  ;;  %v542_v56 = vld [vmem:[%s10133_s10 + $0x32] sm:$0xff] }
  0x20   : > { %v8859_v53 = vpack.i.bf16 %v539_v51, %v538_v50  ;;  %v543_v57 = vld [vmem:[%s10133_s10 + $0x3a] sm:$0xff]  ;;  %v10240_v58 = vpack.i.bf16 %v545_v55, %v544_v54  ;;  %v549_v61 = vld [vmem:[%s10133_s10 + $0x82] sm:$0xff]  ;;  %v547_v63 = vld [vmem:[%s10133_s10 + $0x6a] sm:$0xff] }
  0x21   : > { %v10243_v59 = vpack.i.bf16 %v543_v57, %v542_v56  ;;  %v548_v60 = vld [vmem:[%s10133_s10 + $0x7a] sm:$0xff]  ;;  %v546_v62 = vld [vmem:[%s10133_s10 + $0x62] sm:$0xff]  ;;  %v552_v2 = vld [vmem:[%s10133_s10 + $0xaa] sm:$0xff] }
  0x22   : > { %8815 = vrot.lane.b32.xlu1 %v10170_v22, %s10054_s11  ;;  %v10251_v0 = vpack.i.bf16 %v549_v61, %v548_v60  ;;  %v10255_v1 = vpack.i.bf16 %v547_v63, %v546_v62  ;;  %v553_v4 = vld [vmem:[%s10133_s10 + $0xb2] sm:$0xff]  ;;  %v551_v6 = vld [vmem:[%s10133_s10 + $0x9a] sm:$0xff]  ;;  %v557_v12 = vld [vmem:[%s10133_s10 + $0xe2] sm:$0xff] }
  0x23   : > { %8810 = vrot.lane.b32.xlu0 %v10174_v23, %s10054_s11  ;;  %v550_v5 = vld [vmem:[%s10133_s10 + $0x92] sm:$0xff]  ;;  %v10263_v7 = vpack.i.bf16 %v553_v4, %v552_v2  ;;  %v556_v9 = vld [vmem:[%s10133_s10 + $0xda] sm:$0xff]  ;;  %v554_v13 = vld [vmem:[%s10133_s10 + $0xc2] sm:$0xff] }
  0x24   : > { %v10267_v8 = vpack.i.bf16 %v551_v6, %v550_v5  ;;  %v555_v14 = vld [vmem:[%s10133_s10 + $0xca] sm:$0xff]  ;;  %v10275_v15 = vpack.i.bf16 %v557_v12, %v556_v9  ;;  %v561_v20 = vld [vmem:[%s10133_s10 + $0x112] sm:$0xff]  ;;  %v559_v24 = vld [vmem:[%s10133_s10 + $0xfa] sm:$0xff] }
  0x25   : > { %v10279_v18 = vpack.i.bf16 %v555_v14, %v554_v13  ;;  %v560_v19 = vld [vmem:[%s10133_s10 + $0x10a] sm:$0xff]  ;;  %v558_v21 = vld [vmem:[%s10133_s10 + $0xf2] sm:$0xff]  ;;  %v564_v27 = vld [vmem:[%s10133_s10 + $0x13a] sm:$0xff] }
  0x26   : > { %8825 = vrot.lane.b32.xlu1 %v10182_v28, %s10054_s11  ;;  %v10287_v25 = vpack.i.bf16 %v561_v20, %v560_v19  ;;  %v10291_v26 = vpack.i.bf16 %v559_v24, %v558_v21  ;;  %v565_v30 = vld [vmem:[%s10133_s10 + $0x142] sm:$0xff]  ;;  %v563_v32 = vld [vmem:[%s10133_s10 + $0x12a] sm:$0xff]  ;;  %v569_v38 = vld [vmem:[%s10133_s10 + $0x172] sm:$0xff] }
  0x27   : > { %8820 = vrot.lane.b32.xlu0 %v10186_v29, %s10054_s11  ;;  %v562_v31 = vld [vmem:[%s10133_s10 + $0x122] sm:$0xff]  ;;  %v10299_v33 = vpack.i.bf16 %v565_v30, %v564_v27  ;;  %v568_v37 = vld [vmem:[%s10133_s10 + $0x16a] sm:$0xff]  ;;  %v566_v39 = vld [vmem:[%s10133_s10 + $0x152] sm:$0xff] }
  0x28   : > { %v10303_v36 = vpack.i.bf16 %v563_v32, %v562_v31  ;;  %v567_v42 = vld [vmem:[%s10133_s10 + $0x15a] sm:$0xff]  ;;  %v10311_v43 = vpack.i.bf16 %v569_v38, %v568_v37  ;;  %v573_v48 = vld [vmem:[%s10133_s10 + $0x23] sm:$0xff]  ;;  %v571_v50 = vld [vmem:[%s10133_s10 + $0xb] sm:$0xff] }
  0x29   : > { %v10315_v44 = vpack.i.bf16 %v567_v42, %v566_v39  ;;  %v572_v45 = vld [vmem:[%s10133_s10 + $0x1b] sm:$0xff]  ;;  %v570_v49 = vld [vmem:[%s10133_s10 + $0x3] sm:$0xff]  ;;  %v576_v54 = vld [vmem:[%s10133_s10 + $0x4b] sm:$0xff] }
  0x2a   : > { %8835 = vrot.lane.b32.xlu1 %v10194_v34, %s10054_s11  ;;  %v10323_v51 = vpack.i.bf16 %v573_v48, %v572_v45  ;;  %v577_v55 = vld [vmem:[%s10133_s10 + $0x53] sm:$0xff]  ;;  %v575_v57 = vld [vmem:[%s10133_s10 + $0x3b] sm:$0xff]  ;;  %v581_v63 = vld [vmem:[%s10133_s10 + $0x83] sm:$0xff] }
  0x2b   : > { %8830 = vrot.lane.b32.xlu0 %v10198_v35, %s10054_s11  ;;  %v574_v56 = vld [vmem:[%s10133_s10 + $0x33] sm:$0xff]  ;;  %v10333_v60 = vpack.i.bf16 %v577_v55, %v576_v54  ;;  %v580_v62 = vld [vmem:[%s10133_s10 + $0x7b] sm:$0xff]  ;;  %v578_v2 = vld [vmem:[%s10133_s10 + $0x63] sm:$0xff] }
  0x2c   : > { %v10336_v61 = vpack.i.bf16 %v575_v57, %v574_v56  ;;  %v579_v4 = vld [vmem:[%s10133_s10 + $0x6b] sm:$0xff]  ;;  %v8964_v5 = vpack.i.bf16 %v581_v63, %v580_v62  ;;  %v585_v12 = vld [vmem:[%s10133_s10 + $0xb3] sm:$0xff]  ;;  %v583_v14 = vld [vmem:[%s10133_s10 + $0x9b] sm:$0xff] }
  0x2d   : > { %v10346_v6 = vpack.i.bf16 %v579_v4, %v578_v2  ;;  %v584_v9 = vld [vmem:[%s10133_s10 + $0xab] sm:$0xff]  ;;  %v582_v13 = vld [vmem:[%s10133_s10 + $0x93] sm:$0xff]  ;;  %v588_v21 = vld [vmem:[%s10133_s10 + $0xdb] sm:$0xff] }
  0x2e   : > { %8845 = vrot.lane.b32.xlu1 %v10206_v40, %s10054_s11  ;;  %v8974_v19 = vpack.i.bf16 %v585_v12, %v584_v9  ;;  %v10355_v20 = vpack.i.bf16 %v583_v14, %v582_v13  ;;  %v589_v24 = vld [vmem:[%s10133_s10 + $0xe3] sm:$0xff]  ;;  %v587_v30 = vld [vmem:[%s10133_s10 + $0xcb] sm:$0xff]  ;;  %v593_v38 = vld [vmem:[%s10133_s10 + $0x113] sm:$0xff] }
  0x2f   : > { %8840 = vrot.lane.b32.xlu0 %v10210_v41, %s10054_s11  ;;  %v586_v27 = vld [vmem:[%s10133_s10 + $0xc3] sm:$0xff]  ;;  %v8984_v31 = vpack.i.bf16 %v589_v24, %v588_v21  ;;  %v592_v37 = vld [vmem:[%s10133_s10 + $0x10b] sm:$0xff]  ;;  %v590_v39 = vld [vmem:[%s10133_s10 + $0xf3] sm:$0xff] }
  0x30   : > { %v8979_v32 = vpack.i.bf16 %v587_v30, %v586_v27  ;;  %v591_v42 = vld [vmem:[%s10133_s10 + $0xfb] sm:$0xff]  ;;  %v8994_v45 = vpack.i.bf16 %v593_v38, %v592_v37  ;;  %v595_v54 = vld [vmem:[%s10133_s10 + $0x12b] sm:$0xff]  ;;  %v601_v62 = vld [vmem:[%s10133_s10 + $0x173] sm:$0xff] }
  0x31   : > { %v8989_v48 = vpack.i.bf16 %v591_v42, %v590_v39  ;;  %v600_v57 = vld [vmem:[%s10133_s10 + $0x16b] sm:$0xff]  ;;  %v598_v63 = vld [vmem:[%s10133_s10 + $0x153] sm:$0xff]  ;;  %v599_v2 = vld [vmem:[%s10133_s10 + $0x15b] sm:$0xff] }
  0x32   : > { %8855 = vrot.lane.b32.xlu1 %v10218_v46, %s10054_s11  ;;  %v9014_v4 = vpack.i.bf16 %v601_v62, %v600_v57  ;;  %v7900_v9 = vld [vmem:[%s10133_s10 + $0x30] sm:$0xff]  ;;  %v7901_v12 = vld [vmem:[%s10133_s10 + $0x38] sm:$0xff]  ;;  %v7899_v14 = vld [vmem:[%s10133_s10 + $0x20] sm:$0xff] }
  0x33   : > { %8850 = vrot.lane.b32.xlu0 %v10222_v47, %s10054_s11  ;;  %v7898_v13 = vld [vmem:[%s10133_s10 + $0x18] sm:$0xff]  ;;  %v7904_v24 = vld [vmem:[%s10133_s10 + $0x60] sm:$0xff]  ;;  %v7905_v27 = vld [vmem:[%s10133_s10 + $0x68] sm:$0xff] }
  0x34   : > { %v9019_v21 = vpack.i.bf16 %v7899_v14, %v7898_v13  ;;  %v7902_v30 = vld [vmem:[%s10133_s10 + $0x48] sm:$0xff]  ;;  %v7908_v38 = vld [vmem:[%s10133_s10 + $0x90] sm:$0xff]  ;;  %v7909_v39 = vld [vmem:[%s10133_s10 + $0x98] sm:$0xff] }
  0x35   : > { %v7906_v42 = vld [vmem:[%s10133_s10 + $0x78] sm:$0xff]  ;;  %v7916_v62 = vld [vmem:[%s10133_s10 + $0xf0] sm:$0xff]  ;;  %v7921_v13 = vld [vmem:[%s10133_s10 + $0x128] sm:$0xff] }
  0x36   : > { %8865 = vrot.lane.b32.xlu1 %v10230_v52, %s10055_s12  ;;  %v7918_v14 = vld [vmem:[%s10133_s10 + $0x108] sm:$0xff] }
  0x37   : > { %8860 = vrot.lane.b32.xlu0 %v8859_v53, %s10055_s12  ;;  %v8939_v53 = vpack.i.bf16 %v571_v50, %v570_v49  ;;  %v596_v49 = vld [vmem:[%s10133_s10 + $0x13b] sm:$0xff]  ;;  %v597_v50 = vld [vmem:[%s10133_s10 + $0x143] sm:$0xff] }
  0x38   : > { %v9004_v55 = vpack.i.bf16 %v597_v50, %v596_v49  ;;  %v7912_v50 = vld [vmem:[%s10133_s10 + $0xc0] sm:$0xff] }
  0x3a   : > { %8875 = vrot.lane.b32.xlu1 %v10240_v58, %s10055_s12 }
  0x3b   : > { %8870 = vrot.lane.b32.xlu0 %v10243_v59, %s10055_s12 }
  0x3e   : > { %8885 = vrot.lane.b32.xlu1 %v10251_v0, %s10055_s12 }
  0x3f   : > { %8880 = vrot.lane.b32.xlu0 %v10255_v1, %s10055_s12 }
  0x42   : > { %8895 = vrot.lane.b32.xlu1 %v10263_v7, %s10055_s12 }
  0x43   : > { %8890 = vrot.lane.b32.xlu0 %v10267_v8, %s10055_s12 }
  0x46   : > { %8905 = vrot.lane.b32.xlu1 %v10275_v15, %s10055_s12 }
  0x47   : > { %8900 = vrot.lane.b32.xlu0 %v10279_v18, %s10055_s12 }
  0x4a   : > { %8915 = vrot.lane.b32.xlu1 %v10287_v25, %s10055_s12 }
  0x4b   : > { %8910 = vrot.lane.b32.xlu0 %v10291_v26, %s10055_s12 }
  0x4e   : > { %8925 = vrot.lane.b32.xlu1 %v10299_v33, %s10055_s12 }
  0x4f   : > { %8920 = vrot.lane.b32.xlu0 %v10303_v36, %s10055_s12 }
  0x52   : > { %8935 = vrot.lane.b32.xlu1 %v10311_v43, %s10055_s12 }
  0x53   : > { %8930 = vrot.lane.b32.xlu0 %v10315_v44, %s10055_s12 }
  0x56   : > { %8945 = vrot.lane.b32.xlu1 %v10323_v51, %s10056_s13 }
  0x57   : > { %8940 = vrot.lane.b32.xlu0 %v8939_v53, %s10056_s13  ;;  %v594_v53 = vld [vmem:[%s10133_s10 + $0x123] sm:$0xff] }
  0x58   : > { %v8999_v56 = vpack.i.bf16 %v595_v54, %v594_v53  ;;  %v7913_v53 = vld [vmem:[%s10133_s10 + $0xc8] sm:$0xff] }
  0x59   : > { %v7910_v54 = vld [vmem:[%s10133_s10 + $0xa8] sm:$0xff] }
  0x5a   : > { %8955 = vrot.lane.b32.xlu1 %v10333_v60, %s10056_s13 }
  0x5b   : > { %8950 = vrot.lane.b32.xlu0 %v10336_v61, %s10056_s13 }
  0x5e   : > { %8965 = vrot.lane.b32.xlu1 %v8964_v5, %s10056_s13  ;;  %v9009_v5 = vpack.i.bf16 %v599_v2, %v598_v63  ;;  %v7917_v63 = vld [vmem:[%s10133_s10 + $0xf8] sm:$0xff] }
  0x5f   : > { %8960 = vrot.lane.b32.xlu0 %v10346_v6, %s10056_s13  ;;  %v7914_v2 = vld [vmem:[%s10133_s10 + $0xd8] sm:$0xff] }
  0x62   : > { %8975 = vrot.lane.b32.xlu1 %v8974_v19, %s10056_s13  ;;  %v9024_v19 = vpack.i.bf16 %v7901_v12, %v7900_v9  ;;  %v7920_v12 = vld [vmem:[%s10133_s10 + $0x120] sm:$0xff] }
  0x63   : > { %8970 = vrot.lane.b32.xlu0 %v10355_v20, %s10056_s13 }
  0x66   : > { %8985 = vrot.lane.b32.xlu1 %v8984_v31, %s10056_s13  ;;  %v7903_v31 = vld [vmem:[%s10133_s10 + $0x50] sm:$0xff] }
  0x67   : > { %8980 = vrot.lane.b32.xlu0 %v8979_v32, %s10056_s13  ;;  %v9034_v32 = vpack.i.bf16 %v7905_v27, %v7904_v24  ;;  %v9029_v37 = vpack.i.bf16 %v7903_v31, %v7902_v30  ;;  %v7924_v27 = vld [vmem:[%s10133_s10 + $0x150] sm:$0xff]  ;;  %v7925_v30 = vld [vmem:[%s10133_s10 + $0x158] sm:$0xff] }
  0x6a   : > { %8995 = vrot.lane.b32.xlu1 %v8994_v45, %s10056_s13  ;;  %v7907_v45 = vld [vmem:[%s10133_s10 + $0x80] sm:$0xff] }
  0x6b   : > { %8990 = vrot.lane.b32.xlu0 %v8989_v48, %s10056_s13  ;;  %v9044_v48 = vpack.i.bf16 %v7909_v39, %v7908_v38  ;;  %v9039_v49 = vpack.i.bf16 %v7907_v45, %v7906_v42  ;;  %v9084_v39 = vpack.i.bf16 %v7925_v30, %v7924_v27  ;;  %v7928_v45 = vld [vmem:[%s10133_s10 + $0x180] sm:$0xff] }
  0x6c   : > { %v8002_v30 = vld [vmem:[%s10133_s10 + $0x7b] sm:$0xff] }
  0x6e   : > { %9005 = vrot.lane.b32.xlu1 %v9004_v55, %s10056_s13  ;;  %v7911_v55 = vld [vmem:[%s10133_s10 + $0xb0] sm:$0xff] }
  0x6f   : > { %9000 = vrot.lane.b32.xlu0 %v8999_v56, %s10056_s13  ;;  %v9054_v56 = vpack.i.bf16 %v7913_v53, %v7912_v50  ;;  %v9049_v57 = vpack.i.bf16 %v7911_v55, %v7910_v54  ;;  %v7926_v50 = vld [vmem:[%s10133_s10 + $0x168] sm:$0xff]  ;;  %v7927_v53 = vld [vmem:[%s10133_s10 + $0x170] sm:$0xff] }
  0x72   : > { %9015 = vrot.lane.b32.xlu1 %v9014_v4, %s10056_s13  ;;  %v7915_v4 = vld [vmem:[%s10133_s10 + $0xe0] sm:$0xff] }
  0x73   : > { %9010 = vrot.lane.b32.xlu0 %v9009_v5, %s10056_s13  ;;  %v9064_v5 = vpack.i.bf16 %v7917_v63, %v7916_v62  ;;  %v9059_v9 = vpack.i.bf16 %v7915_v4, %v7914_v2 }
  0x76   : > { %9025 = vrot.lane.b32.xlu1 %v9024_v19, %s10057_s14  ;;  %v7919_v19 = vld [vmem:[%s10133_s10 + $0x110] sm:$0xff] }
  0x77   : > { %9020 = vrot.lane.b32.xlu0 %v9019_v21, %s10057_s14  ;;  %v9074_v21 = vpack.i.bf16 %v7921_v13, %v7920_v12  ;;  %v9069_v24 = vpack.i.bf16 %v7919_v19, %v7918_v14 }
  0x7a   : > { %9035 = vrot.lane.b32.xlu1 %v9034_v32, %s10057_s14  ;;  %v7922_v32 = vld [vmem:[%s10133_s10 + $0x138] sm:$0xff] }
  0x7b   : > { %9030 = vrot.lane.b32.xlu0 %v9029_v37, %s10057_s14  ;;  %v7923_v37 = vld [vmem:[%s10133_s10 + $0x140] sm:$0xff] }
  0x7c   : > { %v9079_v42 = vpack.i.bf16 %v7923_v37, %v7922_v32  ;;  %v8003_v32 = vld [vmem:[%s10133_s10 + $0x83] sm:$0xff] }
  0x7d   : > { %v8008_v37 = vld [vmem:[%s10133_s10 + $0xc3] sm:$0xff] }
  0x7e   : > { %9045 = vrot.lane.b32.xlu1 %v9044_v48, %s10057_s14  ;;  %v7929_v48 = vld [vmem:[%s10133_s10 + $0x188] sm:$0xff] }
  0x7f   : > { %9040 = vrot.lane.b32.xlu0 %v9039_v49, %s10057_s14  ;;  %v9094_v55 = vpack.i.bf16 %v7929_v48, %v7928_v45  ;;  %v8007_v45 = vld [vmem:[%s10133_s10 + $0xb3] sm:$0xff] }
  0x82   : > { %9055 = vrot.lane.b32.xlu1 %v9054_v56, %s10057_s14  ;;  %v9089_v56 = vpack.i.bf16 %v7927_v53, %v7926_v50  ;;  %v8012_v50 = vld [vmem:[%s10133_s10 + $0xf3] sm:$0xff]  ;;  %v8013_v53 = vld [vmem:[%s10133_s10 + $0xfb] sm:$0xff] }
  0x83   : > { %9050 = vrot.lane.b32.xlu0 %v9049_v57, %s10057_s14 }
  0x86   : > { %9065 = vrot.lane.b32.xlu1 %v9064_v5, %s10057_s14 }
  0x87   : > { %9060 = vrot.lane.b32.xlu0 %v9059_v9, %s10057_s14 }
  0x88   : > { %v10420_v31 = vpop.permute.xlu1 %8790 }
  0x89   : > { %v10424_v38 = vpop.permute.xlu0 %8780 }
  0x8a   : > { %9075 = vrot.lane.b32.xlu1 %v9074_v21, %s10057_s14 }
  0x8b   : > { %9070 = vrot.lane.b32.xlu0 %v9069_v24, %s10057_s14 }
  0x8c   : > { %v10430_v49 = vpop.permute.xlu1 %8795 }
  0x8d   : > { %v10434_v54 = vpop.permute.xlu0 %8785 }
  0x8e   : > { %9085 = vrot.lane.b32.xlu1 %v9084_v39, %s10057_s14  ;;  %v8009_v39 = vld [vmem:[%s10133_s10 + $0xcb] sm:$0xff] }
  0x8f   : > { %9080 = vrot.lane.b32.xlu0 %v9079_v42, %s10057_s14  ;;  %v8006_v42 = vld [vmem:[%s10133_s10 + $0xab] sm:$0xff] }
  0x90   : > { %v10438_v57 = vpop.permute.xlu1 %8805 }
  0x91   : > { %v10440_v62 = vpop.permute.xlu0 %8800 }
  0x92   : > { %9095 = vrot.lane.b32.xlu1 %v9094_v55, %s10057_s14 }
  0x93   : > { %9090 = vrot.lane.b32.xlu0 %v9089_v56, %s10057_s14  ;;  %v8010_v56 = vld [vmem:[%s10133_s10 + $0xdb] sm:$0xff] }
  0x94   : > { %v10444_v63 = vpop.permute.xlu1 %8815 }
  0x95   : > { %v10446_v2 = vpop.permute.xlu0 %8810 }
  0x96   : > { %9105 = vrot.lane.b32.xlu1 %v10138_v3, %s10058_s15 }
  0x97   : > { %9100 = vrot.lane.b32.xlu0 %v10150_v11, %s10058_s15 }
  0x98   : > { %v10452_v4 = vpop.permute.xlu1 %8825 }
  0x99   : > { %v10454_v5 = vpop.permute.xlu0 %8820 }
  0x9a   : > { %9115 = vrot.lane.b32.xlu1 %v10162_v17, %s10058_s15 }
  0x9b   : > { %9110 = vrot.lane.b32.xlu0 %v10147_v10, %s10058_s15 }
  0x9c   : > { %v10460_v9 = vpop.permute.xlu1 %8835 }
  0x9d   : > { %v10462_v12 = vpop.permute.xlu0 %8830 }
  0x9e   : > { %9125 = vrot.lane.b32.xlu1 %v10174_v23, %s10058_s15 }
  0x9f   : > { %9120 = vrot.lane.b32.xlu0 %v10158_v16, %s10058_s15 }
  0xa0   : > { %v10468_v3 = vpop.permute.xlu1 %8845 }
  0xa1   : > { %v10470_v11 = vpop.permute.xlu0 %8840 }
  0xa2   : > { %9135 = vrot.lane.b32.xlu1 %v10186_v29, %s10058_s15  ;;  %v7961_v29 = vld [vmem:[%s10133_s10 + $0x189] sm:$0xff] }
  0xa3   : > { %9130 = vrot.lane.b32.xlu0 %v10170_v22, %s10058_s15  ;;  %v7960_v22 = vld [vmem:[%s10133_s10 + $0x181] sm:$0xff] }
  0xa4   : > { %v10476_v10 = vpop.permute.xlu1 %8855 }
  0xa5   : > { %v10478_v17 = vpop.permute.xlu0 %8850 }
  0xa6   : > { %9145 = vrot.lane.b32.xlu1 %v10198_v35, %s10058_s15 }
  0xa7   : > { %9140 = vrot.lane.b32.xlu0 %v10182_v28, %s10058_s15  ;;  %v9174_v28 = vpack.i.bf16 %v7961_v29, %v7960_v22  ;;  %v8011_v22 = vld [vmem:[%s10133_s10 + $0xe3] sm:$0xff] }
  0xa8   : > { %v10484_v16 = vpop.permute.xlu1 %8865 }
  0xa9   : > { %v10486_v23 = vpop.permute.xlu0 %8860 }
  0xaa   : > { %9155 = vrot.lane.b32.xlu1 %v10210_v41, %s10058_s15 }
  0xab   : > { %9150 = vrot.lane.b32.xlu0 %v10194_v34, %s10058_s15 }
  0xac   : > { %v10494_v13 = vpop.permute.xlu1 %8875 }
  0xad   : > { %v10496_v14 = vpop.permute.xlu0 %8870 }
  0xae   : > { %9165 = vrot.lane.b32.xlu1 %v10222_v47, %s10058_s15 }
  0xaf   : > { %9160 = vrot.lane.b32.xlu0 %v10206_v40, %s10058_s15 }
  0xb0   : > { %v10502_v35 = vpop.permute.xlu1 %8885 }
  0xb1   : > { %v10504_v19 = vpop.permute.xlu0 %8880 }
  0xb2   : > { %9175 = vrot.lane.b32.xlu1 %v9174_v28, %s10058_s15  ;;  %v9304_v28 = vpack.i.bf16 %v8013_v53, %v8012_v50  ;;  %v8019_v50 = vld [vmem:[%s10133_s10 + $0x143] sm:$0xff] }
  0xb3   : > { %9170 = vrot.lane.b32.xlu0 %v10218_v46, %s10058_s15 }
  0xb4   : > { %v10509_v34 = vpop.permute.xlu1 %8895 }
  0xb5   : > { %v10511_v41 = vpop.permute.xlu0 %8890 }
  0xb6   : > { %9185 = vrot.lane.b32.xlu1 %v10243_v59, %s10059_s16 }
  0xb7   : > { %9180 = vrot.lane.b32.xlu0 %v10230_v52, %s10059_s16 }
  0xb8   : > { %v10517_v40 = vpop.permute.xlu1 %8905 }
  0xb9   : > { %v10519_v47 = vpop.permute.xlu0 %8900 }
  0xba   : > { %9195 = vrot.lane.b32.xlu1 %v10255_v1, %s10059_s16 }
  0xbb   : > { %9190 = vrot.lane.b32.xlu0 %v10240_v58, %s10059_s16 }
  0xbc   : > { %v10525_v46 = vpop.permute.xlu1 %8915 }
  0xbd   : > { %v10527_v21 = vpop.permute.xlu0 %8910 }
  0xbe   : > { %9205 = vrot.lane.b32.xlu1 %v10267_v8, %s10059_s16 }
  0xbf   : > { %9200 = vrot.lane.b32.xlu0 %v10251_v0, %s10059_s16 }
  0xc0   : > { %v10533_v52 = vpop.permute.xlu1 %8925 }
  0xc1   : > { %v10535_v59 = vpop.permute.xlu0 %8920 }
  0xc2   : > { %9215 = vrot.lane.b32.xlu1 %v10279_v18, %s10059_s16  ;;  %v7993_v18 = vld [vmem:[%s10133_s10 + $0x18a] sm:$0xff] }
  0xc3   : > { %9210 = vrot.lane.b32.xlu0 %v10263_v7, %s10059_s16  ;;  %v7992_v7 = vld [vmem:[%s10133_s10 + $0x182] sm:$0xff] }
  0xc4   : > { %v10541_v58 = vpop.permute.xlu1 %8935 }
  0xc5   : > { %v10543_v1 = vpop.permute.xlu0 %8930 }
  0xc6   : > { %9225 = vrot.lane.b32.xlu1 %v10291_v26, %s10059_s16 }
  0xc7   : > { %9220 = vrot.lane.b32.xlu0 %v10275_v15, %s10059_s16  ;;  %v9254_v15 = vpack.i.bf16 %v7993_v18, %v7992_v7  ;;  %v8016_v7 = vld [vmem:[%s10133_s10 + $0x123] sm:$0xff]  ;;  %v8017_v18 = vld [vmem:[%s10133_s10 + $0x12b] sm:$0xff] }
  0xc8   : > { %v10549_v0 = vpop.permute.xlu1 %8945 }
  0xc9   : > { %16886 = vst [vmem:[#allocation4_spill] sm:$0xff] %v10549_v0  ;;  %v10551_v8 = vpop.permute.xlu0 %8940 }
  0xca   : > { %16887 = vst [vmem:[#allocation5_spill] sm:$0xff] %v10551_v8  ;;  %9235 = vrot.lane.b32.xlu1 %v10303_v36, %s10059_s16 }
  0xcb   : > { %9230 = vrot.lane.b32.xlu0 %v10287_v25, %s10059_s16 }
  0xcc   : > { %v10559_v24 = vpop.permute.xlu1 %8955 }
  0xcd   : > { %16888 = vst [vmem:[#allocation6_spill] sm:$0xff] %v10559_v24  ;;  %v10561_v26 = vpop.permute.xlu0 %8950  ;;  %v8197_v24 = vld [vmem:[%s10133_s10 + $0xc9] sm:$0xff] }
  0xce   : > { %16889 = vst [vmem:[#allocation7_spill] sm:$0xff] %v10561_v26  ;;  %9245 = vrot.lane.b32.xlu1 %v10315_v44, %s10059_s16 }
  0xcf   : > { %9240 = vrot.lane.b32.xlu0 %v10299_v33, %s10059_s16 }
  0xd0   : > { %v10567_v27 = vpop.permute.xlu1 %8965 }
  0xd1   : > { %16890 = vst [vmem:[#allocation8_spill] sm:$0xff] %v10567_v27  ;;  %v10569_v36 = vpop.permute.xlu0 %8960  ;;  %v8858_v27 = vunpack.i.h.bf16 %v10476_v10 }
  0xd2   : > { %16891 = vst [vmem:[#allocation9_spill] sm:$0xff] %v10569_v36  ;;  %9255 = vrot.lane.b32.xlu1 %v9254_v15, %s10059_s16  ;;  %v8193_v36 = vld [vmem:[%s10133_s10 + $0x99] sm:$0xff] }
  0xd3   : > { %9250 = vrot.lane.b32.xlu0 %v10311_v43, %s10059_s16 }
  0xd4   : > { %v10574_v25 = vpop.permute.xlu1 %8975 }
  0xd5   : > { %16892 = vst [vmem:[#allocation10_spill] sm:$0xff] %v10574_v25  ;;  %v10576_v44 = vpop.permute.xlu0 %8970  ;;  %v9992_v25 = vld [vmem:[%s10133_s10 + $0x98] sm:$0xff] }
  0xd6   : > { %16893 = vst [vmem:[#allocation11_spill] sm:$0xff] %v10576_v44  ;;  %9265 = vrot.lane.b32.xlu1 %v10336_v61, %s10060_s17  ;;  %v9279_v61 = vpack.i.bf16 %v8003_v32, %v8002_v30  ;;  %v8014_v30 = vld [vmem:[%s10133_s10 + $0x10b] sm:$0xff]  ;;  %v8015_v32 = vld [vmem:[%s10133_s10 + $0x113] sm:$0xff]  ;;  %v8838_v44 = vunpack.i.h.bf16 %v10460_v9 }
  0xd7   : > { %9260 = vrot.lane.b32.xlu0 %v10323_v51, %s10060_s17 }
  0xd8   : > { %v10582_v33 = vpop.permute.xlu1 %8985 }
  0xd9   : > { %16894 = vst [vmem:[#allocation12_spill] sm:$0xff] %v10582_v33  ;;  %v10586_v43 = vpop.permute.xlu0 %8980  ;;  %v9989_v33 = vld [vmem:[%s10133_s10 + $0xa8] sm:$0xff] }
  0xda   : > { %16895 = vst [vmem:[#allocation13_spill] sm:$0xff] %v10586_v43  ;;  %9275 = vrot.lane.b32.xlu1 %v10346_v6, %s10060_s17  ;;  %v9294_v6 = vpack.i.bf16 %v8009_v39, %v8008_v37  ;;  %v9314_v37 = vpack.i.bf16 %v8017_v18, %v8016_v7  ;;  %v9309_v39 = vpack.i.bf16 %v8015_v32, %v8014_v30  ;;  %v8022_v18 = vld [vmem:[%s10133_s10 + $0x16b] sm:$0xff]  ;;  %v8023_v30 = vld [vmem:[%s10133_s10 + $0x173] sm:$0xff]  ;;  %v8822_v43 = vunpack.i.l.bf16 %v10454_v5 }
  0xdb   : > { %9270 = vrot.lane.b32.xlu0 %v10333_v60, %s10060_s17  ;;  %v9289_v60 = vpack.i.bf16 %v8007_v45, %v8006_v42  ;;  %v8020_v42 = vld [vmem:[%s10133_s10 + $0x153] sm:$0xff]  ;;  %v8021_v45 = vld [vmem:[%s10133_s10 + $0x15b] sm:$0xff] }
  0xdc   : > { %v10594_v51 = vpop.permute.xlu1 %8995 }
  0xdd   : > { %16896 = vst [vmem:[#allocation14_spill] sm:$0xff] %v10594_v51  ;;  %v10598_v48 = vpop.permute.xlu0 %8990  ;;  %v9986_v51 = vld [vmem:[%s10133_s10 + $0x80] sm:$0xff] }
  0xde   : > { %16897 = vst [vmem:[#allocation15_spill] sm:$0xff] %v10598_v48  ;;  %9285 = vrot.lane.b32.xlu1 %v10355_v20, %s10060_s17  ;;  %v9299_v20 = vpack.i.bf16 %v8011_v22, %v8010_v56  ;;  %v9324_v56 = vpack.i.bf16 %v8021_v45, %v8020_v42  ;;  %v8029_v42 = vld [vmem:[%s10133_s10 + $0x50] sm:$0xff]  ;;  %v8813_v48 = vunpack.i.h.bf16 %v10446_v2 }
  0xdf   : > { %9280 = vrot.lane.b32.xlu0 %v9279_v61, %s10060_s17 }
  0xe0   : > { %v10605_v55 = vpop.permute.xlu1 %9005 }
  0xe1   : > { %16898 = vst [vmem:[#allocation16_spill] sm:$0xff] %v10605_v55  ;;  %v10609_v29 = vpop.permute.xlu0 %9000  ;;  %v8807_v55 = vunpack.i.l.bf16 %v10438_v57 }
  0xe2   : > { %16899 = vst [vmem:[#allocation17_spill] sm:$0xff] %v10609_v29  ;;  %9295 = vrot.lane.b32.xlu1 %v9294_v6, %s10060_s17 }
  0xe3   : > { %9290 = vrot.lane.b32.xlu0 %v9289_v60, %s10060_s17  ;;  %v8018_v60 = vld [vmem:[%s10133_s10 + $0x13b] sm:$0xff] }
  0xe4   : > { %v10615_v15 = vpop.permute.xlu1 %9015  ;;  %v9319_v22 = vpack.i.bf16 %v8019_v50, %v8018_v60  ;;  %v8026_v60 = vld [vmem:[%s10133_s10 + $0x30] sm:$0xff]  ;;  %v8027_v50 = vld [vmem:[%s10133_s10 + $0x38] sm:$0xff] }
  0xe5   : > { %16900 = vst [vmem:[#allocation18_spill] sm:$0xff] %v10615_v15  ;;  %v10619_v61 = vpop.permute.xlu0 %9010 }
  0xe6   : > { %16901 = vst [vmem:[#allocation19_spill] sm:$0xff] %v10619_v61  ;;  %9305 = vrot.lane.b32.xlu1 %v9304_v28, %s10060_s17  ;;  %v8024_v28 = vld [vmem:[%s10133_s10 + $0x183] sm:$0xff]  ;;  %v8798_v61 = vunpack.i.h.bf16 %v10430_v49 }
  0xe7   : > { %9300 = vrot.lane.b32.xlu0 %v9299_v20, %s10060_s17  ;;  %v8025_v20 = vld [vmem:[%s10133_s10 + $0x18b] sm:$0xff] }
  0xe8   : > { %v10625_v6 = vpop.permute.xlu1 %9025 }
  0xe9   : > { %16902 = vst [vmem:[#allocation20_spill] sm:$0xff] %v10625_v6  ;;  %v10629_v53 = vpop.permute.xlu0 %9020 }
  0xea   : > { %16903 = vst [vmem:[#allocation21_spill] sm:$0xff] %v10629_v53  ;;  %9315 = vrot.lane.b32.xlu1 %v9314_v37, %s10060_s17  ;;  %v9334_v53 = vpack.i.bf16 %v8025_v20, %v8024_v28  ;;  %v9329_v37 = vpack.i.bf16 %v8023_v30, %v8022_v18  ;;  %v8033_v28 = vld [vmem:[%s10133_s10 + $0x80] sm:$0xff]  ;;  %v8031_v30 = vld [vmem:[%s10133_s10 + $0x68] sm:$0xff] }
  0xeb   : > { %9310 = vrot.lane.b32.xlu0 %v9309_v39, %s10060_s17  ;;  %v8028_v39 = vld [vmem:[%s10133_s10 + $0x48] sm:$0xff]  ;;  %v8030_v18 = vld [vmem:[%s10133_s10 + $0x60] sm:$0xff] }
  0xec   : > { %v10635_v7 = vpop.permute.xlu1 %9035 }
  0xed   : > { %16904 = vst [vmem:[#allocation22_spill] sm:$0xff] %v10635_v7  ;;  %v10639_v32 = vpop.permute.xlu0 %9030 }
  0xee   : > { %16905 = vst [vmem:[#allocation23_spill] sm:$0xff] %v10639_v32  ;;  %9325 = vrot.lane.b32.xlu1 %v9324_v56, %s10060_s17  ;;  %v9344_v32 = vpack.i.bf16 %v8029_v42, %v8028_v39  ;;  %v9339_v56 = vpack.i.bf16 %v8027_v50, %v8026_v60  ;;  %v8036_v39 = vld [vmem:[%s10133_s10 + $0xa8] sm:$0xff]  ;;  %v8037_v42 = vld [vmem:[%s10133_s10 + $0xb0] sm:$0xff] }
  0xef   : > { %9320 = vrot.lane.b32.xlu0 %v9319_v22, %s10060_s17  ;;  %v8032_v22 = vld [vmem:[%s10133_s10 + $0x78] sm:$0xff]  ;;  %v8034_v50 = vld [vmem:[%s10133_s10 + $0x90] sm:$0xff] }
  0xf0   : > { %v10645_v45 = vpop.permute.xlu1 %9045 }
  0xf1   : > { %16906 = vst [vmem:[#allocation24_spill] sm:$0xff] %v10645_v45  ;;  %v10649_v7 = vpop.permute.xlu0 %9040 }
  0xf2   : > { %16907 = vst [vmem:[#allocation25_spill] sm:$0xff] %v10649_v7  ;;  %9335 = vrot.lane.b32.xlu1 %v9334_v53, %s10060_s17  ;;  %v9354_v53 = vpack.i.bf16 %v8033_v28, %v8032_v22  ;;  %v8041_v22 = vld [vmem:[%s10133_s10 + $0xe0] sm:$0xff] }
  0xf3   : > { %9330 = vrot.lane.b32.xlu0 %v9329_v37, %s10060_s17  ;;  %v9349_v37 = vpack.i.bf16 %v8031_v30, %v8030_v18  ;;  %v8038_v18 = vld [vmem:[%s10133_s10 + $0xc0] sm:$0xff]  ;;  %v8039_v30 = vld [vmem:[%s10133_s10 + $0xc8] sm:$0xff] }
  0xf4   : > { %v10655_v20 = vpop.permute.xlu1 %9055 }
  0xf5   : > { %16908 = vst [vmem:[#allocation26_spill] sm:$0xff] %v10655_v20  ;;  %v10659_v45 = vpop.permute.xlu0 %9050  ;;  %v8035_v20 = vld [vmem:[%s10133_s10 + $0x98] sm:$0xff] }
  0xf6   : > { %16909 = vst [vmem:[#allocation27_spill] sm:$0xff] %v10659_v45  ;;  %9345 = vrot.lane.b32.xlu1 %v9344_v32, %s10061_s18  ;;  %v9364_v45 = vpack.i.bf16 %v8037_v42, %v8036_v39  ;;  %v9359_v32 = vpack.i.bf16 %v8035_v20, %v8034_v50  ;;  %v8045_v20 = vld [vmem:[%s10133_s10 + $0x110] sm:$0xff]  ;;  %v8043_v50 = vld [vmem:[%s10133_s10 + $0xf8] sm:$0xff] }
  0xf7   : > { %9340 = vrot.lane.b32.xlu0 %v9339_v56, %s10061_s18  ;;  %v8040_v56 = vld [vmem:[%s10133_s10 + $0xd8] sm:$0xff]  ;;  %v8042_v42 = vld [vmem:[%s10133_s10 + $0xf0] sm:$0xff] }
  0xf8   : > { %v10665_v60 = vpop.permute.xlu1 %9065 }
  0xf9   : > { %16910 = vst [vmem:[#allocation28_spill] sm:$0xff] %v10665_v60  ;;  %v10669_v7 = vpop.permute.xlu0 %9060 }
  0xfa   : > { %16911 = vst [vmem:[#allocation29_spill] sm:$0xff] %v10669_v7  ;;  %9355 = vrot.lane.b32.xlu1 %v9354_v53, %s10061_s18  ;;  %v9374_v7 = vpack.i.bf16 %v8041_v22, %v8040_v56  ;;  %v9369_v53 = vpack.i.bf16 %v8039_v30, %v8038_v18  ;;  %v8049_v56 = vld [vmem:[%s10133_s10 + $0x140] sm:$0xff]  ;;  %v8047_v30 = vld [vmem:[%s10133_s10 + $0x128] sm:$0xff] }
  0xfb   : > { %9350 = vrot.lane.b32.xlu0 %v9349_v37, %s10061_s18  ;;  %v8044_v37 = vld [vmem:[%s10133_s10 + $0x108] sm:$0xff]  ;;  %v8046_v18 = vld [vmem:[%s10133_s10 + $0x120] sm:$0xff] }
  0xfc   : > { %v10675_v28 = vpop.permute.xlu1 %9075 }
  0xfd   : > { %16912 = vst [vmem:[#allocation30_spill] sm:$0xff] %v10675_v28  ;;  %v10679_v60 = vpop.permute.xlu0 %9070 }
  0xfe   : > { %16913 = vst [vmem:[#allocation31_spill] sm:$0xff] %v10679_v60  ;;  %9365 = vrot.lane.b32.xlu1 %v9364_v45, %s10061_s18  ;;  %v9384_v60 = vpack.i.bf16 %v8045_v20, %v8044_v37  ;;  %v9379_v45 = vpack.i.bf16 %v8043_v50, %v8042_v42  ;;  %v8053_v37 = vld [vmem:[%s10133_s10 + $0x170] sm:$0xff]  ;;  %v8051_v50 = vld [vmem:[%s10133_s10 + $0x158] sm:$0xff] }
  0xff   : > { %9360 = vrot.lane.b32.xlu0 %v9359_v32, %s10061_s18  ;;  %v8048_v32 = vld [vmem:[%s10133_s10 + $0x138] sm:$0xff]  ;;  %v8050_v42 = vld [vmem:[%s10133_s10 + $0x150] sm:$0xff] }
 0x100   : > { %v10685_v39 = vpop.permute.xlu1 %9085 }
 0x101   : > { %16914 = vst [vmem:[#allocation32_spill] sm:$0xff] %v10685_v39  ;;  %v10689_v28 = vpop.permute.xlu0 %9080 }
 0x102   : > { %16915 = vst [vmem:[#allocation33_spill] sm:$0xff] %v10689_v28  ;;  %9375 = vrot.lane.b32.xlu1 %v9374_v7, %s10061_s18  ;;  %v9394_v28 = vpack.i.bf16 %v8049_v56, %v8048_v32  ;;  %v9389_v7 = vpack.i.bf16 %v8047_v30, %v8046_v18  ;;  %v8057_v32 = vld [vmem:[%s10133_s10 + $0x1a0] sm:$0xff]  ;;  %v8055_v30 = vld [vmem:[%s10133_s10 + $0x188] sm:$0xff] }
 0x103   : > { %9370 = vrot.lane.b32.xlu0 %v9369_v53, %s10061_s18  ;;  %v8052_v53 = vld [vmem:[%s10133_s10 + $0x168] sm:$0xff]  ;;  %v8054_v18 = vld [vmem:[%s10133_s10 + $0x180] sm:$0xff] }
 0x104   : > { %v10695_v22 = vpop.permute.xlu1 %9095 }
 0x105   : > { %16916 = vst [vmem:[#allocation34_spill] sm:$0xff] %v10695_v22  ;;  %v10699_v39 = vpop.permute.xlu0 %9090 }
 0x106   : > { %16917 = vst [vmem:[#allocation35_spill] sm:$0xff] %v10699_v39  ;;  %9385 = vrot.lane.b32.xlu1 %v9384_v60, %s10061_s18  ;;  %v9404_v39 = vpack.i.bf16 %v8053_v37, %v8052_v53  ;;  %v9399_v60 = vpack.i.bf16 %v8051_v50, %v8050_v42  ;;  %v8061_v53 = vld [vmem:[%s10133_s10 + $0x51] sm:$0xff]  ;;  %v8059_v50 = vld [vmem:[%s10133_s10 + $0x39] sm:$0xff] }
 0x107   : > { %9380 = vrot.lane.b32.xlu0 %v9379_v45, %s10061_s18  ;;  %v8056_v45 = vld [vmem:[%s10133_s10 + $0x198] sm:$0xff] }
 0x108   : > { %v10705_v20 = vpop.permute.xlu1 %9105  ;;  %v8058_v42 = vld [vmem:[%s10133_s10 + $0x31] sm:$0xff] }
 0x109   : > { %16918 = vst [vmem:[#allocation36_spill] sm:$0xff] %v10705_v20  ;;  %v10709_v22 = vpop.permute.xlu0 %9100 }
 0x10a   : > { %16919 = vst [vmem:[#allocation37_spill] sm:$0xff] %v10709_v22  ;;  %9395 = vrot.lane.b32.xlu1 %v9394_v28, %s10061_s18  ;;  %v9414_v22 = vpack.i.bf16 %v8057_v32, %v8056_v45  ;;  %v9409_v28 = vpack.i.bf16 %v8055_v30, %v8054_v18  ;;  %v8065_v45 = vld [vmem:[%s10133_s10 + $0x81] sm:$0xff]  ;;  %v8063_v30 = vld [vmem:[%s10133_s10 + $0x69] sm:$0xff] }
 0x10b   : > { %9390 = vrot.lane.b32.xlu0 %v9389_v7, %s10061_s18  ;;  %v8060_v7 = vld [vmem:[%s10133_s10 + $0x49] sm:$0xff]  ;;  %v8062_v18 = vld [vmem:[%s10133_s10 + $0x61] sm:$0xff] }
 0x10c   : > { %v10715_v56 = vpop.permute.xlu1 %9115 }
 0x10d   : > { %16920 = vst [vmem:[#allocation38_spill] sm:$0xff] %v10715_v56  ;;  %v10719_v20 = vpop.permute.xlu0 %9110 }
 0x10e   : > { %16921 = vst [vmem:[#allocation39_spill] sm:$0xff] %v10719_v20  ;;  %9405 = vrot.lane.b32.xlu1 %v9404_v39, %s10061_s18  ;;  %v9424_v20 = vpack.i.bf16 %v8061_v53, %v8060_v7  ;;  %v9419_v39 = vpack.i.bf16 %v8059_v50, %v8058_v42  ;;  %v8068_v7 = vld [vmem:[%s10133_s10 + $0xa9] sm:$0xff]  ;;  %v8069_v53 = vld [vmem:[%s10133_s10 + $0xb1] sm:$0xff] }
 0x10f   : > { %9400 = vrot.lane.b32.xlu0 %v9399_v60, %s10061_s18  ;;  %v8064_v60 = vld [vmem:[%s10133_s10 + $0x79] sm:$0xff]  ;;  %v8066_v50 = vld [vmem:[%s10133_s10 + $0x91] sm:$0xff] }
 0x110   : > { %v10725_v37 = vpop.permute.xlu1 %9125 }
 0x111   : > { %16922 = vst [vmem:[#allocation40_spill] sm:$0xff] %v10725_v37  ;;  %v10729_v56 = vpop.permute.xlu0 %9120 }
 0x112   : > { %16923 = vst [vmem:[#allocation41_spill] sm:$0xff] %v10729_v56  ;;  %9415 = vrot.lane.b32.xlu1 %v9414_v22, %s10061_s18  ;;  %v9434_v22 = vpack.i.bf16 %v8065_v45, %v8064_v60  ;;  %v8073_v60 = vld [vmem:[%s10133_s10 + $0xe1] sm:$0xff] }
 0x113   : > { %9410 = vrot.lane.b32.xlu0 %v9409_v28, %s10061_s18  ;;  %v9429_v28 = vpack.i.bf16 %v8063_v30, %v8062_v18  ;;  %v8070_v18 = vld [vmem:[%s10133_s10 + $0xc1] sm:$0xff]  ;;  %v8071_v30 = vld [vmem:[%s10133_s10 + $0xc9] sm:$0xff] }
 0x114   : > { %v10735_v32 = vpop.permute.xlu1 %9135 }
 0x115   : > { %16924 = vst [vmem:[#allocation42_spill] sm:$0xff] %v10735_v32  ;;  %v10739_v37 = vpop.permute.xlu0 %9130  ;;  %v8067_v32 = vld [vmem:[%s10133_s10 + $0x99] sm:$0xff] }
 0x116   : > { %16925 = vst [vmem:[#allocation43_spill] sm:$0xff] %v10739_v37  ;;  %9425 = vrot.lane.b32.xlu1 %v9424_v20, %s10062_s19  ;;  %v9444_v37 = vpack.i.bf16 %v8069_v53, %v8068_v7  ;;  %v9439_v20 = vpack.i.bf16 %v8067_v32, %v8066_v50  ;;  %v8077_v32 = vld [vmem:[%s10133_s10 + $0x111] sm:$0xff]  ;;  %v8075_v50 = vld [vmem:[%s10133_s10 + $0xf9] sm:$0xff] }
 0x117   : > { %9420 = vrot.lane.b32.xlu0 %v9419_v39, %s10062_s19  ;;  %v8072_v39 = vld [vmem:[%s10133_s10 + $0xd9] sm:$0xff]  ;;  %v8074_v53 = vld [vmem:[%s10133_s10 + $0xf1] sm:$0xff] }
 0x118   : > { %v10745_v42 = vpop.permute.xlu1 %9145 }
 0x119   : > { %16926 = vst [vmem:[#allocation44_spill] sm:$0xff] %v10745_v42  ;;  %v10749_v56 = vpop.permute.xlu0 %9140 }
 0x11a   : > { %16927 = vst [vmem:[#allocation45_spill] sm:$0xff] %v10749_v56  ;;  %9435 = vrot.lane.b32.xlu1 %v9434_v22, %s10062_s19  ;;  %v9454_v56 = vpack.i.bf16 %v8073_v60, %v8072_v39  ;;  %v9449_v22 = vpack.i.bf16 %v8071_v30, %v8070_v18  ;;  %v8081_v39 = vld [vmem:[%s10133_s10 + $0x141] sm:$0xff]  ;;  %v8079_v30 = vld [vmem:[%s10133_s10 + $0x129] sm:$0xff] }
 0x11b   : > { %9430 = vrot.lane.b32.xlu0 %v9429_v28, %s10062_s19  ;;  %v8076_v28 = vld [vmem:[%s10133_s10 + $0x109] sm:$0xff]  ;;  %v8078_v18 = vld [vmem:[%s10133_s10 + $0x121] sm:$0xff] }
 0x11c   : > { %v10755_v45 = vpop.permute.xlu1 %9155 }
 0x11d   : > { %16928 = vst [vmem:[#allocation46_spill] sm:$0xff] %v10755_v45  ;;  %v10759_v42 = vpop.permute.xlu0 %9150 }
 0x11e   : > { %16929 = vst [vmem:[#allocation47_spill] sm:$0xff] %v10759_v42  ;;  %9445 = vrot.lane.b32.xlu1 %v9444_v37, %s10062_s19  ;;  %v9464_v42 = vpack.i.bf16 %v8077_v32, %v8076_v28  ;;  %v9459_v37 = vpack.i.bf16 %v8075_v50, %v8074_v53  ;;  %v8085_v28 = vld [vmem:[%s10133_s10 + $0x171] sm:$0xff]  ;;  %v8083_v50 = vld [vmem:[%s10133_s10 + $0x159] sm:$0xff] }
 0x11f   : > { %9440 = vrot.lane.b32.xlu0 %v9439_v20, %s10062_s19  ;;  %v8080_v20 = vld [vmem:[%s10133_s10 + $0x139] sm:$0xff]  ;;  %v8082_v53 = vld [vmem:[%s10133_s10 + $0x151] sm:$0xff] }
 0x120   : > { %v10765_v7 = vpop.permute.xlu1 %9165 }
 0x121   : > { %16930 = vst [vmem:[#allocation48_spill] sm:$0xff] %v10765_v7  ;;  %v10769_v45 = vpop.permute.xlu0 %9160 }
 0x122   : > { %16931 = vst [vmem:[#allocation49_spill] sm:$0xff] %v10769_v45  ;;  %9455 = vrot.lane.b32.xlu1 %v9454_v56, %s10062_s19  ;;  %v9474_v45 = vpack.i.bf16 %v8081_v39, %v8080_v20  ;;  %v9469_v56 = vpack.i.bf16 %v8079_v30, %v8078_v18  ;;  %v8089_v20 = vld [vmem:[%s10133_s10 + $0x1a1] sm:$0xff]  ;;  %v8087_v30 = vld [vmem:[%s10133_s10 + $0x189] sm:$0xff] }
 0x123   : > { %9450 = vrot.lane.b32.xlu0 %v9449_v22, %s10062_s19  ;;  %v8084_v22 = vld [vmem:[%s10133_s10 + $0x169] sm:$0xff]  ;;  %v8086_v18 = vld [vmem:[%s10133_s10 + $0x181] sm:$0xff] }
 0x124   : > { %v10775_v60 = vpop.permute.xlu1 %9175 }
 0x125   : > { %16932 = vst [vmem:[#allocation50_spill] sm:$0xff] %v10775_v60  ;;  %v10779_v7 = vpop.permute.xlu0 %9170 }
 0x126   : > { %16933 = vst [vmem:[#allocation51_spill] sm:$0xff] %v10779_v7  ;;  %9465 = vrot.lane.b32.xlu1 %v9464_v42, %s10062_s19  ;;  %v9484_v7 = vpack.i.bf16 %v8085_v28, %v8084_v22  ;;  %v9479_v42 = vpack.i.bf16 %v8083_v50, %v8082_v53  ;;  %v8093_v22 = vld [vmem:[%s10133_s10 + $0x52] sm:$0xff]  ;;  %v8091_v50 = vld [vmem:[%s10133_s10 + $0x3a] sm:$0xff] }
 0x127   : > { %9460 = vrot.lane.b32.xlu0 %v9459_v37, %s10062_s19  ;;  %v8088_v37 = vld [vmem:[%s10133_s10 + $0x199] sm:$0xff] }
 0x128   : > { %v10785_v32 = vpop.permute.xlu1 %9185  ;;  %v8090_v53 = vld [vmem:[%s10133_s10 + $0x32] sm:$0xff] }
 0x129   : > { %16934 = vst [vmem:[#allocation52_spill] sm:$0xff] %v10785_v32  ;;  %v10789_v60 = vpop.permute.xlu0 %9180 }
 0x12a   : > { %16935 = vst [vmem:[#allocation53_spill] sm:$0xff] %v10789_v60  ;;  %9475 = vrot.lane.b32.xlu1 %v9474_v45, %s10062_s19  ;;  %v9494_v60 = vpack.i.bf16 %v8089_v20, %v8088_v37  ;;  %v9489_v45 = vpack.i.bf16 %v8087_v30, %v8086_v18  ;;  %v8097_v37 = vld [vmem:[%s10133_s10 + $0x82] sm:$0xff]  ;;  %v8095_v30 = vld [vmem:[%s10133_s10 + $0x6a] sm:$0xff] }
 0x12b   : > { %9470 = vrot.lane.b32.xlu0 %v9469_v56, %s10062_s19  ;;  %v8092_v56 = vld [vmem:[%s10133_s10 + $0x4a] sm:$0xff]  ;;  %v8094_v18 = vld [vmem:[%s10133_s10 + $0x62] sm:$0xff] }
 0x12c   : > { %v10795_v39 = vpop.permute.xlu1 %9195 }
 0x12d   : > { %16936 = vst [vmem:[#allocation54_spill] sm:$0xff] %v10795_v39  ;;  %v10799_v32 = vpop.permute.xlu0 %9190 }
 0x12e   : > { %16937 = vst [vmem:[#allocation55_spill] sm:$0xff] %v10799_v32  ;;  %9485 = vrot.lane.b32.xlu1 %v9484_v7, %s10062_s19  ;;  %v9504_v32 = vpack.i.bf16 %v8093_v22, %v8092_v56  ;;  %v9499_v7 = vpack.i.bf16 %v8091_v50, %v8090_v53  ;;  %v8100_v56 = vld [vmem:[%s10133_s10 + $0xaa] sm:$0xff]  ;;  %v8101_v22 = vld [vmem:[%s10133_s10 + $0xb2] sm:$0xff] }
 0x12f   : > { %9480 = vrot.lane.b32.xlu0 %v9479_v42, %s10062_s19  ;;  %v8096_v42 = vld [vmem:[%s10133_s10 + $0x7a] sm:$0xff]  ;;  %v8098_v50 = vld [vmem:[%s10133_s10 + $0x92] sm:$0xff] }
 0x130   : > { %v10805_v28 = vpop.permute.xlu1 %9205 }
 0x131   : > { %16938 = vst [vmem:[#allocation56_spill] sm:$0xff] %v10805_v28  ;;  %v10809_v39 = vpop.permute.xlu0 %9200 }
 0x132   : > { %16939 = vst [vmem:[#allocation57_spill] sm:$0xff] %v10809_v39  ;;  %9495 = vrot.lane.b32.xlu1 %v9494_v60, %s10062_s19  ;;  %v9514_v60 = vpack.i.bf16 %v8097_v37, %v8096_v42  ;;  %v8105_v42 = vld [vmem:[%s10133_s10 + $0xe2] sm:$0xff] }
 0x133   : > { %9490 = vrot.lane.b32.xlu0 %v9489_v45, %s10062_s19  ;;  %v9509_v45 = vpack.i.bf16 %v8095_v30, %v8094_v18  ;;  %v8102_v18 = vld [vmem:[%s10133_s10 + $0xc2] sm:$0xff]  ;;  %v8103_v30 = vld [vmem:[%s10133_s10 + $0xca] sm:$0xff]  ;;  %s10072_s19 = smov 20  }
 0x134   : > { %v10815_v20 = vpop.permute.xlu1 %9215 }
 0x135   : > { %16940 = vst [vmem:[#allocation58_spill] sm:$0xff] %v10815_v20  ;;  %v10819_v28 = vpop.permute.xlu0 %9210  ;;  %v8099_v20 = vld [vmem:[%s10133_s10 + $0x9a] sm:$0xff] }
 0x136   : > { %16941 = vst [vmem:[#allocation59_spill] sm:$0xff] %v10819_v28  ;;  %9505 = vrot.lane.b32.xlu1 %v9504_v32, %s10063_s20  ;;  %v9524_v28 = vpack.i.bf16 %v8101_v22, %v8100_v56  ;;  %v9519_v32 = vpack.i.bf16 %v8099_v20, %v8098_v50  ;;  %v8109_v20 = vld [vmem:[%s10133_s10 + $0x112] sm:$0xff]  ;;  %v8107_v50 = vld [vmem:[%s10133_s10 + $0xfa] sm:$0xff] }
 0x137   : > { %9500 = vrot.lane.b32.xlu0 %v9499_v7, %s10063_s20  ;;  %v8104_v7 = vld [vmem:[%s10133_s10 + $0xda] sm:$0xff]  ;;  %v8106_v22 = vld [vmem:[%s10133_s10 + $0xf2] sm:$0xff] }
 0x138   : > { %v10825_v53 = vpop.permute.xlu1 %9225 }
 0x139   : > { %16942 = vst [vmem:[#allocation60_spill] sm:$0xff] %v10825_v53  ;;  %v10829_v39 = vpop.permute.xlu0 %9220 }
 0x13a   : > { %16943 = vst [vmem:[#allocation61_spill] sm:$0xff] %v10829_v39  ;;  %9515 = vrot.lane.b32.xlu1 %v9514_v60, %s10063_s20  ;;  %v9534_v39 = vpack.i.bf16 %v8105_v42, %v8104_v7  ;;  %v9529_v60 = vpack.i.bf16 %v8103_v30, %v8102_v18  ;;  %v8113_v7 = vld [vmem:[%s10133_s10 + $0x142] sm:$0xff]  ;;  %v8111_v30 = vld [vmem:[%s10133_s10 + $0x12a] sm:$0xff] }
 0x13b   : > { %9510 = vrot.lane.b32.xlu0 %v9509_v45, %s10063_s20  ;;  %v8108_v45 = vld [vmem:[%s10133_s10 + $0x10a] sm:$0xff]  ;;  %v8110_v18 = vld [vmem:[%s10133_s10 + $0x122] sm:$0xff] }
 0x13c   : > { %v10835_v37 = vpop.permute.xlu1 %9235 }
 0x13d   : > { %16944 = vst [vmem:[#allocation62_spill] sm:$0xff] %v10835_v37  ;;  %v10839_v53 = vpop.permute.xlu0 %9230 }
 0x13e   : > { %16945 = vst [vmem:[#allocation63_spill] sm:$0xff] %v10839_v53  ;;  %9525 = vrot.lane.b32.xlu1 %v9524_v28, %s10063_s20  ;;  %v9544_v53 = vpack.i.bf16 %v8109_v20, %v8108_v45  ;;  %v9539_v28 = vpack.i.bf16 %v8107_v50, %v8106_v22  ;;  %v8117_v45 = vld [vmem:[%s10133_s10 + $0x172] sm:$0xff]  ;;  %v8115_v50 = vld [vmem:[%s10133_s10 + $0x15a] sm:$0xff] }
 0x13f   : > { %9520 = vrot.lane.b32.xlu0 %v9519_v32, %s10063_s20  ;;  %v8112_v32 = vld [vmem:[%s10133_s10 + $0x13a] sm:$0xff]  ;;  %v8114_v22 = vld [vmem:[%s10133_s10 + $0x152] sm:$0xff] }
 0x140   : > { %v10845_v56 = vpop.permute.xlu1 %9245 }
 0x141   : > { %16946 = vst [vmem:[#allocation64_spill] sm:$0xff] %v10845_v56  ;;  %v10849_v37 = vpop.permute.xlu0 %9240 }
 0x142   : > { %16947 = vst [vmem:[#allocation65_spill] sm:$0xff] %v10849_v37  ;;  %9535 = vrot.lane.b32.xlu1 %v9534_v39, %s10063_s20  ;;  %v9554_v37 = vpack.i.bf16 %v8113_v7, %v8112_v32  ;;  %v9549_v39 = vpack.i.bf16 %v8111_v30, %v8110_v18  ;;  %v8121_v32 = vld [vmem:[%s10133_s10 + $0x1a2] sm:$0xff]  ;;  %v8119_v30 = vld [vmem:[%s10133_s10 + $0x18a] sm:$0xff] }
 0x143   : > { %9530 = vrot.lane.b32.xlu0 %v9529_v60, %s10063_s20  ;;  %v8116_v60 = vld [vmem:[%s10133_s10 + $0x16a] sm:$0xff]  ;;  %v8118_v18 = vld [vmem:[%s10133_s10 + $0x182] sm:$0xff] }
 0x144   : > { %v10855_v42 = vpop.permute.xlu1 %9255 }
 0x145   : > { %16948 = vst [vmem:[#allocation66_spill] sm:$0xff] %v10855_v42  ;;  %v10859_v56 = vpop.permute.xlu0 %9250 }
 0x146   : > { %16949 = vst [vmem:[#allocation67_spill] sm:$0xff] %v10859_v56  ;;  %9545 = vrot.lane.b32.xlu1 %v9544_v53, %s10063_s20  ;;  %v9564_v56 = vpack.i.bf16 %v8117_v45, %v8116_v60  ;;  %v9559_v53 = vpack.i.bf16 %v8115_v50, %v8114_v22  ;;  %v8125_v60 = vld [vmem:[%s10133_s10 + $0x53] sm:$0xff]  ;;  %v8123_v50 = vld [vmem:[%s10133_s10 + $0x3b] sm:$0xff] }
 0x147   : > { %9540 = vrot.lane.b32.xlu0 %v9539_v28, %s10063_s20  ;;  %v8120_v28 = vld [vmem:[%s10133_s10 + $0x19a] sm:$0xff] }
 0x148   : > { %v10865_v20 = vpop.permute.xlu1 %9265  ;;  %v8122_v22 = vld [vmem:[%s10133_s10 + $0x33] sm:$0xff] }
 0x149   : > { %16950 = vst [vmem:[#allocation68_spill] sm:$0xff] %v10865_v20  ;;  %v10869_v42 = vpop.permute.xlu0 %9260 }
 0x14a   : > { %16951 = vst [vmem:[#allocation69_spill] sm:$0xff] %v10869_v42  ;;  %9555 = vrot.lane.b32.xlu1 %v9554_v37, %s10063_s20  ;;  %v9574_v42 = vpack.i.bf16 %v8121_v32, %v8120_v28  ;;  %v9569_v37 = vpack.i.bf16 %v8119_v30, %v8118_v18  ;;  %v8129_v28 = vld [vmem:[%s10133_s10 + $0x83] sm:$0xff]  ;;  %v8127_v30 = vld [vmem:[%s10133_s10 + $0x6b] sm:$0xff] }
 0x14b   : > { %9550 = vrot.lane.b32.xlu0 %v9549_v39, %s10063_s20  ;;  %v8124_v39 = vld [vmem:[%s10133_s10 + $0x4b] sm:$0xff]  ;;  %v8126_v18 = vld [vmem:[%s10133_s10 + $0x63] sm:$0xff] }
 0x14c   : > { %v10875_v7 = vpop.permute.xlu1 %9275 }
 0x14d   : > { %16952 = vst [vmem:[#allocation70_spill] sm:$0xff] %v10875_v7  ;;  %v10879_v20 = vpop.permute.xlu0 %9270 }
 0x14e   : > { %16953 = vst [vmem:[#allocation71_spill] sm:$0xff] %v10879_v20  ;;  %9565 = vrot.lane.b32.xlu1 %v9564_v56, %s10063_s20  ;;  %v9584_v20 = vpack.i.bf16 %v8125_v60, %v8124_v39  ;;  %v9579_v56 = vpack.i.bf16 %v8123_v50, %v8122_v22  ;;  %v8132_v39 = vld [vmem:[%s10133_s10 + $0xab] sm:$0xff]  ;;  %v8133_v60 = vld [vmem:[%s10133_s10 + $0xb3] sm:$0xff] }
 0x14f   : > { %9560 = vrot.lane.b32.xlu0 %v9559_v53, %s10063_s20  ;;  %v8128_v53 = vld [vmem:[%s10133_s10 + $0x7b] sm:$0xff]  ;;  %v8130_v50 = vld [vmem:[%s10133_s10 + $0x93] sm:$0xff] }
 0x150   : > { %v10885_v45 = vpop.permute.xlu1 %9285 }
 0x151   : > { %16954 = vst [vmem:[#allocation72_spill] sm:$0xff] %v10885_v45  ;;  %v10889_v7 = vpop.permute.xlu0 %9280 }
 0x152   : > { %16955 = vst [vmem:[#allocation73_spill] sm:$0xff] %v10889_v7  ;;  %9575 = vrot.lane.b32.xlu1 %v9574_v42, %s10063_s20  ;;  %v9594_v42 = vpack.i.bf16 %v8129_v28, %v8128_v53  ;;  %v8137_v53 = vld [vmem:[%s10133_s10 + $0xe3] sm:$0xff] }
 0x153   : > { %9570 = vrot.lane.b32.xlu0 %v9569_v37, %s10063_s20  ;;  %v9589_v37 = vpack.i.bf16 %v8127_v30, %v8126_v18  ;;  %v8134_v18 = vld [vmem:[%s10133_s10 + $0xc3] sm:$0xff]  ;;  %v8135_v30 = vld [vmem:[%s10133_s10 + $0xcb] sm:$0xff]  ;;  %s13763_s20 = scalar_lea.vmem %s16667_s0, %s8352_s30 }
 0x154   : > { %v10895_v32 = vpop.permute.xlu1 %9295 }
 0x155   : > { %16956 = vst [vmem:[#allocation74_spill] sm:$0xff] %v10895_v32  ;;  %v10899_v45 = vpop.permute.xlu0 %9290  ;;  %v8131_v32 = vld [vmem:[%s10133_s10 + $0x9b] sm:$0xff] }
 0x156   : > { %16957 = vst [vmem:[#allocation75_spill] sm:$0xff] %v10899_v45  ;;  %9585 = vrot.lane.b32.xlu1 %v9584_v20, %s10064_s21  ;;  %v9604_v45 = vpack.i.bf16 %v8133_v60, %v8132_v39  ;;  %v9599_v20 = vpack.i.bf16 %v8131_v32, %v8130_v50  ;;  %v8141_v32 = vld [vmem:[%s10133_s10 + $0x113] sm:$0xff]  ;;  %v8139_v50 = vld [vmem:[%s10133_s10 + $0xfb] sm:$0xff] }
 0x157   : > { %9580 = vrot.lane.b32.xlu0 %v9579_v56, %s10064_s21  ;;  %v8136_v56 = vld [vmem:[%s10133_s10 + $0xdb] sm:$0xff]  ;;  %v8138_v60 = vld [vmem:[%s10133_s10 + $0xf3] sm:$0xff] }
 0x158   : > { %v10905_v22 = vpop.permute.xlu1 %9305 }
 0x159   : > { %16958 = vst [vmem:[#allocation76_spill] sm:$0xff] %v10905_v22  ;;  %v10909_v7 = vpop.permute.xlu0 %9300 }
 0x15a   : > { %16959 = vst [vmem:[#allocation77_spill] sm:$0xff] %v10909_v7  ;;  %9595 = vrot.lane.b32.xlu1 %v9594_v42, %s10064_s21  ;;  %v9614_v7 = vpack.i.bf16 %v8137_v53, %v8136_v56  ;;  %v9609_v42 = vpack.i.bf16 %v8135_v30, %v8134_v18  ;;  %v8145_v56 = vld [vmem:[%s10133_s10 + $0x143] sm:$0xff]  ;;  %v8143_v30 = vld [vmem:[%s10133_s10 + $0x12b] sm:$0xff] }
 0x15b   : > { %9590 = vrot.lane.b32.xlu0 %v9589_v37, %s10064_s21  ;;  %v8140_v37 = vld [vmem:[%s10133_s10 + $0x10b] sm:$0xff]  ;;  %v8142_v18 = vld [vmem:[%s10133_s10 + $0x123] sm:$0xff] }
 0x15c   : > { %v10915_v28 = vpop.permute.xlu1 %9315 }
 0x15d   : > { %16960 = vst [vmem:[#allocation78_spill] sm:$0xff] %v10915_v28  ;;  %v10919_v22 = vpop.permute.xlu0 %9310 }
 0x15e   : > { %16961 = vst [vmem:[#allocation79_spill] sm:$0xff] %v10919_v22  ;;  %9605 = vrot.lane.b32.xlu1 %v9604_v45, %s10064_s21  ;;  %v9624_v22 = vpack.i.bf16 %v8141_v32, %v8140_v37  ;;  %v9619_v45 = vpack.i.bf16 %v8139_v50, %v8138_v60  ;;  %v8149_v37 = vld [vmem:[%s10133_s10 + $0x173] sm:$0xff]  ;;  %v8147_v50 = vld [vmem:[%s10133_s10 + $0x15b] sm:$0xff] }
 0x15f   : > { %9600 = vrot.lane.b32.xlu0 %v9599_v20, %s10064_s21  ;;  %v8144_v20 = vld [vmem:[%s10133_s10 + $0x13b] sm:$0xff]  ;;  %v8146_v60 = vld [vmem:[%s10133_s10 + $0x153] sm:$0xff] }
 0x160   : > { %v10925_v39 = vpop.permute.xlu1 %9325 }
 0x161   : > { %16962 = vst [vmem:[#allocation80_spill] sm:$0xff] %v10925_v39  ;;  %v10929_v28 = vpop.permute.xlu0 %9320 }
 0x162   : > { %16963 = vst [vmem:[#allocation81_spill] sm:$0xff] %v10929_v28  ;;  %9615 = vrot.lane.b32.xlu1 %v9614_v7, %s10064_s21  ;;  %v9634_v28 = vpack.i.bf16 %v8145_v56, %v8144_v20  ;;  %v9629_v7 = vpack.i.bf16 %v8143_v30, %v8142_v18  ;;  %v8153_v20 = vld [vmem:[%s10133_s10 + $0x1a3] sm:$0xff]  ;;  %v8151_v30 = vld [vmem:[%s10133_s10 + $0x18b] sm:$0xff] }
 0x163   : > { %9610 = vrot.lane.b32.xlu0 %v9609_v42, %s10064_s21  ;;  %v8148_v42 = vld [vmem:[%s10133_s10 + $0x16b] sm:$0xff]  ;;  %v8150_v18 = vld [vmem:[%s10133_s10 + $0x183] sm:$0xff] }
 0x164   : > { %v10935_v53 = vpop.permute.xlu1 %9335 }
 0x165   : > { %16964 = vst [vmem:[#allocation82_spill] sm:$0xff] %v10935_v53  ;;  %v10939_v39 = vpop.permute.xlu0 %9330 }
 0x166   : > { %16965 = vst [vmem:[#allocation83_spill] sm:$0xff] %v10939_v39  ;;  %9625 = vrot.lane.b32.xlu1 %v9624_v22, %s10064_s21  ;;  %v9644_v39 = vpack.i.bf16 %v8149_v37, %v8148_v42  ;;  %v9639_v22 = vpack.i.bf16 %v8147_v50, %v8146_v60  ;;  %v8157_v42 = vld [vmem:[%s10133_s10 + $0x68] sm:$0xff]  ;;  %v8155_v50 = vld [vmem:[%s10133_s10 + $0x50] sm:$0xff] }
 0x167   : > { %9620 = vrot.lane.b32.xlu0 %v9619_v45, %s10064_s21  ;;  %v8152_v45 = vld [vmem:[%s10133_s10 + $0x19b] sm:$0xff]  ;;  %v8154_v60 = vld [vmem:[%s10133_s10 + $0x48] sm:$0xff] }
 0x168   : > { %v10945_v32 = vpop.permute.xlu1 %9345 }
 0x169   : > { %16966 = vst [vmem:[#allocation84_spill] sm:$0xff] %v10945_v32  ;;  %v10949_v53 = vpop.permute.xlu0 %9340 }
 0x16a   : > { %16967 = vst [vmem:[#allocation85_spill] sm:$0xff] %v10949_v53  ;;  %9635 = vrot.lane.b32.xlu1 %v9634_v28, %s10064_s21  ;;  %v9654_v53 = vpack.i.bf16 %v8153_v20, %v8152_v45  ;;  %v9649_v28 = vpack.i.bf16 %v8151_v30, %v8150_v18  ;;  %v8161_v45 = vld [vmem:[%s10133_s10 + $0x98] sm:$0xff]  ;;  %v8159_v30 = vld [vmem:[%s10133_s10 + $0x80] sm:$0xff] }
 0x16b   : > { %9630 = vrot.lane.b32.xlu0 %v9629_v7, %s10064_s21  ;;  %v8156_v7 = vld [vmem:[%s10133_s10 + $0x60] sm:$0xff]  ;;  %v8158_v18 = vld [vmem:[%s10133_s10 + $0x78] sm:$0xff] }
 0x16c   : > { %v10955_v56 = vpop.permute.xlu1 %9355 }
 0x16d   : > { %16968 = vst [vmem:[#allocation86_spill] sm:$0xff] %v10955_v56  ;;  %v10959_v32 = vpop.permute.xlu0 %9350 }
 0x16e   : > { %16969 = vst [vmem:[#allocation87_spill] sm:$0xff] %v10959_v32  ;;  %9645 = vrot.lane.b32.xlu1 %v9644_v39, %s10064_s21  ;;  %v9664_v32 = vpack.i.bf16 %v8157_v42, %v8156_v7  ;;  %v9659_v39 = vpack.i.bf16 %v8155_v50, %v8154_v60  ;;  %v8164_v7 = vld [vmem:[%s10133_s10 + $0xc0] sm:$0xff]  ;;  %v8165_v42 = vld [vmem:[%s10133_s10 + $0xc8] sm:$0xff] }
 0x16f   : > { %9640 = vrot.lane.b32.xlu0 %v9639_v22, %s10064_s21  ;;  %v8160_v22 = vld [vmem:[%s10133_s10 + $0x90] sm:$0xff]  ;;  %v8162_v50 = vld [vmem:[%s10133_s10 + $0xa8] sm:$0xff] }
 0x170   : > { %v10965_v37 = vpop.permute.xlu1 %9365 }
 0x171   : > { %16970 = vst [vmem:[#allocation88_spill] sm:$0xff] %v10965_v37  ;;  %v10969_v56 = vpop.permute.xlu0 %9360 }
 0x172   : > { %16971 = vst [vmem:[#allocation89_spill] sm:$0xff] %v10969_v56  ;;  %9655 = vrot.lane.b32.xlu1 %v9654_v53, %s10064_s21  ;;  %v9674_v53 = vpack.i.bf16 %v8161_v45, %v8160_v22  ;;  %v8169_v22 = vld [vmem:[%s10133_s10 + $0xf8] sm:$0xff] }
 0x173   : > { %9650 = vrot.lane.b32.xlu0 %v9649_v28, %s10064_s21  ;;  %v9669_v28 = vpack.i.bf16 %v8159_v30, %v8158_v18  ;;  %v8166_v18 = vld [vmem:[%s10133_s10 + $0xd8] sm:$0xff]  ;;  %v8167_v30 = vld [vmem:[%s10133_s10 + $0xe0] sm:$0xff] }
 0x174   : > { %v10975_v20 = vpop.permute.xlu1 %9375 }
 0x175   : > { %16972 = vst [vmem:[#allocation90_spill] sm:$0xff] %v10975_v20  ;;  %v10979_v37 = vpop.permute.xlu0 %9370  ;;  %v8163_v20 = vld [vmem:[%s10133_s10 + $0xb0] sm:$0xff] }
 0x176   : > { %16973 = vst [vmem:[#allocation91_spill] sm:$0xff] %v10979_v37  ;;  %9665 = vrot.lane.b32.xlu1 %v9664_v32, %s10065_s22  ;;  %v9684_v37 = vpack.i.bf16 %v8165_v42, %v8164_v7  ;;  %v9679_v32 = vpack.i.bf16 %v8163_v20, %v8162_v50  ;;  %v8173_v20 = vld [vmem:[%s10133_s10 + $0x128] sm:$0xff]  ;;  %v8171_v50 = vld [vmem:[%s10133_s10 + $0x110] sm:$0xff] }
 0x177   : > { %9660 = vrot.lane.b32.xlu0 %v9659_v39, %s10065_s22  ;;  %v8168_v39 = vld [vmem:[%s10133_s10 + $0xf0] sm:$0xff]  ;;  %v8170_v42 = vld [vmem:[%s10133_s10 + $0x108] sm:$0xff] }
 0x178   : > { %v10985_v60 = vpop.permute.xlu1 %9385 }
 0x179   : > { %16974 = vst [vmem:[#allocation92_spill] sm:$0xff] %v10985_v60  ;;  %v10989_v56 = vpop.permute.xlu0 %9380 }
 0x17a   : > { %16975 = vst [vmem:[#allocation93_spill] sm:$0xff] %v10989_v56  ;;  %9675 = vrot.lane.b32.xlu1 %v9674_v53, %s10065_s22  ;;  %v9694_v56 = vpack.i.bf16 %v8169_v22, %v8168_v39  ;;  %v9689_v53 = vpack.i.bf16 %v8167_v30, %v8166_v18  ;;  %v8176_v39 = vld [vmem:[%s10133_s10 + $0x150] sm:$0xff]  ;;  %v8177_v22 = vld [vmem:[%s10133_s10 + $0x158] sm:$0xff]  ;;  %v8175_v30 = vld [vmem:[%s10133_s10 + $0x140] sm:$0xff] }
 0x17b   : > { %9670 = vrot.lane.b32.xlu0 %v9669_v28, %s10065_s22  ;;  %v8172_v28 = vld [vmem:[%s10133_s10 + $0x120] sm:$0xff]  ;;  %v8174_v18 = vld [vmem:[%s10133_s10 + $0x138] sm:$0xff] }
 0x17c   : > { %v10995_v45 = vpop.permute.xlu1 %9395 }
 0x17d   : > { %16976 = vst [vmem:[#allocation94_spill] sm:$0xff] %v10995_v45  ;;  %v10999_v60 = vpop.permute.xlu0 %9390 }
 0x17e   : > { %16977 = vst [vmem:[#allocation95_spill] sm:$0xff] %v10999_v60  ;;  %9685 = vrot.lane.b32.xlu1 %v9684_v37, %s10065_s22  ;;  %v9704_v60 = vpack.i.bf16 %v8173_v20, %v8172_v28  ;;  %v9699_v37 = vpack.i.bf16 %v8171_v50, %v8170_v42  ;;  %v8782_v28 = vunpack.i.l.bf16 %v10424_v38  ;;  %v8783_v20 = vunpack.i.h.bf16 %v10424_v38  ;;  %v474_v42 = vld [vmem:[%s10133_s10] sm:$0xff]  ;;  %v9979_v38 = vld [vmem:[%s10133_s10 + $0x30] sm:$0xff] }
 0x17f   : > { %9680 = vrot.lane.b32.xlu0 %v9679_v32, %s10065_s22  ;;  %v8797_v50 = vunpack.i.l.bf16 %v10430_v49 }
 0x180   : > { %v11005_v7 = vpop.permute.xlu1 %9405 }
 0x181   : > { %16978 = vst [vmem:[#allocation96_spill] sm:$0xff] %v11005_v7  ;;  %v11009_v45 = vpop.permute.xlu0 %9400  ;;  %v8792_v7 = vunpack.i.l.bf16 %v10420_v31 }
 0x182   : > { %16979 = vst [vmem:[#allocation97_spill] sm:$0xff] %v11009_v45  ;;  %9695 = vrot.lane.b32.xlu1 %v9694_v56, %s10065_s22  ;;  %v8793_v56 = vunpack.i.h.bf16 %v10420_v31  ;;  %v8181_v31 = vld [vmem:[%s10133_s10 + $0x188] sm:$0xff] }
 0x183   : > { %9690 = vrot.lane.b32.xlu0 %v9689_v53, %s10065_s22  ;;  %v9714_v53 = vpack.i.bf16 %v8177_v22, %v8176_v39  ;;  %v475_v45 = vld [vmem:[%s10133_s10 + $0x8] sm:$0xff]  ;;  %v8179_v22 = vld [vmem:[%s10133_s10 + $0x170] sm:$0xff]  ;;  %v11040_v29 = vsel %vm326_vm0, %v9979_v38, %v8792_v7 }
 0x184   : > { %v11015_v32 = vpop.permute.xlu1 %9415  ;;  %v8178_v39 = vld [vmem:[%s10133_s10 + $0x168] sm:$0xff]  ;;  %v11055_v38 = vsel %vm326_vm0, %v475_v45, %v8783_v20  ;;  %v9983_v45 = vld [vmem:[%s10133_s10 + $0x18] sm:$0xff] }
 0x185   : > { %16980 = vst [vmem:[#allocation98_spill] sm:$0xff] %v11015_v32  ;;  %v11020_v6 = vpop.permute.xlu0 %9410  ;;  %v8180_v32 = vld [vmem:[%s10133_s10 + $0x180] sm:$0xff] }
 0x186   : > { %16981 = vst [vmem:[#allocation99_spill] sm:$0xff] %v11020_v6  ;;  %9705 = vrot.lane.b32.xlu1 %v9704_v60, %s10065_s22  ;;  %v9709_v6 = vpack.i.bf16 %v8175_v30, %v8174_v18  ;;  %v8787_v60 = vunpack.i.l.bf16 %v10434_v54  ;;  %v9980_v30 = vld [vmem:[%s10133_s10 + $0x38] sm:$0xff]  ;;  %v9724_v7 = vpack.i.bf16 %v8181_v31, %v8180_v32  ;;  %v8803_v31 = vunpack.i.h.bf16 %v10440_v62 }
 0x187   : > { %9700 = vrot.lane.b32.xlu0 %v9699_v37, %s10065_s22  ;;  %v8788_v37 = vunpack.i.h.bf16 %v10434_v54  ;;  %v11047_v49 = vsel %vm326_vm0, %v9980_v30, %v8793_v56  ;;  %v9981_v54 = vld [vmem:[%s10133_s10 + $0x48] sm:$0xff]  ;;  %v8808_v56 = vunpack.i.h.bf16 %v10438_v57  ;;  %v8185_v30 = vld [vmem:[%s10133_s10 + $0x1b8] sm:$0xff] }
 0x188   : > { %v11034_v15 = vpop.permute.xlu1 %9425  ;;  %v11071_v20 = vsel %vm326_vm0, %v9983_v45, %v8787_v60  ;;  %v8812_v60 = vunpack.i.l.bf16 %v10446_v2 }
 0x189   : > { %16982 = vst [vmem:[#allocation100_spill] sm:$0xff] %v11034_v15  ;;  %v11043_v18 = vpop.permute.xlu0 %9420  ;;  %v11050_v15 = vsel %vm326_vm0, %v474_v42, %v8782_v28  ;;  %v9719_v28 = vpack.i.bf16 %v8179_v22, %v8178_v39  ;;  %v8184_v42 = vld [vmem:[%s10133_s10 + $0x1b0] sm:$0xff]  ;;  %v8183_v39 = vld [vmem:[%s10133_s10 + $0x1a0] sm:$0xff] }
 0x18a   : > { %16983 = vst [vmem:[#allocation101_spill] sm:$0xff] %v11043_v18  ;;  %9715 = vrot.lane.b32.xlu1 %v9714_v53, %s10065_s22  ;;  %v11059_v18 = vsel %vm326_vm0, %v9981_v54, %v8797_v50  ;;  %v9982_v53 = vld [vmem:[%s10133_s10 + $0x50] sm:$0xff]  ;;  %v8802_v50 = vunpack.i.l.bf16 %v10440_v62  ;;  %v9984_v22 = vld [vmem:[%s10133_s10 + $0x20] sm:$0xff]  ;;  %v9985_v62 = vld [vmem:[%s10133_s10 + $0x78] sm:$0xff] }
 0x18b   : > { %9710 = vrot.lane.b32.xlu0 %v9709_v6, %s10065_s22  ;;  %v11067_v32 = vsel %vm326_vm0, %v9982_v53, %v8798_v61  ;;  %v8182_v6 = vld [vmem:[%s10133_s10 + $0x198] sm:$0xff]  ;;  %v11081_v54 = vsel %vm326_vm0, %v9984_v22, %v8788_v37  ;;  %v8818_v61 = vunpack.i.h.bf16 %v10444_v63  ;;  %v8817_v53 = vunpack.i.l.bf16 %v10444_v63 }
 0x18c   : > { %v11075_v57 = vpop.permute.xlu1 %9435  ;;  %v8827_v37 = vunpack.i.l.bf16 %v10452_v4  ;;  %v9734_v22 = vpack.i.bf16 %v8185_v30, %v8184_v42  ;;  %v11097_v63 = vsel %vm326_vm0, %v9986_v51, %v8808_v56  ;;  %v9729_v2 = vpack.i.bf16 %v8183_v39, %v8182_v6  ;;  %v9988_v30 = vld [vmem:[%s10133_s10 + $0x68] sm:$0xff]  ;;  %v8187_v39 = vld [vmem:[%s10133_s10 + $0x51] sm:$0xff] }
 0x18d   : > { %16984 = vst [vmem:[#allocation102_spill] sm:$0xff] %v11075_v57  ;;  %v11086_v45 = vpop.permute.xlu0 %9430  ;;  %v11090_v57 = vsel %vm326_vm0, %v9985_v62, %v8807_v55  ;;  %v8188_v55 = vld [vmem:[%s10133_s10 + $0x61] sm:$0xff]  ;;  %v8189_v62 = vld [vmem:[%s10133_s10 + $0x69] sm:$0xff]  ;;  %v11110_v51 = vsel %vm326_vm0, %v9988_v30, %v8803_v31  ;;  %v8837_v56 = vunpack.i.l.bf16 %v10460_v9 }
 0x18e   : > { %16985 = vst [vmem:[#allocation103_spill] sm:$0xff] %v11086_v45  ;;  %9725 = vrot.lane.b32.xlu1 %v9724_v7, %s10065_s22  ;;  %v8828_v45 = vunpack.i.h.bf16 %v10452_v4  ;;  %v9987_v7 = vld [vmem:[%s10133_s10 + $0x60] sm:$0xff]  ;;  %v8823_v4 = vunpack.i.h.bf16 %v10454_v5  ;;  %v8186_v6 = vld [vmem:[%s10133_s10 + $0x49] sm:$0xff] }
 0x18f   : > { %9720 = vrot.lane.b32.xlu0 %v9719_v28, %s10065_s22  ;;  %v11106_v42 = vsel %vm326_vm0, %v9987_v7, %v8802_v50  ;;  %v11120_v50 = vsel %vm326_vm0, %v9989_v33, %v8817_v53  ;;  %v9990_v7 = vld [vmem:[%s10133_s10 + $0xb0] sm:$0xff]  ;;  %v11135_v33 = vsel %vm326_vm0, %v9992_v25, %v8813_v48  ;;  %v9993_v53 = vld [vmem:[%s10133_s10 + $0xd8] sm:$0xff]  ;;  %v9994_v9 = vld [vmem:[%s10133_s10 + $0xe0] sm:$0xff]  ;;  %v8833_v48 = vunpack.i.h.bf16 %v10462_v12 }
 0x190   : > { %v11114_v28 = vpop.permute.xlu1 %9445  ;;  %v11124_v31 = vsel %vm326_vm0, %v9990_v7, %v8818_v61  ;;  %v9991_v30 = vld [vmem:[%s10133_s10 + $0x90] sm:$0xff]  ;;  %v11139_v61 = vsel %vm326_vm0, %v9993_v53, %v8827_v37  ;;  %v8832_v7 = vunpack.i.l.bf16 %v10462_v12  ;;  %v9739_v37 = vpack.i.bf16 %v8187_v39, %v8186_v6  ;;  %v8190_v12 = vld [vmem:[%s10133_s10 + $0x79] sm:$0xff] }
 0x191   : > { %16986 = vst [vmem:[#allocation104_spill] sm:$0xff] %v11114_v28  ;;  %v11128_v5 = vsel %vm326_vm0, %v9991_v30, %v8812_v60  ;;  %v11131_v28 = vpop.permute.xlu0 %9440  ;;  %v9744_v60 = vpack.i.bf16 %v8189_v62, %v8188_v55  ;;  %v11145_v30 = vsel %vm326_vm0, %v9994_v9, %v8828_v45  ;;  %v8192_v53 = vld [vmem:[%s10133_s10 + $0x91] sm:$0xff]  ;;  %v9997_v45 = vld [vmem:[%s10133_s10 + $0x108] sm:$0xff]  ;;  %v8848_v9 = vunpack.i.h.bf16 %v10468_v3 }
 0x192   : > { %16987 = vst [vmem:[#allocation105_spill] sm:$0xff] %v11131_v28  ;;  %9735 = vrot.lane.b32.xlu1 %v9734_v22, %s10065_s22  ;;  %v9995_v28 = vld [vmem:[%s10133_s10 + $0xc0] sm:$0xff]  ;;  %v9996_v22 = vld [vmem:[%s10133_s10 + $0xc8] sm:$0xff]  ;;  %v11161_v62 = vsel %vm326_vm0, %v9997_v45, %v8837_v56  ;;  %v9998_v6 = vld [vmem:[%s10133_s10 + $0x110] sm:$0xff]  ;;  %v8857_v56 = vunpack.i.l.bf16 %v10476_v10 }
 0x193   : > { %v11149_v25 = vsel %vm326_vm0, %v9995_v28, %v8822_v43  ;;  %9730 = vrot.lane.b32.xlu0 %v9729_v2, %s10065_s22  ;;  %v11157_v55 = vsel %vm326_vm0, %v9996_v22, %v8823_v4  ;;  %v8847_v43 = vunpack.i.l.bf16 %v10468_v3  ;;  %v8191_v2 = vld [vmem:[%s10133_s10 + $0x81] sm:$0xff]  ;;  %v11171_v39 = vsel %vm326_vm0, %v9998_v6, %v8838_v44  ;;  %v9999_v3 = vld [vmem:[%s10133_s10 + $0xf0] sm:$0xff]  ;;  %v10000_v6 = vld [vmem:[%s10133_s10 + $0xf8] sm:$0xff] }
 0x194   : > { %v11165_v28 = vpop.permute.xlu1 %9455  ;;  %v8843_v4 = vunpack.i.h.bf16 %v10470_v11  ;;  %v8842_v22 = vunpack.i.l.bf16 %v10470_v11  ;;  %v8852_v44 = vunpack.i.l.bf16 %v10478_v17  ;;  %v9754_v11 = vpack.i.bf16 %v8193_v36, %v8192_v53  ;;  %v10002_v53 = vld [vmem:[%s10133_s10 + $0x140] sm:$0xff] }
 0x195   : > { %16988 = vst [vmem:[#allocation106_spill] sm:$0xff] %v11165_v28  ;;  %v11176_v45 = vpop.permute.xlu0 %9450  ;;  %v11180_v28 = vsel %vm326_vm0, %v9999_v3, %v8832_v7  ;;  %v11187_v26 = vsel %vm326_vm0, %v10000_v6, %v8833_v48  ;;  %v8867_v7 = vunpack.i.l.bf16 %v10484_v16  ;;  %v9749_v10 = vpack.i.bf16 %v8191_v2, %v8190_v12  ;;  %v8196_v3 = vld [vmem:[%s10133_s10 + $0xc1] sm:$0xff]  ;;  %v8195_v12 = vld [vmem:[%s10133_s10 + $0xb1] sm:$0xff] }
 0x196   : > { %16989 = vst [vmem:[#allocation107_spill] sm:$0xff] %v11176_v45  ;;  %9745 = vrot.lane.b32.xlu1 %v9744_v60, %s10066_s23  ;;  %v8853_v45 = vunpack.i.h.bf16 %v10478_v17  ;;  %v10001_v60 = vld [vmem:[%s10133_s10 + $0x138] sm:$0xff]  ;;  %v11200_v48 = vsel %vm326_vm0, %v10002_v53, %v8848_v9  ;;  %v8868_v17 = vunpack.i.h.bf16 %v10484_v16  ;;  %v8862_v6 = vunpack.i.l.bf16 %v10486_v23  ;;  %v10003_v2 = vld [vmem:[%s10133_s10 + $0x120] sm:$0xff]  ;;  %v10005_v9 = vld [vmem:[%s10133_s10 + $0x168] sm:$0xff] }
 0x197   : > { %9740 = vrot.lane.b32.xlu0 %v9739_v37, %s10066_s23  ;;  %v11196_v36 = vsel %vm326_vm0, %v10001_v60, %v8847_v43  ;;  %16991 = vst [vmem:[#allocation109_spill] sm:$0xff] %v11200_v48  ;;  %v8194_v37 = vld [vmem:[%s10133_s10 + $0xa9] sm:$0xff]  ;;  %v11210_v0 = vsel %vm326_vm0, %v10003_v2, %v8842_v22  ;;  %v11218_v53 = vsel %vm326_vm0, %v10005_v9, %v8857_v56  ;;  %v8863_v16 = vunpack.i.h.bf16 %v10486_v23 }
 0x198   : > { %16990 = vst [vmem:[#allocation108_spill] sm:$0xff] %v11196_v36  ;;  %v11204_v8 = vpop.permute.xlu1 %9465  ;;  %v10004_v43 = vld [vmem:[%s10133_s10 + $0x128] sm:$0xff]  ;;  %v10006_v48 = vld [vmem:[%s10133_s10 + $0x170] sm:$0xff]  ;;  %v9764_v56 = vpack.i.bf16 %v8197_v24, %v8196_v3  ;;  %v11239_v9 = vsel %vm2941_vm1, %v11071_v20, %v8867_v7  ;;  %v11251_v24 = vsel %vm2941_vm1, %v11050_v15, %v8862_v6  ;;  %v8872_v20 = vunpack.i.l.bf16 %v10496_v14 }
 0x199   : > { %16992 = vst [vmem:[#allocation110_spill] sm:$0xff] %v11204_v8  ;;  %v11214_v60 = vsel %vm326_vm0, %v10004_v43, %v8843_v4  ;;  %v11221_v8 = vpop.permute.xlu0 %9460  ;;  %v11225_v36 = vsel %vm326_vm0, %v10006_v48, %v8858_v27  ;;  %v10007_v22 = vld [vmem:[%s10133_s10 + $0x150] sm:$0xff]  ;;  %v8877_v4 = vunpack.i.l.bf16 %v10494_v13  ;;  %v10008_v43 = vld [vmem:[%s10133_s10 + $0x158] sm:$0xff]  ;;  %v8878_v27 = vunpack.i.h.bf16 %v10494_v13  ;;  %v8199_v3 = vld [vmem:[%s10133_s10 + $0xe1] sm:$0xff] }
 0x19a   : > { %v11229_v2 = vsel %vm326_vm0, %v10007_v22, %v8852_v44  ;;  %9755 = vrot.lane.b32.xlu1 %v9754_v11, %s10066_s23  ;;  %v11235_v23 = vsel %vm326_vm0, %v10008_v43, %v8853_v45  ;;  %v9759_v44 = vpack.i.bf16 %v8195_v12, %v8194_v37  ;;  %v8200_v48 = vld [vmem:[%s10133_s10 + $0xf1] sm:$0xff]  ;;  %v8201_v22 = vld [vmem:[%s10133_s10 + $0xf9] sm:$0xff]  ;;  %v11247_v11 = vsel %vm2941_vm1, %v11081_v54, %v8868_v17 }
 0x19b   : > { %9750 = vrot.lane.b32.xlu0 %v9749_v10, %s10066_s23  ;;  %v8873_v45 = vunpack.i.h.bf16 %v10496_v14  ;;  %v8198_v13 = vld [vmem:[%s10133_s10 + $0xd9] sm:$0xff]  ;;  %v11261_v10 = vsel %vm2941_vm1, %v11055_v38, %v8863_v16  ;;  %v8888_v54 = vunpack.i.h.bf16 %v10502_v35  ;;  %v8887_v17 = vunpack.i.l.bf16 %v10502_v35 }
 0x19c   : > { %v11255_v7 = vpop.permute.xlu1 %9475  ;;  %v8882_v15 = vunpack.i.l.bf16 %v10504_v19  ;;  %v11270_v14 = vsel %vm2941_vm1, %v11059_v18, %v8877_v4  ;;  %v8883_v37 = vunpack.i.h.bf16 %v10504_v19  ;;  %v8897_v12 = vunpack.i.l.bf16 %v10509_v34  ;;  %v8204_v4 = vld [vmem:[%s10133_s10 + $0x121] sm:$0xff]  ;;  %v8205_v19 = vld [vmem:[%s10133_s10 + $0x129] sm:$0xff] }
 0x19d   : > { %v11266_v6 = vpop.permute.xlu0 %9470  ;;  %v9774_v38 = vpack.i.bf16 %v8201_v22, %v8200_v48  ;;  %v11277_v35 = vsel %vm2941_vm1, %v11067_v32, %v8878_v27  ;;  %v8898_v16 = vunpack.i.h.bf16 %v10509_v34  ;;  %v8892_v43 = vunpack.i.l.bf16 %v10511_v41  ;;  %v8202_v48 = vld [vmem:[%s10133_s10 + $0x109] sm:$0xff]  ;;  %v8203_v22 = vld [vmem:[%s10133_s10 + $0x111] sm:$0xff] }
 0x19e   : > { %16993 = vst [vmem:[#allocation111_spill] sm:$0xff] %v11266_v6  ;;  %9765 = vrot.lane.b32.xlu1 %v9764_v56, %s10066_s23  ;;  %v9769_v18 = vpack.i.bf16 %v8199_v3, %v8198_v13  ;;  %v11286_v6 = vsel %vm2941_vm1, %v11040_v29, %v8872_v20  ;;  %v11290_v56 = vsel %vm2941_vm1, %v11047_v49, %v8873_v45  ;;  %v8893_v32 = vunpack.i.h.bf16 %v10511_v41  ;;  %v8208_v3 = vld [vmem:[%s10133_s10 + $0x151] sm:$0xff] }
 0x19f   : > { %9760 = vrot.lane.b32.xlu0 %v9759_v44, %s10066_s23  ;;  %v8907_v27 = vunpack.i.l.bf16 %v10517_v40  ;;  %v11300_v44 = vsel %vm2941_vm1, %v11090_v57, %v8887_v17  ;;  %v11304_v29 = vsel %vm2941_vm1, %v11097_v63, %v8888_v54  ;;  %v11308_v49 = vsel %vm2941_vm1, %v11106_v42, %v8882_v15  ;;  %v8209_v54 = vld [vmem:[%s10133_s10 + $0x159] sm:$0xff] }
 0x1a0   : > { %v11294_v34 = vpop.permute.xlu1 %9485  ;;  %v8908_v41 = vunpack.i.h.bf16 %v10517_v40  ;;  %v11315_v20 = vsel %vm2941_vm1, %v11110_v51, %v8883_v37  ;;  %v11319_v57 = vsel %vm2941_vm1, %v11120_v50, %v8897_v12  ;;  %v8902_v63 = vunpack.i.l.bf16 %v10519_v47  ;;  %v8207_v12 = vld [vmem:[%s10133_s10 + $0x141] sm:$0xff] }
 0x1a1   : > { %v11311_v45 = vpop.permute.xlu0 %9480  ;;  %v9784_v42 = vpack.i.bf16 %v8205_v19, %v8204_v4  ;;  %v11325_v40 = vsel %vm2941_vm1, %v11124_v31, %v8898_v16  ;;  %v11329_v13 = vsel %vm2941_vm1, %v11128_v5, %v8892_v43  ;;  %v8903_v51 = vunpack.i.h.bf16 %v10519_v47  ;;  %v8206_v47 = vld [vmem:[%s10133_s10 + $0x139] sm:$0xff] }
 0x1a2   : > { %9775 = vrot.lane.b32.xlu1 %v9774_v38, %s10066_s23  ;;  %v9779_v50 = vpack.i.bf16 %v8203_v22, %v8202_v48  ;;  %v11337_v17 = vsel %vm2941_vm1, %v11135_v33, %v8893_v32  ;;  %v11341_v31 = vsel %vm2941_vm1, %v11139_v61, %v8907_v27  ;;  %v8918_v15 = vunpack.i.h.bf16 %v10525_v46  ;;  %v8212_v27 = vld [vmem:[%s10133_s10 + $0x181] sm:$0xff] }
 0x1a3   : > { %9770 = vrot.lane.b32.xlu0 %v9769_v18, %s10066_s23  ;;  %v8917_v5 = vunpack.i.l.bf16 %v10525_v46  ;;  %v11351_v38 = vsel %vm2941_vm1, %v11145_v30, %v8908_v41  ;;  %v8913_v33 = vunpack.i.h.bf16 %v10527_v21  ;;  %v8912_v16 = vunpack.i.l.bf16 %v10527_v21 }
 0x1a4   : > { %v11345_v37 = vpop.permute.xlu1 %9495  ;;  %v8927_v61 = vunpack.i.l.bf16 %v10533_v52  ;;  %v11360_v46 = vsel %vm2941_vm1, %v11149_v25, %v8902_v63  ;;  %v8928_v18 = vunpack.i.h.bf16 %v10533_v52  ;;  %v8922_v4 = vunpack.i.l.bf16 %v10535_v59  ;;  %v8213_v52 = vld [vmem:[%s10133_s10 + $0x189] sm:$0xff] }
 0x1a5   : > { %16994 = vst [vmem:[#allocation112_spill] sm:$0xff] %v11345_v37  ;;  %v11356_v43 = vpop.permute.xlu0 %9490  ;;  %v9794_v30 = vpack.i.bf16 %v8209_v54, %v8208_v3  ;;  %v11367_v21 = vsel %vm2941_vm1, %v11157_v55, %v8903_v51  ;;  %v8923_v19 = vunpack.i.h.bf16 %v10535_v59  ;;  %v8937_v32 = vunpack.i.l.bf16 %v10541_v58  ;;  %v8210_v63 = vld [vmem:[%s10133_s10 + $0x169] sm:$0xff] }
 0x1a6   : > { %16995 = vst [vmem:[#allocation113_spill] sm:$0xff] %v11356_v43  ;;  %9785 = vrot.lane.b32.xlu1 %v9784_v42, %s10066_s23  ;;  %v9789_v25 = vpack.i.bf16 %v8207_v12, %v8206_v47  ;;  %v11376_v48 = vsel %vm2941_vm1, %v11161_v62, %v8917_v5  ;;  %v11380_v22 = vsel %vm2941_vm1, %v11171_v39, %v8918_v15  ;;  %v8938_v55 = vunpack.i.h.bf16 %v10541_v58  ;;  %v8211_v42 = vld [vmem:[%s10133_s10 + $0x171] sm:$0xff]  ;;  %v16997_v39 = vld [vmem:[#allocation108_spill] sm:$0xff]  ;;  %v16999_v54 = vld [vmem:[#allocation109_spill] sm:$0xff] }
 0x1a7   : > { %9780 = vrot.lane.b32.xlu0 %v9779_v50, %s10066_s23  ;;  %v8932_v59 = vunpack.i.l.bf16 %v10543_v1  ;;  %v11390_v51 = vsel %vm2941_vm1, %v11180_v28, %v8912_v16  ;;  %v11394_v62 = vsel %vm2941_vm1, %v11187_v26, %v8913_v33  ;;  %v11398_v50 = vsel %vm2941_vm1, %v16997_v39, %v8927_v61  ;;  %v17000_v5 = vld [vmem:[#allocation4_spill] sm:$0xff]  ;;  %v8216_v12 = vld [vmem:[%s10133_s10 + $0x1b1] sm:$0xff] }
 0x1a8   : > { %v11384_v41 = vpop.permute.xlu1 %9505  ;;  %v8933_v58 = vunpack.i.h.bf16 %v10543_v1  ;;  %v11405_v15 = vsel %vm2941_vm1, %v16999_v54, %v8928_v18  ;;  %v11409_v28 = vsel %vm2941_vm1, %v11210_v0, %v8922_v4  ;;  %v8947_v47 = vunpack.i.l.bf16 %v17000_v5  ;;  %v8217_v61 = vld [vmem:[%s10133_s10 + $0x1b9] sm:$0xff]  ;;  %v3404_v4 = vld [vmem:[%s16669_s2 + $0x8] sm:$0xff] }
 0x1a9   : > { %16996 = vst [vmem:[#allocation114_spill] sm:$0xff] %v11384_v41  ;;  %v11401_v3 = vpop.permute.xlu0 %9500  ;;  %v9804_v26 = vpack.i.bf16 %v8213_v52, %v8212_v27  ;;  %v11416_v1 = vsel %vm2941_vm1, %v11214_v60, %v8923_v19  ;;  %v11420_v33 = vsel %vm2941_vm1, %v11218_v53, %v8937_v32  ;;  %v8948_v16 = vunpack.i.h.bf16 %v17000_v5  ;;  %v3403_v18 = vld [vmem:[%s16669_s2] sm:$0xff]  ;;  %v17005_v54 = vld [vmem:[#allocation7_spill] sm:$0xff]  ;;  %v8250_v41 = vld [vmem:[%s10133_s10 + $0x4b] sm:$0xff] }
 0x1aa   : > { %16998 = vst [vmem:[#allocation108_spill] sm:$0xff] %v11401_v3  ;;  %9795 = vrot.lane.b32.xlu1 %v9794_v30, %s10066_s23  ;;  %v9799_v0 = vpack.i.bf16 %v8211_v42, %v8210_v63  ;;  %v11433_v60 = vsel %vm2941_vm1, %v11225_v36, %v8938_v55  ;;  %v11437_v53 = vsel %vm2941_vm1, %v11229_v2, %v8932_v59  ;;  %v17001_v30 = vld [vmem:[#allocation5_spill] sm:$0xff]  ;;  %v17003_v36 = vld [vmem:[#allocation6_spill] sm:$0xff]  ;;  %v8953_v5 = vunpack.i.h.bf16 %v17005_v54 }
 0x1ab   : > { %9790 = vrot.lane.b32.xlu0 %v9789_v25, %s10066_s23  ;;  %v8942_v19 = vunpack.i.l.bf16 %v17001_v30  ;;  %v8214_v25 = vld [vmem:[%s10133_s10 + $0x199] sm:$0xff]  ;;  %v8215_v27 = vld [vmem:[%s10133_s10 + $0x1a1] sm:$0xff]  ;;  %v8684_v52 = vpack.c.bf16 %v3404_v4, %v3403_v18  ;;  %v11446_v63 = vsel %vm2941_vm1, %v11235_v23, %v8933_v58  ;;  %v8943_v42 = vunpack.i.h.bf16 %v17001_v30 }
 0x1ac   : > { %v11440_v32 = vpop.permute.xlu1 %9515  ;;  %v8958_v55 = vunpack.i.h.bf16 %v17003_v36  ;;  %v8957_v2 = vunpack.i.l.bf16 %v17003_v36  ;;  %v11455_v39 = vsel %vm2974_vm2, %v11239_v9, %v8947_v47  ;;  %v8952_v18 = vunpack.i.l.bf16 %v17005_v54  ;;  %v8220_v58 = vld [vmem:[%s10133_s10 + $0x62] sm:$0xff]  ;;  %v8251_v43 = vld [vmem:[%s10133_s10 + $0x53] sm:$0xff] }
 0x1ad   : > { %17002 = vst [vmem:[#allocation109_spill] sm:$0xff] %v11440_v32  ;;  %v11451_v59 = vpop.permute.xlu0 %9510  ;;  %v9814_v23 = vpack.i.bf16 %v8217_v61, %v8216_v12  ;;  %8685 = vmatprep.subr.bf16.mxu0 %v8684_v52  ;;  %v11463_v4 = vsel %vm2974_vm2, %v11247_v11, %v8948_v16  ;;  %v17006_v30 = vld [vmem:[#allocation8_spill] sm:$0xff]  ;;  %v9809_v47 = vpack.i.bf16 %v8215_v27, %v8214_v25  ;;  %v3406_v12 = vld [vmem:[%s16669_s2 + $0x18] sm:$0xff]  ;;  %v17007_v16 = vld [vmem:[#allocation9_spill] sm:$0xff] }
 0x1ae   : > { %17004 = vst [vmem:[#allocation4_spill] sm:$0xff] %v11451_v59  ;;  %9805 = vrot.lane.b32.xlu1 %v9804_v26, %s10066_s23  ;;  %v8968_v36 = vunpack.i.h.bf16 %v17006_v30  ;;  %v8967_v9 = vunpack.i.l.bf16 %v17006_v30  ;;  %v8221_v59 = vld [vmem:[%s10133_s10 + $0x6a] sm:$0xff]  ;;  %8687 = vmatpush3.bf16.msra.mxu0 %v8684_v52  ;;  %v11477_v11 = vsel %vm2974_vm2, %v11251_v24, %v8942_v19  ;;  %v8963_v61 = vunpack.i.h.bf16 %v17007_v16  ;;  %v8219_v52 = vld [vmem:[%s10133_s10 + $0x52] sm:$0xff] }
 0x1af   : > { %9800 = vrot.lane.b32.xlu0 %v9799_v0, %s10066_s23  ;;  %v3405_v26 = vld [vmem:[%s16669_s2 + $0x10] sm:$0xff]  ;;  %v8962_v0 = vunpack.i.l.bf16 %v17007_v16  ;;  %v11487_v30 = vsel %vm2974_vm2, %v11261_v10, %v8943_v42  ;;  %v11491_v32 = vsel %vm2974_vm2, %v11270_v14, %v8957_v2  ;;  %v11495_v24 = vsel %vm2974_vm2, %v11277_v35, %v8958_v55  ;;  %v17011_v2 = vld [vmem:[#allocation11_spill] sm:$0xff] }
 0x1b0   : > { %v11481_v25 = vpop.permute.xlu1 %9525  ;;  %v8218_v27 = vld [vmem:[%s10133_s10 + $0x4a] sm:$0xff]  ;;  %v8688_v54 = vpack.c.bf16 %v3406_v12, %v3405_v26  ;;  %v11502_v26 = vsel %vm2974_vm2, %v11286_v6, %v8952_v18  ;;  %v11506_v10 = vsel %vm2974_vm2, %v11290_v56, %v8953_v5  ;;  %v9824_v42 = vpack.i.bf16 %v8221_v59, %v8220_v58  ;;  %v8224_v35 = vld [vmem:[%s10133_s10 + $0x92] sm:$0xff]  ;;  %v8225_v18 = vld [vmem:[%s10133_s10 + $0x9a] sm:$0xff] }
 0x1b1   : > { %17008 = vst [vmem:[#allocation5_spill] sm:$0xff] %v11481_v25  ;;  %v17009_v19 = vld [vmem:[#allocation10_spill] sm:$0xff]  ;;  %v11498_v3 = vpop.permute.xlu0 %9520  ;;  %v11513_v55 = vsel %vm2974_vm2, %v11300_v44, %v8967_v9  ;;  %v11517_v6 = vsel %vm2974_vm2, %v11304_v29, %v8968_v36  ;;  %v8972_v56 = vunpack.i.l.bf16 %v17011_v2  ;;  %v9819_v5 = vpack.i.bf16 %v8219_v52, %v8218_v27  ;;  %v3407_v59 = vld [vmem:[%s16669_s2 + $0x20] sm:$0xff]  ;;  %v3408_v44 = vld [vmem:[%s16669_s2 + $0x28] sm:$0xff] }
 0x1b2   : > { %v8977_v16 = vunpack.i.l.bf16 %v17009_v19  ;;  %17010 = vst [vmem:[#allocation6_spill] sm:$0xff] %v11498_v3  ;;  %v8978_v14 = vunpack.i.h.bf16 %v17009_v19  ;;  %9815 = vrot.lane.b32.xlu1 %v9814_v23, %s10066_s23  ;;  %8689 = vmatprep.subr.bf16.mxu0 %v8688_v54  ;;  %v11530_v23 = vsel %vm2974_vm2, %v11308_v49, %v8962_v0  ;;  %v11534_v29 = vsel %vm2974_vm2, %v11315_v20, %v8963_v61  ;;  %v8222_v9 = vld [vmem:[%s10133_s10 + $0x7a] sm:$0xff]  ;;  %v17014_v0 = vld [vmem:[#allocation13_spill] sm:$0xff] }
 0x1b3   : > { %9810 = vrot.lane.b32.xlu0 %v9809_v47, %s10066_s23  ;;  %8691 = vmatpush3.bf16.msra.mxu0 %v8688_v54  ;;  %v8973_v58 = vunpack.i.h.bf16 %v17011_v2  ;;  %v8223_v47 = vld [vmem:[%s10133_s10 + $0x82] sm:$0xff]  ;;  %v8692_v12 = vpack.c.bf16 %v3408_v44, %v3407_v59  ;;  %v8982_v19 = vunpack.i.l.bf16 %v17014_v0  ;;  %v8983_v2 = vunpack.i.h.bf16 %v17014_v0  ;;  %v17016_v59 = vld [vmem:[#allocation14_spill] sm:$0xff]  ;;  %s10067_s23 = smov 112  }
 0x1b4   : > { %v11537_v36 = vpop.permute.xlu1 %9535  ;;  %v11543_v27 = vsel %vm2974_vm2, %v11319_v57, %v8977_v16  ;;  %v17013_v52 = vld [vmem:[#allocation12_spill] sm:$0xff]  ;;  %v11552_v61 = vsel %vm2974_vm2, %v11325_v40, %v8978_v14  ;;  %v8997_v44 = vunpack.i.l.bf16 %v17016_v59  ;;  %v9834_v57 = vpack.i.bf16 %v8225_v18, %v8224_v35  ;;  %v17017_v40 = vld [vmem:[#allocation15_spill] sm:$0xff] }
 0x1b5   : > { %17012 = vst [vmem:[#allocation7_spill] sm:$0xff] %v11537_v36  ;;  %v8988_v54 = vunpack.i.h.bf16 %v17013_v52  ;;  %v8987_v49 = vunpack.i.l.bf16 %v17013_v52  ;;  %v11548_v20 = vpop.permute.xlu0 %9530  ;;  %v8228_v16 = vld [vmem:[%s10133_s10 + $0xc2] sm:$0xff]  ;;  %8693 = vmatprep.subr.bf16.mxu0 %v8692_v12  ;;  %v11560_v52 = vsel %vm2974_vm2, %v11329_v13, %v8972_v56  ;;  %v8992_v14 = vunpack.i.l.bf16 %v17017_v40  ;;  %v8229_v36 = vld [vmem:[%s10133_s10 + $0xca] sm:$0xff]  ;;  %v3410_v35 = vld [vmem:[%s16669_s2 + $0x38] sm:$0xff] }
 0x1b6   : > { %17015 = vst [vmem:[#allocation8_spill] sm:$0xff] %v11548_v20  ;;  %9825 = vrot.lane.b32.xlu1 %v9824_v42, %s10067_s23  ;;  %v8998_v20 = vunpack.i.h.bf16 %v17016_v59  ;;  %v9829_v0 = vpack.i.bf16 %v8223_v47, %v8222_v9  ;;  %v3409_v42 = vld [vmem:[%s16669_s2 + $0x30] sm:$0xff]  ;;  %v11574_v13 = vsel %vm2974_vm2, %v11337_v17, %v8973_v58  ;;  %v8993_v56 = vunpack.i.h.bf16 %v17017_v40  ;;  %v17018_v18 = vld [vmem:[#allocation16_spill] sm:$0xff] }
 0x1b7   : > { %9820 = vrot.lane.b32.xlu0 %v9819_v5, %s10067_s23  ;;  %8695 = vmatpush3.bf16.msra.mxu0 %v8692_v12  ;;  %v9007_v5 = vunpack.i.l.bf16 %v17018_v18  ;;  %v8226_v47 = vld [vmem:[%s10133_s10 + $0xaa] sm:$0xff]  ;;  %v8227_v12 = vld [vmem:[%s10133_s10 + $0xb2] sm:$0xff]  ;;  %v8696_v59 = vpack.c.bf16 %v3410_v35, %v3409_v42  ;;  %v11584_v3 = vsel %vm2974_vm2, %v11341_v31, %v8987_v49  ;;  %v11588_v25 = vsel %vm2974_vm2, %v11351_v38, %v8988_v54  ;;  %v8231_v35 = vld [vmem:[%s10133_s10 + $0xe2] sm:$0xff] }
 0x1b8   : > { %v11578_v9 = vpop.permute.xlu1 %9545  ;;  %v11592_v17 = vsel %vm2974_vm2, %v11360_v46, %v8982_v19  ;;  %v9008_v58 = vunpack.i.h.bf16 %v17018_v18  ;;  %v11599_v42 = vsel %vm2974_vm2, %v11367_v21, %v8983_v2  ;;  %v11603_v31 = vsel %vm2974_vm2, %v11376_v48, %v8997_v44  ;;  %v17021_v49 = vld [vmem:[#allocation17_spill] sm:$0xff]  ;;  %v8232_v46 = vld [vmem:[%s10133_s10 + $0xf2] sm:$0xff]  ;;  %v8233_v44 = vld [vmem:[%s10133_s10 + $0xfa] sm:$0xff] }
 0x1b9   : > { %17019 = vst [vmem:[#allocation9_spill] sm:$0xff] %v11578_v9  ;;  %v11595_v40 = vpop.permute.xlu0 %9540  ;;  %v9002_v38 = vunpack.i.l.bf16 %v17021_v49  ;;  %v9844_v54 = vpack.i.bf16 %v8229_v36, %v8228_v16  ;;  %8697 = vmatprep.subr.bf16.mxu0 %v8696_v59  ;;  %v11610_v19 = vsel %vm2974_vm2, %v11380_v22, %v8998_v20  ;;  %v11614_v21 = vsel %vm2974_vm2, %v11390_v51, %v8992_v14  ;;  %v3411_v36 = vld [vmem:[%s16669_s2 + $0x40] sm:$0xff]  ;;  %v3412_v22 = vld [vmem:[%s16669_s2 + $0x48] sm:$0xff] }
 0x1ba   : > { %17020 = vst [vmem:[#allocation10_spill] sm:$0xff] %v11595_v40  ;;  %9835 = vrot.lane.b32.xlu1 %v9834_v57, %s10067_s23  ;;  %v9003_v48 = vunpack.i.h.bf16 %v17021_v49  ;;  %v9839_v2 = vpack.i.bf16 %v8227_v12, %v8226_v47  ;;  %v11627_v20 = vsel %vm2974_vm2, %v11394_v62, %v8993_v56  ;;  %v11631_v51 = vsel %vm2974_vm2, %v11398_v50, %v9007_v5  ;;  %v17022_v57 = vld [vmem:[#allocation18_spill] sm:$0xff]  ;;  %v17024_v62 = vld [vmem:[#allocation19_spill] sm:$0xff]  ;;  %v17026_v49 = vld [vmem:[#allocation20_spill] sm:$0xff] }
 0x1bb   : > { %9830 = vrot.lane.b32.xlu0 %v9829_v0, %s10067_s23  ;;  %8699 = vmatpush3.bf16.msra.mxu0 %v8696_v59  ;;  %v9017_v16 = vunpack.i.l.bf16 %v17022_v57  ;;  %v8230_v0 = vld [vmem:[%s10133_s10 + $0xda] sm:$0xff]  ;;  %v8700_v18 = vpack.c.bf16 %v3412_v22, %v3411_v36  ;;  %v11640_v47 = vsel %vm2974_vm2, %v11405_v15, %v9008_v58  ;;  %v9018_v12 = vunpack.i.h.bf16 %v17022_v57  ;;  %v8236_v58 = vld [vmem:[%s10133_s10 + $0x122] sm:$0xff] }
 0x1bc   : > { %v11634_v14 = vpop.permute.xlu1 %9555  ;;  %v9013_v56 = vunpack.i.h.bf16 %v17024_v62  ;;  %v9012_v50 = vunpack.i.l.bf16 %v17024_v62  ;;  %v11649_v59 = vsel %vm2974_vm2, %v11409_v28, %v9002_v38  ;;  %v9027_v36 = vunpack.i.l.bf16 %v17026_v49  ;;  %v17027_v57 = vld [vmem:[#allocation21_spill] sm:$0xff] }
 0x1bd   : > { %17023 = vst [vmem:[#allocation11_spill] sm:$0xff] %v11634_v14  ;;  %v11645_v5 = vpop.permute.xlu0 %9550  ;;  %v9028_v14 = vunpack.i.h.bf16 %v17026_v49  ;;  %v9854_v15 = vpack.i.bf16 %v8233_v44, %v8232_v46  ;;  %8701 = vmatprep.subr.bf16.mxu0 %v8700_v18  ;;  %v11657_v22 = vsel %vm2974_vm2, %v11416_v1, %v9003_v48  ;;  %v9023_v62 = vunpack.i.h.bf16 %v17027_v57  ;;  %v3414_v46 = vld [vmem:[%s16669_s2 + $0x58] sm:$0xff]  ;;  %v17028_v48 = vld [vmem:[#allocation22_spill] sm:$0xff] }
 0x1be   : > { %17025 = vst [vmem:[#allocation12_spill] sm:$0xff] %v11645_v5  ;;  %9845 = vrot.lane.b32.xlu1 %v9844_v54, %s10067_s23  ;;  %v9022_v28 = vunpack.i.l.bf16 %v17027_v57  ;;  %v9849_v38 = vpack.i.bf16 %v8231_v35, %v8230_v0  ;;  %v8237_v5 = vld [vmem:[%s10133_s10 + $0x12a] sm:$0xff]  ;;  %v11671_v1 = vsel %vm2974_vm2, %v11420_v33, %v9017_v16  ;;  %v9038_v44 = vunpack.i.h.bf16 %v17028_v48  ;;  %v17030_v16 = vld [vmem:[#allocation23_spill] sm:$0xff] }
 0x1bf   : > { %9840 = vrot.lane.b32.xlu0 %v9839_v2, %s10067_s23  ;;  %8703 = vmatpush3.bf16.msra.mxu0 %v8700_v18  ;;  %v3413_v54 = vld [vmem:[%s16669_s2 + $0x50] sm:$0xff]  ;;  %v9037_v2 = vunpack.i.l.bf16 %v17028_v48  ;;  %v11681_v57 = vsel %vm2974_vm2, %v11433_v60, %v9018_v12  ;;  %v11685_v40 = vsel %vm2974_vm2, %v11437_v53, %v9012_v50  ;;  %v11689_v33 = vsel %vm2974_vm2, %v11446_v63, %v9013_v56  ;;  %v17032_v50 = vld [vmem:[#allocation24_spill] sm:$0xff] }
 0x1c0   : > { %v11675_v0 = vpop.permute.xlu1 %9565  ;;  %v8234_v35 = vld [vmem:[%s10133_s10 + $0x10a] sm:$0xff]  ;;  %v8235_v18 = vld [vmem:[%s10133_s10 + $0x112] sm:$0xff]  ;;  %v8704_v49 = vpack.c.bf16 %v3414_v46, %v3413_v54  ;;  %v9032_v48 = vunpack.i.l.bf16 %v17030_v16  ;;  %v11696_v54 = vsel %vm3007_vm3, %v11455_v39, %v9027_v36  ;;  %v11700_v60 = vsel %vm3007_vm3, %v11463_v4, %v9028_v14  ;;  %v8241_v36 = vld [vmem:[%s10133_s10 + $0x15a] sm:$0xff] }
 0x1c1   : > { %17029 = vst [vmem:[#allocation13_spill] sm:$0xff] %v11675_v0  ;;  %v11692_v9 = vpop.permute.xlu0 %9560  ;;  %v9033_v53 = vunpack.i.h.bf16 %v17030_v16  ;;  %v9864_v12 = vpack.i.bf16 %v8237_v5, %v8236_v58  ;;  %v8240_v63 = vld [vmem:[%s10133_s10 + $0x152] sm:$0xff]  ;;  %v11707_v56 = vsel %vm3007_vm3, %v11477_v11, %v9022_v28  ;;  %v11711_v39 = vsel %vm3007_vm3, %v11487_v30, %v9023_v62  ;;  %v3415_v5 = vld [vmem:[%s16669_s2 + $0x60] sm:$0xff]  ;;  %v3416_v11 = vld [vmem:[%s16669_s2 + $0x68] sm:$0xff] }
 0x1c2   : > { %17031 = vst [vmem:[#allocation14_spill] sm:$0xff] %v11692_v9  ;;  %9855 = vrot.lane.b32.xlu1 %v9854_v15, %s10067_s23  ;;  %8705 = vmatprep.subr.bf16.mxu0 %v8704_v49  ;;  %v9047_v4 = vunpack.i.l.bf16 %v17032_v50  ;;  %v9859_v14 = vpack.i.bf16 %v8235_v18, %v8234_v35  ;;  %v11724_v15 = vsel %vm3007_vm3, %v11491_v32, %v9037_v2  ;;  %v9048_v58 = vunpack.i.h.bf16 %v17032_v50  ;;  %v8238_v28 = vld [vmem:[%s10133_s10 + $0x13a] sm:$0xff]  ;;  %v17034_v18 = vld [vmem:[#allocation25_spill] sm:$0xff]  ;;  %v17035_v2 = vld [vmem:[#allocation26_spill] sm:$0xff] }
 0x1c3   : > { %9850 = vrot.lane.b32.xlu0 %v9849_v38, %s10067_s23  ;;  %8707 = vmatpush3.bf16.msra.mxu0 %v8704_v49  ;;  %v11728_v30 = vsel %vm3007_vm3, %v11495_v24, %v9038_v44  ;;  %v8239_v38 = vld [vmem:[%s10133_s10 + $0x142] sm:$0xff]  ;;  %v8708_v46 = vpack.c.bf16 %v3416_v11, %v3415_v5  ;;  %v11737_v35 = vsel %vm3007_vm3, %v11502_v26, %v9032_v48  ;;  %v9043_v49 = vunpack.i.h.bf16 %v17034_v18  ;;  %v17037_v5 = vld [vmem:[#allocation27_spill] sm:$0xff] }
 0x1c4   : > { %v11731_v62 = vpop.permute.xlu1 %9575  ;;  %v9042_v32 = vunpack.i.l.bf16 %v17034_v18  ;;  %v9057_v24 = vunpack.i.l.bf16 %v17035_v2  ;;  %v11746_v16 = vsel %vm3007_vm3, %v11506_v10, %v9033_v53  ;;  %v9058_v50 = vunpack.i.h.bf16 %v17035_v2  ;;  %v8244_v48 = vld [vmem:[%s10133_s10 + $0x182] sm:$0xff]  ;;  %v8245_v2 = vld [vmem:[%s10133_s10 + $0x18a] sm:$0xff] }
 0x1c5   : > { %17033 = vst [vmem:[#allocation15_spill] sm:$0xff] %v11731_v62  ;;  %v11742_v44 = vpop.permute.xlu0 %9570  ;;  %v9052_v11 = vunpack.i.l.bf16 %v17037_v5  ;;  %v9874_v26 = vpack.i.bf16 %v8241_v36, %v8240_v63  ;;  %8709 = vmatprep.subr.bf16.mxu0 %v8708_v46  ;;  %v11754_v18 = vsel %vm3007_vm3, %v11513_v55, %v9047_v4  ;;  %v17038_v62 = vld [vmem:[#allocation28_spill] sm:$0xff]  ;;  %v9869_v53 = vpack.i.bf16 %v8239_v38, %v8238_v28  ;;  %v3418_v63 = vld [vmem:[%s16669_s2 + $0x78] sm:$0xff]  ;;  %v17039_v36 = vld [vmem:[#allocation29_spill] sm:$0xff] }
 0x1c6   : > { %17036 = vst [vmem:[#allocation16_spill] sm:$0xff] %v11742_v44  ;;  %9865 = vrot.lane.b32.xlu1 %v9864_v12, %s10067_s23  ;;  %v9053_v44 = vunpack.i.h.bf16 %v17037_v5  ;;  %v9067_v10 = vunpack.i.l.bf16 %v17038_v62  ;;  %v3417_v12 = vld [vmem:[%s16669_s2 + $0x70] sm:$0xff]  ;;  %v11768_v55 = vsel %vm3007_vm3, %v11517_v6, %v9048_v58  ;;  %v9068_v4 = vunpack.i.h.bf16 %v17038_v62 }
 0x1c7   : > { %9860 = vrot.lane.b32.xlu0 %v9859_v14, %s10067_s23  ;;  %8711 = vmatpush3.bf16.msra.mxu0 %v8708_v46  ;;  %v9062_v5 = vunpack.i.l.bf16 %v17039_v36  ;;  %v8242_v28 = vld [vmem:[%s10133_s10 + $0x16a] sm:$0xff]  ;;  %v8243_v38 = vld [vmem:[%s10133_s10 + $0x172] sm:$0xff]  ;;  %v8712_v46 = vpack.c.bf16 %v3418_v63, %v3417_v12  ;;  %v11778_v9 = vsel %vm3007_vm3, %v11530_v23, %v9042_v32  ;;  %v11782_v0 = vsel %vm3007_vm3, %v11534_v29, %v9043_v49  ;;  %v8249_v32 = vld [vmem:[%s10133_s10 + $0x1ba] sm:$0xff] }
 0x1c8   : > { %v11772_v14 = vpop.permute.xlu1 %9585  ;;  %v11786_v6 = vsel %vm3007_vm3, %v11543_v27, %v9057_v24  ;;  %v9063_v58 = vunpack.i.h.bf16 %v17039_v36  ;;  %v11793_v12 = vsel %vm3007_vm3, %v11552_v61, %v9058_v50  ;;  %v11797_v23 = vsel %vm3007_vm3, %v11560_v52, %v9052_v11  ;;  %v8248_v52 = vld [vmem:[%s10133_s10 + $0x1b2] sm:$0xff] }
 0x1c9   : > { %17040 = vst [vmem:[#allocation17_spill] sm:$0xff] %v11772_v14  ;;  %v11789_v62 = vpop.permute.xlu0 %9580  ;;  %v9884_v29 = vpack.i.bf16 %v8245_v2, %v8244_v48  ;;  %8713 = vmatprep.subr.bf16.mxu0 %v8712_v46  ;;  %v11802_v27 = vsel %vm3007_vm3, %v11574_v13, %v9053_v44  ;;  %v11806_v49 = vsel %vm3007_vm3, %v11584_v3, %v9067_v10  ;;  %v17042_v13 = vld [vmem:[#allocation30_spill] sm:$0xff]  ;;  %v8247_v48 = vld [vmem:[%s10133_s10 + $0x1a2] sm:$0xff] }
 0x1ca   : > { %17041 = vst [vmem:[#allocation18_spill] sm:$0xff] %v11789_v62  ;;  %9875 = vrot.lane.b32.xlu1 %v9874_v26, %s10067_s23  ;;  %v9879_v61 = vpack.i.bf16 %v8243_v38, %v8242_v28  ;;  %v11813_v24 = vsel %vm3007_vm3, %v11588_v25, %v9068_v4  ;;  %v11817_v50 = vsel %vm3007_vm3, %v11592_v17, %v9062_v5  ;;  %v9078_v44 = vunpack.i.h.bf16 %v17042_v13  ;;  %v8246_v26 = vld [vmem:[%s10133_s10 + $0x19a] sm:$0xff]  ;;  %v17047_v5 = vld [vmem:[#allocation33_spill] sm:$0xff] }
 0x1cb   : > { %9870 = vrot.lane.b32.xlu0 %v9869_v53, %s10067_s23  ;;  %8715 = vmatpush3.bf16.msra.mxu0 %v8712_v46  ;;  %v9077_v3 = vunpack.i.l.bf16 %v17042_v13  ;;  %v11827_v10 = vsel %vm3007_vm3, %v11599_v42, %v9063_v58  ;;  %v17044_v53 = vld [vmem:[#allocation31_spill] sm:$0xff]  ;;  %v17045_v17 = vld [vmem:[#allocation32_spill] sm:$0xff]  ;;  %v9083_v28 = vunpack.i.h.bf16 %v17047_v5  ;;  %v9082_v38 = vunpack.i.l.bf16 %v17047_v5  ;;  %v17048_v46 = vld [vmem:[#allocation34_spill] sm:$0xff] }
 0x1cc   : > { %v11821_v11 = vpop.permute.xlu1 %9595  ;;  %v9073_v25 = vunpack.i.h.bf16 %v17044_v53  ;;  %v9072_v2 = vunpack.i.l.bf16 %v17044_v53  ;;  %v9087_v63 = vunpack.i.l.bf16 %v17045_v17  ;;  %v9088_v36 = vunpack.i.h.bf16 %v17045_v17  ;;  %v17049_v53 = vld [vmem:[#allocation35_spill] sm:$0xff]  ;;  %v8252_v62 = vld [vmem:[%s10133_s10 + $0x63] sm:$0xff]  ;;  %v8253_v17 = vld [vmem:[%s10133_s10 + $0x6b] sm:$0xff] }
 0x1cd   : > { %17043 = vst [vmem:[#allocation19_spill] sm:$0xff] %v11821_v11  ;;  %v11832_v4 = vpop.permute.xlu0 %9590  ;;  %v9894_v42 = vpack.i.bf16 %v8249_v32, %v8248_v52  ;;  %v9098_v58 = vunpack.i.h.bf16 %v17048_v46  ;;  %v9097_v13 = vunpack.i.l.bf16 %v17048_v46  ;;  %v9092_v11 = vunpack.i.l.bf16 %v17049_v53  ;;  %v17050_v52 = vld [vmem:[#allocation36_spill] sm:$0xff] }
 0x1ce   : > { %17046 = vst [vmem:[#allocation20_spill] sm:$0xff] %v11832_v4  ;;  %9885 = vrot.lane.b32.xlu1 %v9884_v29, %s10067_s23  ;;  %v9889_v4 = vpack.i.bf16 %v8247_v48, %v8246_v26  ;;  %v11846_v14 = vsel %vm3007_vm3, %v11603_v31, %v9077_v3  ;;  %v11850_v5 = vsel %vm3007_vm3, %v11610_v19, %v9078_v44  ;;  %v9093_v29 = vunpack.i.h.bf16 %v17049_v53 }
 0x1cf   : > { %9880 = vrot.lane.b32.xlu0 %v9879_v61, %s10067_s23  ;;  %v9107_v32 = vunpack.i.l.bf16 %v17050_v52  ;;  %v11860_v61 = vsel %vm3007_vm3, %v11614_v21, %v9072_v2  ;;  %v11864_v31 = vsel %vm3007_vm3, %v11627_v20, %v9073_v25  ;;  %v11868_v19 = vsel %vm3007_vm3, %v11631_v51, %v9087_v63  ;;  %v8256_v25 = vld [vmem:[%s10133_s10 + $0x93] sm:$0xff]  ;;  %v8257_v2 = vld [vmem:[%s10133_s10 + $0x9b] sm:$0xff]  ;;  %v17053_v63 = vld [vmem:[#allocation37_spill] sm:$0xff] }
 0x1d0   : > { %v11854_v46 = vpop.permute.xlu1 %9605  ;;  %v9108_v44 = vunpack.i.h.bf16 %v17050_v52  ;;  %v11875_v26 = vsel %vm3007_vm3, %v11640_v47, %v9088_v36  ;;  %v11879_v21 = vsel %vm3007_vm3, %v11649_v59, %v9082_v38  ;;  %v11883_v20 = vsel %vm3007_vm3, %v11657_v22, %v9083_v28 }
 0x1d1   : > { %17051 = vst [vmem:[#allocation21_spill] sm:$0xff] %v11854_v46  ;;  %v11871_v3 = vpop.permute.xlu0 %9600  ;;  %v9904_v51 = vpack.i.bf16 %v8253_v17, %v8252_v62  ;;  %v11888_v48 = vsel %vm3007_vm3, %v11671_v1, %v9097_v13  ;;  %v11892_v47 = vsel %vm3007_vm3, %v11681_v57, %v9098_v58  ;;  %v11896_v59 = vsel %vm3007_vm3, %v11685_v40, %v9092_v11  ;;  %v8254_v40 = vld [vmem:[%s10133_s10 + $0x7b] sm:$0xff]  ;;  %v8255_v11 = vld [vmem:[%s10133_s10 + $0x83] sm:$0xff]  ;;  %v8259_v46 = vld [vmem:[%s10133_s10 + $0xb3] sm:$0xff] }
 0x1d2   : > { %17052 = vst [vmem:[#allocation22_spill] sm:$0xff] %v11871_v3  ;;  %9895 = vrot.lane.b32.xlu1 %v9894_v42, %s10067_s23  ;;  %v9899_v22 = vpack.i.bf16 %v8251_v43, %v8250_v41  ;;  %v11903_v62 = vsel %vm3007_vm3, %v11689_v33, %v9093_v29  ;;  %v11907_v1 = vsel %vm3040_vm4, %v11696_v54, %v9107_v32  ;;  %v9103_v57 = vunpack.i.h.bf16 %v17053_v63  ;;  %v17055_v41 = vld [vmem:[#allocation38_spill] sm:$0xff]  ;;  %v17056_v54 = vld [vmem:[#allocation39_spill] sm:$0xff]  ;;  %v17058_v13 = vld [vmem:[#allocation40_spill] sm:$0xff] }
 0x1d3   : > { %9890 = vrot.lane.b32.xlu0 %v9889_v4, %s10067_s23  ;;  %v9102_v36 = vunpack.i.l.bf16 %v17053_v63  ;;  %v11917_v43 = vsel %vm3040_vm4, %v11700_v60, %v9108_v44  ;;  %v9118_v33 = vunpack.i.h.bf16 %v17055_v41  ;;  %v9117_v4 = vunpack.i.l.bf16 %v17055_v41  ;;  %s10068_s23 = smov 120   ;;  %v17059_v29 = vld [vmem:[#allocation41_spill] sm:$0xff]  ;;  %v17060_v44 = vld [vmem:[#allocation42_spill] sm:$0xff] }
 0x1d4   : > { %v11911_v28 = vpop.permute.xlu1 %9615  ;;  %v9112_v38 = vunpack.i.l.bf16 %v17056_v54  ;;  %v9113_v58 = vunpack.i.h.bf16 %v17056_v54  ;;  %v9128_v53 = vunpack.i.h.bf16 %v17058_v13  ;;  %v9127_v17 = vunpack.i.l.bf16 %v17058_v13  ;;  %v8260_v54 = vld [vmem:[%s10133_s10 + $0xc3] sm:$0xff]  ;;  %v8258_v3 = vld [vmem:[%s10133_s10 + $0xab] sm:$0xff] }
 0x1d5   : > { %17054 = vst [vmem:[#allocation23_spill] sm:$0xff] %v11911_v28  ;;  %v11922_v42 = vpop.permute.xlu0 %9610  ;;  %v9914_v60 = vpack.i.bf16 %v8257_v2, %v8256_v25  ;;  %v9123_v52 = vunpack.i.h.bf16 %v17059_v29  ;;  %v9122_v32 = vunpack.i.l.bf16 %v17059_v29  ;;  %v9137_v63 = vunpack.i.l.bf16 %v17060_v44  ;;  %v17061_v25 = vld [vmem:[#allocation43_spill] sm:$0xff] }
 0x1d6   : > { %17057 = vst [vmem:[#allocation24_spill] sm:$0xff] %v11922_v42  ;;  %9905 = vrot.lane.b32.xlu1 %v9904_v51, %s10068_s23  ;;  %v9909_v41 = vpack.i.bf16 %v8255_v11, %v8254_v40  ;;  %v8261_v42 = vld [vmem:[%s10133_s10 + $0xcb] sm:$0xff]  ;;  %v11936_v13 = vsel %vm3040_vm4, %v11707_v56, %v9102_v36  ;;  %v11940_v28 = vsel %vm3040_vm4, %v11711_v39, %v9103_v57  ;;  %v9138_v51 = vunpack.i.h.bf16 %v17060_v44 }
 0x1d7   : > { %9900 = vrot.lane.b32.xlu0 %v9899_v22, %s10068_s23  ;;  %v9132_v2 = vunpack.i.l.bf16 %v17061_v25  ;;  %v11950_v22 = vsel %vm3040_vm4, %v11724_v15, %v9117_v4  ;;  %v11954_v56 = vsel %vm3040_vm4, %v11728_v30, %v9118_v33  ;;  %v11958_v39 = vsel %vm3040_vm4, %v11737_v35, %v9112_v38  ;;  %v8264_v33 = vld [vmem:[%s10133_s10 + $0xf3] sm:$0xff]  ;;  %v8265_v4 = vld [vmem:[%s10133_s10 + $0xfb] sm:$0xff] }
 0x1d8   : > { %v11944_v29 = vpop.permute.xlu1 %9625  ;;  %v9133_v57 = vunpack.i.h.bf16 %v17061_v25  ;;  %v11965_v40 = vsel %vm3040_vm4, %v11746_v16, %v9113_v58  ;;  %v11969_v15 = vsel %vm3040_vm4, %v11754_v18, %v9127_v17  ;;  %v11973_v30 = vsel %vm3040_vm4, %v11768_v55, %v9128_v53  ;;  %v8263_v17 = vld [vmem:[%s10133_s10 + $0xe3] sm:$0xff] }
 0x1d9   : > { %17062 = vst [vmem:[#allocation25_spill] sm:$0xff] %v11944_v29  ;;  %v11961_v36 = vpop.permute.xlu0 %9620  ;;  %v9924_v35 = vpack.i.bf16 %v8261_v42, %v8260_v54  ;;  %v11978_v11 = vsel %vm3040_vm4, %v11778_v9, %v9122_v32  ;;  %v11982_v16 = vsel %vm3040_vm4, %v11782_v0, %v9123_v52  ;;  %v11986_v18 = vsel %vm3040_vm4, %v11786_v6, %v9137_v63  ;;  %v17064_v42 = vld [vmem:[#allocation44_spill] sm:$0xff]  ;;  %v17069_v63 = vld [vmem:[#allocation47_spill] sm:$0xff] }
 0x1da   : > { %17063 = vst [vmem:[#allocation26_spill] sm:$0xff] %v11961_v36  ;;  %9915 = vrot.lane.b32.xlu1 %v9914_v60, %s10068_s23  ;;  %v9919_v55 = vpack.i.bf16 %v8259_v46, %v8258_v3  ;;  %v11993_v38 = vsel %vm3040_vm4, %v11793_v12, %v9138_v51  ;;  %v11997_v9 = vsel %vm3040_vm4, %v11797_v23, %v9132_v2  ;;  %v9148_v0 = vunpack.i.h.bf16 %v17064_v42  ;;  %v8262_v6 = vld [vmem:[%s10133_s10 + $0xdb] sm:$0xff]  ;;  %v17066_v3 = vld [vmem:[#allocation45_spill] sm:$0xff]  ;;  %v17067_v23 = vld [vmem:[#allocation46_spill] sm:$0xff] }
 0x1db   : > { %9910 = vrot.lane.b32.xlu0 %v9909_v41, %s10068_s23  ;;  %v9147_v58 = vunpack.i.l.bf16 %v17064_v42  ;;  %v12007_v46 = vsel %vm3040_vm4, %v11802_v27, %v9133_v57  ;;  %v9143_v12 = vunpack.i.h.bf16 %v17066_v3  ;;  %v9142_v60 = vunpack.i.l.bf16 %v17066_v3  ;;  %v17070_v51 = vld [vmem:[#allocation48_spill] sm:$0xff]  ;;  %v17071_v57 = vld [vmem:[#allocation49_spill] sm:$0xff]  ;;  %v8267_v29 = vld [vmem:[%s10133_s10 + $0x113] sm:$0xff] }
 0x1dc   : > { %v12001_v53 = vpop.permute.xlu1 %9635  ;;  %v9157_v52 = vunpack.i.l.bf16 %v17067_v23  ;;  %v9158_v44 = vunpack.i.h.bf16 %v17067_v23  ;;  %v9153_v41 = vunpack.i.h.bf16 %v17069_v63  ;;  %v9152_v54 = vunpack.i.l.bf16 %v17069_v63  ;;  %v8268_v23 = vld [vmem:[%s10133_s10 + $0x123] sm:$0xff]  ;;  %v8266_v36 = vld [vmem:[%s10133_s10 + $0x10b] sm:$0xff] }
 0x1dd   : > { %17065 = vst [vmem:[#allocation27_spill] sm:$0xff] %v12001_v53  ;;  %v12012_v32 = vpop.permute.xlu0 %9630  ;;  %v9934_v27 = vpack.i.bf16 %v8265_v4, %v8264_v33  ;;  %v9168_v25 = vunpack.i.h.bf16 %v17070_v51  ;;  %v9167_v2 = vunpack.i.l.bf16 %v17070_v51  ;;  %v9162_v42 = vunpack.i.l.bf16 %v17071_v57  ;;  %v17072_v33 = vld [vmem:[#allocation50_spill] sm:$0xff] }
 0x1de   : > { %17068 = vst [vmem:[#allocation28_spill] sm:$0xff] %v12012_v32  ;;  %9925 = vrot.lane.b32.xlu1 %v9924_v35, %s10068_s23  ;;  %v9929_v3 = vpack.i.bf16 %v8263_v17, %v8262_v6  ;;  %v8269_v32 = vld [vmem:[%s10133_s10 + $0x12b] sm:$0xff]  ;;  %v12026_v63 = vsel %vm3040_vm4, %v11806_v49, %v9147_v58  ;;  %v12030_v53 = vsel %vm3040_vm4, %v11813_v24, %v9148_v0  ;;  %v9163_v35 = vunpack.i.h.bf16 %v17071_v57 }
 0x1df   : > { %9920 = vrot.lane.b32.xlu0 %v9919_v55, %s10068_s23  ;;  %v9177_v4 = vunpack.i.l.bf16 %v17072_v33  ;;  %v12040_v55 = vsel %vm3040_vm4, %v11817_v50, %v9142_v60  ;;  %v12044_v49 = vsel %vm3040_vm4, %v11827_v10, %v9143_v12  ;;  %v12048_v24 = vsel %vm3040_vm4, %v11846_v14, %v9157_v52  ;;  %v8272_v12 = vld [vmem:[%s10133_s10 + $0x153] sm:$0xff]  ;;  %v8273_v60 = vld [vmem:[%s10133_s10 + $0x15b] sm:$0xff] }
 0x1e0   : > { %v12034_v51 = vpop.permute.xlu1 %9645  ;;  %v9178_v0 = vunpack.i.h.bf16 %v17072_v33  ;;  %v12055_v6 = vsel %vm3040_vm4, %v11850_v5, %v9158_v44  ;;  %v12059_v50 = vsel %vm3040_vm4, %v11860_v61, %v9152_v54  ;;  %v12063_v10 = vsel %vm3040_vm4, %v11864_v31, %v9153_v41  ;;  %v8271_v54 = vld [vmem:[%s10133_s10 + $0x143] sm:$0xff] }
 0x1e1   : > { %17073 = vst [vmem:[#allocation29_spill] sm:$0xff] %v12034_v51  ;;  %v12051_v58 = vpop.permute.xlu0 %9640  ;;  %v9944_v14 = vpack.i.bf16 %v8269_v32, %v8268_v23  ;;  %v12068_v17 = vsel %vm3040_vm4, %v11868_v19, %v9167_v2  ;;  %v12072_v5 = vsel %vm3040_vm4, %v11875_v26, %v9168_v25  ;;  %v12076_v61 = vsel %vm3040_vm4, %v11879_v21, %v9162_v42  ;;  %v17075_v32 = vld [vmem:[#allocation51_spill] sm:$0xff]  ;;  %v17080_v42 = vld [vmem:[#allocation54_spill] sm:$0xff] }
 0x1e2   : > { %17074 = vst [vmem:[#allocation30_spill] sm:$0xff] %v12051_v58  ;;  %9935 = vrot.lane.b32.xlu1 %v9934_v27, %s10068_s23  ;;  %v9939_v31 = vpack.i.bf16 %v8267_v29, %v8266_v36  ;;  %v12083_v52 = vsel %vm3040_vm4, %v11883_v20, %v9163_v35  ;;  %v12087_v19 = vsel %vm3040_vm4, %v11888_v48, %v9177_v4  ;;  %v9173_v26 = vunpack.i.h.bf16 %v17075_v32  ;;  %v8270_v21 = vld [vmem:[%s10133_s10 + $0x13b] sm:$0xff]  ;;  %v17078_v48 = vld [vmem:[#allocation53_spill] sm:$0xff]  ;;  %v8275_v51 = vld [vmem:[%s10133_s10 + $0x173] sm:$0xff] }
 0x1e3   : > { %9930 = vrot.lane.b32.xlu0 %v9929_v3, %s10068_s23  ;;  %v9172_v44 = vunpack.i.l.bf16 %v17075_v32  ;;  %v12097_v29 = vsel %vm3040_vm4, %v11892_v47, %v9178_v0  ;;  %v17077_v36 = vld [vmem:[#allocation52_spill] sm:$0xff]  ;;  %v9182_v25 = vunpack.i.l.bf16 %v17078_v48  ;;  %v9183_v57 = vunpack.i.h.bf16 %v17078_v48  ;;  %v17081_v35 = vld [vmem:[#allocation55_spill] sm:$0xff]  ;;  %v8277_v48 = vld [vmem:[%s10133_s10 + $0x18b] sm:$0xff] }
 0x1e4   : > { %v12091_v41 = vpop.permute.xlu1 %9655  ;;  %v9188_v20 = vunpack.i.h.bf16 %v17077_v36  ;;  %v9187_v27 = vunpack.i.l.bf16 %v17077_v36  ;;  %v9198_v3 = vunpack.i.h.bf16 %v17080_v42  ;;  %v9197_v23 = vunpack.i.l.bf16 %v17080_v42  ;;  %v17082_v0 = vld [vmem:[#allocation56_spill] sm:$0xff]  ;;  %v8274_v58 = vld [vmem:[%s10133_s10 + $0x16b] sm:$0xff] }
 0x1e5   : > { %17076 = vst [vmem:[#allocation31_spill] sm:$0xff] %v12091_v41  ;;  %v12102_v2 = vpop.permute.xlu0 %9650  ;;  %v9954_v47 = vpack.i.bf16 %v8273_v60, %v8272_v12  ;;  %v9193_v33 = vunpack.i.h.bf16 %v17081_v35  ;;  %v9192_v4 = vunpack.i.l.bf16 %v17081_v35  ;;  %v9207_v32 = vunpack.i.l.bf16 %v17082_v0  ;;  %v17083_v12 = vld [vmem:[#allocation57_spill] sm:$0xff] }
 0x1e6   : > { %17079 = vst [vmem:[#allocation32_spill] sm:$0xff] %v12102_v2  ;;  %9945 = vrot.lane.b32.xlu1 %v9944_v14, %s10068_s23  ;;  %v9949_v36 = vpack.i.bf16 %v8271_v54, %v8270_v21  ;;  %v8276_v2 = vld [vmem:[%s10133_s10 + $0x183] sm:$0xff]  ;;  %v12116_v41 = vsel %vm3040_vm4, %v11896_v59, %v9172_v44  ;;  %v12120_v42 = vsel %vm3040_vm4, %v11903_v62, %v9173_v26  ;;  %v9208_v14 = vunpack.i.h.bf16 %v17082_v0 }
 0x1e7   : > { %9940 = vrot.lane.b32.xlu0 %v9939_v31, %s10068_s23  ;;  %v9202_v60 = vunpack.i.l.bf16 %v17083_v12  ;;  %v12130_v31 = vsel %vm3073_vm5, %v11907_v1, %v9187_v27  ;;  %v12134_v59 = vsel %vm3073_vm5, %v11917_v43, %v9188_v20  ;;  %v12138_v62 = vsel %vm3073_vm5, %v11936_v13, %v9182_v25  ;;  %v8280_v20 = vld [vmem:[%s10133_s10 + $0x1b3] sm:$0xff]  ;;  %v8281_v27 = vld [vmem:[%s10133_s10 + $0x1bb] sm:$0xff] }
 0x1e8   : > { %v12124_v35 = vpop.permute.xlu1 %9665  ;;  %v9203_v26 = vunpack.i.h.bf16 %v17083_v12  ;;  %v12145_v21 = vsel %vm3073_vm5, %v11940_v28, %v9183_v57  ;;  %v12149_v1 = vsel %vm3073_vm5, %v11950_v22, %v9197_v23  ;;  %v12153_v43 = vsel %vm3073_vm5, %v11954_v56, %v9198_v3  ;;  %v8279_v23 = vld [vmem:[%s10133_s10 + $0x1a3] sm:$0xff]  ;;  %v17089_v12 = vld [vmem:[#allocation62_spill] sm:$0xff] }
 0x1e9   : > { %v12141_v44 = vpop.permute.xlu0 %9660  ;;  %v9964_v13 = vpack.i.bf16 %v8277_v48, %v8276_v2  ;;  %v12158_v54 = vsel %vm3073_vm5, %v11958_v39, %v9192_v4  ;;  %v12162_v28 = vsel %vm3073_vm5, %v11965_v40, %v9193_v33  ;;  %v12166_v22 = vsel %vm3073_vm5, %v11969_v15, %v9207_v32  ;;  %v17084_v2 = vld [vmem:[#allocation58_spill] sm:$0xff]  ;;  %v8278_v15 = vld [vmem:[%s10133_s10 + $0x19b] sm:$0xff]  ;;  %v17088_v32 = vld [vmem:[#allocation61_spill] sm:$0xff] }
 0x1ea   : > { %9955 = vrot.lane.b32.xlu1 %v9954_v47, %s10068_s23  ;;  %v9959_v56 = vpack.i.bf16 %v8275_v51, %v8274_v58  ;;  %v12173_v25 = vsel %vm3073_vm5, %v11973_v30, %v9208_v14  ;;  %v12177_v39 = vsel %vm3073_vm5, %v11978_v11, %v9202_v60  ;;  %v9218_v40 = vunpack.i.h.bf16 %v17084_v2  ;;  %v17086_v58 = vld [vmem:[#allocation59_spill] sm:$0xff]  ;;  %v17087_v33 = vld [vmem:[#allocation60_spill] sm:$0xff] }
 0x1eb   : > { %9950 = vrot.lane.b32.xlu0 %v9949_v36, %s10068_s23  ;;  %v9217_v57 = vunpack.i.l.bf16 %v17084_v2  ;;  %v12187_v51 = vsel %vm3073_vm5, %v11982_v16, %v9203_v26  ;;  %v9213_v47 = vunpack.i.h.bf16 %v17086_v58  ;;  %v9212_v30 = vunpack.i.l.bf16 %v17086_v58  ;;  %v17090_v26 = vld [vmem:[#allocation63_spill] sm:$0xff] }
 0x1ec   : > { %v12181_v3 = vpop.permute.xlu1 %9675  ;;  %v9228_v4 = vunpack.i.h.bf16 %v17087_v33  ;;  %v9227_v0 = vunpack.i.l.bf16 %v17087_v33  ;;  %v9223_v36 = vunpack.i.h.bf16 %v17088_v32  ;;  %v9222_v48 = vunpack.i.l.bf16 %v17088_v32 }
 0x1ed   : > { %17085 = vst [vmem:[#allocation33_spill] sm:$0xff] %v12181_v3  ;;  %v12192_v11 = vpop.permute.xlu0 %9670  ;;  %v9974_v14 = vpack.i.bf16 %v8281_v27, %v8280_v20  ;;  %v9238_v16 = vunpack.i.h.bf16 %v17089_v12  ;;  %v9237_v60 = vunpack.i.l.bf16 %v17089_v12  ;;  %v9232_v2 = vunpack.i.l.bf16 %v17090_v26  ;;  %v17091_v20 = vld [vmem:[#allocation64_spill] sm:$0xff] }
 0x1ee   : > { %9965 = vrot.lane.b32.xlu1 %v9964_v13, %s10068_s23  ;;  %v9969_v58 = vpack.i.bf16 %v8279_v23, %v8278_v15  ;;  %v12204_v33 = vsel %vm3073_vm5, %v11986_v18, %v9217_v57  ;;  %v12208_v32 = vsel %vm3073_vm5, %v11993_v38, %v9218_v40  ;;  %v9233_v13 = vunpack.i.h.bf16 %v17090_v26  ;;  %v17093_v57 = vld [vmem:[#allocation65_spill] sm:$0xff] }
 0x1ef   : > { %9960 = vrot.lane.b32.xlu0 %v9959_v56, %s10068_s23  ;;  %v9247_v27 = vunpack.i.l.bf16 %v17091_v20  ;;  %v12216_v12 = vsel %vm3073_vm5, %v11997_v9, %v9212_v30  ;;  %v12220_v56 = vsel %vm3073_vm5, %v12007_v46, %v9213_v47  ;;  %v9248_v18 = vunpack.i.h.bf16 %v17091_v20 }
 0x1f0   : > { %v12212_v3 = vpop.permute.xlu1 %9685  ;;  %v9242_v15 = vunpack.i.l.bf16 %v17093_v57  ;;  %v12228_v40 = vsel %vm3073_vm5, %v12026_v63, %v9227_v0  ;;  %v12232_v23 = vsel %vm3073_vm5, %v12030_v53, %v9228_v4  ;;  %v12236_v9 = vsel %vm3073_vm5, %v12040_v55, %v9222_v48 }
 0x1f1   : > { %17092 = vst [vmem:[#allocation34_spill] sm:$0xff] %v12212_v3  ;;  %v12224_v38 = vpop.permute.xlu0 %9680  ;;  %v9243_v46 = vunpack.i.h.bf16 %v17093_v57  ;;  %v12242_v47 = vsel %vm3073_vm5, %v12044_v49, %v9223_v36  ;;  %v12246_v63 = vsel %vm3073_vm5, %v12048_v24, %v9237_v60  ;;  %v12250_v53 = vsel %vm3073_vm5, %v12055_v6, %v9238_v16  ;;  %v17095_v24 = vld [vmem:[#allocation66_spill] sm:$0xff]  ;;  %v17099_v60 = vld [vmem:[#allocation68_spill] sm:$0xff] }
 0x1f2   : > { %17094 = vst [vmem:[#allocation35_spill] sm:$0xff] %v12224_v38  ;;  %9975 = vrot.lane.b32.xlu1 %v9974_v14, %s10068_s23  ;;  %v12254_v55 = vsel %vm3073_vm5, %v12059_v50, %v9232_v2  ;;  %v12259_v30 = vsel %vm3073_vm5, %v12063_v10, %v9233_v13  ;;  %v12263_v49 = vsel %vm3073_vm5, %v12068_v17, %v9247_v27  ;;  %v9258_v4 = vunpack.i.h.bf16 %v17095_v24  ;;  %v17097_v10 = vld [vmem:[#allocation67_spill] sm:$0xff] }
 0x1f3   : > { %9970 = vrot.lane.b32.xlu0 %v9969_v58, %s10068_s23  ;;  %v9257_v0 = vunpack.i.l.bf16 %v17095_v24  ;;  %v12271_v50 = vsel %vm3073_vm5, %v12072_v5, %v9248_v18  ;;  %v12275_v36 = vsel %vm3073_vm5, %v12076_v61, %v9242_v15  ;;  %v9253_v48 = vunpack.i.h.bf16 %v17097_v10  ;;  %v17100_v5 = vld [vmem:[#allocation69_spill] sm:$0xff]  ;;  %v17101_v61 = vld [vmem:[#allocation70_spill] sm:$0xff]  ;;  %v17102_v18 = vld [vmem:[#allocation71_spill] sm:$0xff]  ;;  %s10073_s23 = smov 28  }
 0x1f4   : > { %v12267_v6 = vpop.permute.xlu1 %9695  ;;  %v9252_v14 = vunpack.i.l.bf16 %v17097_v10  ;;  %v12283_v16 = vsel %vm3073_vm5, %v12083_v52, %v9243_v46  ;;  %v9268_v26 = vunpack.i.h.bf16 %v17099_v60  ;;  %v9267_v2 = vunpack.i.l.bf16 %v17099_v60  ;;  %v17103_v24 = vld [vmem:[#allocation72_spill] sm:$0xff] }
 0x1f5   : > { %17096 = vst [vmem:[#allocation36_spill] sm:$0xff] %v12267_v6  ;;  %v12279_v17 = vpop.permute.xlu0 %9690  ;;  %v9262_v58 = vunpack.i.l.bf16 %v17100_v5  ;;  %v9263_v13 = vunpack.i.h.bf16 %v17100_v5  ;;  %v9278_v20 = vunpack.i.h.bf16 %v17101_v61  ;;  %v9277_v27 = vunpack.i.l.bf16 %v17101_v61 }
 0x1f6   : > { %17098 = vst [vmem:[#allocation37_spill] sm:$0xff] %v12279_v17  ;;  %v9272_v57 = vunpack.i.l.bf16 %v17102_v18  ;;  %v12294_v15 = vsel %vm3073_vm5, %v12087_v19, %v9257_v0  ;;  %v12298_v52 = vsel %vm3073_vm5, %v12097_v29, %v9258_v4  ;;  %v9273_v46 = vunpack.i.h.bf16 %v17102_v18  ;;  %v17105_v0 = vld [vmem:[#allocation73_spill] sm:$0xff] }
 0x1f7   : > { %v9287_v10 = vunpack.i.l.bf16 %v17103_v24  ;;  %v12306_v5 = vsel %vm3073_vm5, %v12116_v41, %v9252_v14  ;;  %v12310_v61 = vsel %vm3073_vm5, %v12120_v42, %v9253_v48  ;;  %v9288_v19 = vunpack.i.h.bf16 %v17103_v24 }
 0x1f8   : > { %v12302_v60 = vpop.permute.xlu1 %9705  ;;  %v9282_v6 = vunpack.i.l.bf16 %v17105_v0  ;;  %v12318_v4 = vsel %vm3106_vm6, %v12130_v31, %v9267_v2  ;;  %v12322_v18 = vsel %vm3106_vm6, %v12134_v59, %v9268_v26  ;;  %v12326_v41 = vsel %vm3106_vm6, %v12138_v62, %v9262_v58  ;;  %v17107_v26 = vld [vmem:[#allocation74_spill] sm:$0xff] }
 0x1f9   : > { %17104 = vst [vmem:[#allocation38_spill] sm:$0xff] %v12302_v60  ;;  %v12314_v29 = vpop.permute.xlu0 %9700  ;;  %v9283_v42 = vunpack.i.h.bf16 %v17105_v0  ;;  %v12331_v48 = vsel %vm3106_vm6, %v12145_v21, %v9263_v13  ;;  %v12335_v14 = vsel %vm3106_vm6, %v12149_v1, %v9277_v27  ;;  %v12339_v31 = vsel %vm3106_vm6, %v12153_v43, %v9278_v20 }
 0x1fa   : > { %17106 = vst [vmem:[#allocation39_spill] sm:$0xff] %v12314_v29  ;;  %v12343_v59 = vsel %vm3106_vm6, %v12158_v54, %v9272_v57  ;;  %v12347_v62 = vsel %vm3106_vm6, %v12162_v28, %v9273_v46  ;;  %v12351_v21 = vsel %vm3106_vm6, %v12166_v22, %v9287_v10  ;;  %v9298_v2 = vunpack.i.h.bf16 %v17107_v26  ;;  %v17109_v28 = vld [vmem:[#allocation75_spill] sm:$0xff]  ;;  %v17111_v57 = vld [vmem:[#allocation76_spill] sm:$0xff] }
 0x1fb   : > { %v9297_v1 = vunpack.i.l.bf16 %v17107_v26  ;;  %v12359_v43 = vsel %vm3106_vm6, %v12173_v25, %v9288_v19  ;;  %v12363_v54 = vsel %vm3106_vm6, %v12177_v39, %v9282_v6  ;;  %v9293_v13 = vunpack.i.h.bf16 %v17109_v28  ;;  %v17112_v25 = vld [vmem:[#allocation77_spill] sm:$0xff]  ;;  %v17113_v39 = vld [vmem:[#allocation78_spill] sm:$0xff]  ;;  %v17114_v26 = vld [vmem:[#allocation79_spill] sm:$0xff] }
 0x1fc   : > { %v12355_v58 = vpop.permute.xlu1 %9715  ;;  %v9292_v20 = vunpack.i.l.bf16 %v17109_v28  ;;  %v12371_v27 = vsel %vm3106_vm6, %v12187_v51, %v9283_v42  ;;  %v9308_v46 = vunpack.i.h.bf16 %v17111_v57  ;;  %v9307_v24 = vunpack.i.l.bf16 %v17111_v57  ;;  %v17115_v57 = vld [vmem:[#allocation80_spill] sm:$0xff] }
 0x1fd   : > { %17108 = vst [vmem:[#allocation40_spill] sm:$0xff] %v12355_v58  ;;  %v12367_v22 = vpop.permute.xlu0 %9710  ;;  %v9302_v10 = vunpack.i.l.bf16 %v17112_v25  ;;  %v9303_v19 = vunpack.i.h.bf16 %v17112_v25  ;;  %v9318_v6 = vunpack.i.h.bf16 %v17113_v39  ;;  %v9317_v0 = vunpack.i.l.bf16 %v17113_v39 }
 0x1fe   : > { %17110 = vst [vmem:[#allocation41_spill] sm:$0xff] %v12367_v22  ;;  %v9312_v28 = vunpack.i.l.bf16 %v17114_v26  ;;  %v12382_v58 = vsel %vm3106_vm6, %v12204_v33, %v9297_v1  ;;  %v12386_v51 = vsel %vm3106_vm6, %v12208_v32, %v9298_v2  ;;  %v9313_v42 = vunpack.i.h.bf16 %v17114_v26  ;;  %v17117_v1 = vld [vmem:[#allocation81_spill] sm:$0xff] }
 0x1ff   : > { %v9327_v22 = vunpack.i.l.bf16 %v17115_v57  ;;  %v12394_v39 = vsel %vm3106_vm6, %v12216_v12, %v9292_v20  ;;  %v12398_v60 = vsel %vm3106_vm6, %v12220_v56, %v9293_v13  ;;  %v9328_v33 = vunpack.i.h.bf16 %v17115_v57 }
 0x200   : > { %v12390_v25 = vpop.permute.xlu1 %9725  ;;  %v9322_v29 = vunpack.i.l.bf16 %v17117_v1  ;;  %v12406_v2 = vsel %vm3106_vm6, %v12228_v40, %v9307_v24  ;;  %v12410_v26 = vsel %vm3106_vm6, %v12232_v23, %v9308_v46  ;;  %v12414_v12 = vsel %vm3106_vm6, %v12236_v9, %v9302_v10  ;;  %v17119_v46 = vld [vmem:[#allocation82_spill] sm:$0xff] }
 0x201   : > { %17116 = vst [vmem:[#allocation42_spill] sm:$0xff] %v12390_v25  ;;  %v12402_v32 = vpop.permute.xlu0 %9720  ;;  %v9323_v56 = vunpack.i.h.bf16 %v17117_v1  ;;  %v12419_v13 = vsel %vm3106_vm6, %v12242_v47, %v9303_v19  ;;  %v12423_v20 = vsel %vm3106_vm6, %v12246_v63, %v9317_v0  ;;  %v12427_v40 = vsel %vm3106_vm6, %v12250_v53, %v9318_v6  ;;  %v17123_v0 = vld [vmem:[#allocation84_spill] sm:$0xff] }
 0x202   : > { %17118 = vst [vmem:[#allocation43_spill] sm:$0xff] %v12402_v32  ;;  %v12431_v23 = vsel %vm3106_vm6, %v12254_v55, %v9312_v28  ;;  %v12435_v9 = vsel %vm3106_vm6, %v12259_v30, %v9313_v42  ;;  %v12439_v47 = vsel %vm3106_vm6, %v12263_v49, %v9327_v22  ;;  %v9338_v24 = vunpack.i.h.bf16 %v17119_v46  ;;  %v17121_v30 = vld [vmem:[#allocation83_spill] sm:$0xff] }
 0x203   : > { %v9337_v63 = vunpack.i.l.bf16 %v17119_v46  ;;  %v12447_v53 = vsel %vm3106_vm6, %v12271_v50, %v9328_v33  ;;  %v12451_v55 = vsel %vm3106_vm6, %v12275_v36, %v9322_v29  ;;  %v9333_v19 = vunpack.i.h.bf16 %v17121_v30  ;;  %v17124_v50 = vld [vmem:[#allocation85_spill] sm:$0xff]  ;;  %v17125_v36 = vld [vmem:[#allocation86_spill] sm:$0xff]  ;;  %v17126_v46 = vld [vmem:[#allocation87_spill] sm:$0xff] }
 0x204   : > { %v12443_v10 = vpop.permute.xlu1 %9735  ;;  %v9332_v6 = vunpack.i.l.bf16 %v17121_v30  ;;  %v12459_v22 = vsel %vm3106_vm6, %v12283_v16, %v9323_v56  ;;  %v9348_v28 = vunpack.i.h.bf16 %v17123_v0  ;;  %v9347_v42 = vunpack.i.l.bf16 %v17123_v0  ;;  %v17127_v0 = vld [vmem:[#allocation88_spill] sm:$0xff] }
 0x205   : > { %17120 = vst [vmem:[#allocation44_spill] sm:$0xff] %v12443_v10  ;;  %v12455_v49 = vpop.permute.xlu0 %9730  ;;  %v9342_v57 = vunpack.i.l.bf16 %v17124_v50  ;;  %v9343_v33 = vunpack.i.h.bf16 %v17124_v50  ;;  %v9358_v29 = vunpack.i.h.bf16 %v17125_v36  ;;  %v9357_v1 = vunpack.i.l.bf16 %v17125_v36 }
 0x206   : > { %17122 = vst [vmem:[#allocation45_spill] sm:$0xff] %v12455_v49  ;;  %v9352_v30 = vunpack.i.l.bf16 %v17126_v46  ;;  %v12470_v10 = vsel %vm3106_vm6, %v12294_v15, %v9337_v63  ;;  %v12474_v16 = vsel %vm3106_vm6, %v12298_v52, %v9338_v24  ;;  %v9353_v56 = vunpack.i.h.bf16 %v17126_v46  ;;  %v17128_v63 = vld [vmem:[#allocation89_spill] sm:$0xff] }
 0x207   : > { %v9367_v49 = vunpack.i.l.bf16 %v17127_v0  ;;  %v12482_v50 = vsel %vm3106_vm6, %v12306_v5, %v9332_v6  ;;  %v12486_v36 = vsel %vm3106_vm6, %v12310_v61, %v9333_v19  ;;  %v9368_v15 = vunpack.i.h.bf16 %v17127_v0 }
 0x208   : > { %v12478_v25 = vpop.permute.xlu1 %9745  ;;  %v9362_v32 = vunpack.i.l.bf16 %v17128_v63  ;;  %v12494_v24 = vsel %vm3139_vm7, %v12318_v4, %v9347_v42  ;;  %v12498_v46 = vsel %vm3139_vm7, %v12322_v18, %v9348_v28  ;;  %v12502_v5 = vsel %vm3139_vm7, %v12326_v41, %v9342_v57  ;;  %v17129_v28 = vld [vmem:[#allocation90_spill] sm:$0xff] }
 0x209   : > { %v12490_v52 = vpop.permute.xlu0 %9740  ;;  %v9363_v61 = vunpack.i.h.bf16 %v17128_v63  ;;  %v12507_v19 = vsel %vm3139_vm7, %v12331_v48, %v9343_v33  ;;  %v12511_v6 = vsel %vm3139_vm7, %v12335_v14, %v9357_v1  ;;  %v12515_v4 = vsel %vm3139_vm7, %v12339_v31, %v9358_v29  ;;  %v17132_v1 = vld [vmem:[#allocation92_spill] sm:$0xff] }
 0x20a   : > { %v12519_v18 = vsel %vm3139_vm7, %v12343_v59, %v9352_v30  ;;  %v12523_v41 = vsel %vm3139_vm7, %v12347_v62, %v9353_v56  ;;  %v12527_v48 = vsel %vm3139_vm7, %v12351_v21, %v9367_v49  ;;  %v9378_v42 = vunpack.i.h.bf16 %v17129_v28  ;;  %v17131_v62 = vld [vmem:[#allocation91_spill] sm:$0xff] }
 0x20b   : > { %v9377_v14 = vunpack.i.l.bf16 %v17129_v28  ;;  %v12535_v31 = vsel %vm3139_vm7, %v12359_v43, %v9368_v15  ;;  %v12539_v59 = vsel %vm3139_vm7, %v12363_v54, %v9362_v32  ;;  %v9373_v33 = vunpack.i.h.bf16 %v17131_v62  ;;  %v17133_v43 = vld [vmem:[#allocation93_spill] sm:$0xff]  ;;  %v17134_v54 = vld [vmem:[#allocation94_spill] sm:$0xff]  ;;  %v17135_v28 = vld [vmem:[#allocation95_spill] sm:$0xff] }
 0x20c   : > { %v12531_v57 = vpop.permute.xlu1 %9755  ;;  %v9372_v29 = vunpack.i.l.bf16 %v17131_v62  ;;  %v12547_v49 = vsel %vm3139_vm7, %v12371_v27, %v9363_v61  ;;  %v9388_v30 = vunpack.i.h.bf16 %v17132_v1  ;;  %v9387_v56 = vunpack.i.l.bf16 %v17132_v1  ;;  %v17136_v1 = vld [vmem:[#allocation96_spill] sm:$0xff] }
 0x20d   : > { %17130 = vst [vmem:[#allocation46_spill] sm:$0xff] %v12531_v57  ;;  %v12543_v21 = vpop.permute.xlu0 %9750  ;;  %v9382_v0 = vunpack.i.l.bf16 %v17133_v43  ;;  %v9383_v15 = vunpack.i.h.bf16 %v17133_v43  ;;  %v9398_v32 = vunpack.i.h.bf16 %v17134_v54  ;;  %v9397_v63 = vunpack.i.l.bf16 %v17134_v54 }
 0x20e   : > { %v9392_v62 = vunpack.i.l.bf16 %v17135_v28  ;;  %v12558_v17 = vsel %vm3139_vm7, %v12382_v58, %v9377_v14  ;;  %v12562_v27 = vsel %vm3139_vm7, %v12386_v51, %v9378_v42  ;;  %v9393_v61 = vunpack.i.h.bf16 %v17135_v28  ;;  %v17138_v14 = vld [vmem:[#allocation97_spill] sm:$0xff] }
 0x20f   : > { %v9407_v3 = vunpack.i.l.bf16 %v17136_v1  ;;  %v12570_v54 = vsel %vm3139_vm7, %v12394_v39, %v9372_v29  ;;  %v12574_v38 = vsel %vm3139_vm7, %v12398_v60, %v9373_v33  ;;  %v9408_v58 = vunpack.i.h.bf16 %v17136_v1 }
 0x210   : > { %v12566_v43 = vpop.permute.xlu1 %9765  ;;  %v9402_v57 = vunpack.i.l.bf16 %v17138_v14  ;;  %v12582_v42 = vsel %vm3139_vm7, %v12406_v2, %v9387_v56  ;;  %v12586_v28 = vsel %vm3139_vm7, %v12410_v26, %v9388_v30  ;;  %v12590_v39 = vsel %vm3139_vm7, %v12414_v12, %v9382_v0  ;;  %v17140_v30 = vld [vmem:[#allocation98_spill] sm:$0xff] }
 0x211   : > { %17137 = vst [vmem:[#allocation47_spill] sm:$0xff] %v12566_v43  ;;  %v12578_v51 = vpop.permute.xlu0 %9760  ;;  %v9403_v60 = vunpack.i.h.bf16 %v17138_v14  ;;  %v12595_v33 = vsel %vm3139_vm7, %v12419_v13, %v9383_v15  ;;  %v12599_v29 = vsel %vm3139_vm7, %v12423_v20, %v9397_v63  ;;  %v12603_v2 = vsel %vm3139_vm7, %v12427_v40, %v9398_v32  ;;  %v17144_v63 = vld [vmem:[#allocation100_spill] sm:$0xff] }
 0x212   : > { %17139 = vst [vmem:[#allocation48_spill] sm:$0xff] %v12578_v51  ;;  %v12607_v26 = vsel %vm3139_vm7, %v12431_v23, %v9392_v62  ;;  %v12611_v12 = vsel %vm3139_vm7, %v12435_v9, %v9393_v61  ;;  %v12615_v13 = vsel %vm3139_vm7, %v12439_v47, %v9407_v3  ;;  %v9418_v56 = vunpack.i.h.bf16 %v17140_v30  ;;  %v17142_v9 = vld [vmem:[#allocation99_spill] sm:$0xff] }
 0x213   : > { %v9417_v20 = vunpack.i.l.bf16 %v17140_v30  ;;  %v12623_v40 = vsel %vm3139_vm7, %v12447_v53, %v9408_v58  ;;  %v12627_v23 = vsel %vm3139_vm7, %v12451_v55, %v9402_v57  ;;  %v9413_v15 = vunpack.i.h.bf16 %v17142_v9  ;;  %v17145_v53 = vld [vmem:[#allocation101_spill] sm:$0xff]  ;;  %v17146_v55 = vld [vmem:[#allocation102_spill] sm:$0xff]  ;;  %v17147_v30 = vld [vmem:[#allocation103_spill] sm:$0xff] }
 0x214   : > { %v12619_v0 = vpop.permute.xlu1 %9775  ;;  %v9412_v32 = vunpack.i.l.bf16 %v17142_v9  ;;  %v12635_v47 = vsel %vm3139_vm7, %v12459_v22, %v9403_v60  ;;  %v9428_v62 = vunpack.i.h.bf16 %v17144_v63  ;;  %v9427_v61 = vunpack.i.l.bf16 %v17144_v63  ;;  %v17149_v63 = vld [vmem:[#allocation104_spill] sm:$0xff] }
 0x215   : > { %17141 = vst [vmem:[#allocation49_spill] sm:$0xff] %v12619_v0  ;;  %v12631_v3 = vpop.permute.xlu0 %9770  ;;  %v9422_v1 = vunpack.i.l.bf16 %v17145_v53  ;;  %v9423_v58 = vunpack.i.h.bf16 %v17145_v53  ;;  %v9438_v57 = vunpack.i.h.bf16 %v17146_v55  ;;  %v9437_v14 = vunpack.i.l.bf16 %v17146_v55 }
 0x216   : > { %17143 = vst [vmem:[#allocation50_spill] sm:$0xff] %v12631_v3  ;;  %v9432_v9 = vunpack.i.l.bf16 %v17147_v30  ;;  %v12646_v0 = vsel %vm3139_vm7, %v12470_v10, %v9417_v20  ;;  %v12650_v22 = vsel %vm3139_vm7, %v12474_v16, %v9418_v56  ;;  %v9433_v60 = vunpack.i.h.bf16 %v17147_v30  ;;  %v17151_v20 = vld [vmem:[#allocation105_spill] sm:$0xff] }
 0x217   : > { %17148 = vst [vmem:[#allocation51_spill] sm:$0xff] %v12650_v22  ;;  %v9447_v3 = vunpack.i.l.bf16 %v17149_v63  ;;  %v12658_v53 = vsel %vm3139_vm7, %v12482_v50, %v9412_v32  ;;  %v12662_v55 = vsel %vm3139_vm7, %v12486_v36, %v9413_v15  ;;  %v9448_v10 = vunpack.i.h.bf16 %v17149_v63 }
 0x218   : > { %v12654_v43 = vpop.permute.xlu1 %9785  ;;  %v9442_v51 = vunpack.i.l.bf16 %v17151_v20  ;;  %v12670_v56 = vsel %vm3172_vm8, %v12494_v24, %v9427_v61  ;;  %v12674_v30 = vsel %vm3172_vm8, %v12498_v46, %v9428_v62  ;;  %v12678_v50 = vsel %vm3172_vm8, %v12502_v5, %v9422_v1  ;;  %v17153_v62 = vld [vmem:[#allocation106_spill] sm:$0xff] }
 0x219   : > { %17150 = vst [vmem:[#allocation52_spill] sm:$0xff] %v12654_v43  ;;  %v12666_v16 = vpop.permute.xlu0 %9780  ;;  %v9443_v36 = vunpack.i.h.bf16 %v17151_v20  ;;  %v12683_v15 = vsel %vm3172_vm8, %v12507_v19, %v9423_v58  ;;  %v12687_v32 = vsel %vm3172_vm8, %v12511_v6, %v9437_v14  ;;  %v12691_v24 = vsel %vm3172_vm8, %v12515_v4, %v9438_v57  ;;  %v17157_v14 = vld [vmem:[#allocation110_spill] sm:$0xff] }
 0x21a   : > { %17152 = vst [vmem:[#allocation53_spill] sm:$0xff] %v12666_v16  ;;  %v12695_v46 = vsel %vm3172_vm8, %v12519_v18, %v9432_v9  ;;  %v12699_v5 = vsel %vm3172_vm8, %v12523_v41, %v9433_v60  ;;  %v12703_v19 = vsel %vm3172_vm8, %v12527_v48, %v9447_v3  ;;  %v9458_v61 = vunpack.i.h.bf16 %v17153_v62  ;;  %v17155_v41 = vld [vmem:[#allocation107_spill] sm:$0xff] }
 0x21b   : > { %v9457_v6 = vunpack.i.l.bf16 %v17153_v62  ;;  %v12711_v4 = vsel %vm3172_vm8, %v12535_v31, %v9448_v10  ;;  %v12715_v18 = vsel %vm3172_vm8, %v12539_v59, %v9442_v51  ;;  %v9453_v58 = vunpack.i.h.bf16 %v17155_v41  ;;  %v17158_v10 = vld [vmem:[#allocation111_spill] sm:$0xff] }
 0x21c   : > { %v12707_v1 = vpop.permute.xlu1 %9795  ;;  %v9452_v57 = vunpack.i.l.bf16 %v17155_v41  ;;  %v12723_v3 = vsel %vm3172_vm8, %v12547_v49, %v9443_v36  ;;  %v9468_v9 = vunpack.i.h.bf16 %v17157_v14  ;;  %v9467_v60 = vunpack.i.l.bf16 %v17157_v14 }
 0x21d   : > { %17154 = vst [vmem:[#allocation54_spill] sm:$0xff] %v12707_v1  ;;  %v12719_v48 = vpop.permute.xlu0 %9790  ;;  %v9462_v31 = vunpack.i.l.bf16 %v11221_v8  ;;  %v9463_v59 = vunpack.i.h.bf16 %v11221_v8  ;;  %v9478_v51 = vunpack.i.h.bf16 %v11255_v7  ;;  %v9477_v63 = vunpack.i.l.bf16 %v11255_v7 }
 0x21e   : > { %17156 = vst [vmem:[#allocation55_spill] sm:$0xff] %v12719_v48  ;;  %v9472_v20 = vunpack.i.l.bf16 %v17158_v10  ;;  %v12734_v62 = vsel %vm3172_vm8, %v12558_v17, %v9457_v6  ;;  %v12738_v49 = vsel %vm3172_vm8, %v12562_v27, %v9458_v61  ;;  %v9473_v36 = vunpack.i.h.bf16 %v17158_v10 }
 0x21f   : > { %v9487_v41 = vunpack.i.l.bf16 %v11294_v34  ;;  %v12746_v8 = vsel %vm3172_vm8, %v12570_v54, %v9452_v57  ;;  %v12750_v7 = vsel %vm3172_vm8, %v12574_v38, %v9453_v58  ;;  %v9488_v17 = vunpack.i.h.bf16 %v11294_v34 }
 0x220   : > { %v12742_v14 = vpop.permute.xlu1 %9805  ;;  %v9482_v6 = vunpack.i.l.bf16 %v11311_v45  ;;  %v12758_v61 = vsel %vm3172_vm8, %v12582_v42, %v9467_v60  ;;  %v12762_v10 = vsel %vm3172_vm8, %v12586_v28, %v9468_v9  ;;  %v12766_v54 = vsel %vm3172_vm8, %v12590_v39, %v9462_v31  ;;  %v17163_v60 = vld [vmem:[#allocation114_spill] sm:$0xff] }
 0x221   : > { %17159 = vst [vmem:[#allocation56_spill] sm:$0xff] %v12742_v14  ;;  %v12754_v27 = vpop.permute.xlu0 %9800  ;;  %v9483_v38 = vunpack.i.h.bf16 %v11311_v45  ;;  %v12771_v34 = vsel %vm3172_vm8, %v12595_v33, %v9463_v59  ;;  %v12775_v58 = vsel %vm3172_vm8, %v12599_v29, %v9477_v63  ;;  %v12779_v42 = vsel %vm3172_vm8, %v12603_v2, %v9478_v51  ;;  %v17161_v29 = vld [vmem:[#allocation113_spill] sm:$0xff]  ;;  %v17165_v63 = vld [vmem:[#allocation108_spill] sm:$0xff] }
 0x222   : > { %17160 = vst [vmem:[#allocation57_spill] sm:$0xff] %v12754_v27  ;;  %v12783_v28 = vsel %vm3172_vm8, %v12607_v26, %v9472_v20  ;;  %v12787_v39 = vsel %vm3172_vm8, %v12611_v12, %v9473_v36  ;;  %v12791_v45 = vsel %vm3172_vm8, %v12615_v13, %v9487_v41  ;;  %v9497_v33 = vunpack.i.l.bf16 %v11345_v37  ;;  %v17166_v36 = vld [vmem:[#allocation109_spill] sm:$0xff] }
 0x223   : > { %v9492_v57 = vunpack.i.l.bf16 %v17161_v29  ;;  %v12799_v2 = vsel %vm3172_vm8, %v12623_v40, %v9488_v17  ;;  %v12803_v26 = vsel %vm3172_vm8, %v12627_v23, %v9482_v6  ;;  %v9493_v12 = vunpack.i.h.bf16 %v17161_v29  ;;  %v17167_v17 = vld [vmem:[#allocation4_spill] sm:$0xff] }
 0x224   : > { %v12795_v9 = vpop.permute.xlu1 %9815  ;;  %v9507_v31 = vunpack.i.l.bf16 %v17163_v60  ;;  %v12811_v59 = vsel %vm3172_vm8, %v12635_v47, %v9483_v38  ;;  %v9508_v51 = vunpack.i.h.bf16 %v17163_v60  ;;  %v9503_v20 = vunpack.i.h.bf16 %v17165_v63  ;;  %v17168_v60 = vld [vmem:[#allocation5_spill] sm:$0xff] }
 0x225   : > { %17162 = vst [vmem:[#allocation58_spill] sm:$0xff] %v12795_v9  ;;  %v12807_v13 = vpop.permute.xlu0 %9810  ;;  %v9502_v40 = vunpack.i.l.bf16 %v17165_v63  ;;  %v9518_v41 = vunpack.i.h.bf16 %v17166_v36  ;;  %v9517_v23 = vunpack.i.l.bf16 %v17166_v36  ;;  %v9513_v6 = vunpack.i.h.bf16 %v17167_v17 }
 0x226   : > { %17164 = vst [vmem:[#allocation59_spill] sm:$0xff] %v12807_v13  ;;  %v9512_v29 = vunpack.i.l.bf16 %v17167_v17  ;;  %v12823_v47 = vsel %vm3172_vm8, %v12646_v0, %v9497_v33  ;;  %v12827_v38 = vsel %vm3172_vm8, %v12658_v53, %v9492_v57  ;;  %v9527_v63 = vunpack.i.l.bf16 %v17168_v60  ;;  %v17169_v0 = vld [vmem:[#allocation6_spill] sm:$0xff] }
 0x227   : > { %v12834_v36 = vsel %vm3172_vm8, %v12662_v55, %v9493_v12  ;;  %v12838_v17 = vsel %vm3205_vm9, %v12670_v56, %v9507_v31  ;;  %v9528_v22 = vunpack.i.h.bf16 %v17168_v60  ;;  %v9522_v33 = vunpack.i.l.bf16 %v17169_v0 }
 0x228   : > { %v12830_v9 = vpop.permute.xlu1 %9825  ;;  %v12846_v53 = vsel %vm3205_vm9, %v12674_v30, %v9508_v51  ;;  %v12850_v57 = vsel %vm3205_vm9, %v12678_v50, %v9502_v40  ;;  %v12854_v55 = vsel %vm3205_vm9, %v12683_v15, %v9503_v20  ;;  %v9523_v56 = vunpack.i.h.bf16 %v17169_v0  ;;  %v17170_v51 = vld [vmem:[#allocation7_spill] sm:$0xff]  ;;  %v17171_v40 = vld [vmem:[#allocation8_spill] sm:$0xff]  ;;  %v17173_v0 = vld [vmem:[#allocation10_spill] sm:$0xff] }
 0x229   : > { %v12842_v37 = vpop.permute.xlu0 %9820  ;;  %v12859_v12 = vsel %vm3205_vm9, %v12687_v32, %v9517_v23  ;;  %v12863_v31 = vsel %vm3205_vm9, %v12691_v24, %v9518_v41  ;;  %v12867_v30 = vsel %vm3205_vm9, %v12695_v46, %v9512_v29  ;;  %v12871_v50 = vsel %vm3205_vm9, %v12699_v5, %v9513_v6 }
 0x22a   : > { %v12875_v15 = vsel %vm3205_vm9, %v12703_v19, %v9527_v63  ;;  %v9538_v20 = vunpack.i.h.bf16 %v17170_v51  ;;  %v9537_v32 = vunpack.i.l.bf16 %v17170_v51  ;;  %v9532_v23 = vunpack.i.l.bf16 %v17171_v40  ;;  %v17172_v19 = vld [vmem:[#allocation9_spill] sm:$0xff] }
 0x22b   : > { %v12884_v46 = vsel %vm3205_vm9, %v12711_v4, %v9528_v22  ;;  %v12888_v5 = vsel %vm3205_vm9, %v12715_v18, %v9522_v33  ;;  %v9533_v41 = vunpack.i.h.bf16 %v17171_v40  ;;  %v9547_v6 = vunpack.i.l.bf16 %v17172_v19  ;;  %v17174_v4 = vld [vmem:[#allocation11_spill] sm:$0xff]  ;;  %v17175_v40 = vld [vmem:[#allocation12_spill] sm:$0xff] }
 0x22c   : > { %v12880_v24 = vpop.permute.xlu1 %9835  ;;  %v12896_v60 = vsel %vm3205_vm9, %v12723_v3, %v9523_v56  ;;  %v9548_v63 = vunpack.i.h.bf16 %v17172_v19  ;;  %v9543_v51 = vunpack.i.h.bf16 %v17173_v0  ;;  %v9542_v22 = vunpack.i.l.bf16 %v17173_v0  ;;  %v17176_v19 = vld [vmem:[#allocation13_spill] sm:$0xff] }
 0x22d   : > { %v12892_v29 = vpop.permute.xlu0 %9830  ;;  %v9558_v18 = vunpack.i.h.bf16 %v17174_v4  ;;  %v9557_v33 = vunpack.i.l.bf16 %v17174_v4  ;;  %v9553_v13 = vunpack.i.h.bf16 %v17175_v40  ;;  %v9552_v14 = vunpack.i.l.bf16 %v17175_v40 }
 0x22e   : > { %v12907_v27 = vsel %vm3205_vm9, %v12734_v62, %v9537_v32  ;;  %v12911_v3 = vsel %vm3205_vm9, %v12738_v49, %v9538_v20  ;;  %v12915_v56 = vsel %vm3205_vm9, %v12746_v8, %v9532_v23  ;;  %v9567_v0 = vunpack.i.l.bf16 %v17176_v19  ;;  %v17177_v49 = vld [vmem:[#allocation14_spill] sm:$0xff] }
 0x22f   : > { %v12922_v4 = vsel %vm3205_vm9, %v12750_v7, %v9533_v41  ;;  %v12926_v62 = vsel %vm3205_vm9, %v12758_v61, %v9547_v6  ;;  %v9568_v32 = vunpack.i.h.bf16 %v17176_v19  ;;  %v9562_v20 = vunpack.i.l.bf16 %v17177_v49 }
 0x230   : > { %v12918_v1 = vpop.permute.xlu1 %9845  ;;  %v12934_v8 = vsel %vm3205_vm9, %v12762_v10, %v9548_v63  ;;  %v12938_v23 = vsel %vm3205_vm9, %v12766_v54, %v9542_v22  ;;  %v12942_v7 = vsel %vm3205_vm9, %v12771_v34, %v9543_v51  ;;  %v9563_v61 = vunpack.i.h.bf16 %v17177_v49  ;;  %v17178_v63 = vld [vmem:[#allocation15_spill] sm:$0xff] }
 0x231   : > { %v12930_v40 = vpop.permute.xlu0 %9840  ;;  %v12947_v41 = vsel %vm3205_vm9, %v12775_v58, %v9557_v33  ;;  %v12951_v6 = vsel %vm3205_vm9, %v12779_v42, %v9558_v18  ;;  %v12955_v10 = vsel %vm3205_vm9, %v12783_v28, %v9552_v14  ;;  %v12959_v54 = vsel %vm3205_vm9, %v12787_v39, %v9553_v13  ;;  %v17179_v58 = vld [vmem:[#allocation16_spill] sm:$0xff]  ;;  %v17180_v39 = vld [vmem:[#allocation17_spill] sm:$0xff] }
 0x232   : > { %v12963_v34 = vsel %vm3205_vm9, %v12791_v45, %v9567_v0  ;;  %v9577_v51 = vunpack.i.l.bf16 %v17178_v63  ;;  %v9573_v22 = vunpack.i.h.bf16 %v17179_v58  ;;  %v9572_v33 = vunpack.i.l.bf16 %v17179_v58  ;;  %v17181_v0 = vld [vmem:[#allocation18_spill] sm:$0xff] }
 0x233   : > { %v12972_v14 = vsel %vm3205_vm9, %v12799_v2, %v9568_v32  ;;  %v12976_v28 = vsel %vm3205_vm9, %v12803_v26, %v9562_v20  ;;  %v9588_v13 = vunpack.i.h.bf16 %v17180_v39  ;;  %v9587_v45 = vunpack.i.l.bf16 %v17180_v39  ;;  %v17182_v2 = vld [vmem:[#allocation19_spill] sm:$0xff]  ;;  %v17183_v20 = vld [vmem:[#allocation20_spill] sm:$0xff] }
 0x234   : > { %v12968_v42 = vpop.permute.xlu1 %9855  ;;  %v12984_v19 = vsel %vm3205_vm9, %v12811_v59, %v9563_v61  ;;  %v9583_v49 = vunpack.i.h.bf16 %v17181_v0  ;;  %v9582_v58 = vunpack.i.l.bf16 %v17181_v0  ;;  %v9597_v32 = vunpack.i.l.bf16 %v17182_v2  ;;  %v17184_v0 = vld [vmem:[#allocation21_spill] sm:$0xff] }
 0x235   : > { %v12980_v18 = vpop.permute.xlu0 %9850  ;;  %v9598_v26 = vunpack.i.h.bf16 %v17182_v2  ;;  %v9593_v43 = vunpack.i.h.bf16 %v17183_v20  ;;  %v9592_v39 = vunpack.i.l.bf16 %v17183_v20  ;;  %v12995_v16 = vsel %vm3205_vm9, %v12823_v47, %v9577_v51 }
 0x236   : > { %v12999_v59 = vsel %vm3205_vm9, %v12827_v38, %v9572_v33  ;;  %v13003_v61 = vsel %vm3205_vm9, %v12834_v36, %v9573_v22  ;;  %v9607_v48 = vunpack.i.l.bf16 %v17184_v0  ;;  %v13010_v2 = vsel %vm3238_vm10, %v12838_v17, %v9587_v45  ;;  %v17186_v38 = vld [vmem:[#allocation22_spill] sm:$0xff] }
 0x237   : > { %v13014_v47 = vsel %vm3238_vm10, %v12846_v53, %v9588_v13  ;;  %v9608_v51 = vunpack.i.h.bf16 %v17184_v0  ;;  %v9602_v33 = vunpack.i.l.bf16 %v17186_v38  ;;  %v13022_v36 = vsel %vm3238_vm10, %v12850_v57, %v9582_v58 }
 0x238   : > { %v13006_v63 = vpop.permute.xlu1 %9865  ;;  %v13026_v22 = vsel %vm3238_vm10, %v12854_v55, %v9583_v49  ;;  %v13030_v17 = vsel %vm3238_vm10, %v12859_v12, %v9597_v32  ;;  %v9603_v53 = vunpack.i.h.bf16 %v17186_v38  ;;  %v13035_v13 = vsel %vm3238_vm10, %v12863_v31, %v9598_v26  ;;  %v17188_v55 = vld [vmem:[#allocation23_spill] sm:$0xff]  ;;  %v17189_v32 = vld [vmem:[#allocation24_spill] sm:$0xff] }
 0x239   : > { %17185 = vst [vmem:[#allocation60_spill] sm:$0xff] %v13006_v63  ;;  %v13018_v20 = vpop.permute.xlu0 %9860  ;;  %v13039_v45 = vsel %vm3238_vm10, %v12867_v30, %v9592_v39  ;;  %v13043_v57 = vsel %vm3238_vm10, %v12871_v50, %v9593_v43  ;;  %v9617_v49 = vunpack.i.l.bf16 %v17188_v55  ;;  %v13048_v12 = vsel %vm3238_vm10, %v12875_v15, %v9607_v48  ;;  %v17191_v50 = vld [vmem:[#allocation25_spill] sm:$0xff] }
 0x23a   : > { %17187 = vst [vmem:[#allocation61_spill] sm:$0xff] %v13018_v20  ;;  %v9618_v58 = vunpack.i.h.bf16 %v17188_v55  ;;  %v9613_v0 = vunpack.i.h.bf16 %v17189_v32  ;;  %v9612_v31 = vunpack.i.l.bf16 %v17189_v32  ;;  %v13057_v30 = vsel %vm3238_vm10, %v12884_v46, %v9608_v51  ;;  %v17193_v55 = vld [vmem:[#allocation26_spill] sm:$0xff]  ;;  %v17194_v51 = vld [vmem:[#allocation27_spill] sm:$0xff] }
 0x23b   : > { %v13061_v43 = vsel %vm3238_vm10, %v12888_v5, %v9602_v33  ;;  %v9628_v39 = vunpack.i.h.bf16 %v17191_v50  ;;  %v9627_v48 = vunpack.i.l.bf16 %v17191_v50  ;;  %v13069_v38 = vsel %vm3238_vm10, %v12896_v60, %v9603_v53  ;;  %v17195_v50 = vld [vmem:[#allocation28_spill] sm:$0xff] }
 0x23c   : > { %v13053_v26 = vpop.permute.xlu1 %9875  ;;  %v9623_v32 = vunpack.i.h.bf16 %v17193_v55  ;;  %v9622_v46 = vunpack.i.l.bf16 %v17193_v55  ;;  %v13076_v5 = vsel %vm3238_vm10, %v12907_v27, %v9617_v49  ;;  %v9638_v33 = vunpack.i.h.bf16 %v17194_v51  ;;  %v17196_v27 = vld [vmem:[#allocation29_spill] sm:$0xff] }
 0x23d   : > { %17190 = vst [vmem:[#allocation62_spill] sm:$0xff] %v13053_v26  ;;  %v13065_v15 = vpop.permute.xlu0 %9870  ;;  %v9637_v26 = vunpack.i.l.bf16 %v17194_v51  ;;  %v9633_v63 = vunpack.i.h.bf16 %v17195_v50  ;;  %v13083_v60 = vsel %vm3238_vm10, %v12911_v3, %v9618_v58  ;;  %v13087_v53 = vsel %vm3238_vm10, %v12915_v56, %v9612_v31  ;;  %v17197_v58 = vld [vmem:[#allocation30_spill] sm:$0xff] }
 0x23e   : > { %17192 = vst [vmem:[#allocation63_spill] sm:$0xff] %v13065_v15  ;;  %v9632_v15 = vunpack.i.l.bf16 %v17195_v50  ;;  %v13091_v55 = vsel %vm3238_vm10, %v12922_v4, %v9613_v0  ;;  %v9647_v49 = vunpack.i.l.bf16 %v17196_v27  ;;  %v13098_v51 = vsel %vm3238_vm10, %v12926_v62, %v9627_v48 }
 0x23f   : > { %v13102_v3 = vsel %vm3238_vm10, %v12934_v8, %v9628_v39  ;;  %v9648_v56 = vunpack.i.h.bf16 %v17196_v27  ;;  %v9642_v31 = vunpack.i.l.bf16 %v17197_v58  ;;  %v13110_v4 = vsel %vm3238_vm10, %v12938_v23, %v9622_v46 }
 0x240   : > { %v13094_v20 = vpop.permute.xlu1 %9885  ;;  %v13114_v0 = vsel %vm3238_vm10, %v12942_v7, %v9623_v32  ;;  %v13118_v62 = vsel %vm3238_vm10, %v12947_v41, %v9637_v26  ;;  %v9643_v8 = vunpack.i.h.bf16 %v17197_v58  ;;  %v13123_v39 = vsel %vm3238_vm10, %v12951_v6, %v9638_v33  ;;  %v17198_v7 = vld [vmem:[#allocation31_spill] sm:$0xff]  ;;  %v17199_v26 = vld [vmem:[#allocation32_spill] sm:$0xff] }
 0x241   : > { %v13106_v50 = vpop.permute.xlu0 %9880  ;;  %v13127_v48 = vsel %vm3238_vm10, %v12955_v10, %v9632_v15  ;;  %v13131_v23 = vsel %vm3238_vm10, %v12959_v54, %v9633_v63  ;;  %v9657_v32 = vunpack.i.l.bf16 %v17198_v7  ;;  %v13136_v41 = vsel %vm3238_vm10, %v12963_v34, %v9647_v49 }
 0x242   : > { %v9652_v46 = vunpack.i.l.bf16 %v17199_v26  ;;  %v9667_v27 = vunpack.i.l.bf16 %v12124_v35  ;;  %v9662_v6 = vunpack.i.l.bf16 %v12141_v44  ;;  %v13145_v10 = vsel %vm3238_vm10, %v12972_v14, %v9648_v56 }
 0x243   : > { %17201 = vst [vmem:[#allocation65_spill] sm:$0xff] %v13145_v10  ;;  %v13149_v54 = vsel %vm3238_vm10, %v12976_v28, %v9642_v31  ;;  %v9663_v63 = vunpack.i.h.bf16 %v12141_v44  ;;  %v9742_v34 = vunpack.i.l.bf16 %v12490_v52  ;;  %v13157_v49 = vsel %vm3238_vm10, %v12984_v19, %v9643_v8 }
 0x244   : > { %v13141_v33 = vpop.permute.xlu1 %9895  ;;  %v9743_v14 = vunpack.i.h.bf16 %v12490_v52  ;;  %v13164_v28 = vsel %vm3238_vm10, %v12995_v16, %v9657_v32  ;;  %v9747_v44 = vunpack.i.l.bf16 %v12478_v25  ;;  %v9823_v56 = vunpack.i.h.bf16 %v12842_v37 }
 0x245   : > { %17200 = vst [vmem:[#allocation64_spill] sm:$0xff] %v13141_v33  ;;  %v13153_v15 = vpop.permute.xlu0 %9890  ;;  %v9653_v33 = vunpack.i.h.bf16 %v17199_v26  ;;  %17202 = vst [vmem:[#allocation66_spill] sm:$0xff] %v13164_v28  ;;  %v9822_v31 = vunpack.i.l.bf16 %v12842_v37  ;;  %v13171_v19 = vsel %vm3238_vm10, %v12999_v59, %v9652_v46  ;;  %v9668_v8 = vunpack.i.h.bf16 %v12124_v35 }
 0x246   : > { %17203 = vst [vmem:[#allocation67_spill] sm:$0xff] %v13171_v19  ;;  %v3274_v26 = vsel %vm3271_vm11, %v13010_v2, %v9667_v27  ;;  %v3272_v16 = vsel %vm3271_vm11, %v13022_v36, %v9662_v6  ;;  %v3273_v32 = vsel %vm3271_vm11, %v13026_v22, %v9663_v63  ;;  %v9672_v58 = vunpack.i.l.bf16 %v12192_v11 }
 0x247   : > { %v9827_v37 = vunpack.i.l.bf16 %v12830_v9  ;;  %v3305_v59 = vsel %vm3304_vm12, %v3272_v16, %v9742_v34  ;;  %v3306_v19 = vsel %vm3304_vm12, %v3273_v32, %v9743_v14  ;;  %v9748_v2 = vunpack.i.h.bf16 %v12478_v25  ;;  %v17205_v32 = vld [vmem:[#allocation46_spill] sm:$0xff] }
 0x248   : > { %v9906_v52 = vpop.permute.xlu1 %9905  ;;  %v3338_v27 = vsel %vm3337_vm13, %v3305_v59, %v9822_v31  ;;  %v3339_v36 = vsel %vm3337_vm13, %v3306_v19, %v9823_v56  ;;  %v3307_v22 = vsel %vm3304_vm12, %v3274_v26, %v9747_v44  ;;  %v9752_v6 = vunpack.i.l.bf16 %v12543_v21  ;;  %v17204_v26 = vld [vmem:[#allocation33_spill] sm:$0xff] }
 0x249   : > { %v9901_v7 = vpop.permute.xlu0 %9900  ;;  %v9907_v46 = vunpack.i.l.bf16 %v9906_v52  ;;  %v9828_v63 = vunpack.i.h.bf16 %v12830_v9  ;;  %v9832_v25 = vunpack.i.l.bf16 %v12892_v29  ;;  %v9908_v14 = vunpack.i.h.bf16 %v9906_v52 }
 0x24a   : > { %v9903_v28 = vunpack.i.h.bf16 %v9901_v7  ;;  %v9902_v35 = vunpack.i.l.bf16 %v9901_v7  ;;  %v13194_v7 = vsel %vm3238_vm10, %v13003_v61, %v9653_v33  ;;  %v3340_v56 = vsel %vm3337_vm13, %v3307_v22, %v9827_v37 }
 0x24b   : > { %v3275_v44 = vsel %vm3271_vm11, %v13014_v47, %v9668_v8  ;;  %v9673_v9 = vunpack.i.h.bf16 %v12192_v11  ;;  %v9677_v16 = vunpack.i.l.bf16 %v17204_v26  ;;  %v3276_v61 = vsel %vm3271_vm11, %v13039_v45, %v9672_v58 }
 0x24c   : > { %v3371_v10 = vsel %vm3370_vm14, %v3338_v27, %v9902_v35  ;;  %v3372_v34 = vsel %vm3370_vm14, %v3339_v36, %v9903_v28  ;;  %v3373_v28 = vsel %vm3370_vm14, %v3340_v56, %v9907_v46  ;;  %v9753_v33 = vunpack.i.h.bf16 %v12543_v21  ;;  %v9916_v52 = vpop.permute.xlu1 %9915  ;;  %v17206_v36 = vld [vmem:[#allocation35_spill] sm:$0xff] }
 0x24d   : > { %v9911_v31 = vpop.permute.xlu0 %9910  ;;  %8512 = vmatprep.mubr.f32.mxu0 %v3371_v10  ;;  %v3308_v10 = vsel %vm3304_vm12, %v3275_v44, %v9748_v2  ;;  %v9757_v37 = vunpack.i.l.bf16 %v17205_v32  ;;  %v9833_v47 = vunpack.i.h.bf16 %v12892_v29  ;;  %v3309_v8 = vsel %vm3304_vm12, %v3276_v61, %v9752_v6  ;;  %v17208_v61 = vld [vmem:[#allocation34_spill] sm:$0xff] }
 0x24e   : > { %v9912_v19 = vunpack.i.l.bf16 %v9911_v31  ;;  %8513 = vmatmul.mubr.f32.vlgmr.msra.gmra.mrb[0].mxu0 %v3372_v34  ;;  %v3341_v11 = vsel %vm3337_vm13, %v3308_v10, %v9828_v63  ;;  %v9837_v59 = vunpack.i.l.bf16 %v12880_v24  ;;  %v9913_v46 = vunpack.i.h.bf16 %v9911_v31 }
 0x24f   : > { %8515 = vmatprep.mubr.f32.mxu0 %v3373_v28  ;;  %v3374_v35 = vsel %vm3370_vm14, %v3341_v11, %v9908_v14  ;;  %v3342_v45 = vsel %vm3337_vm13, %v3309_v8, %v9832_v25  ;;  %v9678_v21 = vunpack.i.h.bf16 %v17204_v26  ;;  %v3277_v58 = vsel %vm3271_vm11, %v13043_v57, %v9673_v9  ;;  %v17207_v25 = vld [vmem:[#allocation48_spill] sm:$0xff] }
 0x250   : > { %v9917_v2 = vunpack.i.l.bf16 %v9916_v52  ;;  %v3375_v29 = vsel %vm3370_vm14, %v3342_v45, %v9912_v19  ;;  %v3278_v27 = vsel %vm3271_vm11, %v13030_v17, %v9677_v16  ;;  %v9682_v22 = vunpack.i.l.bf16 %v17206_v36 }
 0x251   : > { %v9758_v6 = vunpack.i.h.bf16 %v17205_v32  ;;  %v9921_v63 = vpop.permute.xlu0 %9920  ;;  %v3310_v34 = vsel %vm3304_vm12, %v3277_v58, %v9753_v33  ;;  %v9762_v14 = vunpack.i.l.bf16 %v17207_v25  ;;  %v9838_v31 = vunpack.i.h.bf16 %v12880_v24  ;;  %v9926_v32 = vpop.permute.xlu1 %9925 }
 0x252   : > { %8516 = vmatmul.mubr.f32.gmra.mrb[2].mxu0 %v3374_v35  ;;  %v3343_v57 = vsel %vm3337_vm13, %v3310_v34, %v9833_v47  ;;  %v3311_v56 = vsel %vm3304_vm12, %v3278_v27, %v9757_v37  ;;  %v9842_v44 = vunpack.i.l.bf16 %v12930_v40  ;;  %v9918_v9 = vunpack.i.h.bf16 %v9916_v52  ;;  %v17209_v47 = vld [vmem:[#allocation47_spill] sm:$0xff]  ;;  %v17210_v27 = vld [vmem:[#allocation37_spill] sm:$0xff]  ;;  %v17211_v34 = vld [vmem:[#allocation50_spill] sm:$0xff] }
 0x253   : > { %8518 = vmatprep.mubr.f32.mxu0 %v3375_v29  ;;  %v3376_v17 = vsel %vm3370_vm14, %v3343_v57, %v9913_v46  ;;  %v3344_v19 = vsel %vm3337_vm13, %v3311_v56, %v9837_v59  ;;  %v3279_v28 = vsel %vm3271_vm11, %v13035_v13, %v9678_v21  ;;  %v9683_v26 = vunpack.i.h.bf16 %v17206_v36 }
 0x254   : > { %v9922_v16 = vunpack.i.l.bf16 %v9921_v63  ;;  %v3377_v24 = vsel %vm3370_vm14, %v3344_v19, %v9917_v2  ;;  %v9687_v33 = vunpack.i.l.bf16 %v17208_v61  ;;  %v3280_v10 = vsel %vm3271_vm11, %v13061_v43, %v9682_v22 }
 0x255   : > { %v9763_v52 = vunpack.i.h.bf16 %v17207_v25  ;;  %v3312_v37 = vsel %vm3304_vm12, %v3279_v28, %v9758_v6  ;;  %v9767_v11 = vunpack.i.l.bf16 %v17209_v47  ;;  %v9843_v13 = vunpack.i.h.bf16 %v12930_v40  ;;  %v9931_v6 = vpop.permute.xlu0 %9930  ;;  %v17212_v28 = vld [vmem:[#allocation36_spill] sm:$0xff] }
 0x256   : > { %8519 = vmatmul.mubr.f32.gmra.mrb[4].mxu0 %v3376_v17  ;;  %v3345_v8 = vsel %vm3337_vm13, %v3312_v37, %v9838_v31  ;;  %v3313_v59 = vsel %vm3304_vm12, %v3280_v10, %v9762_v14  ;;  %v9847_v46 = vunpack.i.l.bf16 %v12918_v1  ;;  %v9923_v35 = vunpack.i.h.bf16 %v9921_v63  ;;  %v17213_v10 = vld [vmem:[#allocation49_spill] sm:$0xff] }
 0x257   : > { %8521 = vmatprep.mubr.f32.mxu0 %v3377_v24  ;;  %v3378_v45 = vsel %vm3370_vm14, %v3345_v8, %v9918_v9  ;;  %v3346_v43 = vsel %vm3337_vm13, %v3313_v59, %v9842_v44  ;;  %v9688_v21 = vunpack.i.h.bf16 %v17208_v61  ;;  %v3281_v58 = vsel %vm3271_vm11, %v13069_v38, %v9683_v26  ;;  %v9936_v61 = vpop.permute.xlu1 %9935 }
 0x258   : > { %v9927_v2 = vunpack.i.l.bf16 %v9926_v32  ;;  %v3379_v40 = vsel %vm3370_vm14, %v3346_v43, %v9922_v16  ;;  %v3282_v29 = vsel %vm3271_vm11, %v13048_v12, %v9687_v33  ;;  %v9692_v36 = vunpack.i.l.bf16 %v17210_v27 }
 0x259   : > { %v9768_v22 = vunpack.i.h.bf16 %v17209_v47  ;;  %v3314_v63 = vsel %vm3304_vm12, %v3281_v58, %v9763_v52  ;;  %v9772_v25 = vunpack.i.l.bf16 %v17211_v34  ;;  %v9848_v14 = vunpack.i.h.bf16 %v12918_v1  ;;  %v9941_v58 = vpop.permute.xlu0 %9940 }
 0x25a   : > { %8522 = vmatmul.mubr.f32.gmra.mrb[6].mxu0 %v3378_v45  ;;  %v3347_v38 = vsel %vm3337_vm13, %v3314_v63, %v9843_v13  ;;  %v3315_v31 = vsel %vm3304_vm12, %v3282_v29, %v9767_v11  ;;  %v9852_v57 = vunpack.i.l.bf16 %v12980_v18  ;;  %v9928_v56 = vunpack.i.h.bf16 %v9926_v32  ;;  %v17214_v45 = vld [vmem:[#allocation39_spill] sm:$0xff] }
 0x25b   : > { %8524 = vmatprep.mubr.f32.mxu0 %v3379_v40  ;;  %v3380_v12 = vsel %vm3370_vm14, %v3347_v38, %v9923_v35  ;;  %v3348_v44 = vsel %vm3337_vm13, %v3315_v31, %v9847_v46  ;;  %v3283_v9 = vsel %vm3271_vm11, %v13057_v30, %v9688_v21  ;;  %v9693_v17 = vunpack.i.h.bf16 %v17210_v27  ;;  %v17215_v40 = vld [vmem:[#allocation53_spill] sm:$0xff]  ;;  %v17217_v31 = vld [vmem:[#allocation38_spill] sm:$0xff] }
 0x25c   : > { %v9932_v19 = vunpack.i.l.bf16 %v9931_v6  ;;  %v3381_v1 = vsel %vm3370_vm14, %v3348_v44, %v9927_v2  ;;  %v9697_v26 = vunpack.i.l.bf16 %v17212_v28  ;;  %v3284_v16 = vsel %vm3271_vm11, %v13087_v53, %v9692_v36  ;;  %v9946_v44 = vpop.permute.xlu1 %9945 }
 0x25d   : > { %v9773_v24 = vunpack.i.h.bf16 %v17211_v34  ;;  %v3316_v33 = vsel %vm3304_vm12, %v3283_v9, %v9768_v22  ;;  %v9777_v52 = vunpack.i.l.bf16 %v17213_v10  ;;  %v9853_v30 = vunpack.i.h.bf16 %v12980_v18  ;;  %v17216_v22 = vld [vmem:[#allocation61_spill] sm:$0xff] }
 0x25e   : > { %8525 = vmatmul.mubr.f32.gmra.mrb[8].mxu0 %v3380_v12  ;;  %v3349_v32 = vsel %vm3337_vm13, %v3316_v33, %v9848_v14  ;;  %v3317_v37 = vsel %vm3304_vm12, %v3284_v16, %v9772_v25  ;;  %v9857_v47 = vunpack.i.l.bf16 %v12968_v42  ;;  %v9933_v11 = vunpack.i.h.bf16 %v9931_v6 }
 0x25f   : > { %8527 = vmatprep.mubr.f32.mxu0 %v3381_v1  ;;  %v3382_v13 = vsel %vm3370_vm14, %v3349_v32, %v9928_v56  ;;  %v3350_v53 = vsel %vm3337_vm13, %v3317_v37, %v9852_v57  ;;  %v9698_v8 = vunpack.i.h.bf16 %v17212_v28  ;;  %v3285_v59 = vsel %vm3271_vm11, %v13091_v55, %v9693_v17  ;;  %v17218_v17 = vld [vmem:[#allocation52_spill] sm:$0xff]  ;;  %v17220_v37 = vld [vmem:[#allocation41_spill] sm:$0xff] }
 0x260   : > { %v9937_v46 = vunpack.i.l.bf16 %v9936_v61  ;;  %v3383_v18 = vsel %vm3370_vm14, %v3350_v53, %v9932_v19  ;;  %v3286_v35 = vsel %vm3271_vm11, %v13076_v5, %v9697_v26  ;;  %v9702_v43 = vunpack.i.l.bf16 %v17214_v45  ;;  %v17219_v26 = vld [vmem:[#allocation60_spill] sm:$0xff] }
 0x261   : > { %v9778_v21 = vunpack.i.h.bf16 %v17213_v10  ;;  %v3318_v2 = vsel %vm3304_vm12, %v3285_v59, %v9773_v24  ;;  %v9782_v29 = vunpack.i.l.bf16 %v17215_v40  ;;  %v9858_v27 = vunpack.i.h.bf16 %v12968_v42 }
 0x262   : > { %8528 = vmatmul.mubr.f32.gmra.mrb[10].mxu0 %v3382_v13  ;;  %v3351_v55 = vsel %vm3337_vm13, %v3318_v2, %v9853_v30  ;;  %v3319_v36 = vsel %vm3304_vm12, %v3286_v35, %v9777_v52  ;;  %v9862_v6 = vunpack.i.l.bf16 %v17216_v22  ;;  %v9938_v63 = vunpack.i.h.bf16 %v9936_v61  ;;  %v9951_v13 = vpop.permute.xlu0 %9950  ;;  %v17222_v35 = vld [vmem:[#allocation63_spill] sm:$0xff] }
 0x263   : > { %8530 = vmatprep.mubr.f32.mxu0 %v3383_v18  ;;  %v3384_v5 = vsel %vm3370_vm14, %v3351_v55, %v9933_v11  ;;  %v3352_v34 = vsel %vm3337_vm13, %v3319_v36, %v9857_v47  ;;  %v3287_v25 = vsel %vm3271_vm11, %v13083_v60, %v9698_v8  ;;  %v9703_v14 = vunpack.i.h.bf16 %v17214_v45  ;;  %v17221_v8 = vld [vmem:[#allocation55_spill] sm:$0xff] }
 0x264   : > { %v9942_v38 = vunpack.i.l.bf16 %v9941_v58  ;;  %v3385_v42 = vsel %vm3370_vm14, %v3352_v34, %v9937_v46  ;;  %v9707_v57 = vunpack.i.l.bf16 %v17217_v31  ;;  %v3288_v56 = vsel %vm3271_vm11, %v13110_v4, %v9702_v43 }
 0x265   : > { %v9783_v12 = vunpack.i.h.bf16 %v17215_v40  ;;  %v3320_v9 = vsel %vm3304_vm12, %v3287_v25, %v9778_v21  ;;  %v9787_v19 = vunpack.i.l.bf16 %v17218_v17  ;;  %v9863_v60 = vunpack.i.h.bf16 %v17216_v22 }
 0x266   : > { %8531 = vmatmul.mubr.f32.gmra.mrb[12].mxu0 %v3384_v5  ;;  %v3353_v1 = vsel %vm3337_vm13, %v3320_v9, %v9858_v27  ;;  %v3321_v28 = vsel %vm3304_vm12, %v3288_v56, %v9782_v29  ;;  %v9867_v16 = vunpack.i.l.bf16 %v17219_v26  ;;  %v9943_v24 = vunpack.i.h.bf16 %v9941_v58  ;;  %v17223_v27 = vld [vmem:[#allocation40_spill] sm:$0xff]  ;;  %v17224_v5 = vld [vmem:[#allocation54_spill] sm:$0xff] }
 0x267   : > { %8533 = vmatprep.mubr.f32.mxu0 %v3385_v42  ;;  %v3386_v61 = vsel %vm3370_vm14, %v3353_v1, %v9938_v63  ;;  %v3354_v4 = vsel %vm3337_vm13, %v3321_v28, %v9862_v6  ;;  %v9708_v33 = vunpack.i.h.bf16 %v17217_v31  ;;  %v3289_v10 = vsel %vm3271_vm11, %v13114_v0, %v9703_v14  ;;  %v9956_v6 = vpop.permute.xlu1 %9955  ;;  %v9961_v28 = vpop.permute.xlu0 %9960 }
 0x268   : > { %v9947_v52 = vunpack.i.l.bf16 %v9946_v44  ;;  %v3387_v30 = vsel %vm3370_vm14, %v3354_v4, %v9942_v38  ;;  %v3290_v32 = vsel %vm3271_vm11, %v13098_v51, %v9707_v57  ;;  %v9712_v47 = vunpack.i.l.bf16 %v17220_v37  ;;  %v17225_v38 = vld [vmem:[#allocation62_spill] sm:$0xff] }
 0x269   : > { %v9788_v11 = vunpack.i.h.bf16 %v17218_v17  ;;  %v3322_v53 = vsel %vm3304_vm12, %v3289_v10, %v9783_v12  ;;  %v9792_v59 = vunpack.i.l.bf16 %v17221_v8  ;;  %v9868_v46 = vunpack.i.h.bf16 %v17219_v26 }
 0x26a   : > { %8534 = vmatmul.mubr.f32.gmra.mrb[14].mxu0 %v3386_v61  ;;  %v3355_v0 = vsel %vm3337_vm13, %v3322_v53, %v9863_v60  ;;  %v3323_v18 = vsel %vm3304_vm12, %v3290_v32, %v9787_v19  ;;  %v9872_v45 = vunpack.i.l.bf16 %v17222_v35  ;;  %v9948_v43 = vunpack.i.h.bf16 %v9946_v44  ;;  %v17226_v19 = vld [vmem:[#allocation43_spill] sm:$0xff] }
 0x26b   : > { %8536 = vmatprep.mubr.f32.mxu0 %v3387_v30  ;;  %v3388_v51 = vsel %vm3370_vm14, %v3355_v0, %v9943_v24  ;;  %v3356_v21 = vsel %vm3337_vm13, %v3323_v18, %v9867_v16  ;;  %v3291_v58 = vsel %vm3271_vm11, %v13102_v3, %v9708_v33  ;;  %v9713_v2 = vunpack.i.h.bf16 %v17220_v37  ;;  %v17227_v16 = vld [vmem:[#allocation57_spill] sm:$0xff]  ;;  %v17229_v0 = vld [vmem:[#allocation56_spill] sm:$0xff] }
 0x26c   : > { %v9952_v40 = vunpack.i.l.bf16 %v9951_v13  ;;  %v3389_v29 = vsel %vm3370_vm14, %v3356_v21, %v9947_v52  ;;  %v9717_v55 = vunpack.i.l.bf16 %v17223_v27  ;;  %v3292_v36 = vsel %vm3271_vm11, %v13127_v48, %v9712_v47 }
 0x26d   : > { %v9793_v22 = vunpack.i.h.bf16 %v17221_v8  ;;  %v3324_v63 = vsel %vm3304_vm12, %v3291_v58, %v9788_v11  ;;  %v9797_v34 = vunpack.i.l.bf16 %v17224_v5  ;;  %v9873_v3 = vunpack.i.h.bf16 %v17222_v35  ;;  %v17228_v11 = vld [vmem:[#allocation42_spill] sm:$0xff] }
 0x26e   : > { %8537 = vmatmul.mubr.f32.gmra.mrb[16].mxu0 %v3388_v51  ;;  %v3357_v25 = vsel %vm3337_vm13, %v3324_v63, %v9868_v46  ;;  %v3325_v14 = vsel %vm3304_vm12, %v3292_v36, %v9792_v59  ;;  %v9877_v42 = vunpack.i.l.bf16 %v17225_v38  ;;  %v9953_v31 = vunpack.i.h.bf16 %v9951_v13  ;;  %v9966_v59 = vpop.permute.xlu1 %9965  ;;  %v17231_v63 = vld [vmem:[#allocation59_spill] sm:$0xff] }
 0x26f   : > { %8539 = vmatprep.mubr.f32.mxu0 %v3389_v29  ;;  %v3390_v57 = vsel %vm3370_vm14, %v3357_v25, %v9948_v43  ;;  %v3358_v48 = vsel %vm3337_vm13, %v3325_v14, %v9872_v45  ;;  %v9718_v56 = vunpack.i.h.bf16 %v17223_v27  ;;  %v3293_v12 = vsel %vm3271_vm11, %v13131_v23, %v9713_v2  ;;  %v17230_v27 = vld [vmem:[#allocation45_spill] sm:$0xff] }
 0x270   : > { %v9957_v44 = vunpack.i.l.bf16 %v9956_v6  ;;  %v3391_v9 = vsel %vm3370_vm14, %v3358_v48, %v9952_v40  ;;  %v3294_v17 = vsel %vm3271_vm11, %v13118_v62, %v9717_v55  ;;  %v9722_v60 = vunpack.i.l.bf16 %v17226_v19 }
 0x271   : > { %v9798_v1 = vunpack.i.h.bf16 %v17224_v5  ;;  %v3326_v26 = vsel %vm3304_vm12, %v3293_v12, %v9793_v22  ;;  %v9802_v24 = vunpack.i.l.bf16 %v17227_v16  ;;  %v9878_v61 = vunpack.i.h.bf16 %v17225_v38  ;;  %v9971_v22 = vpop.permute.xlu0 %9970 }
 0x272   : > { %8540 = vmatmul.mubr.f32.gmra.mrb[18].mxu0 %v3390_v57  ;;  %v3359_v23 = vsel %vm3337_vm13, %v3326_v26, %v9873_v3  ;;  %v3327_v4 = vsel %vm3304_vm12, %v3294_v17, %v9797_v34  ;;  %v9882_v33 = vunpack.i.l.bf16 %v13106_v50  ;;  %v9958_v10 = vunpack.i.h.bf16 %v9956_v6 }
 0x273   : > { %8542 = vmatprep.mubr.f32.mxu0 %v3391_v9  ;;  %v3392_v62 = vsel %vm3370_vm14, %v3359_v23, %v9953_v31  ;;  %v3360_v52 = vsel %vm3337_vm13, %v3327_v4, %v9877_v42  ;;  %v3295_v30 = vsel %vm3271_vm11, %v13123_v39, %v9718_v56  ;;  %v9723_v32 = vunpack.i.h.bf16 %v17226_v19  ;;  %v17232_v42 = vld [vmem:[#allocation65_spill] sm:$0xff]  ;;  %v17233_v56 = vld [vmem:[#allocation44_spill] sm:$0xff]  ;;  %v9976_v19 = vpop.permute.xlu1 %9975 }
 0x274   : > { %v9962_v37 = vunpack.i.l.bf16 %v9961_v28  ;;  %v3393_v47 = vsel %vm3370_vm14, %v3360_v52, %v9957_v44  ;;  %v9727_v13 = vunpack.i.l.bf16 %v17228_v11  ;;  %v3296_v53 = vsel %vm3271_vm11, %v13149_v54, %v9722_v60  ;;  %v17234_v44 = vld [vmem:[#allocation67_spill] sm:$0xff] }
 0x275   : > { %v9803_v8 = vunpack.i.h.bf16 %v17227_v16  ;;  %v3328_v46 = vsel %vm3304_vm12, %v3295_v30, %v9798_v1  ;;  %v9807_v18 = vunpack.i.l.bf16 %v17229_v0  ;;  %v9883_v39 = vunpack.i.h.bf16 %v13106_v50  ;;  %v17235_v1 = vld [vmem:[#allocation58_spill] sm:$0xff] }
 0x276   : > { %8543 = vmatmul.mubr.f32.gmra.mrb[20].mxu0 %v3392_v62  ;;  %v3361_v35 = vsel %vm3337_vm13, %v3328_v46, %v9878_v61  ;;  %v3329_v45 = vsel %vm3304_vm12, %v3296_v53, %v9802_v24  ;;  %v9887_v43 = vunpack.i.l.bf16 %v13094_v20  ;;  %v9963_v51 = vunpack.i.h.bf16 %v9961_v28  ;;  %v17236_v61 = vld [vmem:[#allocation64_spill] sm:$0xff]  ;;  %v17241_v46 = vld [vmem:[#allocation15_spill] sm:$0xff] }
 0x277   : > { %8545 = vmatprep.mubr.f32.mxu0 %v3393_v47  ;;  %v3394_v21 = vsel %vm3370_vm14, %v3361_v35, %v9958_v10  ;;  %v3362_v54 = vsel %vm3337_vm13, %v3329_v45, %v9882_v33  ;;  %v9728_v58 = vunpack.i.h.bf16 %v17228_v11  ;;  %v3297_v2 = vsel %vm3271_vm11, %v13157_v49, %v9723_v32  ;;  %v17237_v32 = vld [vmem:[#allocation112_spill] sm:$0xff]  ;;  %v17239_v47 = vld [vmem:[#allocation51_spill] sm:$0xff] }
 0x278   : > { %v9967_v40 = vunpack.i.l.bf16 %v9966_v59  ;;  %v3395_v50 = vsel %vm3370_vm14, %v3362_v54, %v9962_v37  ;;  %v3298_v29 = vsel %vm3271_vm11, %v13136_v41, %v9727_v13  ;;  %v9732_v55 = vunpack.i.l.bf16 %v17230_v27  ;;  %v17240_v13 = vld [vmem:[#allocation66_spill] sm:$0xff]  ;;  %v17243_v45 = vld [vmem:[#allocation31_spill] sm:$0xff] }
 0x279   : > { %v9808_v36 = vunpack.i.h.bf16 %v17229_v0  ;;  %v3330_v6 = vsel %vm3304_vm12, %v3297_v2, %v9803_v8  ;;  %v9812_v5 = vunpack.i.l.bf16 %v17231_v63  ;;  %v9888_v34 = vunpack.i.h.bf16 %v13094_v20 }
 0x27a   : > { %8546 = vmatmul.mubr.f32.gmra.mrb[22].mxu0 %v3394_v21  ;;  %v3363_v49 = vsel %vm3337_vm13, %v3330_v6, %v9883_v39  ;;  %v3331_v3 = vsel %vm3304_vm12, %v3298_v29, %v9807_v18  ;;  %v9892_v25 = vunpack.i.l.bf16 %v13153_v15  ;;  %v9968_v14 = vunpack.i.h.bf16 %v9966_v59 }
 0x27b   : > { %8548 = vmatprep.mubr.f32.mxu0 %v3395_v50  ;;  %v3396_v41 = vsel %vm3370_vm14, %v3363_v49, %v9963_v51  ;;  %v3364_v38 = vsel %vm3337_vm13, %v3331_v3, %v9887_v43  ;;  %v3299_v31 = vsel %vm3271_vm11, %v17232_v42, %v9728_v58  ;;  %v9733_v57 = vunpack.i.h.bf16 %v17230_v27 }
 0x27c   : > { %v9972_v48 = vunpack.i.l.bf16 %v9971_v22  ;;  %v3397_v20 = vsel %vm3370_vm14, %v3364_v38, %v9967_v40  ;;  %v9737_v12 = vunpack.i.l.bf16 %v17233_v56  ;;  %v3300_v9 = vsel %vm3271_vm11, %v17234_v44, %v9732_v55 }
 0x27d   : > { %v9813_v17 = vunpack.i.h.bf16 %v17231_v63  ;;  %v3332_v60 = vsel %vm3304_vm12, %v3299_v31, %v9808_v36  ;;  %v9817_v28 = vunpack.i.l.bf16 %v17235_v1  ;;  %v9893_v26 = vunpack.i.h.bf16 %v13153_v15  ;;  %v13689_v36 = vld [vmem:[%s16670_s3] ss:$0 sm:$0xff] }
 0x27e   : > { %8549 = vmatmul.mubr.f32.gmra.mrb[24].mxu0 %v3396_v41  ;;  %v3365_v16 = vsel %vm3337_vm13, %v3332_v60, %v9888_v34  ;;  %v3333_v24 = vsel %vm3304_vm12, %v3300_v9, %v9812_v5  ;;  %v9897_v23 = vunpack.i.l.bf16 %v17236_v61  ;;  %v9973_v4 = vunpack.i.h.bf16 %v9971_v22 }
 0x27f   : > { %8551 = vmatprep.mubr.f32.mxu0 %v3397_v20  ;;  %v3398_v33 = vsel %vm3370_vm14, %v3365_v16, %v9968_v14  ;;  %v3366_v10 = vsel %vm3337_vm13, %v3333_v24, %v9892_v25  ;;  %v9738_v62 = vunpack.i.h.bf16 %v17233_v56  ;;  %v3301_v52 = vsel %vm3271_vm11, %v13194_v7, %v9733_v57 }
 0x280   : > { %v9977_v30 = vunpack.i.l.bf16 %v9976_v19  ;;  %v3399_v15 = vsel %vm3370_vm14, %v3366_v10, %v9972_v48  ;;  %v17238_v37 = vunpack.i.h.bf16 %v17237_v32  ;;  %v3302_v53 = vsel %vm3271_vm11, %v17240_v13, %v9737_v12 }
 0x281   : > { %v9818_v8 = vunpack.i.h.bf16 %v17235_v1  ;;  %v3334_v59 = vsel %vm3304_vm12, %v3301_v52, %v9813_v17  ;;  %v17242_v0 = vunpack.i.h.bf16 %v17241_v46  ;;  %v9898_v18 = vunpack.i.h.bf16 %v17236_v61 }
 0x282   : > { %8552 = vmatmul.mubr.f32.gmra.mrb[26].mxu0 %v3398_v33  ;;  %v3204_v11 = vsel %vm3172_vm8, %v17239_v47, %v17238_v37  ;;  %v3367_v39 = vsel %vm3337_vm13, %v3334_v59, %v9893_v26  ;;  %v3335_v35 = vsel %vm3304_vm12, %v3302_v53, %v9817_v28  ;;  %v17244_v43 = vunpack.i.h.bf16 %v17243_v45 }
 0x283   : > { %8554 = vmatprep.mubr.f32.mxu0 %v3399_v15  ;;  %v3237_v7 = vsel %vm3205_vm9, %v3204_v11, %v17242_v0  ;;  %v9978_v21 = vunpack.i.h.bf16 %v9976_v19  ;;  %v3400_v54 = vsel %vm3370_vm14, %v3367_v39, %v9973_v4  ;;  %v3368_v58 = vsel %vm3337_vm13, %v3335_v35, %v9897_v23 }
 0x284   : > { %v3270_v51 = vsel %vm3238_vm10, %v3237_v7, %v17244_v43  ;;  %v3401_v40 = vsel %vm3370_vm14, %v3368_v58, %v9977_v30  ;;  %v16849_v55 = vmov 0.0   ;;  %vm330_vm9 = vcmask 57344  }
 0x285   : > { %v3303_v2 = vsel %vm3271_vm11, %v3270_v51, %v9738_v62  ;;  %334 = vst.msk [vmem:[#allocation2 + $0x30] sm:$0xff] %vm326_vm0, %v16849_v55  ;;  %327 = vst.msk [vmem:[#allocation2] sm:$0xff] %vm326_vm0, %v16849_v55  ;;  %vm404_vm10 = vcmask 24576  }
 0x286   : > { %8555 = vmatmul.mubr.f32.gmra.mrb[28].mxu0 %v3400_v54  ;;  %v3336_v50 = vsel %vm3304_vm12, %v3303_v2, %v9818_v8  ;;  %328 = vst.msk [vmem:[#allocation2 + $0x8] sm:$0xff] %vm326_vm0, %v16849_v55  ;;  %329 = vst.msk [vmem:[#allocation2 + $0x10] sm:$0xff] %vm326_vm0, %v16849_v55 }
 0x287   : > { %8557 = vmatprep.mubr.f32.mxu0 %v3401_v40  ;;  %v3369_v29 = vsel %vm3337_vm13, %v3336_v50, %v9898_v18  ;;  %332 = vst.msk [vmem:[#allocation2 + $0x20] sm:$0xff] %vm326_vm0, %v16849_v55  ;;  %333 = vst.msk [vmem:[#allocation2 + $0x28] sm:$0xff] %vm326_vm0, %v16849_v55 }
 0x288   : > { %v3402_v27 = vsel %vm3370_vm14, %v3369_v29, %v9978_v21  ;;  %336 = vst.msk [vmem:[#allocation2 + $0x40] sm:$0xff] %vm326_vm0, %v16849_v55  ;;  %337 = vst.msk [vmem:[#allocation2 + $0x48] sm:$0xff] %vm326_vm0, %v16849_v55 }
 0x289   : > { %338 = vst.msk [vmem:[#allocation2 + $0x50] sm:$0xff] %vm326_vm0, %v16849_v55  ;;  %340 = vst.msk [vmem:[#allocation2 + $0x60] sm:$0xff] %vm326_vm0, %v16849_v55 }
 0x28a   : > { %8558 = vmatmul.mubr.f32.gmra.mrb[30].mxu0 %v3402_v27  ;;  %341 = vst.msk [vmem:[#allocation2 + $0x68] sm:$0xff] %vm326_vm0, %v16849_v55  ;;  %342 = vst.msk [vmem:[#allocation2 + $0x70] sm:$0xff] %vm326_vm0, %v16849_v55 }
 0x28b   : > { %344 = vst.msk [vmem:[#allocation2 + $0x80] sm:$0xff] %vm326_vm0, %v16849_v55  ;;  %345 = vst.msk [vmem:[#allocation2 + $0x88] sm:$0xff] %vm326_vm0, %v16849_v55 }
 0x28c   : > { %346 = vst.msk [vmem:[#allocation2 + $0x90] sm:$0xff] %vm326_vm0, %v16849_v55  ;;  %348 = vst.msk [vmem:[#allocation2 + $0xa0] sm:$0xff] %vm326_vm0, %v16849_v55 }
 0x28d   : > { %349 = vst.msk [vmem:[#allocation2 + $0xa8] sm:$0xff] %vm326_vm0, %v16849_v55  ;;  %350 = vst.msk [vmem:[#allocation2 + $0xb0] sm:$0xff] %vm326_vm0, %v16849_v55 }
 0x28e   : > { %352 = vst.msk [vmem:[#allocation2 + $0xc0] sm:$0xff] %vm326_vm0, %v16849_v55  ;;  %353 = vst.msk [vmem:[#allocation2 + $0xc8] sm:$0xff] %vm326_vm0, %v16849_v55 }
 0x28f   : > { %354 = vst.msk [vmem:[#allocation2 + $0xd0] sm:$0xff] %vm326_vm0, %v16849_v55  ;;  %356 = vst.msk [vmem:[#allocation2 + $0xe0] sm:$0xff] %vm326_vm0, %v16849_v55 }
 0x290   : > { %357 = vst.msk [vmem:[#allocation2 + $0xe8] sm:$0xff] %vm326_vm0, %v16849_v55  ;;  %358 = vst.msk [vmem:[#allocation2 + $0xf0] sm:$0xff] %vm326_vm0, %v16849_v55 }
 0x291   : > { %360 = vst.msk [vmem:[#allocation2 + $0x100] sm:$0xff] %vm326_vm0, %v16849_v55  ;;  %361 = vst.msk [vmem:[#allocation2 + $0x108] sm:$0xff] %vm326_vm0, %v16849_v55 }
 0x292   : > { %362 = vst.msk [vmem:[#allocation2 + $0x110] sm:$0xff] %vm326_vm0, %v16849_v55  ;;  %364 = vst.msk [vmem:[#allocation2 + $0x120] sm:$0xff] %vm326_vm0, %v16849_v55 }
 0x293   : > { %365 = vst.msk [vmem:[#allocation2 + $0x128] sm:$0xff] %vm326_vm0, %v16849_v55  ;;  %366 = vst.msk [vmem:[#allocation2 + $0x130] sm:$0xff] %vm326_vm0, %v16849_v55 }
 0x294   : > { %368 = vst.msk [vmem:[#allocation2 + $0x140] sm:$0xff] %vm326_vm0, %v16849_v55  ;;  %369 = vst.msk [vmem:[#allocation2 + $0x148] sm:$0xff] %vm326_vm0, %v16849_v55 }
 0x295   : > { %370 = vst.msk [vmem:[#allocation2 + $0x150] sm:$0xff] %vm326_vm0, %v16849_v55  ;;  %372 = vst.msk [vmem:[#allocation2 + $0x160] sm:$0xff] %vm326_vm0, %v16849_v55 }
 0x296   : > { %373 = vst.msk [vmem:[#allocation2 + $0x168] sm:$0xff] %vm326_vm0, %v16849_v55  ;;  %374 = vst.msk [vmem:[#allocation2 + $0x170] sm:$0xff] %vm326_vm0, %v16849_v55 }
 0x297   : > { %376 = vst.msk [vmem:[#allocation2 + $0x180] sm:$0xff] %vm326_vm0, %v16849_v55  ;;  %377 = vst.msk [vmem:[#allocation2 + $0x188] sm:$0xff] %vm326_vm0, %v16849_v55 }
 0x298   : > { %378 = vst.msk [vmem:[#allocation2 + $0x190] sm:$0xff] %vm326_vm0, %v16849_v55  ;;  %380 = vst.msk [vmem:[#allocation2 + $0x1a0] sm:$0xff] %vm326_vm0, %v16849_v55 }
 0x299   : > { %381 = vst.msk [vmem:[#allocation2 + $0x1a8] sm:$0xff] %vm326_vm0, %v16849_v55  ;;  %382 = vst.msk [vmem:[#allocation2 + $0x1b0] sm:$0xff] %vm326_vm0, %v16849_v55 }
 0x29a   : > { %384 = vst.msk [vmem:[#allocation2 + $0x1c0] sm:$0xff] %vm326_vm0, %v16849_v55  ;;  %385 = vst.msk [vmem:[#allocation2 + $0x1c8] sm:$0xff] %vm326_vm0, %v16849_v55 }
 0x29b   : > { %386 = vst.msk [vmem:[#allocation2 + $0x1d0] sm:$0xff] %vm326_vm0, %v16849_v55  ;;  %388 = vst.msk [vmem:[#allocation2 + $0x1e0] sm:$0xff] %vm326_vm0, %v16849_v55 }
 0x29c   : > { %389 = vst.msk [vmem:[#allocation2 + $0x1e8] sm:$0xff] %vm326_vm0, %v16849_v55  ;;  %390 = vst.msk [vmem:[#allocation2 + $0x1f0] sm:$0xff] %vm326_vm0, %v16849_v55 }
 0x29d   : > { %392 = vst.msk [vmem:[#allocation2 + $0x200] sm:$0xff] %vm326_vm0, %v16849_v55  ;;  %393 = vst.msk [vmem:[#allocation2 + $0x208] sm:$0xff] %vm326_vm0, %v16849_v55 }
 0x29e   : > { %394 = vst.msk [vmem:[#allocation2 + $0x210] sm:$0xff] %vm326_vm0, %v16849_v55  ;;  %396 = vst.msk [vmem:[#allocation2 + $0x220] sm:$0xff] %vm326_vm0, %v16849_v55 }
 0x29f   : > { %397 = vst.msk [vmem:[#allocation2 + $0x228] sm:$0xff] %vm326_vm0, %v16849_v55  ;;  %398 = vst.msk [vmem:[#allocation2 + $0x230] sm:$0xff] %vm326_vm0, %v16849_v55 }
 0x2a0   : > { %401 = vst.msk [vmem:[#allocation3] sm:$0xff] %vm400_vm15, %v16849_v55  ;;  %402 = vst.msk [vmem:[#allocation3 + $0x8] sm:$0xff] %vm400_vm15, %v16849_v55 }
 0x2a1   : > { %403 = vst.msk [vmem:[#allocation3 + $0x10] sm:$0xff] %vm400_vm15, %v16849_v55  ;;  %406 = vst.msk [vmem:[#allocation3 + $0x20] sm:$0xff] %vm400_vm15, %v16849_v55 }
 0x2a2   : > { %407 = vst.msk [vmem:[#allocation3 + $0x28] sm:$0xff] %vm400_vm15, %v16849_v55  ;;  %408 = vst.msk [vmem:[#allocation3 + $0x30] sm:$0xff] %vm400_vm15, %v16849_v55 }
 0x2a3   : > { %410 = vst.msk [vmem:[#allocation3 + $0x40] sm:$0xff] %vm400_vm15, %v16849_v55  ;;  %411 = vst.msk [vmem:[#allocation3 + $0x48] sm:$0xff] %vm400_vm15, %v16849_v55 }
 0x2a4   : > { %412 = vst.msk [vmem:[#allocation3 + $0x50] sm:$0xff] %vm400_vm15, %v16849_v55  ;;  %414 = vst.msk [vmem:[#allocation3 + $0x60] sm:$0xff] %vm400_vm15, %v16849_v55 }
 0x2a5   : > { %415 = vst.msk [vmem:[#allocation3 + $0x68] sm:$0xff] %vm400_vm15, %v16849_v55  ;;  %416 = vst.msk [vmem:[#allocation3 + $0x70] sm:$0xff] %vm400_vm15, %v16849_v55 }
 0x2a6   : > { %418 = vst.msk [vmem:[#allocation3 + $0x80] sm:$0xff] %vm400_vm15, %v16849_v55  ;;  %419 = vst.msk [vmem:[#allocation3 + $0x88] sm:$0xff] %vm400_vm15, %v16849_v55 }
 0x2a7   : > { %420 = vst.msk [vmem:[#allocation3 + $0x90] sm:$0xff] %vm400_vm15, %v16849_v55  ;;  %422 = vst.msk [vmem:[#allocation3 + $0xa0] sm:$0xff] %vm400_vm15, %v16849_v55 }
 0x2a8   : > { %423 = vst.msk [vmem:[#allocation3 + $0xa8] sm:$0xff] %vm400_vm15, %v16849_v55  ;;  %424 = vst.msk [vmem:[#allocation3 + $0xb0] sm:$0xff] %vm400_vm15, %v16849_v55 }
 0x2a9   : > { %426 = vst.msk [vmem:[#allocation3 + $0xc0] sm:$0xff] %vm400_vm15, %v16849_v55  ;;  %427 = vst.msk [vmem:[#allocation3 + $0xc8] sm:$0xff] %vm400_vm15, %v16849_v55 }
 0x2aa   : > { %428 = vst.msk [vmem:[#allocation3 + $0xd0] sm:$0xff] %vm400_vm15, %v16849_v55  ;;  %430 = vst.msk [vmem:[#allocation3 + $0xe0] sm:$0xff] %vm400_vm15, %v16849_v55 }
 0x2ab   : > { %431 = vst.msk [vmem:[#allocation3 + $0xe8] sm:$0xff] %vm400_vm15, %v16849_v55  ;;  %432 = vst.msk [vmem:[#allocation3 + $0xf0] sm:$0xff] %vm400_vm15, %v16849_v55 }
 0x2ac   : > { %434 = vst.msk [vmem:[#allocation3 + $0x100] sm:$0xff] %vm400_vm15, %v16849_v55  ;;  %435 = vst.msk [vmem:[#allocation3 + $0x108] sm:$0xff] %vm400_vm15, %v16849_v55 }
 0x2ad   : > { %436 = vst.msk [vmem:[#allocation3 + $0x110] sm:$0xff] %vm400_vm15, %v16849_v55  ;;  %438 = vst.msk [vmem:[#allocation3 + $0x120] sm:$0xff] %vm400_vm15, %v16849_v55 }
 0x2ae   : > { %439 = vst.msk [vmem:[#allocation3 + $0x128] sm:$0xff] %vm400_vm15, %v16849_v55  ;;  %440 = vst.msk [vmem:[#allocation3 + $0x130] sm:$0xff] %vm400_vm15, %v16849_v55 }
 0x2af   : > { %442 = vst.msk [vmem:[#allocation3 + $0x140] sm:$0xff] %vm400_vm15, %v16849_v55  ;;  %443 = vst.msk [vmem:[#allocation3 + $0x148] sm:$0xff] %vm400_vm15, %v16849_v55 }
 0x2b0   : > { %444 = vst.msk [vmem:[#allocation3 + $0x150] sm:$0xff] %vm400_vm15, %v16849_v55  ;;  %446 = vst.msk [vmem:[#allocation3 + $0x160] sm:$0xff] %vm400_vm15, %v16849_v55 }
 0x2b1   : > { %447 = vst.msk [vmem:[#allocation3 + $0x168] sm:$0xff] %vm400_vm15, %v16849_v55  ;;  %448 = vst.msk [vmem:[#allocation3 + $0x170] sm:$0xff] %vm400_vm15, %v16849_v55 }
 0x2b2   : > { %450 = vst.msk [vmem:[#allocation3 + $0x180] sm:$0xff] %vm400_vm15, %v16849_v55  ;;  %451 = vst.msk [vmem:[#allocation3 + $0x188] sm:$0xff] %vm400_vm15, %v16849_v55 }
 0x2b3   : > { %452 = vst.msk [vmem:[#allocation3 + $0x190] sm:$0xff] %vm400_vm15, %v16849_v55  ;;  %454 = vst.msk [vmem:[#allocation3 + $0x1a0] sm:$0xff] %vm400_vm15, %v16849_v55 }
 0x2b4   : > { %455 = vst.msk [vmem:[#allocation3 + $0x1a8] sm:$0xff] %vm400_vm15, %v16849_v55  ;;  %456 = vst.msk [vmem:[#allocation3 + $0x1b0] sm:$0xff] %vm400_vm15, %v16849_v55 }
 0x2b5   : > { %458 = vst.msk [vmem:[#allocation3 + $0x1c0] sm:$0xff] %vm400_vm15, %v16849_v55  ;;  %459 = vst.msk [vmem:[#allocation3 + $0x1c8] sm:$0xff] %vm400_vm15, %v16849_v55 }
 0x2b6   : > { %460 = vst.msk [vmem:[#allocation3 + $0x1d0] sm:$0xff] %vm400_vm15, %v16849_v55  ;;  %462 = vst.msk [vmem:[#allocation3 + $0x1e0] sm:$0xff] %vm400_vm15, %v16849_v55 }
 0x2b7   : > { %463 = vst.msk [vmem:[#allocation3 + $0x1e8] sm:$0xff] %vm400_vm15, %v16849_v55  ;;  %464 = vst.msk [vmem:[#allocation3 + $0x1f0] sm:$0xff] %vm400_vm15, %v16849_v55 }
 0x2b8   : > { %466 = vst.msk [vmem:[#allocation3 + $0x200] sm:$0xff] %vm400_vm15, %v16849_v55  ;;  %467 = vst.msk [vmem:[#allocation3 + $0x208] sm:$0xff] %vm400_vm15, %v16849_v55 }
 0x2b9   : > { %468 = vst.msk [vmem:[#allocation3 + $0x210] sm:$0xff] %vm400_vm15, %v16849_v55  ;;  %470 = vst.msk [vmem:[#allocation3 + $0x220] sm:$0xff] %vm400_vm15, %v16849_v55 }
 0x2ba   : > { %471 = vst.msk [vmem:[#allocation3 + $0x228] sm:$0xff] %vm400_vm15, %v16849_v55  ;;  %472 = vst.msk [vmem:[#allocation3 + $0x230] sm:$0xff] %vm400_vm15, %v16849_v55 }
 0x2bb   : > { %331 = vst.msk [vmem:[#allocation2 + $0x18] sm:$0x1] %vm330_vm9, %v16849_v55  ;;  %335 = vst.msk [vmem:[#allocation2 + $0x38] sm:$0x1] %vm330_vm9, %v16849_v55 }
 0x2bc   : > { %339 = vst.msk [vmem:[#allocation2 + $0x58] sm:$0x1] %vm330_vm9, %v16849_v55  ;;  %343 = vst.msk [vmem:[#allocation2 + $0x78] sm:$0x1] %vm330_vm9, %v16849_v55 }
 0x2bd   : > { %347 = vst.msk [vmem:[#allocation2 + $0x98] sm:$0x1] %vm330_vm9, %v16849_v55  ;;  %351 = vst.msk [vmem:[#allocation2 + $0xb8] sm:$0x1] %vm330_vm9, %v16849_v55 }
 0x2be   : > { %355 = vst.msk [vmem:[#allocation2 + $0xd8] sm:$0x1] %vm330_vm9, %v16849_v55  ;;  %359 = vst.msk [vmem:[#allocation2 + $0xf8] sm:$0x1] %vm330_vm9, %v16849_v55 }
 0x2bf   : > { %363 = vst.msk [vmem:[#allocation2 + $0x118] sm:$0x1] %vm330_vm9, %v16849_v55  ;;  %367 = vst.msk [vmem:[#allocation2 + $0x138] sm:$0x1] %vm330_vm9, %v16849_v55 }
 0x2c0   : > { %371 = vst.msk [vmem:[#allocation2 + $0x158] sm:$0x1] %vm330_vm9, %v16849_v55  ;;  %375 = vst.msk [vmem:[#allocation2 + $0x178] sm:$0x1] %vm330_vm9, %v16849_v55 }
 0x2c1   : > { %379 = vst.msk [vmem:[#allocation2 + $0x198] sm:$0x1] %vm330_vm9, %v16849_v55  ;;  %383 = vst.msk [vmem:[#allocation2 + $0x1b8] sm:$0x1] %vm330_vm9, %v16849_v55 }
 0x2c2   : > { %387 = vst.msk [vmem:[#allocation2 + $0x1d8] sm:$0x1] %vm330_vm9, %v16849_v55  ;;  %391 = vst.msk [vmem:[#allocation2 + $0x1f8] sm:$0x1] %vm330_vm9, %v16849_v55 }
 0x2c3   : > { %395 = vst.msk [vmem:[#allocation2 + $0x218] sm:$0x1] %vm330_vm9, %v16849_v55  ;;  %399 = vst.msk [vmem:[#allocation2 + $0x238] sm:$0x1] %vm330_vm9, %v16849_v55 }
 0x321   : > { %v8514_v22 = vpop.f32.mrb[0].mxu0 }
 0x322   : > { %v3498_v6 = vadd.f32 %v8514_v22, %v13689_v36  ;;  %v3492_v63 = vpop.f32.mrb[1].mxu0 }
 0x323   : > { %v3493_v5 = vadd.f32 %v13689_v36, %v3492_v63  ;;  %v3909_v63 = vld [vmem:[#allocation2 + $0x10] sm:$0xff] }
 0x324   : > { %3717 = vrot.lane.b32.xlu1 %v3498_v6, %s10070_s29 }
 0x325   : > { %v8517_v34 = vpop.f32.mrb[2].mxu0  ;;  %3715 = vrot.lane.b32.xlu0 %v3493_v5, %s10070_s29  ;;  %v3908_v5 = vld [vmem:[#allocation2 + $0x8] sm:$0xff] }
 0x326   : > { %v3508_v49 = vadd.f32 %v8517_v34, %v13689_v36  ;;  %v3502_v3 = vpop.f32.mrb[3].mxu0  ;;  %v3651_v34 = vld [vmem:[%s13763_s20] sm:$0xff] }
 0x327   : > { %v3503_v25 = vadd.f32 %v13689_v36, %v3502_v3 }
 0x328   : > { %3721 = vrot.lane.b32.xlu1 %v3508_v49, %s10070_s29 }
 0x329   : > { %v8520_v14 = vpop.f32.mrb[4].mxu0  ;;  %3719 = vrot.lane.b32.xlu0 %v3503_v25, %s10070_s29 }
 0x32a   : > { %v3518_v41 = vadd.f32 %v8520_v14, %v13689_v36  ;;  %v3512_v38 = vpop.f32.mrb[5].mxu0 }
 0x32b   : > { %v3513_v42 = vadd.f32 %v13689_v36, %v3512_v38  ;;  %v3653_v38 = vld [vmem:[%s13763_s20 + $0x10] sm:$0xff] }
 0x32c   : > { %3725 = vrot.lane.b32.xlu1 %v3518_v41, %s10070_s29  ;;  %v3654_v41 = vld [vmem:[%s13763_s20 + $0x18] sm:$0xff] }
 0x32d   : > { %v8523_v31 = vpop.f32.mrb[6].mxu0  ;;  %3723 = vrot.lane.b32.xlu0 %v3513_v42, %s10070_s29 }
 0x32e   : > { %v3528_v57 = vadd.f32 %v8523_v31, %v13689_v36  ;;  %v3522_v48 = vpop.f32.mrb[7].mxu0 }
 0x32f   : > { %v3523_v20 = vadd.f32 %v13689_v36, %v3522_v48 }
 0x330   : > { %3729 = vrot.lane.b32.xlu1 %v3528_v57, %s10070_s29 }
 0x331   : > { %v8526_v56 = vpop.f32.mrb[8].mxu0  ;;  %3727 = vrot.lane.b32.xlu0 %v3523_v20, %s10070_s29  ;;  %v3656_v20 = vld [vmem:[%s13763_s20 + $0x28] sm:$0xff] }
 0x332   : > { %v3538_v12 = vadd.f32 %v8526_v56, %v13689_v36  ;;  %v3532_v44 = vpop.f32.mrb[9].mxu0  ;;  %v3655_v56 = vld [vmem:[%s13763_s20 + $0x20] sm:$0xff] }
 0x333   : > { %v3533_v9 = vadd.f32 %v13689_v36, %v3532_v44 }
 0x334   : > { %3733 = vrot.lane.b32.xlu1 %v3538_v12, %s10070_s29 }
 0x335   : > { %v8529_v17 = vpop.f32.mrb[10].mxu0  ;;  %3731 = vrot.lane.b32.xlu0 %v3533_v9, %s10070_s29 }
 0x336   : > { %v3548_v19 = vadd.f32 %v8529_v17, %v13689_v36  ;;  %v3542_v60 = vpop.f32.mrb[11].mxu0 }
 0x337   : > { %v3543_v1 = vadd.f32 %v13689_v36, %v3542_v60 }
 0x338   : > { %3737 = vrot.lane.b32.xlu1 %v3548_v19, %s10070_s29 }
 0x339   : > { %v8532_v28 = vpop.f32.mrb[12].mxu0  ;;  %3735 = vrot.lane.b32.xlu0 %v3543_v1, %s10070_s29  ;;  %v3658_v1 = vld [vmem:[%s13763_s20 + $0x38] sm:$0xff] }
 0x33a   : > { %v3558_v26 = vadd.f32 %v8532_v28, %v13689_v36  ;;  %v3552_v16 = vpop.f32.mrb[13].mxu0  ;;  %v3657_v28 = vld [vmem:[%s13763_s20 + $0x30] sm:$0xff] }
 0x33b   : > { %v3553_v24 = vadd.f32 %v13689_v36, %v3552_v16 }
 0x33c   : > { %3741 = vrot.lane.b32.xlu1 %v3558_v26, %s10070_s29 }
 0x33d   : > { %v8535_v61 = vpop.f32.mrb[14].mxu0  ;;  %3739 = vrot.lane.b32.xlu0 %v3553_v24, %s10070_s29 }
 0x33e   : > { %v3568_v23 = vadd.f32 %v8535_v61, %v13689_v36  ;;  %v3562_v4 = vpop.f32.mrb[15].mxu0 }
 0x33f   : > { %v3563_v33 = vadd.f32 %v13689_v36, %v3562_v4 }
 0x340   : > { %3745 = vrot.lane.b32.xlu1 %v3568_v23, %s10070_s29 }
 0x341   : > { %v8538_v10 = vpop.f32.mrb[16].mxu0  ;;  %3743 = vrot.lane.b32.xlu0 %v3563_v33, %s10070_s29  ;;  %v3660_v33 = vld [vmem:[%s13763_s20 + $0x48] sm:$0xff] }
 0x342   : > { %v3578_v62 = vadd.f32 %v8538_v10, %v13689_v36  ;;  %v3572_v52 = vpop.f32.mrb[17].mxu0  ;;  %v3659_v10 = vld [vmem:[%s13763_s20 + $0x40] sm:$0xff] }
 0x343   : > { %v3573_v30 = vadd.f32 %v13689_v36, %v3572_v52 }
 0x344   : > { %3749 = vrot.lane.b32.xlu1 %v3578_v62, %s10070_s29 }
 0x345   : > { %v8541_v15 = vpop.f32.mrb[18].mxu0  ;;  %3747 = vrot.lane.b32.xlu0 %v3573_v30, %s10070_s29 }
 0x346   : > { %v3588_v32 = vadd.f32 %v8541_v15, %v13689_v36  ;;  %v3582_v37 = vpop.f32.mrb[19].mxu0 }
 0x347   : > { %v3583_v47 = vadd.f32 %v13689_v36, %v3582_v37 }
 0x348   : > { %3753 = vrot.lane.b32.xlu1 %v3588_v32, %s10070_s29 }
 0x349   : > { %v8544_v11 = vpop.f32.mrb[20].mxu0  ;;  %3751 = vrot.lane.b32.xlu0 %v3583_v47, %s10070_s29  ;;  %v3662_v47 = vld [vmem:[%s13763_s20 + $0x58] sm:$0xff] }
 0x34a   : > { %v3598_v13 = vadd.f32 %v8544_v11, %v13689_v36  ;;  %v3592_v53 = vpop.f32.mrb[21].mxu0  ;;  %v3661_v11 = vld [vmem:[%s13763_s20 + $0x50] sm:$0xff] }
 0x34b   : > { %v3593_v8 = vadd.f32 %v13689_v36, %v3592_v53 }
 0x34c   : > { %3757 = vrot.lane.b32.xlu1 %v3598_v13, %s10070_s29 }
 0x34d   : > { %v8547_v59 = vpop.f32.mrb[22].mxu0  ;;  %3755 = vrot.lane.b32.xlu0 %v3593_v8, %s10070_s29 }
 0x34e   : > { %v3608_v46 = vadd.f32 %v8547_v59, %v13689_v36  ;;  %v3602_v0 = vpop.f32.mrb[23].mxu0 }
 0x34f   : > { %v3603_v7 = vadd.f32 %v13689_v36, %v3602_v0 }
 0x350   : > { %3761 = vrot.lane.b32.xlu1 %v3608_v46, %s10070_s29 }
 0x351   : > { %v8550_v18 = vpop.f32.mrb[24].mxu0  ;;  %3759 = vrot.lane.b32.xlu0 %v3603_v7, %s10070_s29  ;;  %v3664_v7 = vld [vmem:[%s13763_s20 + $0x68] sm:$0xff] }
 0x352   : > { %v3618_v39 = vadd.f32 %v8550_v18, %v13689_v36  ;;  %v3612_v35 = vpop.f32.mrb[25].mxu0  ;;  %v3663_v18 = vld [vmem:[%s13763_s20 + $0x60] sm:$0xff] }
 0x353   : > { %v3613_v45 = vadd.f32 %v13689_v36, %v3612_v35 }
 0x354   : > { %3765 = vrot.lane.b32.xlu1 %v3618_v39, %s10070_s29 }
 0x355   : > { %v8553_v43 = vpop.f32.mrb[26].mxu0  ;;  %3763 = vrot.lane.b32.xlu0 %v3613_v45, %s10070_s29 }
 0x356   : > { %v3628_v51 = vadd.f32 %v8553_v43, %v13689_v36  ;;  %v3622_v21 = vpop.f32.mrb[27].mxu0 }
 0x357   : > { %v3623_v54 = vadd.f32 %v13689_v36, %v3622_v21 }
 0x358   : > { %3769 = vrot.lane.b32.xlu1 %v3628_v51, %s10070_s29 }
 0x359   : > { %v8556_v58 = vpop.f32.mrb[28].mxu0  ;;  %3767 = vrot.lane.b32.xlu0 %v3623_v54, %s10070_s29  ;;  %v3666_v54 = vld [vmem:[%s13763_s20 + $0x78] sm:$0xff] }
 0x35a   : > { %v3638_v2 = vadd.f32 %v8556_v58, %v13689_v36  ;;  %v3632_v40 = vpop.f32.mrb[29].mxu0  ;;  %v3665_v58 = vld [vmem:[%s13763_s20 + $0x70] sm:$0xff] }
 0x35b   : > { %v3633_v50 = vadd.f32 %v13689_v36, %v3632_v40 }
 0x35c   : > { %3773 = vrot.lane.b32.xlu1 %v3638_v2, %s10070_s29 }
 0x35d   : > { %v8559_v29 = vpop.f32.mrb[30].mxu0  ;;  %3771 = vrot.lane.b32.xlu0 %v3633_v50, %s10070_s29 }
 0x35e   : > { %v3648_v27 = vadd.f32 %v8559_v29, %v13689_v36  ;;  %v3642_v22 = vpop.f32.mrb[31].mxu0 }
 0x35f   : > { %v3643_v6 = vadd.f32 %v13689_v36, %v3642_v22  ;;  %v3652_v36 = vld [vmem:[%s13763_s20 + $0x8] sm:$0xff] }
 0x360   : > { %3777 = vrot.lane.b32.xlu1 %v3648_v27, %s10070_s29 }
 0x361   : > { %3775 = vrot.lane.b32.xlu0 %v3643_v6, %s10070_s29  ;;  %v3668_v6 = vld [vmem:[%s13763_s20 + $0x88] sm:$0xff] }
 0x364   : > { %4199 = vrot.lane.b32.xlu1 %v3909_v63, %s10054_s11  ;;  %v3667_v63 = vld [vmem:[%s13763_s20 + $0x80] sm:$0xff] }
 0x365   : > { %4197 = vrot.lane.b32.xlu0 %v3908_v5, %s10054_s11 }
 0x396   : > { %v3718_v49 = vpop.permute.xlu1 %3717 }
 0x397   : > { %v3812_v3 = vsel %vm400_vm15, %v3652_v36, %v3718_v49  ;;  %v3716_v25 = vpop.permute.xlu0 %3715 }
 0x398   : > { %3845 = vst.msk [vmem:[#allocation2 + $0x30] sm:$0xff] %vm326_vm0, %v3812_v3  ;;  %v3811_v14 = vsel %vm400_vm15, %v3651_v34, %v3716_v25 }
 0x399   : > { %3844 = vst.msk [vmem:[#allocation2 + $0x28] sm:$0xff] %vm326_vm0, %v3811_v14  ;;  %v3670_v14 = vld [vmem:[%s13763_s20 + $0x98] sm:$0xff] }
 0x39a   : > { %v3722_v42 = vpop.permute.xlu1 %3721 }
 0x39b   : > { %v3814_v31 = vsel %vm400_vm15, %v3654_v41, %v3722_v42  ;;  %v3720_v57 = vpop.permute.xlu0 %3719  ;;  %v3669_v41 = vld [vmem:[%s13763_s20 + $0x90] sm:$0xff] }
 0x39c   : > { %3847 = vst.msk [vmem:[#allocation2 + $0x50] sm:$0xff] %vm326_vm0, %v3814_v31  ;;  %v3813_v48 = vsel %vm400_vm15, %v3653_v38, %v3720_v57 }
 0x39d   : > { %3846 = vst.msk [vmem:[#allocation2 + $0x48] sm:$0xff] %vm326_vm0, %v3813_v48 }
 0x39e   : > { %v3726_v12 = vpop.permute.xlu1 %3725 }
 0x39f   : > { %v3816_v44 = vsel %vm400_vm15, %v3656_v20, %v3726_v12  ;;  %v3724_v9 = vpop.permute.xlu0 %3723  ;;  %v13780_v17 = vld [vmem:[#allocation2 + $0x30] sm:$0xff]  ;;  %v3671_v12 = vld [vmem:[%s13763_s20 + $0xa0] sm:$0xff] }
 0x3a0   : > { %3849 = vst.msk [vmem:[#allocation2 + $0x70] sm:$0xff] %vm326_vm0, %v3816_v44  ;;  %v3815_v19 = vsel %vm400_vm15, %v3655_v56, %v3724_v9  ;;  %4203 = vrot.lane.b32.xlu1 %v13780_v17, %s10054_s11  ;;  %v13786_v60 = vld [vmem:[#allocation2 + $0x28] sm:$0xff] }
 0x3a1   : > { %3848 = vst.msk [vmem:[#allocation2 + $0x68] sm:$0xff] %vm326_vm0, %v3815_v19  ;;  %4201 = vrot.lane.b32.xlu0 %v13786_v60, %s10054_s11  ;;  %v3672_v56 = vld [vmem:[%s13763_s20 + $0xa8] sm:$0xff] }
 0x3a2   : > { %v3730_v26 = vpop.permute.xlu1 %3729 }
 0x3a3   : > { %v3818_v16 = vsel %vm400_vm15, %v3658_v1, %v3730_v26  ;;  %v3728_v24 = vpop.permute.xlu0 %3727  ;;  %v13794_v61 = vld [vmem:[#allocation2 + $0x50] sm:$0xff] }
 0x3a4   : > { %3851 = vst.msk [vmem:[#allocation2 + $0x90] sm:$0xff] %vm326_vm0, %v3818_v16  ;;  %v3817_v23 = vsel %vm400_vm15, %v3657_v28, %v3728_v24  ;;  %4207 = vrot.lane.b32.xlu1 %v13794_v61, %s10054_s11  ;;  %v13800_v4 = vld [vmem:[#allocation2 + $0x48] sm:$0xff]  ;;  %v3674_v16 = vld [vmem:[%s13763_s20 + $0xb8] sm:$0xff]  ;;  %v3673_v24 = vld [vmem:[%s13763_s20 + $0xb0] sm:$0xff] }
 0x3a5   : > { %3850 = vst.msk [vmem:[#allocation2 + $0x88] sm:$0xff] %vm326_vm0, %v3817_v23  ;;  %4205 = vrot.lane.b32.xlu0 %v13800_v4, %s10054_s11 }
 0x3a6   : > { %v3734_v62 = vpop.permute.xlu1 %3733 }
 0x3a7   : > { %v3820_v52 = vsel %vm400_vm15, %v3660_v33, %v3734_v62  ;;  %v3732_v30 = vpop.permute.xlu0 %3731  ;;  %v13808_v15 = vld [vmem:[#allocation2 + $0x70] sm:$0xff] }
 0x3a8   : > { %3853 = vst.msk [vmem:[#allocation2 + $0xb0] sm:$0xff] %vm326_vm0, %v3820_v52  ;;  %v3819_v32 = vsel %vm400_vm15, %v3659_v10, %v3732_v30  ;;  %4211 = vrot.lane.b32.xlu1 %v13808_v15, %s10054_s11  ;;  %v13814_v37 = vld [vmem:[#allocation2 + $0x68] sm:$0xff] }
 0x3a9   : > { %3852 = vst.msk [vmem:[#allocation2 + $0xa8] sm:$0xff] %vm326_vm0, %v3819_v32  ;;  %4209 = vrot.lane.b32.xlu0 %v13814_v37, %s10054_s11  ;;  %v3676_v32 = vld [vmem:[%s13763_s20 + $0xc8] sm:$0xff] }
 0x3aa   : > { %v3738_v13 = vpop.permute.xlu1 %3737 }
 0x3ab   : > { %v3822_v53 = vsel %vm400_vm15, %v3662_v47, %v3738_v13  ;;  %v3736_v8 = vpop.permute.xlu0 %3735  ;;  %v13822_v59 = vld [vmem:[#allocation2 + $0x90] sm:$0xff]  ;;  %v3675_v47 = vld [vmem:[%s13763_s20 + $0xc0] sm:$0xff] }
 0x3ac   : > { %3855 = vst.msk [vmem:[#allocation2 + $0xd0] sm:$0xff] %vm326_vm0, %v3822_v53  ;;  %v3821_v46 = vsel %vm400_vm15, %v3661_v11, %v3736_v8  ;;  %4215 = vrot.lane.b32.xlu1 %v13822_v59, %s10054_s11  ;;  %v13828_v0 = vld [vmem:[#allocation2 + $0x88] sm:$0xff] }
 0x3ad   : > { %3854 = vst.msk [vmem:[#allocation2 + $0xc8] sm:$0xff] %vm326_vm0, %v3821_v46  ;;  %4213 = vrot.lane.b32.xlu0 %v13828_v0, %s10054_s11 }
 0x3ae   : > { %v3742_v39 = vpop.permute.xlu1 %3741 }
 0x3af   : > { %v3824_v35 = vsel %vm400_vm15, %v3664_v7, %v3742_v39  ;;  %v3740_v45 = vpop.permute.xlu0 %3739  ;;  %v13836_v43 = vld [vmem:[#allocation2 + $0xb0] sm:$0xff] }
 0x3b0   : > { %3857 = vst.msk [vmem:[#allocation2 + $0xf0] sm:$0xff] %vm326_vm0, %v3824_v35  ;;  %v3823_v51 = vsel %vm400_vm15, %v3663_v18, %v3740_v45  ;;  %4219 = vrot.lane.b32.xlu1 %v13836_v43, %s10054_s11  ;;  %v13842_v21 = vld [vmem:[#allocation2 + $0xa8] sm:$0xff]  ;;  %v3678_v18 = vld [vmem:[%s13763_s20 + $0xd8] sm:$0xff]  ;;  %v3677_v39 = vld [vmem:[%s13763_s20 + $0xd0] sm:$0xff] }
 0x3b1   : > { %3856 = vst.msk [vmem:[#allocation2 + $0xe8] sm:$0xff] %vm326_vm0, %v3823_v51  ;;  %4217 = vrot.lane.b32.xlu0 %v13842_v21, %s10054_s11 }
 0x3b2   : > { %v3746_v2 = vpop.permute.xlu1 %3745 }
 0x3b3   : > { %v3826_v40 = vsel %vm400_vm15, %v3666_v54, %v3746_v2  ;;  %v3744_v50 = vpop.permute.xlu0 %3743  ;;  %v13850_v29 = vld [vmem:[#allocation2 + $0xd0] sm:$0xff] }
 0x3b4   : > { %3859 = vst.msk [vmem:[#allocation2 + $0x110] sm:$0xff] %vm326_vm0, %v3826_v40  ;;  %v3825_v27 = vsel %vm400_vm15, %v3665_v58, %v3744_v50  ;;  %4223 = vrot.lane.b32.xlu1 %v13850_v29, %s10054_s11  ;;  %v13856_v22 = vld [vmem:[#allocation2 + $0xc8] sm:$0xff]  ;;  %v3679_v50 = vld [vmem:[%s13763_s20 + $0xe0] sm:$0xff] }
 0x3b5   : > { %3858 = vst.msk [vmem:[#allocation2 + $0x108] sm:$0xff] %vm326_vm0, %v3825_v27  ;;  %4221 = vrot.lane.b32.xlu0 %v13856_v22, %s10054_s11  ;;  %v3680_v40 = vld [vmem:[%s13763_s20 + $0xe8] sm:$0xff] }
 0x3b6   : > { %v3750_v5 = vpop.permute.xlu1 %3749 }
 0x3b7   : > { %v3828_v36 = vsel %vm400_vm15, %v3668_v6, %v3750_v5  ;;  %v3748_v34 = vpop.permute.xlu0 %3747  ;;  %v13864_v49 = vld [vmem:[#allocation2 + $0xf0] sm:$0xff] }
 0x3b8   : > { %3861 = vst.msk [vmem:[#allocation2 + $0x130] sm:$0xff] %vm326_vm0, %v3828_v36  ;;  %v3827_v3 = vsel %vm400_vm15, %v3667_v63, %v3748_v34  ;;  %4227 = vrot.lane.b32.xlu1 %v13864_v49, %s10054_s11  ;;  %v13870_v25 = vld [vmem:[#allocation2 + $0xe8] sm:$0xff] }
 0x3b9   : > { %3860 = vst.msk [vmem:[#allocation2 + $0x128] sm:$0xff] %vm326_vm0, %v3827_v3  ;;  %4225 = vrot.lane.b32.xlu0 %v13870_v25, %s10054_s11  ;;  %v3682_v3 = vld [vmem:[%s13763_s20 + $0xf8] sm:$0xff] }
 0x3ba   : > { %v3754_v38 = vpop.permute.xlu1 %3753 }
 0x3bb   : > { %v3830_v42 = vsel %vm400_vm15, %v3670_v14, %v3754_v38  ;;  %v3752_v31 = vpop.permute.xlu0 %3751  ;;  %v13878_v57 = vld [vmem:[#allocation2 + $0x110] sm:$0xff] }
 0x3bc   : > { %3863 = vst.msk [vmem:[#allocation2 + $0x150] sm:$0xff] %vm326_vm0, %v3830_v42  ;;  %v3829_v48 = vsel %vm400_vm15, %v3669_v41, %v3752_v31  ;;  %4231 = vrot.lane.b32.xlu1 %v13878_v57, %s10054_s11  ;;  %v13884_v20 = vld [vmem:[#allocation2 + $0x108] sm:$0xff]  ;;  %v3681_v14 = vld [vmem:[%s13763_s20 + $0xf0] sm:$0xff] }
 0x3bd   : > { %3862 = vst.msk [vmem:[#allocation2 + $0x148] sm:$0xff] %vm326_vm0, %v3829_v48  ;;  %4229 = vrot.lane.b32.xlu0 %v13884_v20, %s10054_s11 }
 0x3be   : > { %v3758_v44 = vpop.permute.xlu1 %3757 }
 0x3bf   : > { %v3832_v9 = vsel %vm400_vm15, %v3672_v56, %v3758_v44  ;;  %v3756_v19 = vpop.permute.xlu0 %3755  ;;  %v13892_v1 = vld [vmem:[#allocation2 + $0x130] sm:$0xff] }
 0x3c0   : > { %3865 = vst.msk [vmem:[#allocation2 + $0x170] sm:$0xff] %vm326_vm0, %v3832_v9  ;;  %v3831_v28 = vsel %vm400_vm15, %v3671_v12, %v3756_v19  ;;  %4235 = vrot.lane.b32.xlu1 %v13892_v1, %s10054_s11  ;;  %v13898_v26 = vld [vmem:[#allocation2 + $0x128] sm:$0xff]  ;;  %v3941_v9 = vld [vmem:[#allocation2 + $0x11] sm:$0xff] }
 0x3c1   : > { %3864 = vst.msk [vmem:[#allocation2 + $0x168] sm:$0xff] %vm326_vm0, %v3831_v28  ;;  %4233 = vrot.lane.b32.xlu0 %v13898_v26, %s10054_s11  ;;  %v3940_v19 = vld [vmem:[#allocation2 + $0x9] sm:$0xff]  ;;  %v13983_v28 = vld [vmem:[#allocation2 + $0x31] sm:$0xff] }
 0x3c2   : > { %v3762_v23 = vpop.permute.xlu1 %3761 }
 0x3c3   : > { %v3834_v33 = vsel %vm400_vm15, %v3674_v16, %v3762_v23  ;;  %v3760_v10 = vpop.permute.xlu0 %3759  ;;  %v13906_v62 = vld [vmem:[#allocation2 + $0x150] sm:$0xff] }
 0x3c4   : > { %3867 = vst.msk [vmem:[#allocation2 + $0x190] sm:$0xff] %vm326_vm0, %v3834_v33  ;;  %v3833_v52 = vsel %vm400_vm15, %v3673_v24, %v3760_v10  ;;  %4239 = vrot.lane.b32.xlu1 %v13906_v62, %s10054_s11  ;;  %v13912_v30 = vld [vmem:[#allocation2 + $0x148] sm:$0xff]  ;;  %v13991_v24 = vld [vmem:[#allocation2 + $0x51] sm:$0xff] }
 0x3c5   : > { %3866 = vst.msk [vmem:[#allocation2 + $0x188] sm:$0xff] %vm326_vm0, %v3833_v52  ;;  %4237 = vrot.lane.b32.xlu0 %v13912_v30, %s10054_s11  ;;  %v13987_v16 = vld [vmem:[#allocation2 + $0x29] sm:$0xff]  ;;  %v13999_v33 = vld [vmem:[#allocation2 + $0x71] sm:$0xff] }
 0x3c6   : > { %v3766_v11 = vpop.permute.xlu1 %3765  ;;  %v13995_v23 = vld [vmem:[#allocation2 + $0x49] sm:$0xff]  ;;  %v14007_v52 = vld [vmem:[#allocation2 + $0x91] sm:$0xff] }
 0x3c7   : > { %v3836_v13 = vsel %vm400_vm15, %v3676_v32, %v3766_v11  ;;  %v3764_v53 = vpop.permute.xlu0 %3763  ;;  %v13920_v8 = vld [vmem:[#allocation2 + $0x170] sm:$0xff] }
 0x3c8   : > { %3869 = vst.msk [vmem:[#allocation2 + $0x1b0] sm:$0xff] %vm326_vm0, %v3836_v13  ;;  %v3835_v46 = vsel %vm400_vm15, %v3675_v47, %v3764_v53  ;;  %4243 = vrot.lane.b32.xlu1 %v13920_v8, %s10054_s11  ;;  %v13926_v7 = vld [vmem:[#allocation2 + $0x168] sm:$0xff]  ;;  %v14015_v47 = vld [vmem:[#allocation2 + $0xb1] sm:$0xff] }
 0x3c9   : > { %3868 = vst.msk [vmem:[#allocation2 + $0x1a8] sm:$0xff] %vm326_vm0, %v3835_v46  ;;  %4241 = vrot.lane.b32.xlu0 %v13926_v7, %s10054_s11  ;;  %v14003_v10 = vld [vmem:[#allocation2 + $0x69] sm:$0xff]  ;;  %v14023_v13 = vld [vmem:[#allocation2 + $0xd1] sm:$0xff] }
 0x3ca   : > { %v3770_v35 = vpop.permute.xlu1 %3769  ;;  %v14011_v32 = vld [vmem:[#allocation2 + $0x89] sm:$0xff]  ;;  %v14031_v46 = vld [vmem:[#allocation2 + $0xf1] sm:$0xff] }
 0x3cb   : > { %v3838_v45 = vsel %vm400_vm15, %v3678_v18, %v3770_v35  ;;  %v3768_v51 = vpop.permute.xlu0 %3767  ;;  %v13934_v54 = vld [vmem:[#allocation2 + $0x190] sm:$0xff] }
 0x3cc   : > { %3871 = vst.msk [vmem:[#allocation2 + $0x1d0] sm:$0xff] %vm326_vm0, %v3838_v45  ;;  %v3837_v58 = vsel %vm400_vm15, %v3677_v39, %v3768_v51  ;;  %4247 = vrot.lane.b32.xlu1 %v13934_v54, %s10054_s11  ;;  %v13940_v2 = vld [vmem:[#allocation2 + $0x188] sm:$0xff]  ;;  %v14039_v39 = vld [vmem:[#allocation2 + $0x111] sm:$0xff] }
 0x3cd   : > { %3870 = vst.msk [vmem:[#allocation2 + $0x1c8] sm:$0xff] %vm326_vm0, %v3837_v58  ;;  %4245 = vrot.lane.b32.xlu0 %v13940_v2, %s10054_s11  ;;  %v14019_v11 = vld [vmem:[#allocation2 + $0xa9] sm:$0xff]  ;;  %v14047_v45 = vld [vmem:[#allocation2 + $0x131] sm:$0xff] }
 0x3ce   : > { %v3774_v27 = vpop.permute.xlu1 %3773  ;;  %v14027_v53 = vld [vmem:[#allocation2 + $0xc9] sm:$0xff]  ;;  %v14055_v58 = vld [vmem:[#allocation2 + $0x151] sm:$0xff] }
 0x3cf   : > { %v3840_v6 = vsel %vm400_vm15, %v3680_v40, %v3774_v27  ;;  %v3772_v63 = vpop.permute.xlu0 %3771  ;;  %v13948_v5 = vld [vmem:[#allocation2 + $0x1b0] sm:$0xff] }
 0x3d0   : > { %3873 = vst.msk [vmem:[#allocation2 + $0x1f0] sm:$0xff] %vm326_vm0, %v3840_v6  ;;  %v3839_v36 = vsel %vm400_vm15, %v3679_v50, %v3772_v63  ;;  %4251 = vrot.lane.b32.xlu1 %v13948_v5, %s10054_s11  ;;  %v13954_v34 = vld [vmem:[#allocation2 + $0x1a8] sm:$0xff]  ;;  %v14063_v50 = vld [vmem:[#allocation2 + $0x171] sm:$0xff] }
 0x3d1   : > { %3872 = vst.msk [vmem:[#allocation2 + $0x1e8] sm:$0xff] %vm326_vm0, %v3839_v36  ;;  %4249 = vrot.lane.b32.xlu0 %v13954_v34, %s10054_s11  ;;  %v14035_v18 = vld [vmem:[#allocation2 + $0xe9] sm:$0xff]  ;;  %v14071_v6 = vld [vmem:[#allocation2 + $0x191] sm:$0xff] }
 0x3d2   : > { %v3778_v41 = vpop.permute.xlu1 %3777  ;;  %v14043_v35 = vld [vmem:[#allocation2 + $0x109] sm:$0xff] }
 0x3d3   : > { %v3842_v38 = vsel %vm400_vm15, %v3682_v3, %v3778_v41  ;;  %v3776_v42 = vpop.permute.xlu0 %3775  ;;  %v13962_v31 = vld [vmem:[#allocation2 + $0x1d0] sm:$0xff] }
 0x3d4   : > { %3875 = vst.msk [vmem:[#allocation2 + $0x210] sm:$0xff] %vm326_vm0, %v3842_v38  ;;  %v3841_v48 = vsel %vm400_vm15, %v3681_v14, %v3776_v42  ;;  %4255 = vrot.lane.b32.xlu1 %v13962_v31, %s10054_s11  ;;  %v13968_v56 = vld [vmem:[#allocation2 + $0x1c8] sm:$0xff]  ;;  %v14083_v14 = vld [vmem:[#allocation2 + $0x1b1] sm:$0xff] }
 0x3d5   : > { %3874 = vst.msk [vmem:[#allocation2 + $0x208] sm:$0xff] %vm326_vm0, %v3841_v48  ;;  %4253 = vrot.lane.b32.xlu0 %v13968_v56, %s10054_s11  ;;  %v14051_v51 = vld [vmem:[#allocation2 + $0x129] sm:$0xff]  ;;  %v14095_v48 = vld [vmem:[#allocation2 + $0x1d1] sm:$0xff] }
 0x3d6   : > { %v14059_v40 = vld [vmem:[#allocation2 + $0x149] sm:$0xff]  ;;  %v14077_v36 = vpop.permute.xlu1 %4199  ;;  %17250 = vst [vmem:[#allocation73_spill] sm:$0xff] %v14095_v48 }
 0x3d7   : > { %v13973_v12 = vld [vmem:[#allocation2 + $0x1f0] sm:$0xff]  ;;  %17245 = vst [vmem:[#allocation68_spill] sm:$0xff] %v14077_v36  ;;  %v14081_v3 = vpop.permute.xlu0 %4197 }
 0x3d8   : > { %4259 = vrot.lane.b32.xlu1 %v13973_v12, %s10054_s11  ;;  %v13977_v44 = vld [vmem:[#allocation2 + $0x1e8] sm:$0xff]  ;;  %17246 = vst [vmem:[#allocation69_spill] sm:$0xff] %v14081_v3  ;;  %v14107_v36 = vld [vmem:[#allocation2 + $0x1f1] sm:$0xff] }
 0x3d9   : > { %4257 = vrot.lane.b32.xlu0 %v13977_v44, %s10054_s11  ;;  %v14067_v27 = vld [vmem:[#allocation2 + $0x169] sm:$0xff]  ;;  %17254 = vst [vmem:[#allocation77_spill] sm:$0xff] %v14107_v36 }
 0x3da   : > { %v14075_v63 = vld [vmem:[#allocation2 + $0x189] sm:$0xff] }
 0x3db   : > { %v14087_v41 = vld [vmem:[#allocation2 + $0x1a9] sm:$0xff] }
 0x3dc   : > { %4327 = vrot.lane.b32.xlu1 %v3941_v9, %s10055_s12  ;;  %17247 = vst [vmem:[#allocation70_spill] sm:$0xff] %v14087_v41  ;;  %v14099_v9 = vld [vmem:[#allocation2 + $0x1c9] sm:$0xff] }
 0x3dd   : > { %4325 = vrot.lane.b32.xlu0 %v3940_v19, %s10055_s12  ;;  %17251 = vst [vmem:[#allocation74_spill] sm:$0xff] %v14099_v9  ;;  %v3879_v3 = vld [vmem:[#allocation2 + $0x2f] sm:$0xff] }
 0x3e0   : > { %4331 = vrot.lane.b32.xlu1 %v13983_v28, %s10055_s12 }
 0x3e1   : > { %4329 = vrot.lane.b32.xlu0 %v13987_v16, %s10055_s12 }
 0x3e4   : > { %4335 = vrot.lane.b32.xlu1 %v13991_v24, %s10055_s12 }
 0x3e5   : > { %4333 = vrot.lane.b32.xlu0 %v13995_v23, %s10055_s12 }
 0x3e8   : > { %4339 = vrot.lane.b32.xlu1 %v13999_v33, %s10055_s12 }
 0x3e9   : > { %4337 = vrot.lane.b32.xlu0 %v14003_v10, %s10055_s12 }
 0x3ec   : > { %4343 = vrot.lane.b32.xlu1 %v14007_v52, %s10055_s12 }
 0x3ed   : > { %4341 = vrot.lane.b32.xlu0 %v14011_v32, %s10055_s12 }
 0x3f0   : > { %4347 = vrot.lane.b32.xlu1 %v14015_v47, %s10055_s12 }
 0x3f1   : > { %4345 = vrot.lane.b32.xlu0 %v14019_v11, %s10055_s12 }
 0x3f4   : > { %4351 = vrot.lane.b32.xlu1 %v14023_v13, %s10055_s12 }
 0x3f5   : > { %4349 = vrot.lane.b32.xlu0 %v14027_v53, %s10055_s12 }
 0x3f8   : > { %4355 = vrot.lane.b32.xlu1 %v14031_v46, %s10055_s12 }
 0x3f9   : > { %4353 = vrot.lane.b32.xlu0 %v14035_v18, %s10055_s12 }
 0x3fc   : > { %4359 = vrot.lane.b32.xlu1 %v14039_v39, %s10055_s12 }
 0x3fd   : > { %4357 = vrot.lane.b32.xlu0 %v14043_v35, %s10055_s12 }
 0x400   : > { %4363 = vrot.lane.b32.xlu1 %v14047_v45, %s10055_s12 }
 0x401   : > { %4361 = vrot.lane.b32.xlu0 %v14051_v51, %s10055_s12 }
 0x404   : > { %4367 = vrot.lane.b32.xlu1 %v14055_v58, %s10055_s12 }
 0x405   : > { %4365 = vrot.lane.b32.xlu0 %v14059_v40, %s10055_s12 }
 0x408   : > { %4371 = vrot.lane.b32.xlu1 %v14063_v50, %s10055_s12 }
 0x409   : > { %4369 = vrot.lane.b32.xlu0 %v14067_v27, %s10055_s12 }
 0x40c   : > { %4375 = vrot.lane.b32.xlu1 %v14071_v6, %s10055_s12 }
 0x40d   : > { %4373 = vrot.lane.b32.xlu0 %v14075_v63, %s10055_s12 }
 0x410   : > { %4379 = vrot.lane.b32.xlu1 %v14083_v14, %s10055_s12 }
 0x411   : > { %4377 = vrot.lane.b32.xlu0 %v14087_v41, %s10055_s12  ;;  %v14127_v41 = vld [vmem:[#allocation2 + $0x47] sm:$0xff] }
 0x412   : > { %v14091_v38 = vpop.permute.xlu1 %4203  ;;  %17260 = vst [vmem:[#allocation83_spill] sm:$0xff] %v14127_v41 }
 0x413   : > { %17248 = vst [vmem:[#allocation71_spill] sm:$0xff] %v14091_v38  ;;  %v14093_v42 = vpop.permute.xlu0 %4201  ;;  %v14111_v38 = vld [vmem:[#allocation2 + $0x1e9] sm:$0xff] }
 0x414   : > { %17249 = vst [vmem:[#allocation72_spill] sm:$0xff] %v14093_v42  ;;  %4383 = vrot.lane.b32.xlu1 %v14095_v48, %s10055_s12 }
 0x415   : > { %4381 = vrot.lane.b32.xlu0 %v14099_v9, %s10055_s12  ;;  %v3878_v9 = vld [vmem:[#allocation2 + $0x27] sm:$0xff] }
 0x416   : > { %v14103_v19 = vpop.permute.xlu1 %4207 }
 0x417   : > { %17252 = vst [vmem:[#allocation75_spill] sm:$0xff] %v14103_v19  ;;  %v14105_v55 = vpop.permute.xlu0 %4205 }
 0x418   : > { %17253 = vst [vmem:[#allocation76_spill] sm:$0xff] %v14105_v55  ;;  %4387 = vrot.lane.b32.xlu1 %v14107_v36, %s10055_s12  ;;  %v14123_v55 = vld [vmem:[#allocation2 + $0x4f] sm:$0xff] }
 0x419   : > { %4385 = vrot.lane.b32.xlu0 %v14111_v38, %s10055_s12  ;;  %17258 = vst [vmem:[#allocation81_spill] sm:$0xff] %v14123_v55 }
 0x41a   : > { %v14115_v42 = vpop.permute.xlu1 %4211 }
 0x41b   : > { %17255 = vst [vmem:[#allocation78_spill] sm:$0xff] %v14115_v42  ;;  %v14117_v48 = vpop.permute.xlu0 %4209 }
 0x41c   : > { %17256 = vst [vmem:[#allocation79_spill] sm:$0xff] %v14117_v48  ;;  %4455 = vrot.lane.b32.xlu1 %v3879_v3, %s10056_s13  ;;  %v14135_v48 = vld [vmem:[#allocation2 + $0x6f] sm:$0xff] }
 0x41d   : > { %4453 = vrot.lane.b32.xlu0 %v3878_v9, %s10056_s13  ;;  %17262 = vst [vmem:[#allocation85_spill] sm:$0xff] %v14135_v48  ;;  %v14139_v9 = vld [vmem:[#allocation2 + $0x67] sm:$0xff] }
 0x41e   : > { %v14121_v19 = vpop.permute.xlu1 %4215  ;;  %17264 = vst [vmem:[#allocation87_spill] sm:$0xff] %v14139_v9 }
 0x41f   : > { %17257 = vst [vmem:[#allocation80_spill] sm:$0xff] %v14121_v19  ;;  %v14125_v36 = vpop.permute.xlu0 %4213 }
 0x420   : > { %17259 = vst [vmem:[#allocation82_spill] sm:$0xff] %v14125_v36  ;;  %4459 = vrot.lane.b32.xlu1 %v14123_v55, %s10056_s13  ;;  %v14147_v36 = vld [vmem:[#allocation2 + $0x8f] sm:$0xff] }
 0x421   : > { %4457 = vrot.lane.b32.xlu0 %v14127_v41, %s10056_s13  ;;  %17266 = vst [vmem:[#allocation89_spill] sm:$0xff] %v14147_v36  ;;  %v14151_v41 = vld [vmem:[#allocation2 + $0x87] sm:$0xff] }
 0x422   : > { %v14133_v42 = vpop.permute.xlu1 %4219  ;;  %17268 = vst [vmem:[#allocation91_spill] sm:$0xff] %v14151_v41 }
 0x423   : > { %17261 = vst [vmem:[#allocation84_spill] sm:$0xff] %v14133_v42  ;;  %v14137_v3 = vpop.permute.xlu0 %4217 }
 0x424   : > { %17263 = vst [vmem:[#allocation86_spill] sm:$0xff] %v14137_v3  ;;  %4463 = vrot.lane.b32.xlu1 %v14135_v48, %s10056_s13  ;;  %v14159_v3 = vld [vmem:[#allocation2 + $0xaf] sm:$0xff] }
 0x425   : > { %4461 = vrot.lane.b32.xlu0 %v14139_v9, %s10056_s13  ;;  %17270 = vst [vmem:[#allocation93_spill] sm:$0xff] %v14159_v3  ;;  %v14163_v9 = vld [vmem:[#allocation2 + $0xa7] sm:$0xff] }
 0x426   : > { %v14145_v19 = vpop.permute.xlu1 %4223  ;;  %17272 = vst [vmem:[#allocation95_spill] sm:$0xff] %v14163_v9 }
 0x427   : > { %17265 = vst [vmem:[#allocation88_spill] sm:$0xff] %v14145_v19  ;;  %v14149_v55 = vpop.permute.xlu0 %4221 }
 0x428   : > { %17267 = vst [vmem:[#allocation90_spill] sm:$0xff] %v14149_v55  ;;  %4467 = vrot.lane.b32.xlu1 %v14147_v36, %s10056_s13  ;;  %v14171_v55 = vld [vmem:[#allocation2 + $0xcf] sm:$0xff] }
 0x429   : > { %4465 = vrot.lane.b32.xlu0 %v14151_v41, %s10056_s13  ;;  %17274 = vst [vmem:[#allocation97_spill] sm:$0xff] %v14171_v55  ;;  %v14175_v41 = vld [vmem:[#allocation2 + $0xc7] sm:$0xff] }
 0x42a   : > { %v14157_v42 = vpop.permute.xlu1 %4227  ;;  %17276 = vst [vmem:[#allocation99_spill] sm:$0xff] %v14175_v41 }
 0x42b   : > { %17269 = vst [vmem:[#allocation92_spill] sm:$0xff] %v14157_v42  ;;  %v14161_v48 = vpop.permute.xlu0 %4225 }
 0x42c   : > { %17271 = vst [vmem:[#allocation94_spill] sm:$0xff] %v14161_v48  ;;  %4471 = vrot.lane.b32.xlu1 %v14159_v3, %s10056_s13  ;;  %v14183_v48 = vld [vmem:[#allocation2 + $0xef] sm:$0xff] }
 0x42d   : > { %4469 = vrot.lane.b32.xlu0 %v14163_v9, %s10056_s13  ;;  %17278 = vst [vmem:[#allocation101_spill] sm:$0xff] %v14183_v48  ;;  %v14187_v9 = vld [vmem:[#allocation2 + $0xe7] sm:$0xff] }
 0x42e   : > { %v14169_v19 = vpop.permute.xlu1 %4231  ;;  %17280 = vst [vmem:[#allocation103_spill] sm:$0xff] %v14187_v9 }
 0x42f   : > { %17273 = vst [vmem:[#allocation96_spill] sm:$0xff] %v14169_v19  ;;  %v14173_v36 = vpop.permute.xlu0 %4229 }
 0x430   : > { %17275 = vst [vmem:[#allocation98_spill] sm:$0xff] %v14173_v36  ;;  %4475 = vrot.lane.b32.xlu1 %v14171_v55, %s10056_s13  ;;  %v14195_v36 = vld [vmem:[#allocation2 + $0x10f] sm:$0xff] }
 0x431   : > { %4473 = vrot.lane.b32.xlu0 %v14175_v41, %s10056_s13  ;;  %17282 = vst [vmem:[#allocation105_spill] sm:$0xff] %v14195_v36  ;;  %v14199_v41 = vld [vmem:[#allocation2 + $0x107] sm:$0xff] }
 0x432   : > { %v14181_v42 = vpop.permute.xlu1 %4235  ;;  %17284 = vst [vmem:[#allocation107_spill] sm:$0xff] %v14199_v41 }
 0x433   : > { %17277 = vst [vmem:[#allocation100_spill] sm:$0xff] %v14181_v42  ;;  %v14185_v3 = vpop.permute.xlu0 %4233 }
 0x434   : > { %17279 = vst [vmem:[#allocation102_spill] sm:$0xff] %v14185_v3  ;;  %4479 = vrot.lane.b32.xlu1 %v14183_v48, %s10056_s13  ;;  %v14207_v3 = vld [vmem:[#allocation2 + $0x12f] sm:$0xff] }
 0x435   : > { %4477 = vrot.lane.b32.xlu0 %v14187_v9, %s10056_s13  ;;  %17286 = vst [vmem:[#allocation111_spill] sm:$0xff] %v14207_v3  ;;  %v14211_v9 = vld [vmem:[#allocation2 + $0x127] sm:$0xff] }
 0x436   : > { %v14193_v19 = vpop.permute.xlu1 %4239  ;;  %17288 = vst [vmem:[#allocation114_spill] sm:$0xff] %v14211_v9 }
 0x437   : > { %17281 = vst [vmem:[#allocation104_spill] sm:$0xff] %v14193_v19  ;;  %v14197_v55 = vpop.permute.xlu0 %4237 }
 0x438   : > { %17283 = vst [vmem:[#allocation106_spill] sm:$0xff] %v14197_v55  ;;  %4483 = vrot.lane.b32.xlu1 %v14195_v36, %s10056_s13  ;;  %v14219_v55 = vld [vmem:[#allocation2 + $0x14f] sm:$0xff] }
 0x439   : > { %4481 = vrot.lane.b32.xlu0 %v14199_v41, %s10056_s13  ;;  %17290 = vst [vmem:[#allocation109_spill] sm:$0xff] %v14219_v55  ;;  %v14223_v41 = vld [vmem:[#allocation2 + $0x147] sm:$0xff] }
 0x43a   : > { %v14205_v42 = vpop.permute.xlu1 %4243  ;;  %17292 = vst [vmem:[#allocation5_spill] sm:$0xff] %v14223_v41 }
 0x43b   : > { %17285 = vst [vmem:[#allocation110_spill] sm:$0xff] %v14205_v42  ;;  %v14209_v48 = vpop.permute.xlu0 %4241 }
 0x43c   : > { %17287 = vst [vmem:[#allocation113_spill] sm:$0xff] %v14209_v48  ;;  %4487 = vrot.lane.b32.xlu1 %v14207_v3, %s10056_s13  ;;  %v14231_v48 = vld [vmem:[#allocation2 + $0x16f] sm:$0xff] }
 0x43d   : > { %4485 = vrot.lane.b32.xlu0 %v14211_v9, %s10056_s13  ;;  %17294 = vst [vmem:[#allocation7_spill] sm:$0xff] %v14231_v48  ;;  %v14235_v9 = vld [vmem:[#allocation2 + $0x167] sm:$0xff] }
 0x43e   : > { %v14217_v19 = vpop.permute.xlu1 %4247  ;;  %17296 = vst [vmem:[#allocation9_spill] sm:$0xff] %v14235_v9 }
 0x43f   : > { %17289 = vst [vmem:[#allocation108_spill] sm:$0xff] %v14217_v19  ;;  %v14221_v36 = vpop.permute.xlu0 %4245 }
 0x440   : > { %17291 = vst [vmem:[#allocation4_spill] sm:$0xff] %v14221_v36  ;;  %4491 = vrot.lane.b32.xlu1 %v14219_v55, %s10056_s13  ;;  %v14243_v36 = vld [vmem:[#allocation2 + $0x18f] sm:$0xff] }
 0x441   : > { %4489 = vrot.lane.b32.xlu0 %v14223_v41, %s10056_s13  ;;  %17298 = vst [vmem:[#allocation11_spill] sm:$0xff] %v14243_v36  ;;  %v14247_v41 = vld [vmem:[#allocation2 + $0x187] sm:$0xff] }
 0x442   : > { %v14229_v42 = vpop.permute.xlu1 %4251  ;;  %17300 = vst [vmem:[#allocation13_spill] sm:$0xff] %v14247_v41 }
 0x443   : > { %17293 = vst [vmem:[#allocation6_spill] sm:$0xff] %v14229_v42  ;;  %v14233_v3 = vpop.permute.xlu0 %4249 }
 0x444   : > { %17295 = vst [vmem:[#allocation8_spill] sm:$0xff] %v14233_v3  ;;  %4495 = vrot.lane.b32.xlu1 %v14231_v48, %s10056_s13  ;;  %v14255_v3 = vld [vmem:[#allocation2 + $0x1af] sm:$0xff] }
 0x445   : > { %4493 = vrot.lane.b32.xlu0 %v14235_v9, %s10056_s13  ;;  %17302 = vst [vmem:[#allocation16_spill] sm:$0xff] %v14255_v3  ;;  %v14259_v9 = vld [vmem:[#allocation2 + $0x1a7] sm:$0xff] }
 0x446   : > { %v14241_v19 = vpop.permute.xlu1 %4255  ;;  %17304 = vst [vmem:[#allocation18_spill] sm:$0xff] %v14259_v9 }
 0x447   : > { %17297 = vst [vmem:[#allocation10_spill] sm:$0xff] %v14241_v19  ;;  %v14245_v55 = vpop.permute.xlu0 %4253 }
 0x448   : > { %17299 = vst [vmem:[#allocation12_spill] sm:$0xff] %v14245_v55  ;;  %4499 = vrot.lane.b32.xlu1 %v14243_v36, %s10056_s13  ;;  %v14267_v55 = vld [vmem:[#allocation2 + $0x1cf] sm:$0xff] }
 0x449   : > { %4497 = vrot.lane.b32.xlu0 %v14247_v41, %s10056_s13  ;;  %17306 = vst [vmem:[#allocation20_spill] sm:$0xff] %v14267_v55  ;;  %v14271_v41 = vld [vmem:[#allocation2 + $0x1c7] sm:$0xff] }
 0x44a   : > { %v14253_v42 = vpop.permute.xlu1 %4259 }
 0x44b   : > { %17301 = vst [vmem:[#allocation14_spill] sm:$0xff] %v14253_v42  ;;  %v14257_v48 = vpop.permute.xlu0 %4257 }
 0x44c   : > { %17303 = vst [vmem:[#allocation17_spill] sm:$0xff] %v14257_v48  ;;  %4503 = vrot.lane.b32.xlu1 %v14255_v3, %s10056_s13  ;;  %v14279_v48 = vld [vmem:[#allocation2 + $0x1ef] sm:$0xff] }
 0x44d   : > { %4501 = vrot.lane.b32.xlu0 %v14259_v9, %s10056_s13  ;;  %17309 = vst [vmem:[#allocation23_spill] sm:$0xff] %v14279_v48  ;;  %v14283_v9 = vld [vmem:[#allocation2 + $0x1e7] sm:$0xff] }
 0x44e   : > { %v14265_v19 = vpop.permute.xlu1 %4327 }
 0x44f   : > { %17305 = vst [vmem:[#allocation19_spill] sm:$0xff] %v14265_v19  ;;  %v14269_v36 = vpop.permute.xlu0 %4325 }
 0x450   : > { %17307 = vst [vmem:[#allocation21_spill] sm:$0xff] %v14269_v36  ;;  %4507 = vrot.lane.b32.xlu1 %v14267_v55, %s10056_s13  ;;  %v14293_v55 = vld [vmem:[#allocation2 + $0x20f] sm:$0xff] }
 0x451   : > { %4505 = vrot.lane.b32.xlu0 %v14271_v41, %s10056_s13 }
 0x452   : > { %v14277_v42 = vpop.permute.xlu1 %4331 }
 0x453   : > { %17308 = vst [vmem:[#allocation22_spill] sm:$0xff] %v14277_v42  ;;  %v14281_v3 = vpop.permute.xlu0 %4329  ;;  %v14297_v42 = vld [vmem:[#allocation2 + $0x207] sm:$0xff] }
 0x454   : > { %17310 = vst [vmem:[#allocation24_spill] sm:$0xff] %v14281_v3  ;;  %4511 = vrot.lane.b32.xlu1 %v14279_v48, %s10056_s13  ;;  %17313 = vst [vmem:[#allocation27_spill] sm:$0xff] %v14297_v42 }
 0x455   : > { %4509 = vrot.lane.b32.xlu0 %v14283_v9, %s10056_s13 }
 0x456   : > { %v14289_v19 = vpop.permute.xlu1 %4335 }
 0x457   : > { %17311 = vst [vmem:[#allocation25_spill] sm:$0xff] %v14289_v19  ;;  %v14291_v36 = vpop.permute.xlu0 %4333 }
 0x458   : > { %17312 = vst [vmem:[#allocation26_spill] sm:$0xff] %v14291_v36  ;;  %4515 = vrot.lane.b32.xlu1 %v14293_v55, %s10056_s13 }
 0x459   : > { %4513 = vrot.lane.b32.xlu0 %v14297_v42, %s10056_s13 }
 0x45a   : > { %v14301_v3 = vpop.permute.xlu1 %4339 }
 0x45b   : > { %17314 = vst [vmem:[#allocation28_spill] sm:$0xff] %v14301_v3  ;;  %v14303_v48 = vpop.permute.xlu0 %4337 }
 0x45c   : > { %4583 = vrot.lane.b32.xlu1 %v13780_v17, %s10057_s14 }
 0x45d   : > { %4581 = vrot.lane.b32.xlu0 %v13786_v60, %s10057_s14 }
 0x45e   : > { %v14309_v19 = vpop.permute.xlu1 %4343 }
 0x45f   : > { %v14311_v36 = vpop.permute.xlu0 %4341 }
 0x460   : > { %4587 = vrot.lane.b32.xlu1 %v13794_v61, %s10057_s14 }
 0x461   : > { %4585 = vrot.lane.b32.xlu0 %v13800_v4, %s10057_s14 }
 0x462   : > { %v14317_v42 = vpop.permute.xlu1 %4347 }
 0x463   : > { %17315 = vst [vmem:[#allocation29_spill] sm:$0xff] %v14317_v42  ;;  %v14319_v3 = vpop.permute.xlu0 %4345 }
 0x464   : > { %4591 = vrot.lane.b32.xlu1 %v13808_v15, %s10057_s14 }
 0x465   : > { %4589 = vrot.lane.b32.xlu0 %v13814_v37, %s10057_s14 }
 0x466   : > { %v14325_v17 = vpop.permute.xlu1 %4351 }
 0x467   : > { %17316 = vst [vmem:[#allocation30_spill] sm:$0xff] %v14325_v17  ;;  %v14327_v60 = vpop.permute.xlu0 %4349 }
 0x468   : > { %17317 = vst [vmem:[#allocation32_spill] sm:$0xff] %v14327_v60  ;;  %4595 = vrot.lane.b32.xlu1 %v13822_v59, %s10057_s14  ;;  %v4152_v60 = vld [vmem:[#allocation2 + $0x171] sm:$0xff] }
 0x469   : > { %4593 = vrot.lane.b32.xlu0 %v13828_v0, %s10057_s14 }
 0x46a   : > { %v14333_v61 = vpop.permute.xlu1 %4355 }
 0x46b   : > { %17318 = vst [vmem:[#allocation33_spill] sm:$0xff] %v14333_v61  ;;  %v14335_v4 = vpop.permute.xlu0 %4353 }
 0x46c   : > { %17319 = vst [vmem:[#allocation46_spill] sm:$0xff] %v14335_v4  ;;  %4599 = vrot.lane.b32.xlu1 %v13836_v43, %s10057_s14  ;;  %v4148_v4 = vld [vmem:[#allocation2 + $0x131] sm:$0xff] }
 0x46d   : > { %4597 = vrot.lane.b32.xlu0 %v13842_v21, %s10057_s14 }
 0x46e   : > { %v14341_v15 = vpop.permute.xlu1 %4359 }
 0x46f   : > { %17320 = vst [vmem:[#allocation35_spill] sm:$0xff] %v14341_v15  ;;  %v14343_v37 = vpop.permute.xlu0 %4357 }
 0x470   : > { %17321 = vst [vmem:[#allocation48_spill] sm:$0xff] %v14343_v37  ;;  %4603 = vrot.lane.b32.xlu1 %v13850_v29, %s10057_s14 }
 0x471   : > { %4601 = vrot.lane.b32.xlu0 %v13856_v22, %s10057_s14 }
 0x472   : > { %v14349_v59 = vpop.permute.xlu1 %4363 }
 0x473   : > { %17322 = vst [vmem:[#allocation34_spill] sm:$0xff] %v14349_v59  ;;  %v14351_v0 = vpop.permute.xlu0 %4361  ;;  %v17388_v59 = vld [vmem:[#allocation111_spill] sm:$0xff] }
 0x474   : > { %17323 = vst [vmem:[#allocation47_spill] sm:$0xff] %v14351_v0  ;;  %4607 = vrot.lane.b32.xlu1 %v13864_v49, %s10057_s14  ;;  %v4099_v0 = vld [vmem:[#allocation2 + $0x227] sm:$0xff] }
 0x475   : > { %4605 = vrot.lane.b32.xlu0 %v13870_v25, %s10057_s14 }
 0x476   : > { %v14357_v43 = vpop.permute.xlu1 %4367 }
 0x477   : > { %17324 = vst [vmem:[#allocation37_spill] sm:$0xff] %v14357_v43  ;;  %v14359_v21 = vpop.permute.xlu0 %4365  ;;  %v17380_v43 = vld [vmem:[#allocation101_spill] sm:$0xff] }
 0x478   : > { %17325 = vst [vmem:[#allocation50_spill] sm:$0xff] %v14359_v21  ;;  %4611 = vrot.lane.b32.xlu1 %v13878_v57, %s10057_s14 }
 0x479   : > { %4609 = vrot.lane.b32.xlu0 %v13884_v20, %s10057_s14 }
 0x47a   : > { %v14365_v29 = vpop.permute.xlu1 %4371 }
 0x47b   : > { %17326 = vst [vmem:[#allocation36_spill] sm:$0xff] %v14365_v29  ;;  %v14367_v22 = vpop.permute.xlu0 %4369  ;;  %v17372_v29 = vld [vmem:[#allocation93_spill] sm:$0xff] }
 0x47c   : > { %17327 = vst [vmem:[#allocation49_spill] sm:$0xff] %v14367_v22  ;;  %4615 = vrot.lane.b32.xlu1 %v13892_v1, %s10057_s14 }
 0x47d   : > { %4613 = vrot.lane.b32.xlu0 %v13898_v26, %s10057_s14 }
 0x47e   : > { %v14373_v49 = vpop.permute.xlu1 %4375 }
 0x47f   : > { %17328 = vst [vmem:[#allocation39_spill] sm:$0xff] %v14373_v49  ;;  %v14375_v25 = vpop.permute.xlu0 %4373 }
 0x480   : > { %17329 = vst [vmem:[#allocation53_spill] sm:$0xff] %v14375_v25  ;;  %4619 = vrot.lane.b32.xlu1 %v13906_v62, %s10057_s14 }
 0x481   : > { %4617 = vrot.lane.b32.xlu0 %v13912_v30, %s10057_s14 }
 0x482   : > { %v14381_v57 = vpop.permute.xlu1 %4379 }
 0x483   : > { %17330 = vst [vmem:[#allocation61_spill] sm:$0xff] %v14381_v57  ;;  %v14383_v20 = vpop.permute.xlu0 %4377 }
 0x484   : > { %17331 = vst [vmem:[#allocation38_spill] sm:$0xff] %v14383_v20  ;;  %4623 = vrot.lane.b32.xlu1 %v13920_v8, %s10057_s14 }
 0x485   : > { %4621 = vrot.lane.b32.xlu0 %v13926_v7, %s10057_s14 }
 0x486   : > { %v14389_v1 = vpop.permute.xlu1 %4383 }
 0x487   : > { %17332 = vst [vmem:[#allocation52_spill] sm:$0xff] %v14389_v1  ;;  %v14391_v26 = vpop.permute.xlu0 %4381 }
 0x488   : > { %17333 = vst [vmem:[#allocation60_spill] sm:$0xff] %v14391_v26  ;;  %4627 = vrot.lane.b32.xlu1 %v13934_v54, %s10057_s14 }
 0x489   : > { %4625 = vrot.lane.b32.xlu0 %v13940_v2, %s10057_s14 }
 0x48a   : > { %v14397_v62 = vpop.permute.xlu1 %4387 }
 0x48b   : > { %17334 = vst [vmem:[#allocation41_spill] sm:$0xff] %v14397_v62  ;;  %v14399_v30 = vpop.permute.xlu0 %4385  ;;  %v14425_v62 = vld [vmem:[#allocation2 + $0x210] sm:$0xff] }
 0x48c   : > { %17335 = vst [vmem:[#allocation55_spill] sm:$0xff] %v14399_v30  ;;  %4631 = vrot.lane.b32.xlu1 %v13948_v5, %s10057_s14 }
 0x48d   : > { %4629 = vrot.lane.b32.xlu0 %v13954_v34, %s10057_s14 }
 0x48e   : > { %v14405_v8 = vpop.permute.xlu1 %4455 }
 0x48f   : > { %v14407_v7 = vpop.permute.xlu0 %4453 }
 0x490   : > { %4635 = vrot.lane.b32.xlu1 %v13962_v31, %s10057_s14  ;;  %v14429_v31 = vld [vmem:[#allocation2 + $0x208] sm:$0xff] }
 0x491   : > { %4633 = vrot.lane.b32.xlu0 %v13968_v56, %s10057_s14 }
 0x492   : > { %v14413_v54 = vpop.permute.xlu1 %4459 }
 0x493   : > { %v14415_v2 = vpop.permute.xlu0 %4457 }
 0x494   : > { %4639 = vrot.lane.b32.xlu1 %v13973_v12, %s10057_s14 }
 0x495   : > { %4637 = vrot.lane.b32.xlu0 %v13977_v44, %s10057_s14 }
 0x496   : > { %v14421_v5 = vpop.permute.xlu1 %4463 }
 0x497   : > { %v14423_v34 = vpop.permute.xlu0 %4461 }
 0x498   : > { %4643 = vrot.lane.b32.xlu1 %v14425_v62, %s10057_s14 }
 0x499   : > { %4641 = vrot.lane.b32.xlu0 %v14429_v31, %s10057_s14 }
 0x49a   : > { %v14433_v56 = vpop.permute.xlu1 %4467 }
 0x49b   : > { %v14435_v12 = vpop.permute.xlu0 %4465 }
 0x49c   : > { %4711 = vrot.lane.b32.xlu1 %v13983_v28, %s10058_s15 }
 0x49d   : > { %4709 = vrot.lane.b32.xlu0 %v13987_v16, %s10058_s15 }
 0x49e   : > { %v14441_v44 = vpop.permute.xlu1 %4471 }
 0x49f   : > { %v14443_v30 = vpop.permute.xlu0 %4469 }
 0x4a0   : > { %4715 = vrot.lane.b32.xlu1 %v13991_v24, %s10058_s15 }
 0x4a1   : > { %4713 = vrot.lane.b32.xlu0 %v13995_v23, %s10058_s15 }
 0x4a2   : > { %v14449_v1 = vpop.permute.xlu1 %4475 }
 0x4a3   : > { %17336 = vst [vmem:[#allocation63_spill] sm:$0xff] %v14449_v1  ;;  %v14451_v26 = vpop.permute.xlu0 %4473  ;;  %v17458_v1 = vld [vmem:[#allocation19_spill] sm:$0xff] }
 0x4a4   : > { %17337 = vst [vmem:[#allocation40_spill] sm:$0xff] %v14451_v26  ;;  %4719 = vrot.lane.b32.xlu1 %v13999_v33, %s10058_s15 }
 0x4a5   : > { %4717 = vrot.lane.b32.xlu0 %v14003_v10, %s10058_s15 }
 0x4a6   : > { %v14457_v28 = vpop.permute.xlu1 %4479 }
 0x4a7   : > { %17338 = vst [vmem:[#allocation54_spill] sm:$0xff] %v14457_v28  ;;  %v14459_v16 = vpop.permute.xlu0 %4477 }
 0x4a8   : > { %17339 = vst [vmem:[#allocation62_spill] sm:$0xff] %v14459_v16  ;;  %4723 = vrot.lane.b32.xlu1 %v14007_v52, %s10058_s15  ;;  %v4120_v16 = vld [vmem:[#allocation2 + $0x170] sm:$0xff] }
 0x4a9   : > { %4721 = vrot.lane.b32.xlu0 %v14011_v32, %s10058_s15 }
 0x4aa   : > { %v14465_v24 = vpop.permute.xlu1 %4483 }
 0x4ab   : > { %17340 = vst [vmem:[#allocation43_spill] sm:$0xff] %v14465_v24  ;;  %v14467_v23 = vpop.permute.xlu0 %4481 }
 0x4ac   : > { %17341 = vst [vmem:[#allocation57_spill] sm:$0xff] %v14467_v23  ;;  %4727 = vrot.lane.b32.xlu1 %v14015_v47, %s10058_s15  ;;  %v4138_v23 = vld [vmem:[#allocation2 + $0x91] sm:$0xff] }
 0x4ad   : > { %4725 = vrot.lane.b32.xlu0 %v14019_v11, %s10058_s15 }
 0x4ae   : > { %v14473_v33 = vpop.permute.xlu1 %4487 }
 0x4af   : > { %17342 = vst [vmem:[#allocation42_spill] sm:$0xff] %v14473_v33  ;;  %v14475_v10 = vpop.permute.xlu0 %4485  ;;  %v4101_v33 = vld [vmem:[#allocation2 + $0x48] sm:$0xff] }
 0x4b0   : > { %17343 = vst [vmem:[#allocation56_spill] sm:$0xff] %v14475_v10  ;;  %4731 = vrot.lane.b32.xlu1 %v14023_v13, %s10058_s15  ;;  %v4106_v10 = vld [vmem:[#allocation2 + $0x90] sm:$0xff] }
 0x4b1   : > { %4729 = vrot.lane.b32.xlu0 %v14027_v53, %s10058_s15 }
 0x4b2   : > { %v14481_v52 = vpop.permute.xlu1 %4491 }
 0x4b3   : > { %17344 = vst [vmem:[#allocation45_spill] sm:$0xff] %v14481_v52  ;;  %v14483_v32 = vpop.permute.xlu0 %4489  ;;  %v17384_v52 = vld [vmem:[#allocation105_spill] sm:$0xff] }
 0x4b4   : > { %17345 = vst [vmem:[#allocation59_spill] sm:$0xff] %v14483_v32  ;;  %4735 = vrot.lane.b32.xlu1 %v14031_v46, %s10058_s15 }
 0x4b5   : > { %4733 = vrot.lane.b32.xlu0 %v14035_v18, %s10058_s15 }
 0x4b6   : > { %v14489_v47 = vpop.permute.xlu1 %4495 }
 0x4b7   : > { %17346 = vst [vmem:[#allocation65_spill] sm:$0xff] %v14489_v47  ;;  %v14491_v11 = vpop.permute.xlu0 %4493  ;;  %v17376_v47 = vld [vmem:[#allocation97_spill] sm:$0xff] }
 0x4b8   : > { %17347 = vst [vmem:[#allocation44_spill] sm:$0xff] %v14491_v11  ;;  %4739 = vrot.lane.b32.xlu1 %v14039_v39, %s10058_s15 }
 0x4b9   : > { %4737 = vrot.lane.b32.xlu0 %v14043_v35, %s10058_s15 }
 0x4ba   : > { %v14497_v13 = vpop.permute.xlu1 %4499 }
 0x4bb   : > { %17348 = vst [vmem:[#allocation67_spill] sm:$0xff] %v14497_v13  ;;  %v14499_v53 = vpop.permute.xlu0 %4497  ;;  %v17368_v13 = vld [vmem:[#allocation89_spill] sm:$0xff] }
 0x4bc   : > { %17349 = vst [vmem:[#allocation58_spill] sm:$0xff] %v14499_v53  ;;  %4743 = vrot.lane.b32.xlu1 %v14047_v45, %s10058_s15 }
 0x4bd   : > { %4741 = vrot.lane.b32.xlu0 %v14051_v51, %s10058_s15 }
 0x4be   : > { %v14505_v46 = vpop.permute.xlu1 %4503 }
 0x4bf   : > { %17350 = vst [vmem:[#allocation64_spill] sm:$0xff] %v14505_v46  ;;  %v14507_v18 = vpop.permute.xlu0 %4501  ;;  %v17364_v46 = vld [vmem:[#allocation85_spill] sm:$0xff] }
 0x4c0   : > { %17351 = vst [vmem:[#allocation112_spill] sm:$0xff] %v14507_v18  ;;  %4747 = vrot.lane.b32.xlu1 %v14055_v58, %s10058_s15  ;;  %v17365_v18 = vld [vmem:[#allocation87_spill] sm:$0xff] }
 0x4c1   : > { %4745 = vrot.lane.b32.xlu0 %v14059_v40, %s10058_s15 }
 0x4c2   : > { %v14513_v39 = vpop.permute.xlu1 %4507 }
 0x4c3   : > { %17352 = vst [vmem:[#allocation51_spill] sm:$0xff] %v14513_v39  ;;  %v14515_v35 = vpop.permute.xlu0 %4505  ;;  %v14557_v39 = vld [vmem:[#allocation2 + $0x211] sm:$0xff] }
 0x4c4   : > { %17353 = vst [vmem:[#allocation66_spill] sm:$0xff] %v14515_v35  ;;  %4751 = vrot.lane.b32.xlu1 %v14063_v50, %s10058_s15  ;;  %v17358_v50 = vld [vmem:[#allocation70_spill] sm:$0xff]  ;;  %v17363_v35 = vld [vmem:[#allocation83_spill] sm:$0xff] }
 0x4c5   : > { %4749 = vrot.lane.b32.xlu0 %v14067_v27, %s10058_s15 }
 0x4c6   : > { %v14521_v45 = vpop.permute.xlu1 %4511 }
 0x4c7   : > { %17354 = vst [vmem:[#allocation15_spill] sm:$0xff] %v14521_v45  ;;  %v14523_v51 = vpop.permute.xlu0 %4509 }
 0x4c8   : > { %17355 = vst [vmem:[#allocation31_spill] sm:$0xff] %v14523_v51  ;;  %4755 = vrot.lane.b32.xlu1 %v14071_v6, %s10058_s15  ;;  %v17359_v51 = vld [vmem:[#allocation73_spill] sm:$0xff]  ;;  %v17360_v6 = vld [vmem:[#allocation74_spill] sm:$0xff] }
 0x4c9   : > { %4753 = vrot.lane.b32.xlu0 %v14075_v63, %s10058_s15 }
 0x4ca   : > { %v14529_v58 = vpop.permute.xlu1 %4515 }
 0x4cb   : > { %17356 = vst [vmem:[#allocation115_spill] sm:$0xff] %v14529_v58  ;;  %v14531_v40 = vpop.permute.xlu0 %4513 }
 0x4cc   : > { %17357 = vst [vmem:[#allocation116_spill] sm:$0xff] %v14531_v40  ;;  %4759 = vrot.lane.b32.xlu1 %v14083_v14, %s10058_s15  ;;  %v17361_v40 = vld [vmem:[#allocation77_spill] sm:$0xff] }
 0x4cd   : > { %4757 = vrot.lane.b32.xlu0 %v17358_v50, %s10058_s15 }
 0x4ce   : > { %v14537_v27 = vpop.permute.xlu1 %4583 }
 0x4cf   : > { %v14539_v45 = vpop.permute.xlu0 %4581 }
 0x4d0   : > { %4763 = vrot.lane.b32.xlu1 %v17359_v51, %s10058_s15  ;;  %v14561_v51 = vld [vmem:[#allocation2 + $0x209] sm:$0xff] }
 0x4d1   : > { %4761 = vrot.lane.b32.xlu0 %v17360_v6, %s10058_s15 }
 0x4d2   : > { %v14545_v63 = vpop.permute.xlu1 %4587 }
 0x4d3   : > { %v14547_v58 = vpop.permute.xlu0 %4585 }
 0x4d4   : > { %4767 = vrot.lane.b32.xlu1 %v17361_v40, %s10058_s15 }
 0x4d5   : > { %4765 = vrot.lane.b32.xlu0 %v14111_v38, %s10058_s15  ;;  %v17362_v38 = vld [vmem:[#allocation81_spill] sm:$0xff] }
 0x4d6   : > { %v14553_v14 = vpop.permute.xlu1 %4591 }
 0x4d7   : > { %v14555_v50 = vpop.permute.xlu0 %4589 }
 0x4d8   : > { %4771 = vrot.lane.b32.xlu1 %v14557_v39, %s10058_s15 }
 0x4d9   : > { %4769 = vrot.lane.b32.xlu0 %v14561_v51, %s10058_s15 }
 0x4da   : > { %v14565_v6 = vpop.permute.xlu1 %4595 }
 0x4db   : > { %v14567_v40 = vpop.permute.xlu0 %4593 }
 0x4dc   : > { %4839 = vrot.lane.b32.xlu1 %v17362_v38, %s10059_s16  ;;  %v17369_v38 = vld [vmem:[#allocation91_spill] sm:$0xff] }
 0x4dd   : > { %4837 = vrot.lane.b32.xlu0 %v17363_v35, %s10059_s16 }
 0x4de   : > { %v14573_v57 = vpop.permute.xlu1 %4599 }
 0x4df   : > { %v14575_v20 = vpop.permute.xlu0 %4597 }
 0x4e0   : > { %4843 = vrot.lane.b32.xlu1 %v17364_v46, %s10059_s16  ;;  %v17373_v46 = vld [vmem:[#allocation95_spill] sm:$0xff] }
 0x4e1   : > { %4841 = vrot.lane.b32.xlu0 %v17365_v18, %s10059_s16 }
 0x4e2   : > { %v14581_v49 = vpop.permute.xlu1 %4603 }
 0x4e3   : > { %17366 = vst [vmem:[#allocation70_spill] sm:$0xff] %v14581_v49  ;;  %v14583_v25 = vpop.permute.xlu0 %4601 }
 0x4e4   : > { %17367 = vst [vmem:[#allocation73_spill] sm:$0xff] %v14583_v25  ;;  %4847 = vrot.lane.b32.xlu1 %v17368_v13, %s10059_s16  ;;  %v17377_v13 = vld [vmem:[#allocation99_spill] sm:$0xff]  ;;  %v4163_v25 = vld [vmem:[#allocation2 + $0x229] sm:$0xff] }
 0x4e5   : > { %4845 = vrot.lane.b32.xlu0 %v17369_v38, %s10059_s16 }
 0x4e6   : > { %v14589_v35 = vpop.permute.xlu1 %4607 }
 0x4e7   : > { %17370 = vst [vmem:[#allocation74_spill] sm:$0xff] %v14589_v35  ;;  %v14591_v53 = vpop.permute.xlu0 %4605 }
 0x4e8   : > { %17371 = vst [vmem:[#allocation77_spill] sm:$0xff] %v14591_v53  ;;  %4851 = vrot.lane.b32.xlu1 %v17372_v29, %s10059_s16  ;;  %v17381_v29 = vld [vmem:[#allocation103_spill] sm:$0xff] }
 0x4e9   : > { %4849 = vrot.lane.b32.xlu0 %v17373_v46, %s10059_s16  ;;  %v4150_v53 = vld [vmem:[#allocation2 + $0x151] sm:$0xff] }
 0x4ea   : > { %v14597_v18 = vpop.permute.xlu1 %4611 }
 0x4eb   : > { %17374 = vst [vmem:[#allocation81_spill] sm:$0xff] %v14597_v18  ;;  %v14599_v22 = vpop.permute.xlu0 %4609 }
 0x4ec   : > { %17375 = vst [vmem:[#allocation83_spill] sm:$0xff] %v14599_v22  ;;  %4855 = vrot.lane.b32.xlu1 %v17376_v47, %s10059_s16  ;;  %v17385_v47 = vld [vmem:[#allocation107_spill] sm:$0xff] }
 0x4ed   : > { %4853 = vrot.lane.b32.xlu0 %v17377_v13, %s10059_s16  ;;  %v4136_v22 = vld [vmem:[#allocation2 + $0x71] sm:$0xff] }
 0x4ee   : > { %v14605_v38 = vpop.permute.xlu1 %4615 }
 0x4ef   : > { %17378 = vst [vmem:[#allocation85_spill] sm:$0xff] %v14605_v38  ;;  %v14607_v11 = vpop.permute.xlu0 %4613 }
 0x4f0   : > { %17379 = vst [vmem:[#allocation87_spill] sm:$0xff] %v14607_v11  ;;  %4859 = vrot.lane.b32.xlu1 %v17380_v43, %s10059_s16  ;;  %v17389_v43 = vld [vmem:[#allocation114_spill] sm:$0xff] }
 0x4f1   : > { %4857 = vrot.lane.b32.xlu0 %v17381_v29, %s10059_s16  ;;  %v4102_v11 = vld [vmem:[#allocation2 + $0x50] sm:$0xff] }
 0x4f2   : > { %v14613_v46 = vpop.permute.xlu1 %4619 }
 0x4f3   : > { %17382 = vst [vmem:[#allocation89_spill] sm:$0xff] %v14613_v46  ;;  %v14615_v21 = vpop.permute.xlu0 %4617 }
 0x4f4   : > { %17383 = vst [vmem:[#allocation91_spill] sm:$0xff] %v14615_v21  ;;  %4863 = vrot.lane.b32.xlu1 %v17384_v52, %s10059_s16  ;;  %v17392_v21 = vld [vmem:[#allocation109_spill] sm:$0xff] }
 0x4f5   : > { %4861 = vrot.lane.b32.xlu0 %v17385_v47, %s10059_s16  ;;  %v17393_v52 = vld [vmem:[#allocation5_spill] sm:$0xff] }
 0x4f6   : > { %v14621_v13 = vpop.permute.xlu1 %4623 }
 0x4f7   : > { %17386 = vst [vmem:[#allocation93_spill] sm:$0xff] %v14621_v13  ;;  %v14623_v32 = vpop.permute.xlu0 %4621 }
 0x4f8   : > { %17387 = vst [vmem:[#allocation95_spill] sm:$0xff] %v14623_v32  ;;  %4867 = vrot.lane.b32.xlu1 %v17388_v59, %s10059_s16  ;;  %v17396_v32 = vld [vmem:[#allocation7_spill] sm:$0xff]  ;;  %v17397_v59 = vld [vmem:[#allocation9_spill] sm:$0xff] }
 0x4f9   : > { %4865 = vrot.lane.b32.xlu0 %v17389_v43, %s10059_s16 }
 0x4fa   : > { %v14629_v29 = vpop.permute.xlu1 %4627 }
 0x4fb   : > { %17390 = vst [vmem:[#allocation97_spill] sm:$0xff] %v14629_v29  ;;  %v14631_v46 = vpop.permute.xlu0 %4625 }
 0x4fc   : > { %17391 = vst [vmem:[#allocation99_spill] sm:$0xff] %v14631_v46  ;;  %4871 = vrot.lane.b32.xlu1 %v17392_v21, %s10059_s16  ;;  %v17400_v46 = vld [vmem:[#allocation11_spill] sm:$0xff]  ;;  %v17401_v21 = vld [vmem:[#allocation13_spill] sm:$0xff] }
 0x4fd   : > { %4869 = vrot.lane.b32.xlu0 %v17393_v52, %s10059_s16 }
 0x4fe   : > { %v14637_v47 = vpop.permute.xlu1 %4631 }
 0x4ff   : > { %17394 = vst [vmem:[#allocation101_spill] sm:$0xff] %v14637_v47  ;;  %v14639_v13 = vpop.permute.xlu0 %4629 }
 0x500   : > { %17395 = vst [vmem:[#allocation103_spill] sm:$0xff] %v14639_v13  ;;  %4875 = vrot.lane.b32.xlu1 %v17396_v32, %s10059_s16  ;;  %v17404_v13 = vld [vmem:[#allocation16_spill] sm:$0xff]  ;;  %v17405_v32 = vld [vmem:[#allocation18_spill] sm:$0xff] }
 0x501   : > { %4873 = vrot.lane.b32.xlu0 %v17397_v59, %s10059_s16 }
 0x502   : > { %v14645_v43 = vpop.permute.xlu1 %4635 }
 0x503   : > { %17398 = vst [vmem:[#allocation105_spill] sm:$0xff] %v14645_v43  ;;  %v14647_v29 = vpop.permute.xlu0 %4633 }
 0x504   : > { %17399 = vst [vmem:[#allocation107_spill] sm:$0xff] %v14647_v29  ;;  %4879 = vrot.lane.b32.xlu1 %v17400_v46, %s10059_s16  ;;  %v5445_v46 = vld [vmem:[%s16671_s4] sm:$0xff] }
 0x505   : > { %4877 = vrot.lane.b32.xlu0 %v17401_v21, %s10059_s16  ;;  %v5446_v21 = vld [vmem:[%s16671_s4 + $0x8] sm:$0xff]  ;;  %v5449_v29 = vld [vmem:[%s16671_s4 + $0x20] sm:$0xff] }
 0x506   : > { %v14653_v52 = vpop.permute.xlu1 %4639 }
 0x507   : > { %17402 = vst [vmem:[#allocation111_spill] sm:$0xff] %v14653_v52  ;;  %v14655_v47 = vpop.permute.xlu0 %4637  ;;  %v17408_v52 = vld [vmem:[#allocation20_spill] sm:$0xff] }
 0x508   : > { %17403 = vst [vmem:[#allocation114_spill] sm:$0xff] %v14655_v47  ;;  %4883 = vrot.lane.b32.xlu1 %v17404_v13, %s10059_s16  ;;  %v8716_v47 = vpack.c.bf16 %v5446_v21, %v5445_v46 }
 0x509   : > { %4881 = vrot.lane.b32.xlu0 %v17405_v32, %s10059_s16 }
 0x50a   : > { %v14661_v59 = vpop.permute.xlu1 %4643  ;;  %8717 = vmatprep.subr.bf16.mxu0 %v8716_v47  ;;  %8740 = vmatprep.subr.bf16.mxu1 %v8716_v47 }
 0x50b   : > { %17406 = vst [vmem:[#allocation109_spill] sm:$0xff] %v14661_v59  ;;  %v14663_v43 = vpop.permute.xlu0 %4641  ;;  %8719 = vmatpush3.bf16.msra.mxu0 %v8716_v47  ;;  %v5447_v59 = vld [vmem:[%s16671_s4 + $0x10] sm:$0xff]  ;;  %8745 = vmatpush3.bf16.msra.mxu1 %v8716_v47  ;;  %v5450_v47 = vld [vmem:[%s16671_s4 + $0x28] sm:$0xff] }
 0x50c   : > { %17407 = vst [vmem:[#allocation5_spill] sm:$0xff] %v14663_v43  ;;  %4887 = vrot.lane.b32.xlu1 %v17408_v52, %s10059_s16  ;;  %v5448_v43 = vld [vmem:[%s16671_s4 + $0x18] sm:$0xff] }
 0x50d   : > { %4885 = vrot.lane.b32.xlu0 %v14271_v41, %s10059_s16  ;;  %v17409_v52 = vld [vmem:[#allocation23_spill] sm:$0xff]  ;;  %v8720_v41 = vpack.c.bf16 %v5448_v43, %v5447_v59  ;;  %v4100_v59 = vld [vmem:[#allocation2 + $0x22f] sm:$0xff] }
 0x50e   : > { %v14675_v13 = vpop.permute.xlu1 %4711  ;;  %v17410_v43 = vld [vmem:[#allocation27_spill] sm:$0xff] }
 0x50f   : > { %v14677_v32 = vpop.permute.xlu0 %4709  ;;  %8721 = vmatprep.subr.bf16.mxu0 %v8720_v41  ;;  %8741 = vmatprep.subr.bf16.mxu1 %v8720_v41 }
 0x510   : > { %4891 = vrot.lane.b32.xlu1 %v17409_v52, %s10059_s16  ;;  %8723 = vmatpush3.bf16.msra.mxu0 %v8720_v41 }
 0x511   : > { %4889 = vrot.lane.b32.xlu0 %v14283_v9, %s10059_s16  ;;  %8746 = vmatpush3.bf16.msra.mxu1 %v8720_v41  ;;  %v8724_v9 = vpack.c.bf16 %v5450_v47, %v5449_v29  ;;  %v5451_v41 = vld [vmem:[%s16671_s4 + $0x30] sm:$0xff] }
 0x512   : > { %v14689_v46 = vpop.permute.xlu1 %4715 }
 0x513   : > { %v14691_v21 = vpop.permute.xlu0 %4713  ;;  %8725 = vmatprep.subr.bf16.mxu0 %v8724_v9  ;;  %8742 = vmatprep.subr.bf16.mxu1 %v8724_v9 }
 0x514   : > { %4895 = vrot.lane.b32.xlu1 %v14293_v55, %s10059_s16  ;;  %8727 = vmatpush3.bf16.msra.mxu0 %v8724_v9  ;;  %v5452_v55 = vld [vmem:[%s16671_s4 + $0x38] sm:$0xff] }
 0x515   : > { %4893 = vrot.lane.b32.xlu0 %v17410_v43, %s10059_s16  ;;  %8747 = vmatpush3.bf16.msra.mxu1 %v8724_v9  ;;  %v8728_v29 = vpack.c.bf16 %v5452_v55, %v5451_v41  ;;  %v5453_v9 = vld [vmem:[%s16671_s4 + $0x40] sm:$0xff]  ;;  %v4104_v41 = vld [vmem:[#allocation2 + $0x70] sm:$0xff]  ;;  %v4103_v55 = vld [vmem:[#allocation2 + $0x68] sm:$0xff] }
 0x516   : > { %v14703_v52 = vpop.permute.xlu1 %4719 }
 0x517   : > { %v14705_v38 = vpop.permute.xlu0 %4717  ;;  %8729 = vmatprep.subr.bf16.mxu0 %v8728_v29  ;;  %8743 = vmatprep.subr.bf16.mxu1 %v8728_v29 }
 0x518   : > { %4899 = vrot.lane.b32.xlu1 %v4100_v59, %s10059_s16  ;;  %8731 = vmatpush3.bf16.msra.mxu0 %v8728_v29 }
 0x519   : > { %4897 = vrot.lane.b32.xlu0 %v4099_v0, %s10059_s16  ;;  %8748 = vmatpush3.bf16.msra.mxu1 %v8728_v29  ;;  %s16460_s16 = scalar_lea.vmem %s16675_s8, %s8352_s30 }
 0x51a   : > { %v14715_v47 = vpop.permute.xlu1 %4723  ;;  %8576 = vmatprep.subr.mxu0 %v5453_v9  ;;  %8744 = vmatprep.subr.mxu1 %v5453_v9 }
 0x51b   : > { %v14717_v43 = vpop.permute.xlu0 %4721 }
 0x51c   : > { %4967 = vrot.lane.b32.xlu1 %v4102_v11, %s10060_s17  ;;  %8577 = vmatpush3.msra.mxu0 %v5453_v9 }
 0x51d   : > { %4965 = vrot.lane.b32.xlu0 %v4101_v33, %s10060_s17  ;;  %8749 = vmatpush3.msra.mxu1 %v5453_v9  ;;  %v4105_v33 = vld [vmem:[#allocation2 + $0x88] sm:$0xff]  ;;  %v4134_v9 = vld [vmem:[#allocation2 + $0x51] sm:$0xff] }
 0x51e   : > { %v14724_v0 = vpop.permute.xlu1 %4727 }
 0x51f   : > { %v14726_v59 = vpop.permute.xlu0 %4725 }
 0x520   : > { %4971 = vrot.lane.b32.xlu1 %v4104_v41, %s10060_s17  ;;  %v4133_v41 = vld [vmem:[#allocation2 + $0x49] sm:$0xff] }
 0x521   : > { %4969 = vrot.lane.b32.xlu0 %v4103_v55, %s10060_s17 }
 0x522   : > { %v14730_v11 = vpop.permute.xlu1 %4731 }
 0x523   : > { %17411 = vst [vmem:[#allocation7_spill] sm:$0xff] %v14730_v11  ;;  %v14732_v29 = vpop.permute.xlu0 %4729  ;;  %v17456_v11 = vld [vmem:[#allocation68_spill] sm:$0xff] }
 0x524   : > { %17412 = vst [vmem:[#allocation9_spill] sm:$0xff] %v14732_v29  ;;  %4975 = vrot.lane.b32.xlu1 %v4106_v10, %s10060_s17  ;;  %v4135_v10 = vld [vmem:[#allocation2 + $0x69] sm:$0xff] }
 0x525   : > { %4973 = vrot.lane.b32.xlu0 %v4105_v33, %s10060_s17  ;;  %v17457_v29 = vld [vmem:[#allocation21_spill] sm:$0xff] }
 0x526   : > { %v14736_v15 = vpop.permute.xlu1 %4735 }
 0x527   : > { %17413 = vst [vmem:[#allocation11_spill] sm:$0xff] %v14736_v15  ;;  %v14738_v37 = vpop.permute.xlu0 %4733 }
 0x528   : > { %17414 = vst [vmem:[#allocation13_spill] sm:$0xff] %v14738_v37  ;;  %5095 = vrot.lane.b32.xlu1 %v4134_v9, %s10061_s18  ;;  %v4137_v9 = vld [vmem:[#allocation2 + $0x89] sm:$0xff] }
 0x529   : > { %5093 = vrot.lane.b32.xlu0 %v4133_v41, %s10061_s18  ;;  %v4118_v37 = vld [vmem:[#allocation2 + $0x150] sm:$0xff] }
 0x52a   : > { %v14742_v55 = vpop.permute.xlu1 %4739 }
 0x52b   : > { %17415 = vst [vmem:[#allocation16_spill] sm:$0xff] %v14742_v55  ;;  %v14744_v18 = vpop.permute.xlu0 %4737 }
 0x52c   : > { %17416 = vst [vmem:[#allocation18_spill] sm:$0xff] %v14744_v18  ;;  %5099 = vrot.lane.b32.xlu1 %v4136_v22, %s10061_s18  ;;  %v4108_v18 = vld [vmem:[#allocation2 + $0xb0] sm:$0xff]  ;;  %v4107_v22 = vld [vmem:[#allocation2 + $0xa8] sm:$0xff] }
 0x52d   : > { %5097 = vrot.lane.b32.xlu0 %v4135_v10, %s10061_s18 }
 0x52e   : > { %v14748_v33 = vpop.permute.xlu1 %4743 }
 0x52f   : > { %17417 = vst [vmem:[#allocation20_spill] sm:$0xff] %v14748_v33  ;;  %v14750_v24 = vpop.permute.xlu0 %4741 }
 0x530   : > { %17418 = vst [vmem:[#allocation23_spill] sm:$0xff] %v14750_v24  ;;  %5103 = vrot.lane.b32.xlu1 %v4138_v23, %s10061_s18  ;;  %v4140_v24 = vld [vmem:[#allocation2 + $0xb1] sm:$0xff]  ;;  %v4139_v23 = vld [vmem:[#allocation2 + $0xa9] sm:$0xff] }
 0x531   : > { %5101 = vrot.lane.b32.xlu0 %v4137_v9, %s10061_s18 }
 0x532   : > { %v14754_v41 = vpop.permute.xlu1 %4747 }
 0x533   : > { %17419 = vst [vmem:[#allocation27_spill] sm:$0xff] %v14754_v41  ;;  %v14756_v55 = vpop.permute.xlu0 %4745 }
 0x534   : > { %17420 = vst [vmem:[#allocation117_spill] sm:$0xff] %v14756_v55  ;;  %4979 = vrot.lane.b32.xlu1 %v4108_v18, %s10060_s17  ;;  %v4110_v55 = vld [vmem:[#allocation2 + $0xd0] sm:$0xff]  ;;  %v4109_v18 = vld [vmem:[#allocation2 + $0xc8] sm:$0xff] }
 0x535   : > { %4977 = vrot.lane.b32.xlu0 %v4107_v22, %s10060_s17 }
 0x536   : > { %v14760_v10 = vpop.permute.xlu1 %4751 }
 0x537   : > { %17421 = vst [vmem:[#allocation118_spill] sm:$0xff] %v14760_v10  ;;  %v14762_v33 = vpop.permute.xlu0 %4749 }
 0x538   : > { %17422 = vst [vmem:[#allocation119_spill] sm:$0xff] %v14762_v33  ;;  %5107 = vrot.lane.b32.xlu1 %v4140_v24, %s10061_s18  ;;  %v4142_v33 = vld [vmem:[#allocation2 + $0xd1] sm:$0xff]  ;;  %v4141_v24 = vld [vmem:[#allocation2 + $0xc9] sm:$0xff] }
 0x539   : > { %5105 = vrot.lane.b32.xlu0 %v4139_v23, %s10061_s18 }
 0x53a   : > { %v14766_v9 = vpop.permute.xlu1 %4755 }
 0x53b   : > { %17423 = vst [vmem:[#allocation120_spill] sm:$0xff] %v14766_v9  ;;  %v14768_v41 = vpop.permute.xlu0 %4753 }
 0x53c   : > { %17424 = vst [vmem:[#allocation121_spill] sm:$0xff] %v14768_v41  ;;  %4983 = vrot.lane.b32.xlu1 %v4110_v55, %s10060_s17  ;;  %v4112_v41 = vld [vmem:[#allocation2 + $0xf0] sm:$0xff]  ;;  %v4111_v55 = vld [vmem:[#allocation2 + $0xe8] sm:$0xff] }
 0x53d   : > { %4981 = vrot.lane.b32.xlu0 %v4109_v18, %s10060_s17 }
 0x53e   : > { %v14772_v22 = vpop.permute.xlu1 %4759 }
 0x53f   : > { %17425 = vst [vmem:[#allocation122_spill] sm:$0xff] %v14772_v22  ;;  %v14774_v10 = vpop.permute.xlu0 %4757 }
 0x540   : > { %17426 = vst [vmem:[#allocation123_spill] sm:$0xff] %v14774_v10  ;;  %5111 = vrot.lane.b32.xlu1 %v4142_v33, %s10061_s18  ;;  %v4144_v10 = vld [vmem:[#allocation2 + $0xf1] sm:$0xff]  ;;  %v4143_v33 = vld [vmem:[#allocation2 + $0xe9] sm:$0xff] }
 0x541   : > { %5109 = vrot.lane.b32.xlu0 %v4141_v24, %s10061_s18 }
 0x542   : > { %v14778_v23 = vpop.permute.xlu1 %4763 }
 0x543   : > { %17427 = vst [vmem:[#allocation124_spill] sm:$0xff] %v14778_v23  ;;  %v14780_v9 = vpop.permute.xlu0 %4761 }
 0x544   : > { %17428 = vst [vmem:[#allocation125_spill] sm:$0xff] %v14780_v9  ;;  %4987 = vrot.lane.b32.xlu1 %v4112_v41, %s10060_s17  ;;  %v4114_v9 = vld [vmem:[#allocation2 + $0x110] sm:$0xff]  ;;  %v4113_v41 = vld [vmem:[#allocation2 + $0x108] sm:$0xff] }
 0x545   : > { %4985 = vrot.lane.b32.xlu0 %v4111_v55, %s10060_s17 }
 0x546   : > { %v14784_v18 = vpop.permute.xlu1 %4767 }
 0x547   : > { %17429 = vst [vmem:[#allocation126_spill] sm:$0xff] %v14784_v18  ;;  %v14786_v22 = vpop.permute.xlu0 %4765 }
 0x548   : > { %17430 = vst [vmem:[#allocation127_spill] sm:$0xff] %v14786_v22  ;;  %5115 = vrot.lane.b32.xlu1 %v4144_v10, %s10061_s18  ;;  %v4146_v22 = vld [vmem:[#allocation2 + $0x111] sm:$0xff]  ;;  %v4145_v10 = vld [vmem:[#allocation2 + $0x109] sm:$0xff] }
 0x549   : > { %5113 = vrot.lane.b32.xlu0 %v4143_v33, %s10061_s18 }
 0x54a   : > { %v14790_v24 = vpop.permute.xlu1 %4771 }
 0x54b   : > { %17431 = vst [vmem:[#allocation128_spill] sm:$0xff] %v14790_v24  ;;  %v14792_v23 = vpop.permute.xlu0 %4769 }
 0x54c   : > { %17432 = vst [vmem:[#allocation129_spill] sm:$0xff] %v14792_v23  ;;  %4991 = vrot.lane.b32.xlu1 %v4114_v9, %s10060_s17  ;;  %v4116_v23 = vld [vmem:[#allocation2 + $0x130] sm:$0xff]  ;;  %v4115_v9 = vld [vmem:[#allocation2 + $0x128] sm:$0xff] }
 0x54d   : > { %4989 = vrot.lane.b32.xlu0 %v4113_v41, %s10060_s17 }
 0x54e   : > { %v14796_v55 = vpop.permute.xlu1 %4839 }
 0x54f   : > { %v14798_v18 = vpop.permute.xlu0 %4837 }
 0x550   : > { %5119 = vrot.lane.b32.xlu1 %v4146_v22, %s10061_s18  ;;  %v4147_v22 = vld [vmem:[#allocation2 + $0x129] sm:$0xff] }
 0x551   : > { %5117 = vrot.lane.b32.xlu0 %v4145_v10, %s10061_s18 }
 0x552   : > { %v14802_v33 = vpop.permute.xlu1 %4843 }
 0x553   : > { %v14804_v24 = vpop.permute.xlu0 %4841 }
 0x554   : > { %4995 = vrot.lane.b32.xlu1 %v4116_v23, %s10060_s17  ;;  %v4117_v23 = vld [vmem:[#allocation2 + $0x148] sm:$0xff] }
 0x555   : > { %4993 = vrot.lane.b32.xlu0 %v4115_v9, %s10060_s17 }
 0x556   : > { %v14808_v41 = vpop.permute.xlu1 %4847 }
 0x557   : > { %v14810_v61 = vpop.permute.xlu0 %4845 }
 0x558   : > { %5123 = vrot.lane.b32.xlu1 %v4148_v4, %s10061_s18  ;;  %v4149_v4 = vld [vmem:[#allocation2 + $0x149] sm:$0xff] }
 0x559   : > { %5121 = vrot.lane.b32.xlu0 %v4147_v22, %s10061_s18 }
 0x55a   : > { %v14814_v10 = vpop.permute.xlu1 %4851 }
 0x55b   : > { %v14816_v15 = vpop.permute.xlu0 %4849 }
 0x55c   : > { %4999 = vrot.lane.b32.xlu1 %v4118_v37, %s10060_s17  ;;  %v4119_v37 = vld [vmem:[#allocation2 + $0x168] sm:$0xff] }
 0x55d   : > { %4997 = vrot.lane.b32.xlu0 %v4117_v23, %s10060_s17 }
 0x55e   : > { %v14820_v9 = vpop.permute.xlu1 %4855 }
 0x55f   : > { %v14822_v35 = vpop.permute.xlu0 %4853 }
 0x560   : > { %5127 = vrot.lane.b32.xlu1 %v4150_v53, %s10061_s18  ;;  %v4151_v53 = vld [vmem:[#allocation2 + $0x169] sm:$0xff] }
 0x561   : > { %5125 = vrot.lane.b32.xlu0 %v4149_v4, %s10061_s18 }
 0x562   : > { %v14826_v22 = vpop.permute.xlu1 %4859 }
 0x563   : > { %17433 = vst [vmem:[#allocation130_spill] sm:$0xff] %v14826_v22  ;;  %v14828_v28 = vpop.permute.xlu0 %4857 }
 0x564   : > { %17434 = vst [vmem:[#allocation131_spill] sm:$0xff] %v14828_v28  ;;  %5003 = vrot.lane.b32.xlu1 %v4120_v16, %s10060_s17  ;;  %v4122_v28 = vld [vmem:[#allocation2 + $0x190] sm:$0xff]  ;;  %v4121_v16 = vld [vmem:[#allocation2 + $0x188] sm:$0xff] }
 0x565   : > { %5001 = vrot.lane.b32.xlu0 %v4119_v37, %s10060_s17 }
 0x566   : > { %v14832_v23 = vpop.permute.xlu1 %4863 }
 0x567   : > { %17435 = vst [vmem:[#allocation132_spill] sm:$0xff] %v14832_v23  ;;  %v14834_v17 = vpop.permute.xlu0 %4861 }
 0x568   : > { %17436 = vst [vmem:[#allocation133_spill] sm:$0xff] %v14834_v17  ;;  %5131 = vrot.lane.b32.xlu1 %v4152_v60, %s10061_s18  ;;  %v4154_v17 = vld [vmem:[#allocation2 + $0x191] sm:$0xff]  ;;  %v4153_v60 = vld [vmem:[#allocation2 + $0x189] sm:$0xff] }
 0x569   : > { %5129 = vrot.lane.b32.xlu0 %v4151_v53, %s10061_s18 }
 0x56a   : > { %v14838_v4 = vpop.permute.xlu1 %4867 }
 0x56b   : > { %17437 = vst [vmem:[#allocation134_spill] sm:$0xff] %v14838_v4  ;;  %v14840_v22 = vpop.permute.xlu0 %4865 }
 0x56c   : > { %17438 = vst [vmem:[#allocation135_spill] sm:$0xff] %v14840_v22  ;;  %5007 = vrot.lane.b32.xlu1 %v4122_v28, %s10060_s17  ;;  %v4124_v22 = vld [vmem:[#allocation2 + $0x1b0] sm:$0xff]  ;;  %v4123_v28 = vld [vmem:[#allocation2 + $0x1a8] sm:$0xff] }
 0x56d   : > { %5005 = vrot.lane.b32.xlu0 %v4121_v16, %s10060_s17 }
 0x56e   : > { %v14844_v37 = vpop.permute.xlu1 %4871 }
 0x56f   : > { %17439 = vst [vmem:[#allocation136_spill] sm:$0xff] %v14844_v37  ;;  %v14846_v23 = vpop.permute.xlu0 %4869 }
 0x570   : > { %17440 = vst [vmem:[#allocation137_spill] sm:$0xff] %v14846_v23  ;;  %5135 = vrot.lane.b32.xlu1 %v4154_v17, %s10061_s18  ;;  %v4156_v23 = vld [vmem:[#allocation2 + $0x1b1] sm:$0xff]  ;;  %v4155_v17 = vld [vmem:[#allocation2 + $0x1a9] sm:$0xff] }
 0x571   : > { %5133 = vrot.lane.b32.xlu0 %v4153_v60, %s10061_s18 }
 0x572   : > { %v14850_v53 = vpop.permute.xlu1 %4875 }
 0x573   : > { %17441 = vst [vmem:[#allocation138_spill] sm:$0xff] %v14850_v53  ;;  %v14852_v4 = vpop.permute.xlu0 %4873 }
 0x574   : > { %17442 = vst [vmem:[#allocation139_spill] sm:$0xff] %v14852_v4  ;;  %5011 = vrot.lane.b32.xlu1 %v4124_v22, %s10060_s17  ;;  %v4126_v4 = vld [vmem:[#allocation2 + $0x1d0] sm:$0xff]  ;;  %v4125_v22 = vld [vmem:[#allocation2 + $0x1c8] sm:$0xff] }
 0x575   : > { %5009 = vrot.lane.b32.xlu0 %v4123_v28, %s10060_s17 }
 0x576   : > { %v14856_v16 = vpop.permute.xlu1 %4879 }
 0x577   : > { %17443 = vst [vmem:[#allocation140_spill] sm:$0xff] %v14856_v16  ;;  %v14858_v37 = vpop.permute.xlu0 %4877 }
 0x578   : > { %17444 = vst [vmem:[#allocation141_spill] sm:$0xff] %v14858_v37  ;;  %5139 = vrot.lane.b32.xlu1 %v4156_v23, %s10061_s18  ;;  %v4158_v37 = vld [vmem:[#allocation2 + $0x1d1] sm:$0xff]  ;;  %v4157_v23 = vld [vmem:[#allocation2 + $0x1c9] sm:$0xff] }
 0x579   : > { %5137 = vrot.lane.b32.xlu0 %v4155_v17, %s10061_s18 }
 0x57a   : > { %v14862_v60 = vpop.permute.xlu1 %4883 }
 0x57b   : > { %17445 = vst [vmem:[#allocation142_spill] sm:$0xff] %v14862_v60  ;;  %v14864_v53 = vpop.permute.xlu0 %4881 }
 0x57c   : > { %17446 = vst [vmem:[#allocation143_spill] sm:$0xff] %v14864_v53  ;;  %5015 = vrot.lane.b32.xlu1 %v4126_v4, %s10060_s17  ;;  %v4128_v53 = vld [vmem:[#allocation2 + $0x1f0] sm:$0xff]  ;;  %v4127_v4 = vld [vmem:[#allocation2 + $0x1e8] sm:$0xff] }
 0x57d   : > { %5013 = vrot.lane.b32.xlu0 %v4125_v22, %s10060_s17 }
 0x57e   : > { %v14868_v28 = vpop.permute.xlu1 %4887 }
 0x57f   : > { %17447 = vst [vmem:[#allocation144_spill] sm:$0xff] %v14868_v28  ;;  %v14870_v16 = vpop.permute.xlu0 %4885 }
 0x580   : > { %17448 = vst [vmem:[#allocation145_spill] sm:$0xff] %v14870_v16  ;;  %5143 = vrot.lane.b32.xlu1 %v4158_v37, %s10061_s18  ;;  %v4160_v16 = vld [vmem:[#allocation2 + $0x1f1] sm:$0xff]  ;;  %v4159_v37 = vld [vmem:[#allocation2 + $0x1e9] sm:$0xff] }
 0x581   : > { %5141 = vrot.lane.b32.xlu0 %v4157_v23, %s10061_s18 }
 0x582   : > { %v14874_v17 = vpop.permute.xlu1 %4891 }
 0x583   : > { %17449 = vst [vmem:[#allocation146_spill] sm:$0xff] %v14874_v17  ;;  %v14876_v60 = vpop.permute.xlu0 %4889 }
 0x584   : > { %17450 = vst [vmem:[#allocation147_spill] sm:$0xff] %v14876_v60  ;;  %5019 = vrot.lane.b32.xlu1 %v4128_v53, %s10060_s17 }
 0x585   : > { %5017 = vrot.lane.b32.xlu0 %v4127_v4, %s10060_s17 }
 0x586   : > { %v14880_v22 = vpop.permute.xlu1 %4895 }
 0x587   : > { %17451 = vst [vmem:[#allocation148_spill] sm:$0xff] %v14880_v22  ;;  %v14882_v28 = vpop.permute.xlu0 %4893 }
 0x588   : > { %17452 = vst [vmem:[#allocation149_spill] sm:$0xff] %v14882_v28  ;;  %5147 = vrot.lane.b32.xlu1 %v4160_v16, %s10061_s18  ;;  %v4132_v16 = vld [vmem:[#allocation2 + $0x230] sm:$0xff] }
 0x589   : > { %5145 = vrot.lane.b32.xlu0 %v4159_v37, %s10061_s18  ;;  %v3876_v37 = vld [vmem:[#allocation2 + $0x7] sm:$0xff]  ;;  %v3877_v28 = vld [vmem:[#allocation2 + $0xf] sm:$0xff] }
 0x58a   : > { %v14886_v23 = vpop.permute.xlu1 %4899 }
 0x58b   : > { %17453 = vst [vmem:[#allocation150_spill] sm:$0xff] %v14886_v23  ;;  %v14888_v17 = vpop.permute.xlu0 %4897  ;;  %v4131_v23 = vld [vmem:[#allocation2 + $0x228] sm:$0xff] }
 0x58c   : > { %17454 = vst [vmem:[#allocation151_spill] sm:$0xff] %v14888_v17  ;;  %5023 = vrot.lane.b32.xlu1 %v14425_v62, %s10060_s17  ;;  %v17455_v62 = vld [vmem:[#allocation69_spill] sm:$0xff] }
 0x58d   : > { %5021 = vrot.lane.b32.xlu0 %v14429_v31, %s10060_s17  ;;  %v5189_v60 = vsel %vm326_vm0, %v3876_v37, %v17455_v62  ;;  %v4164_v31 = vld [vmem:[#allocation2 + $0x231] sm:$0xff] }
 0x58e   : > { %v4968_v53 = vpop.permute.xlu1 %4967  ;;  %v17460_v62 = vld [vmem:[#allocation71_spill] sm:$0xff] }
 0x58f   : > { %v4966_v4 = vpop.permute.xlu0 %4965 }
 0x590   : > { %5151 = vrot.lane.b32.xlu1 %v14557_v39, %s10061_s18  ;;  %v5190_v39 = vsel %vm326_vm0, %v3877_v28, %v17456_v11  ;;  %v10009_v11 = vld [vmem:[#allocation2 + $0x27] sm:$0xff] }
 0x591   : > { %5149 = vrot.lane.b32.xlu0 %v14561_v51, %s10061_s18  ;;  %v5221_v51 = vsel %vm2941_vm1, %v5189_v60, %v17457_v29  ;;  %v5222_v26 = vsel %vm2941_vm1, %v5190_v39, %v17458_v1  ;;  %v17459_v28 = vld [vmem:[#allocation72_spill] sm:$0xff] }
 0x592   : > { %v4972_v22 = vpop.permute.xlu1 %4971  ;;  %v5254_v37 = vsel %vm2974_vm2, %v5222_v26, %v14405_v8  ;;  %v5191_v29 = vsel %vm326_vm0, %v10009_v11, %v17459_v28  ;;  %v17461_v8 = vld [vmem:[#allocation24_spill] sm:$0xff] }
 0x593   : > { %v4970_v17 = vpop.permute.xlu0 %4969  ;;  %v5286_v60 = vsel %vm3007_vm3, %v5254_v37, %v14537_v27  ;;  %v17462_v27 = vld [vmem:[#allocation22_spill] sm:$0xff] }
 0x594   : > { %5027 = vrot.lane.b32.xlu1 %v4132_v16, %s10060_s17  ;;  %v5253_v16 = vsel %vm2974_vm2, %v5221_v51, %v14407_v7  ;;  %v10010_v7 = vld [vmem:[#allocation2 + $0x2f] sm:$0xff] }
 0x595   : > { %5025 = vrot.lane.b32.xlu0 %v4131_v23, %s10060_s17  ;;  %v5285_v23 = vsel %vm3007_vm3, %v5253_v16, %v14539_v45  ;;  %v5192_v26 = vsel %vm326_vm0, %v10010_v7, %v17460_v62  ;;  %v5223_v45 = vsel %vm2941_vm1, %v5191_v29, %v17461_v8  ;;  %v10011_v29 = vld [vmem:[#allocation2 + $0x47] sm:$0xff]  ;;  %v17465_v7 = vld [vmem:[#allocation26_spill] sm:$0xff] }
 0x596   : > { %v4976_v49 = vpop.permute.xlu1 %4975  ;;  %v5317_v1 = vsel %vm3040_vm4, %v5285_v23, %v14677_v32  ;;  %v5224_v16 = vsel %vm2941_vm1, %v5192_v26, %v17462_v27 }
 0x597   : > { %v4974_v42 = vpop.permute.xlu0 %4973  ;;  %v5349_v39 = vsel %vm3073_vm5, %v5317_v1, %v14798_v18  ;;  %v5256_v11 = vsel %vm2974_vm2, %v5224_v16, %v14413_v54  ;;  %v10012_v54 = vld [vmem:[#allocation2 + $0x4f] sm:$0xff] }
 0x598   : > { %5155 = vrot.lane.b32.xlu1 %v4164_v31, %s10061_s18  ;;  %v5318_v31 = vsel %vm3040_vm4, %v5286_v60, %v14675_v13  ;;  %v5381_v37 = vsel %vm3106_vm6, %v5349_v39, %v4966_v4  ;;  %v17463_v60 = vld [vmem:[#allocation76_spill] sm:$0xff] }
 0x599   : > { %5153 = vrot.lane.b32.xlu0 %v4163_v25, %s10061_s18  ;;  %v5255_v25 = vsel %vm2974_vm2, %v5223_v45, %v14415_v2  ;;  %v5350_v32 = vsel %vm3073_vm5, %v5318_v31, %v14796_v55  ;;  %v5193_v2 = vsel %vm326_vm0, %v10011_v29, %v17463_v60  ;;  %v5288_v55 = vsel %vm3007_vm3, %v5256_v11, %v14545_v63  ;;  %v10013_v11 = vld [vmem:[#allocation2 + $0x67] sm:$0xff]  ;;  %s10071_s18 = smov 12  }
 0x59a   : > { %v5096_v51 = vpop.permute.xlu1 %5095  ;;  %v5287_v13 = vsel %vm3007_vm3, %v5255_v25, %v14547_v58  ;;  %v5382_v18 = vsel %vm3106_vm6, %v5350_v32, %v4968_v53  ;;  %v17464_v58 = vld [vmem:[#allocation75_spill] sm:$0xff]  ;;  %v5225_v62 = vsel %vm2941_vm1, %v5193_v2, %v17465_v7  ;;  %v5320_v26 = vsel %vm3040_vm4, %v5288_v55, %v14689_v46 }
 0x59b   : > { %v5094_v23 = vpop.permute.xlu0 %5093  ;;  %v5319_v4 = vsel %vm3040_vm4, %v5287_v13, %v14691_v21  ;;  %v5414_v1 = vsel %vm3139_vm7, %v5382_v18, %v5096_v51  ;;  %v5194_v53 = vsel %vm326_vm0, %v10012_v54, %v17464_v58  ;;  %v17466_v21 = vld [vmem:[#allocation25_spill] sm:$0xff]  ;;  %v5257_v31 = vsel %vm2974_vm2, %v5225_v62, %v14423_v34  ;;  %v17467_v13 = vld [vmem:[#allocation79_spill] sm:$0xff] }
 0x59c   : > { %v5413_v28 = vsel %vm3139_vm7, %v5381_v37, %v5094_v23  ;;  %v5351_v63 = vsel %vm3073_vm5, %v5319_v4, %v14804_v24  ;;  %v5226_v45 = vsel %vm2941_vm1, %v5194_v53, %v17466_v21  ;;  %v5352_v39 = vsel %vm3073_vm5, %v5320_v26, %v14802_v33  ;;  %v10015_v26 = vld [vmem:[#allocation2 + $0x87] sm:$0xff] }
 0x59d   : > { %8578 = vmatprep.mubr.msk.f32.mxu0 %vm3172_vm8, %v5413_v28  ;;  %v5383_v51 = vsel %vm3106_vm6, %v5351_v63, %v4970_v17  ;;  %v5258_v46 = vsel %vm2974_vm2, %v5226_v45, %v14421_v5  ;;  %v5289_v24 = vsel %vm3007_vm3, %v5257_v31, %v14555_v50  ;;  %v5384_v16 = vsel %vm3106_vm6, %v5352_v39, %v4972_v22  ;;  %v17468_v28 = vld [vmem:[#allocation78_spill] sm:$0xff] }
 0x59e   : > { %v5100_v8 = vpop.permute.xlu1 %5099  ;;  %8579 = vmatmul.mubr.msk.f32.vlgmr.msra.gmra.mrb[32].mxu0 %vm3172_vm8, %v5414_v1  ;;  %v5290_v32 = vsel %vm3007_vm3, %v5258_v46, %v14553_v14  ;;  %v5321_v34 = vsel %vm3040_vm4, %v5289_v24, %v14705_v38  ;;  %v17470_v63 = vld [vmem:[#allocation82_spill] sm:$0xff] }
 0x59f   : > { %v5098_v27 = vpop.permute.xlu0 %5097  ;;  %v5416_v33 = vsel %vm3139_vm7, %v5384_v16, %v5100_v8  ;;  %v5322_v5 = vsel %vm3040_vm4, %v5290_v32, %v14703_v52  ;;  %v5353_v50 = vsel %vm3073_vm5, %v5321_v34, %v14810_v61  ;;  %v5195_v52 = vsel %vm326_vm0, %v10013_v11, %v17467_v13  ;;  %v10014_v61 = vld [vmem:[#allocation2 + $0x6f] sm:$0xff]  ;;  %v17471_v8 = vld [vmem:[#allocation80_spill] sm:$0xff]  ;;  %v17476_v11 = vld [vmem:[#allocation63_spill] sm:$0xff] }
 0x5a0   : > { %v5415_v25 = vsel %vm3139_vm7, %v5383_v51, %v5098_v27  ;;  %v5354_v22 = vsel %vm3073_vm5, %v5322_v5, %v14808_v41  ;;  %v5385_v14 = vsel %vm3106_vm6, %v5353_v50, %v4974_v42  ;;  %v5196_v29 = vsel %vm326_vm0, %v10014_v61, %v17468_v28  ;;  %v10017_v34 = vld [vmem:[#allocation2 + $0xa7] sm:$0xff]  ;;  %v17478_v61 = vld [vmem:[#allocation70_spill] sm:$0xff] }
 0x5a1   : > { %8581 = vmatprep.mubr.msk.f32.mxu0 %vm3172_vm8, %v5415_v25  ;;  %v5386_v38 = vsel %vm3106_vm6, %v5354_v22, %v4976_v49  ;;  %v5227_v42 = vsel %vm2941_vm1, %v5195_v52, %v14303_v48  ;;  %v17469_v49 = vld [vmem:[#allocation28_spill] sm:$0xff]  ;;  %v17474_v22 = vld [vmem:[#allocation29_spill] sm:$0xff] }
 0x5a2   : > { %v5104_v17 = vpop.permute.xlu1 %5103  ;;  %8582 = vmatmul.mubr.msk.f32.gmra.mrb[34].mxu0 %vm3172_vm8, %v5416_v33  ;;  %v5228_v60 = vsel %vm2941_vm1, %v5196_v29, %v17469_v49  ;;  %v5259_v2 = vsel %vm2974_vm2, %v5227_v42, %v14435_v12  ;;  %v17472_v33 = vld [vmem:[#allocation86_spill] sm:$0xff]  ;;  %v17473_v5 = vld [vmem:[#allocation84_spill] sm:$0xff]  ;;  %v17477_v52 = vld [vmem:[#allocation73_spill] sm:$0xff] }
 0x5a3   : > { %v5102_v37 = vpop.permute.xlu0 %5101  ;;  %v5418_v18 = vsel %vm3139_vm7, %v5386_v38, %v5104_v17  ;;  %v5260_v4 = vsel %vm2974_vm2, %v5228_v60, %v14433_v56  ;;  %v5291_v1 = vsel %vm3007_vm3, %v5259_v2, %v14567_v40  ;;  %v17480_v42 = vld [vmem:[#allocation7_spill] sm:$0xff] }
 0x5a4   : > { %v5417_v23 = vsel %vm3139_vm7, %v5385_v14, %v5102_v37  ;;  %v5292_v54 = vsel %vm3007_vm3, %v5260_v4, %v14565_v6  ;;  %v5323_v48 = vsel %vm3040_vm4, %v5291_v1, %v14717_v43  ;;  %v5197_v43 = vsel %vm326_vm0, %v10015_v26, %v17470_v63  ;;  %v17475_v37 = vld [vmem:[#allocation40_spill] sm:$0xff]  ;;  %v17481_v49 = vld [vmem:[#allocation131_spill] sm:$0xff] }
 0x5a5   : > { %8584 = vmatprep.mubr.msk.f32.mxu0 %vm3172_vm8, %v5417_v23  ;;  %v5324_v58 = vsel %vm3040_vm4, %v5292_v54, %v14715_v47  ;;  %v5355_v53 = vsel %vm3073_vm5, %v5323_v48, %v14816_v15  ;;  %v10016_v15 = vld [vmem:[#allocation2 + $0x8f] sm:$0xff]  ;;  %v17485_v26 = vld [vmem:[#allocation32_spill] sm:$0xff] }
 0x5a6   : > { %v4980_v41 = vpop.permute.xlu1 %4979  ;;  %8585 = vmatmul.mubr.msk.f32.gmra.mrb[36].mxu0 %vm3172_vm8, %v5418_v18  ;;  %v5356_v7 = vsel %vm3073_vm5, %v5324_v58, %v14814_v10  ;;  %v5198_v21 = vsel %vm326_vm0, %v10016_v15, %v17471_v8  ;;  %v5229_v10 = vsel %vm2941_vm1, %v5197_v43, %v14311_v36  ;;  %v17487_v8 = vld [vmem:[#allocation62_spill] sm:$0xff] }
 0x5a7   : > { %v4978_v55 = vpop.permute.xlu0 %4977  ;;  %v5388_v40 = vsel %vm3106_vm6, %v5356_v7, %v4980_v41  ;;  %v5230_v31 = vsel %vm2941_vm1, %v5198_v21, %v14309_v19  ;;  %v5261_v39 = vsel %vm2974_vm2, %v5229_v10, %v14443_v30 }
 0x5a8   : > { %v5387_v56 = vsel %vm3106_vm6, %v5355_v53, %v4978_v55  ;;  %v5262_v27 = vsel %vm2974_vm2, %v5230_v31, %v14441_v44  ;;  %v5293_v46 = vsel %vm3007_vm3, %v5261_v39, %v14575_v20  ;;  %v17482_v55 = vld [vmem:[#allocation130_spill] sm:$0xff]  ;;  %v10019_v53 = vld [vmem:[#allocation2 + $0xc7] sm:$0xff] }
 0x5a9   : > { %v5294_v24 = vsel %vm3007_vm3, %v5262_v27, %v14573_v57  ;;  %v5325_v36 = vsel %vm3040_vm4, %v5293_v46, %v14726_v59  ;;  %v5199_v59 = vsel %vm326_vm0, %v10017_v34, %v17472_v33  ;;  %v17489_v39 = vld [vmem:[#allocation77_spill] sm:$0xff]  ;;  %v17490_v27 = vld [vmem:[#allocation74_spill] sm:$0xff] }
 0x5aa   : > { %v5108_v12 = vpop.permute.xlu1 %5107  ;;  %v5326_v16 = vsel %vm3040_vm4, %v5294_v24, %v14724_v0  ;;  %v5357_v19 = vsel %vm3073_vm5, %v5325_v36, %v14822_v35  ;;  %v10018_v35 = vld [vmem:[#allocation2 + $0xaf] sm:$0xff] }
 0x5ab   : > { %v5106_v62 = vpop.permute.xlu0 %5105  ;;  %v5420_v47 = vsel %vm3139_vm7, %v5388_v40, %v5108_v12  ;;  %v5358_v25 = vsel %vm3073_vm5, %v5326_v16, %v14820_v9  ;;  %v5200_v50 = vsel %vm326_vm0, %v10018_v35, %v17473_v5  ;;  %v5231_v9 = vsel %vm2941_vm1, %v5199_v59, %v14319_v3  ;;  %v17479_v3 = vld [vmem:[#allocation9_spill] sm:$0xff]  ;;  %v17483_v12 = vld [vmem:[#allocation90_spill] sm:$0xff]  ;;  %v17484_v40 = vld [vmem:[#allocation88_spill] sm:$0xff] }
 0x5ac   : > { %v5419_v6 = vsel %vm3139_vm7, %v5387_v56, %v5106_v62  ;;  %v5232_v14 = vsel %vm2941_vm1, %v5200_v50, %v17474_v22  ;;  %v5263_v38 = vsel %vm2974_vm2, %v5231_v9, %v17475_v37  ;;  %v5201_v7 = vsel %vm326_vm0, %v10019_v53, %v17483_v12  ;;  %v10020_v62 = vld [vmem:[#allocation2 + $0xcf] sm:$0xff]  ;;  %v17492_v16 = vld [vmem:[#allocation11_spill] sm:$0xff] }
 0x5ad   : > { %8587 = vmatprep.mubr.msk.f32.mxu0 %vm3172_vm8, %v5419_v6  ;;  %v5264_v13 = vsel %vm2974_vm2, %v5232_v14, %v17476_v11  ;;  %v5295_v18 = vsel %vm3007_vm3, %v5263_v38, %v17477_v52  ;;  %v5202_v6 = vsel %vm326_vm0, %v10020_v62, %v17484_v40  ;;  %v5233_v63 = vsel %vm2941_vm1, %v5201_v7, %v17485_v26  ;;  %v17491_v24 = vld [vmem:[#allocation13_spill] sm:$0xff]  ;;  %v17495_v35 = vld [vmem:[#allocation94_spill] sm:$0xff] }
 0x5ae   : > { %v4984_v45 = vpop.permute.xlu1 %4983  ;;  %8588 = vmatmul.mubr.msk.f32.gmra.mrb[38].mxu0 %vm3172_vm8, %v5420_v47  ;;  %v5296_v28 = vsel %vm3007_vm3, %v5264_v13, %v17478_v61  ;;  %v5327_v29 = vsel %vm3040_vm4, %v5295_v18, %v17479_v3  ;;  %v17486_v47 = vld [vmem:[#allocation30_spill] sm:$0xff]  ;;  %v5265_v21 = vsel %vm2974_vm2, %v5233_v63, %v17487_v8  ;;  %v17499_v13 = vld [vmem:[#allocation57_spill] sm:$0xff]  ;;  %v17500_v61 = vld [vmem:[#allocation43_spill] sm:$0xff] }
 0x5af   : > { %v4982_v51 = vpop.permute.xlu0 %4981  ;;  %v5390_v20 = vsel %vm3106_vm6, %v5358_v25, %v4984_v45  ;;  %v5328_v41 = vsel %vm3040_vm4, %v5296_v28, %v17480_v42  ;;  %v5359_v60 = vsel %vm3073_vm5, %v5327_v29, %v17481_v49  ;;  %v5234_v15 = vsel %vm2941_vm1, %v5202_v6, %v17486_v47  ;;  %v17488_v45 = vld [vmem:[#allocation54_spill] sm:$0xff]  ;;  %v17501_v3 = vld [vmem:[#allocation83_spill] sm:$0xff]  ;;  %v17502_v42 = vld [vmem:[#allocation81_spill] sm:$0xff] }
 0x5b0   : > { %v5389_v44 = vsel %vm3106_vm6, %v5357_v19, %v4982_v51  ;;  %v5360_v4 = vsel %vm3073_vm5, %v5328_v41, %v17482_v55  ;;  %v5266_v31 = vsel %vm2974_vm2, %v5234_v15, %v17488_v45  ;;  %v5297_v51 = vsel %vm3007_vm3, %v5265_v21, %v17489_v39  ;;  %v10022_v9 = vld [vmem:[#allocation2 + $0xef] sm:$0xff]  ;;  %v10023_v62 = vld [vmem:[#allocation2 + $0x107] sm:$0xff] }
 0x5b1   : > { %v5298_v46 = vsel %vm3007_vm3, %v5266_v31, %v17490_v27  ;;  %v5329_v36 = vsel %vm3040_vm4, %v5297_v51, %v17491_v24  ;;  %v17497_v14 = vld [vmem:[#allocation46_spill] sm:$0xff]  ;;  %v17509_v15 = vld [vmem:[#allocation48_spill] sm:$0xff]  ;;  %v17513_v24 = vld [vmem:[#allocation87_spill] sm:$0xff] }
 0x5b2   : > { %v5112_v30 = vpop.permute.xlu1 %5111  ;;  %v5330_v19 = vsel %vm3040_vm4, %v5298_v46, %v17492_v16  ;;  %v17503_v49 = vld [vmem:[#allocation18_spill] sm:$0xff]  ;;  %v17511_v31 = vld [vmem:[#allocation56_spill] sm:$0xff]  ;;  %v17514_v16 = vld [vmem:[#allocation85_spill] sm:$0xff] }
 0x5b3   : > { %v5110_v32 = vpop.permute.xlu0 %5109  ;;  %v5422_v0 = vsel %vm3139_vm7, %v5390_v20, %v5112_v30  ;;  %v17493_v30 = vld [vmem:[#allocation133_spill] sm:$0xff]  ;;  %v17507_v40 = vld [vmem:[#allocation98_spill] sm:$0xff] }
 0x5b4   : > { %v5421_v57 = vsel %vm3139_vm7, %v5389_v44, %v5110_v32  ;;  %v5361_v25 = vsel %vm3073_vm5, %v5329_v36, %v17493_v30  ;;  %v17494_v32 = vld [vmem:[#allocation132_spill] sm:$0xff]  ;;  %v5205_v6 = vsel %vm326_vm0, %v10023_v62, %v17507_v40  ;;  %v10024_v63 = vld [vmem:[#allocation2 + $0x10f] sm:$0xff]  ;;  %v17515_v30 = vld [vmem:[#allocation23_spill] sm:$0xff] }
 0x5b5   : > { %8590 = vmatprep.mubr.msk.f32.mxu0 %vm3172_vm8, %v5421_v57  ;;  %v5362_v20 = vsel %vm3073_vm5, %v5330_v19, %v17494_v32  ;;  %v5237_v8 = vsel %vm2941_vm1, %v5205_v6, %v17509_v15  ;;  %v17512_v27 = vld [vmem:[#allocation42_spill] sm:$0xff] }
 0x5b6   : > { %v4988_v17 = vpop.permute.xlu1 %4987  ;;  %8591 = vmatmul.mubr.msk.f32.gmra.mrb[40].mxu0 %vm3172_vm8, %v5422_v0  ;;  %v10021_v0 = vld [vmem:[#allocation2 + $0xe7] sm:$0xff]  ;;  %v5269_v39 = vsel %vm2974_vm2, %v5237_v8, %v17511_v31  ;;  %v10028_v8 = vld [vmem:[#allocation2 + $0x14f] sm:$0xff] }
 0x5b7   : > { %v4986_v23 = vpop.permute.xlu0 %4985  ;;  %v5392_v48 = vsel %vm3106_vm6, %v5360_v4, %v4988_v17  ;;  %v5203_v5 = vsel %vm326_vm0, %v10021_v0, %v17495_v35  ;;  %v17496_v17 = vld [vmem:[#allocation92_spill] sm:$0xff]  ;;  %v17505_v4 = vld [vmem:[#allocation135_spill] sm:$0xff]  ;;  %v5301_v36 = vsel %vm3007_vm3, %v5269_v39, %v17513_v24 }
 0x5b8   : > { %v5391_v1 = vsel %vm3106_vm6, %v5359_v60, %v4986_v23  ;;  %v5204_v22 = vsel %vm326_vm0, %v10022_v9, %v17496_v17  ;;  %v5235_v37 = vsel %vm2941_vm1, %v5203_v5, %v17497_v14  ;;  %v17498_v23 = vld [vmem:[#allocation33_spill] sm:$0xff]  ;;  %v17519_v17 = vld [vmem:[#allocation102_spill] sm:$0xff] }
 0x5b9   : > { %v5236_v11 = vsel %vm2941_vm1, %v5204_v22, %v17498_v23  ;;  %v5267_v52 = vsel %vm2974_vm2, %v5235_v37, %v17499_v13  ;;  %v10025_v9 = vld [vmem:[#allocation2 + $0x127] sm:$0xff]  ;;  %v10026_v37 = vld [vmem:[#allocation2 + $0x12f] sm:$0xff] }
 0x5ba   : > { %v5116_v2 = vpop.permute.xlu1 %5115  ;;  %v5268_v28 = vsel %vm2974_vm2, %v5236_v11, %v17500_v61  ;;  %v5299_v29 = vsel %vm3007_vm3, %v5267_v52, %v17501_v3  ;;  %v5207_v22 = vsel %vm326_vm0, %v10025_v9, %v17519_v17  ;;  %v17521_v11 = vld [vmem:[#allocation47_spill] sm:$0xff] }
 0x5bb   : > { %v5114_v54 = vpop.permute.xlu0 %5113  ;;  %v5424_v56 = vsel %vm3139_vm7, %v5392_v48, %v5116_v2  ;;  %v5300_v41 = vsel %vm3007_vm3, %v5268_v28, %v17502_v42  ;;  %v5331_v60 = vsel %vm3040_vm4, %v5299_v29, %v17503_v49  ;;  %v17504_v2 = vld [vmem:[#allocation16_spill] sm:$0xff]  ;;  %v17506_v48 = vld [vmem:[#allocation134_spill] sm:$0xff]  ;;  %v5239_v13 = vsel %vm2941_vm1, %v5207_v22, %v17521_v11  ;;  %v17523_v28 = vld [vmem:[#allocation59_spill] sm:$0xff] }
 0x5bc   : > { %v5423_v58 = vsel %vm3139_vm7, %v5391_v1, %v5114_v54  ;;  %v5332_v55 = vsel %vm3040_vm4, %v5300_v41, %v17504_v2  ;;  %v5363_v1 = vsel %vm3073_vm5, %v5331_v60, %v17505_v4  ;;  %v5271_v3 = vsel %vm2974_vm2, %v5239_v13, %v17523_v28  ;;  %v17524_v42 = vld [vmem:[#allocation45_spill] sm:$0xff]  ;;  %v17525_v49 = vld [vmem:[#allocation91_spill] sm:$0xff] }
 0x5bd   : > { %8593 = vmatprep.mubr.msk.f32.mxu0 %vm3172_vm8, %v5423_v58  ;;  %v5364_v58 = vsel %vm3073_vm5, %v5332_v55, %v17506_v48  ;;  %v5303_v60 = vsel %vm3007_vm3, %v5271_v3, %v17525_v49  ;;  %v17526_v2 = vld [vmem:[#allocation89_spill] sm:$0xff] }
 0x5be   : > { %v4992_v43 = vpop.permute.xlu1 %4991  ;;  %8594 = vmatmul.mubr.msk.f32.gmra.mrb[42].mxu0 %vm3172_vm8, %v5424_v56  ;;  %v17527_v4 = vld [vmem:[#allocation117_spill] sm:$0xff] }
 0x5bf   : > { %v4990_v10 = vpop.permute.xlu0 %4989  ;;  %v5394_v33 = vsel %vm3106_vm6, %v5362_v20, %v4992_v43  ;;  %v17508_v43 = vld [vmem:[#allocation96_spill] sm:$0xff]  ;;  %v17517_v20 = vld [vmem:[#allocation137_spill] sm:$0xff] }
 0x5c0   : > { %v5393_v57 = vsel %vm3106_vm6, %v5361_v25, %v4990_v10  ;;  %v5206_v47 = vsel %vm326_vm0, %v10024_v63, %v17508_v43  ;;  %v17510_v10 = vld [vmem:[#allocation35_spill] sm:$0xff]  ;;  %v5333_v25 = vsel %vm3040_vm4, %v5301_v36, %v17515_v30  ;;  %v10027_v63 = vld [vmem:[#allocation2 + $0x147] sm:$0xff]  ;;  %v17531_v43 = vld [vmem:[#allocation106_spill] sm:$0xff] }
 0x5c1   : > { %v5238_v45 = vsel %vm2941_vm1, %v5206_v47, %v17510_v10  ;;  %v5209_v47 = vsel %vm326_vm0, %v10027_v63, %v17531_v43  ;;  %v17537_v30 = vld [vmem:[#allocation95_spill] sm:$0xff]  ;;  %v10030_v13 = vld [vmem:[#allocation2 + $0x16f] sm:$0xff] }
 0x5c2   : > { %v5120_v44 = vpop.permute.xlu1 %5119  ;;  %v5270_v46 = vsel %vm2974_vm2, %v5238_v45, %v17512_v27  ;;  %v17533_v45 = vld [vmem:[#allocation50_spill] sm:$0xff] }
 0x5c3   : > { %v5118_v34 = vpop.permute.xlu0 %5117  ;;  %v5426_v50 = vsel %vm3139_vm7, %v5394_v33, %v5120_v44  ;;  %v5302_v19 = vsel %vm3007_vm3, %v5270_v46, %v17514_v16  ;;  %v17516_v44 = vld [vmem:[#allocation20_spill] sm:$0xff]  ;;  %v5241_v31 = vsel %vm2941_vm1, %v5209_v47, %v17533_v45  ;;  %v17536_v16 = vld [vmem:[#allocation65_spill] sm:$0xff] }
 0x5c4   : > { %v5425_v59 = vsel %vm3139_vm7, %v5393_v57, %v5118_v34  ;;  %v5334_v32 = vsel %vm3040_vm4, %v5302_v19, %v17516_v44  ;;  %v5365_v57 = vsel %vm3073_vm5, %v5333_v25, %v17517_v20  ;;  %v17518_v33 = vld [vmem:[#allocation136_spill] sm:$0xff]  ;;  %v17538_v44 = vld [vmem:[#allocation93_spill] sm:$0xff]  ;;  %v17539_v20 = vld [vmem:[#allocation119_spill] sm:$0xff] }
 0x5c5   : > { %8596 = vmatprep.mubr.msk.f32.mxu1 %vm3172_vm8, %v5425_v59  ;;  %v5366_v59 = vsel %vm3073_vm5, %v5334_v32, %v17518_v33  ;;  %v17535_v46 = vld [vmem:[#allocation44_spill] sm:$0xff] }
 0x5c6   : > { %v4996_v38 = vpop.permute.xlu1 %4995  ;;  %8597 = vmatmul.mubr.msk.f32.vlgmr.msra.gmra.mrb[0].mxu1 %vm3172_vm8, %v5426_v50  ;;  %v5273_v24 = vsel %vm2974_vm2, %v5241_v31, %v17535_v46  ;;  %v10032_v31 = vld [vmem:[#allocation2 + $0x18f] sm:$0xff] }
 0x5c7   : > { %v4994_v18 = vpop.permute.xlu0 %4993  ;;  %v5396_v7 = vsel %vm3106_vm6, %v5364_v58, %v4996_v38  ;;  %v17520_v38 = vld [vmem:[#allocation100_spill] sm:$0xff]  ;;  %v17529_v58 = vld [vmem:[#allocation139_spill] sm:$0xff]  ;;  %v5305_v25 = vsel %vm3007_vm3, %v5273_v24, %v17537_v30 }
 0x5c8   : > { %v5395_v53 = vsel %vm3106_vm6, %v5363_v1, %v4994_v18  ;;  %v5208_v23 = vsel %vm326_vm0, %v10026_v37, %v17520_v38  ;;  %v17522_v18 = vld [vmem:[#allocation34_spill] sm:$0xff]  ;;  %v5335_v1 = vsel %vm3040_vm4, %v5303_v60, %v17527_v4  ;;  %v10029_v37 = vld [vmem:[#allocation2 + $0x167] sm:$0xff]  ;;  %v17549_v4 = vld [vmem:[#allocation99_spill] sm:$0xff] }
 0x5c9   : > { %v5240_v61 = vsel %vm2941_vm1, %v5208_v23, %v17522_v18  ;;  %v17543_v38 = vld [vmem:[#allocation113_spill] sm:$0xff] }
 0x5ca   : > { %v5124_v54 = vpop.permute.xlu1 %5123  ;;  %v5272_v41 = vsel %vm2974_vm2, %v5240_v61, %v17524_v42  ;;  %v5211_v23 = vsel %vm326_vm0, %v10029_v37, %v17543_v38  ;;  %v17545_v61 = vld [vmem:[#allocation49_spill] sm:$0xff] }
 0x5cb   : > { %v5122_v12 = vpop.permute.xlu0 %5121  ;;  %v5428_v26 = vsel %vm3139_vm7, %v5396_v7, %v5124_v54  ;;  %v5304_v55 = vsel %vm3007_vm3, %v5272_v41, %v17526_v2  ;;  %v17528_v54 = vld [vmem:[#allocation27_spill] sm:$0xff]  ;;  %v17530_v7 = vld [vmem:[#allocation138_spill] sm:$0xff]  ;;  %v5243_v28 = vsel %vm2941_vm1, %v5211_v23, %v17545_v61 }
 0x5cc   : > { %v5427_v56 = vsel %vm3139_vm7, %v5395_v53, %v5122_v12  ;;  %v5336_v48 = vsel %vm3040_vm4, %v5304_v55, %v17528_v54  ;;  %v5367_v53 = vsel %vm3073_vm5, %v5335_v1, %v17529_v58  ;;  %v17547_v41 = vld [vmem:[#allocation58_spill] sm:$0xff]  ;;  %v17548_v2 = vld [vmem:[#allocation67_spill] sm:$0xff]  ;;  %v17550_v54 = vld [vmem:[#allocation97_spill] sm:$0xff] }
 0x5cd   : > { %8599 = vmatprep.mubr.msk.f32.mxu1 %vm3172_vm8, %v5427_v56  ;;  %v5368_v56 = vsel %vm3073_vm5, %v5336_v48, %v17530_v7  ;;  %v5275_v49 = vsel %vm2974_vm2, %v5243_v28, %v17547_v41  ;;  %v17551_v58 = vld [vmem:[#allocation121_spill] sm:$0xff] }
 0x5ce   : > { %v5000_v21 = vpop.permute.xlu1 %4999  ;;  %8600 = vmatmul.mubr.msk.f32.gmra.mrb[2].mxu1 %vm3172_vm8, %v5428_v26  ;;  %v5307_v1 = vsel %vm3007_vm3, %v5275_v49, %v17549_v4  ;;  %v10034_v28 = vld [vmem:[#allocation2 + $0x1af] sm:$0xff] }
 0x5cf   : > { %v4998_v51 = vpop.permute.xlu0 %4997  ;;  %v5398_v5 = vsel %vm3106_vm6, %v5366_v59, %v5000_v21  ;;  %v17532_v21 = vld [vmem:[#allocation104_spill] sm:$0xff]  ;;  %v17541_v59 = vld [vmem:[#allocation141_spill] sm:$0xff] }
 0x5d0   : > { %v5397_v0 = vsel %vm3106_vm6, %v5365_v57, %v4998_v51  ;;  %v5210_v10 = vsel %vm326_vm0, %v10028_v8, %v17532_v21  ;;  %v17534_v51 = vld [vmem:[#allocation37_spill] sm:$0xff]  ;;  %v5337_v57 = vsel %vm3040_vm4, %v5305_v25, %v17539_v20  ;;  %v17555_v21 = vld [vmem:[#allocation4_spill] sm:$0xff]  ;;  %v17561_v20 = vld [vmem:[#allocation103_spill] sm:$0xff] }
 0x5d1   : > { %v5242_v27 = vsel %vm2941_vm1, %v5210_v10, %v17534_v51  ;;  %v10031_v8 = vld [vmem:[#allocation2 + $0x187] sm:$0xff] }
 0x5d2   : > { %v5128_v34 = vpop.permute.xlu1 %5127  ;;  %v5274_v19 = vsel %vm2974_vm2, %v5242_v27, %v17536_v16  ;;  %v5213_v10 = vsel %vm326_vm0, %v10031_v8, %v17555_v21  ;;  %v17557_v27 = vld [vmem:[#allocation53_spill] sm:$0xff] }
 0x5d3   : > { %v5126_v35 = vpop.permute.xlu0 %5125  ;;  %v5430_v14 = vsel %vm3139_vm7, %v5398_v5, %v5128_v34  ;;  %v5306_v32 = vsel %vm3007_vm3, %v5274_v19, %v17538_v44  ;;  %v17540_v34 = vld [vmem:[#allocation118_spill] sm:$0xff]  ;;  %v17542_v5 = vld [vmem:[#allocation140_spill] sm:$0xff]  ;;  %v5245_v46 = vsel %vm2941_vm1, %v5213_v10, %v17557_v27 }
 0x5d4   : > { %v5429_v50 = vsel %vm3139_vm7, %v5397_v0, %v5126_v35  ;;  %v5338_v33 = vsel %vm3040_vm4, %v5306_v32, %v17540_v34  ;;  %v5369_v0 = vsel %vm3073_vm5, %v5337_v57, %v17541_v59  ;;  %v17559_v19 = vld [vmem:[#allocation112_spill] sm:$0xff]  ;;  %v17562_v34 = vld [vmem:[#allocation101_spill] sm:$0xff]  ;;  %v17563_v59 = vld [vmem:[#allocation123_spill] sm:$0xff] }
 0x5d5   : > { %8602 = vmatprep.mubr.msk.f32.mxu1 %vm3172_vm8, %v5429_v50  ;;  %v5370_v50 = vsel %vm3073_vm5, %v5338_v33, %v17542_v5  ;;  %v5277_v30 = vsel %vm2974_vm2, %v5245_v46, %v17559_v19  ;;  %v17560_v44 = vld [vmem:[#allocation64_spill] sm:$0xff]  ;;  %v17581_v19 = vld [vmem:[#allocation10_spill] sm:$0xff] }
 0x5d6   : > { %v5004_v52 = vpop.permute.xlu1 %5003  ;;  %8603 = vmatmul.mubr.msk.f32.gmra.mrb[4].mxu1 %vm3172_vm8, %v5430_v14  ;;  %v5309_v57 = vsel %vm3007_vm3, %v5277_v30, %v17561_v20  ;;  %v10035_v27 = vld [vmem:[#allocation2 + $0x1c7] sm:$0xff] }
 0x5d7   : > { %v5002_v29 = vpop.permute.xlu0 %5001  ;;  %v5400_v6 = vsel %vm3106_vm6, %v5368_v56, %v5004_v52  ;;  %v17544_v52 = vld [vmem:[#allocation110_spill] sm:$0xff]  ;;  %v17553_v56 = vld [vmem:[#allocation143_spill] sm:$0xff]  ;;  %v17580_v46 = vld [vmem:[#allocation12_spill] sm:$0xff] }
 0x5d8   : > { %v5399_v62 = vsel %vm3106_vm6, %v5367_v53, %v5002_v29  ;;  %v5212_v18 = vsel %vm326_vm0, %v10030_v13, %v17544_v52  ;;  %v17546_v29 = vld [vmem:[#allocation36_spill] sm:$0xff]  ;;  %v5339_v53 = vsel %vm3040_vm4, %v5307_v1, %v17551_v58  ;;  %v17573_v58 = vld [vmem:[#allocation107_spill] sm:$0xff] }
 0x5d9   : > { %v5244_v42 = vsel %vm2941_vm1, %v5212_v18, %v17546_v29  ;;  %v10033_v13 = vld [vmem:[#allocation2 + $0x1a7] sm:$0xff] }
 0x5da   : > { %v5132_v12 = vpop.permute.xlu1 %5131  ;;  %v5276_v55 = vsel %vm2974_vm2, %v5244_v42, %v17548_v2  ;;  %v17567_v52 = vld [vmem:[#allocation8_spill] sm:$0xff]  ;;  %v17569_v42 = vld [vmem:[#allocation38_spill] sm:$0xff] }
 0x5db   : > { %v5130_v40 = vpop.permute.xlu0 %5129  ;;  %v5432_v15 = vsel %vm3139_vm7, %v5400_v6, %v5132_v12  ;;  %v5308_v48 = vsel %vm3007_vm3, %v5276_v55, %v17550_v54  ;;  %v17552_v12 = vld [vmem:[#allocation120_spill] sm:$0xff]  ;;  %v17554_v6 = vld [vmem:[#allocation142_spill] sm:$0xff]  ;;  %v5215_v18 = vsel %vm326_vm0, %v10033_v13, %v17567_v52  ;;  %v17572_v54 = vld [vmem:[#allocation51_spill] sm:$0xff] }
 0x5dc   : > { %v5431_v26 = vsel %vm3139_vm7, %v5399_v62, %v5130_v40  ;;  %v5340_v7 = vsel %vm3040_vm4, %v5308_v48, %v17552_v12  ;;  %v5371_v62 = vsel %vm3073_vm5, %v5339_v53, %v17553_v56  ;;  %v5247_v41 = vsel %vm2941_vm1, %v5215_v18, %v17569_v42  ;;  %v17571_v55 = vld [vmem:[#allocation66_spill] sm:$0xff]  ;;  %v17583_v20 = vld [vmem:[#allocation52_spill] sm:$0xff] }
 0x5dd   : > { %8605 = vmatprep.mubr.msk.f32.mxu1 %vm3172_vm8, %v5431_v26  ;;  %v5372_v26 = vsel %vm3073_vm5, %v5340_v7, %v17554_v6  ;;  %v5279_v4 = vsel %vm2974_vm2, %v5247_v41, %v17571_v55  ;;  %v17574_v12 = vmov 0.0   ;;  %v17575_v7 = vld [vmem:[#allocation105_spill] sm:$0xff]  ;;  %v17577_v6 = vld [vmem:[#allocation124_spill] sm:$0xff]  ;;  %v17593_v55 = vld [vmem:[#allocation14_spill] sm:$0xff] }
 0x5de   : > { %v5008_v39 = vpop.permute.xlu1 %5007  ;;  %8606 = vmatmul.mubr.msk.f32.gmra.mrb[6].mxu1 %vm3172_vm8, %v5432_v15  ;;  %v5311_v53 = vsel %vm3007_vm3, %v5279_v4, %v17573_v58  ;;  %405 = vst.msk [vmem:[#allocation3 + $0x18] sm:$0x1] %vm404_vm10, %v17574_v12  ;;  %409 = vst.msk [vmem:[#allocation3 + $0x38] sm:$0x1] %vm404_vm10, %v17574_v12  ;;  %v17591_v52 = vld [vmem:[#allocation148_spill] sm:$0xff]  ;;  %v17592_v41 = vld [vmem:[#allocation17_spill] sm:$0xff] }
 0x5df   : > { %v5006_v36 = vpop.permute.xlu0 %5005  ;;  %v5402_v22 = vsel %vm3106_vm6, %v5370_v50, %v5008_v39  ;;  %v17556_v39 = vld [vmem:[#allocation108_spill] sm:$0xff]  ;;  %v17565_v50 = vld [vmem:[#allocation145_spill] sm:$0xff]  ;;  %413 = vst.msk [vmem:[#allocation3 + $0x58] sm:$0x1] %vm404_vm10, %v17574_v12  ;;  %417 = vst.msk [vmem:[#allocation3 + $0x78] sm:$0x1] %vm404_vm10, %v17574_v12 }
 0x5e0   : > { %v5401_v9 = vsel %vm3106_vm6, %v5369_v0, %v5006_v36  ;;  %v5214_v51 = vsel %vm326_vm0, %v10032_v31, %v17556_v39  ;;  %v17558_v36 = vld [vmem:[#allocation39_spill] sm:$0xff]  ;;  %v5341_v0 = vsel %vm3040_vm4, %v5309_v57, %v17563_v59  ;;  %421 = vst.msk [vmem:[#allocation3 + $0x98] sm:$0x1] %vm404_vm10, %v17574_v12  ;;  %425 = vst.msk [vmem:[#allocation3 + $0xb8] sm:$0x1] %vm404_vm10, %v17574_v12  ;;  %v10037_v42 = vld [vmem:[#allocation2 + $0x1e7] sm:$0xff] }
 0x5e1   : > { %v5246_v16 = vsel %vm2941_vm1, %v5214_v51, %v17558_v36  ;;  %429 = vst.msk [vmem:[#allocation3 + $0xd8] sm:$0x1] %vm404_vm10, %v17574_v12  ;;  %433 = vst.msk [vmem:[#allocation3 + $0xf8] sm:$0x1] %vm404_vm10, %v17574_v12  ;;  %v5879_v51 = vld [vmem:[#allocation3 + $0x8] sm:$0xff] }
 0x5e2   : > { %v5136_v35 = vpop.permute.xlu1 %5135  ;;  %v5278_v32 = vsel %vm2974_vm2, %v5246_v16, %v17560_v44  ;;  %437 = vst.msk [vmem:[#allocation3 + $0x118] sm:$0x1] %vm404_vm10, %v17574_v12  ;;  %441 = vst.msk [vmem:[#allocation3 + $0x138] sm:$0x1] %vm404_vm10, %v17574_v12  ;;  %6168 = vrot.lane.b32.xlu0 %v5879_v51, %s10070_s29  ;;  %v10036_v16 = vld [vmem:[#allocation2 + $0x1cf] sm:$0xff] }
 0x5e3   : > { %v5134_v17 = vpop.permute.xlu0 %5133  ;;  %v5434_v11 = vsel %vm3139_vm7, %v5402_v22, %v5136_v35  ;;  %v5310_v33 = vsel %vm3007_vm3, %v5278_v32, %v17562_v34  ;;  %v17564_v35 = vld [vmem:[#allocation122_spill] sm:$0xff]  ;;  %v17566_v22 = vld [vmem:[#allocation144_spill] sm:$0xff]  ;;  %445 = vst.msk [vmem:[#allocation3 + $0x158] sm:$0x1] %vm404_vm10, %v17574_v12  ;;  %449 = vst.msk [vmem:[#allocation3 + $0x178] sm:$0x1] %vm404_vm10, %v17574_v12  ;;  %v5218_v30 = vsel %vm326_vm0, %v10036_v16, %v17581_v19 }
 0x5e4   : > { %v5433_v14 = vsel %vm3139_vm7, %v5401_v9, %v5134_v17  ;;  %v5342_v5 = vsel %vm3040_vm4, %v5310_v33, %v17564_v35  ;;  %v5373_v9 = vsel %vm3073_vm5, %v5341_v0, %v17565_v50  ;;  %453 = vst.msk [vmem:[#allocation3 + $0x198] sm:$0x1] %vm404_vm10, %v17574_v12  ;;  %457 = vst.msk [vmem:[#allocation3 + $0x1b8] sm:$0x1] %vm404_vm10, %v17574_v12  ;;  %v17584_v34 = vld [vmem:[#allocation31_spill] sm:$0xff]  ;;  %v17595_v58 = vld [vmem:[#allocation41_spill] sm:$0xff] }
 0x5e5   : > { %8608 = vmatprep.mubr.msk.f32.mxu1 %vm3172_vm8, %v5433_v14  ;;  %v5374_v14 = vsel %vm3073_vm5, %v5342_v5, %v17566_v22  ;;  %461 = vst.msk [vmem:[#allocation3 + $0x1d8] sm:$0x1] %vm404_vm10, %v17574_v12  ;;  %465 = vst.msk [vmem:[#allocation3 + $0x1f8] sm:$0x1] %vm404_vm10, %v17574_v12  ;;  %v5250_v57 = vsel %vm2941_vm1, %v5218_v30, %v17583_v20  ;;  %v17585_v0 = vld [vmem:[#allocation15_spill] sm:$0xff]  ;;  %v17586_v5 = vld [vmem:[#allocation114_spill] sm:$0xff] }
 0x5e6   : > { %v5012_v3 = vpop.permute.xlu1 %5011  ;;  %8609 = vmatmul.mubr.msk.f32.gmra.mrb[8].mxu1 %vm3172_vm8, %v5434_v11  ;;  %469 = vst.msk [vmem:[#allocation3 + $0x218] sm:$0x1] %vm404_vm10, %v17574_v12  ;;  %473 = vst.msk [vmem:[#allocation3 + $0x238] sm:$0x1] %vm404_vm10, %v17574_v12  ;;  %v5282_v35 = vsel %vm2974_vm2, %v5250_v57, %v17585_v0  ;;  %v17588_v22 = vld [vmem:[#allocation127_spill] sm:$0xff]  ;;  %v17596_v12 = vld [vmem:[#allocation116_spill] sm:$0xff] }
 0x5e7   : > { %v5010_v60 = vpop.permute.xlu0 %5009  ;;  %v5404_v47 = vsel %vm3106_vm6, %v5372_v26, %v5012_v3  ;;  %v17568_v3 = vld [vmem:[#allocation6_spill] sm:$0xff]  ;;  %v15423_v19 = vld [vmem:[%s16672_s5] ss:$0 sm:$0xff] }
 0x5e8   : > { %v5403_v63 = vsel %vm3106_vm6, %v5371_v62, %v5010_v60  ;;  %v5216_v29 = vsel %vm326_vm0, %v10034_v28, %v17568_v3  ;;  %v17570_v60 = vld [vmem:[#allocation61_spill] sm:$0xff] }
 0x5e9   : > { %v5248_v2 = vsel %vm2941_vm1, %v5216_v29, %v17570_v60  ;;  %v17576_v62 = vld [vmem:[#allocation125_spill] sm:$0xff] }
 0x5ea   : > { %v5140_v40 = vpop.permute.xlu1 %5139  ;;  %v5280_v48 = vsel %vm2974_vm2, %v5248_v2, %v17572_v54  ;;  %v10038_v2 = vld [vmem:[#allocation2 + $0x1ef] sm:$0xff] }
 0x5eb   : > { %v5138_v43 = vpop.permute.xlu0 %5137  ;;  %v5436_v45 = vsel %vm3139_vm7, %v5404_v47, %v5140_v40  ;;  %v5312_v56 = vsel %vm3007_vm3, %v5280_v48, %v17575_v7  ;;  %v5343_v40 = vsel %vm3040_vm4, %v5311_v53, %v17576_v62  ;;  %v5220_v4 = vsel %vm326_vm0, %v10038_v2, %v17593_v55  ;;  %v17597_v62 = vld [vmem:[#allocation115_spill] sm:$0xff] }
 0x5ec   : > { %v5435_v15 = vsel %vm3139_vm7, %v5403_v63, %v5138_v43  ;;  %v5344_v26 = vsel %vm3040_vm4, %v5312_v56, %v17577_v6  ;;  %v17578_v63 = vld [vmem:[#allocation147_spill] sm:$0xff]  ;;  %v5252_v53 = vsel %vm2941_vm1, %v5220_v4, %v17595_v58  ;;  %v17598_v6 = vld [vmem:[#allocation5_spill] sm:$0xff] }
 0x5ed   : > { %8611 = vmatprep.mubr.msk.f32.mxu1 %vm3172_vm8, %v5435_v15  ;;  %v5375_v43 = vsel %vm3073_vm5, %v5343_v40, %v17578_v63  ;;  %v17579_v15 = vld [vmem:[#allocation146_spill] sm:$0xff]  ;;  %v5284_v40 = vsel %vm2974_vm2, %v5252_v53, %v17597_v62  ;;  %v17599_v63 = vld [vmem:[#allocation109_spill] sm:$0xff] }
 0x5ee   : > { %v5016_v24 = vpop.permute.xlu1 %5015  ;;  %8612 = vmatmul.mubr.msk.f32.gmra.mrb[10].mxu1 %vm3172_vm8, %v5436_v45  ;;  %v5376_v8 = vsel %vm3073_vm5, %v5344_v26, %v17579_v15  ;;  %v5880_v45 = vld [vmem:[#allocation3 + $0x10] sm:$0xff] }
 0x5ef   : > { %v5014_v25 = vpop.permute.xlu0 %5013  ;;  %v5406_v23 = vsel %vm3106_vm6, %v5374_v14, %v5016_v24  ;;  %6170 = vrot.lane.b32.xlu1 %v5880_v45, %s10070_s29  ;;  %v5217_v24 = vsel %vm326_vm0, %v10035_v27, %v17580_v46 }
 0x5f0   : > { %v5405_v37 = vsel %vm3106_vm6, %v5373_v9, %v5014_v25  ;;  %v17582_v25 = vld [vmem:[#allocation60_spill] sm:$0xff]  ;;  %v17587_v9 = vld [vmem:[#allocation111_spill] sm:$0xff] }
 0x5f1   : > { %v5249_v44 = vsel %vm2941_vm1, %v5217_v24, %v17582_v25 }
 0x5f2   : > { %v5144_v17 = vpop.permute.xlu1 %5143  ;;  %v5281_v33 = vsel %vm2974_vm2, %v5249_v44, %v17584_v34 }
 0x5f3   : > { %v5142_v38 = vpop.permute.xlu0 %5141  ;;  %v5438_v61 = vsel %vm3139_vm7, %v5406_v23, %v5144_v17  ;;  %v5313_v50 = vsel %vm3007_vm3, %v5281_v33, %v17586_v5  ;;  %v5314_v17 = vsel %vm3007_vm3, %v5282_v35, %v17587_v9  ;;  %v17590_v23 = vld [vmem:[#allocation149_spill] sm:$0xff] }
 0x5f4   : > { %v5437_v11 = vsel %vm3139_vm7, %v5405_v37, %v5142_v38  ;;  %v5345_v14 = vsel %vm3040_vm4, %v5313_v50, %v17588_v22  ;;  %v17589_v37 = vld [vmem:[#allocation126_spill] sm:$0xff] }
 0x5f5   : > { %8614 = vmatprep.mubr.msk.f32.mxu1 %vm3172_vm8, %v5437_v11  ;;  %v5346_v38 = vsel %vm3040_vm4, %v5314_v17, %v17589_v37  ;;  %v5377_v11 = vsel %vm3073_vm5, %v5345_v14, %v17590_v23 }
 0x5f6   : > { %v5020_v49 = vpop.permute.xlu1 %5019  ;;  %8615 = vmatmul.mubr.msk.f32.gmra.mrb[12].mxu1 %vm3172_vm8, %v5438_v61  ;;  %v5378_v18 = vsel %vm3073_vm5, %v5346_v38, %v17591_v52 }
 0x5f7   : > { %v5018_v1 = vpop.permute.xlu0 %5017  ;;  %v5408_v31 = vsel %vm3106_vm6, %v5376_v8, %v5020_v49  ;;  %v5219_v49 = vsel %vm326_vm0, %v10037_v42, %v17592_v41  ;;  %v17601_v8 = vld [vmem:[#allocation128_spill] sm:$0xff] }
 0x5f8   : > { %v5407_v21 = vsel %vm3106_vm6, %v5375_v43, %v5018_v1  ;;  %v17594_v1 = vld [vmem:[#allocation55_spill] sm:$0xff]  ;;  %v5316_v43 = vsel %vm3007_vm3, %v5284_v40, %v17599_v63 }
 0x5f9   : > { %v5251_v54 = vsel %vm2941_vm1, %v5219_v49, %v17594_v1 }
 0x5fa   : > { %v5148_v47 = vpop.permute.xlu1 %5147  ;;  %v5283_v7 = vsel %vm2974_vm2, %v5251_v54, %v17596_v12 }
 0x5fb   : > { %v5146_v10 = vpop.permute.xlu0 %5145  ;;  %v5440_v36 = vsel %vm3139_vm7, %v5408_v31, %v5148_v47  ;;  %v5315_v26 = vsel %vm3007_vm3, %v5283_v7, %v17598_v6  ;;  %v17600_v47 = vld [vmem:[#allocation129_spill] sm:$0xff] }
 0x5fc   : > { %v5439_v39 = vsel %vm3139_vm7, %v5407_v21, %v5146_v10  ;;  %v5347_v15 = vsel %vm3040_vm4, %v5315_v26, %v17600_v47  ;;  %v5348_v21 = vsel %vm3040_vm4, %v5316_v43, %v17601_v8  ;;  %v17602_v10 = vld [vmem:[#allocation151_spill] sm:$0xff]  ;;  %vm7528_vm4 = vcmask 1043456  }
 0x5fd   : > { %8617 = vmatprep.mubr.msk.f32.mxu1 %vm3172_vm8, %v5439_v39  ;;  %v5379_v45 = vsel %vm3073_vm5, %v5347_v15, %v17602_v10  ;;  %v17603_v39 = vld [vmem:[#allocation150_spill] sm:$0xff] }
 0x5fe   : > { %v5024_v32 = vpop.permute.xlu1 %5023  ;;  %8618 = vmatmul.mubr.msk.f32.gmra.mrb[14].mxu1 %vm3172_vm8, %v5440_v36  ;;  %v5380_v51 = vsel %vm3073_vm5, %v5348_v21, %v17603_v39  ;;  %vm7224_vm5 = vcmask 97280  }
 0x5ff   : > { %v5022_v59 = vpop.permute.xlu0 %5021  ;;  %v5410_v3 = vsel %vm3106_vm6, %v5378_v18, %v5024_v32 }
 0x600   : > { %v5409_v61 = vsel %vm3106_vm6, %v5377_v11, %v5022_v59 }
 0x602   : > { %v5152_v13 = vpop.permute.xlu1 %5151 }
 0x603   : > { %v5150_v28 = vpop.permute.xlu0 %5149  ;;  %v5442_v60 = vsel %vm3139_vm7, %v5410_v3, %v5152_v13 }
 0x604   : > { %v5441_v29 = vsel %vm3139_vm7, %v5409_v61, %v5150_v28 }
 0x605   : > { %8620 = vmatprep.mubr.msk.f32.mxu1 %vm3172_vm8, %v5441_v29 }
 0x606   : > { %v5028_v48 = vpop.permute.xlu1 %5027  ;;  %8621 = vmatmul.mubr.msk.f32.gmra.mrb[16].mxu1 %vm3172_vm8, %v5442_v60 }
 0x607   : > { %v5026_v56 = vpop.permute.xlu0 %5025  ;;  %v5412_v24 = vsel %vm3106_vm6, %v5380_v51, %v5028_v48 }
 0x608   : > { %v5411_v27 = vsel %vm3106_vm6, %v5379_v45, %v5026_v56  ;;  %vm7289_vm6 = vcmask 162816  }
 0x60a   : > { %v5156_v31 = vpop.permute.xlu1 %5155 }
 0x60b   : > { %v5154_v46 = vpop.permute.xlu0 %5153  ;;  %v5444_v16 = vsel %vm3139_vm7, %v5412_v24, %v5156_v31 }
 0x60c   : > { %v5443_v36 = vsel %vm3139_vm7, %v5411_v27, %v5154_v46  ;;  %vm7354_vm7 = vcmask 228352  }
 0x60d   : > { %8623 = vmatprep.mubr.msk.f32.mxu1 %vm3172_vm8, %v5443_v36 }
 0x60e   : > { %8624 = vmatmul.mubr.msk.f32.gmra.mrb[18].mxu1 %vm3172_vm8, %v5444_v16  ;;  %vm7431_vm8 = vcmask 293888  }
 0x671   : > { %v8580_v30 = vpop.f32.mrb[32].mxu0 }
 0x672   : > { %v5629_v25 = vadd.f32 %v8580_v30, %v15423_v19  ;;  %v5623_v44 = vpop.f32.mrb[33].mxu0 }
 0x673   : > { %v5624_v32 = vadd.f32 %v15423_v19, %v5623_v44 }
 0x674   : > { %v5783_v20 = vmax.f32 %v5629_v25, 0.0 }
 0x675   : > { %v5782_v57 = vmax.f32 %v5624_v32, 0.0  ;;  %v8583_v34 = vpop.f32.mrb[34].mxu0 }
 0x676   : > { %5816 = vst.msk [vmem:[#allocation3 + $0x30] sm:$0xff] %vm400_vm15, %v5783_v20  ;;  %v5639_v33 = vadd.f32 %v8583_v34, %v15423_v19  ;;  %v5633_v59 = vpop.f32.mrb[35].mxu0 }
 0x677   : > { %5815 = vst.msk [vmem:[#allocation3 + $0x28] sm:$0xff] %vm400_vm15, %v5782_v57  ;;  %v5634_v0 = vadd.f32 %v15423_v19, %v5633_v59 }
 0x678   : > { %v5785_v35 = vmax.f32 %v5639_v33, 0.0 }
 0x679   : > { %v5784_v5 = vmax.f32 %v5634_v0, 0.0  ;;  %v8586_v50 = vpop.f32.mrb[36].mxu0 }
 0x67a   : > { %5818 = vst.msk [vmem:[#allocation3 + $0x50] sm:$0xff] %vm400_vm15, %v5785_v35  ;;  %v5649_v9 = vadd.f32 %v8586_v50, %v15423_v19  ;;  %v5643_v17 = vpop.f32.mrb[37].mxu0 }
 0x67b   : > { %5817 = vst.msk [vmem:[#allocation3 + $0x48] sm:$0xff] %vm400_vm15, %v5784_v5  ;;  %v5644_v22 = vadd.f32 %v15423_v19, %v5643_v17 }
 0x67c   : > { %v5787_v14 = vmax.f32 %v5649_v9, 0.0 }
 0x67d   : > { %v5786_v37 = vmax.f32 %v5644_v22, 0.0  ;;  %v15435_v38 = vld [vmem:[#allocation3 + $0x30] sm:$0xff] }
 0x67e   : > { %5820 = vst.msk [vmem:[#allocation3 + $0x70] sm:$0xff] %vm400_vm15, %v5787_v14  ;;  %6174 = vrot.lane.b32.xlu1 %v15435_v38, %s10070_s29  ;;  %v15440_v23 = vld [vmem:[#allocation3 + $0x28] sm:$0xff] }
 0x67f   : > { %5819 = vst.msk [vmem:[#allocation3 + $0x68] sm:$0xff] %vm400_vm15, %v5786_v37  ;;  %6172 = vrot.lane.b32.xlu0 %v15440_v23, %s10070_s29 }
 0x681   : > { %v8589_v11 = vpop.f32.mrb[38].mxu0  ;;  %v15445_v13 = vld [vmem:[#allocation3 + $0x50] sm:$0xff] }
 0x682   : > { %v5659_v52 = vadd.f32 %v8589_v11, %v15423_v19  ;;  %6178 = vrot.lane.b32.xlu1 %v15445_v13, %s10070_s29  ;;  %v5653_v18 = vpop.f32.mrb[39].mxu0  ;;  %v15450_v61 = vld [vmem:[#allocation3 + $0x48] sm:$0xff] }
 0x683   : > { %v5654_v28 = vadd.f32 %v15423_v19, %v5653_v18  ;;  %6176 = vrot.lane.b32.xlu0 %v15450_v61, %s10070_s29 }
 0x684   : > { %v5789_v3 = vmax.f32 %v5659_v52, 0.0 }
 0x685   : > { %v5788_v29 = vmax.f32 %v5654_v28, 0.0  ;;  %v15455_v42 = vld [vmem:[#allocation3 + $0x70] sm:$0xff] }
 0x686   : > { %5822 = vst.msk [vmem:[#allocation3 + $0x90] sm:$0xff] %vm400_vm15, %v5789_v3  ;;  %6182 = vrot.lane.b32.xlu1 %v15455_v42, %s10070_s29  ;;  %v15460_v41 = vld [vmem:[#allocation3 + $0x68] sm:$0xff] }
 0x687   : > { %5821 = vst.msk [vmem:[#allocation3 + $0x88] sm:$0xff] %vm400_vm15, %v5788_v29  ;;  %6180 = vrot.lane.b32.xlu0 %v15460_v41, %s10070_s29 }
 0x689   : > { %v8592_v49 = vpop.f32.mrb[40].mxu0 }
 0x68a   : > { %v5669_v60 = vadd.f32 %v8592_v49, %v15423_v19  ;;  %v5663_v2 = vpop.f32.mrb[41].mxu0 }
 0x68b   : > { %v5664_v55 = vadd.f32 %v15423_v19, %v5663_v2 }
 0x68c   : > { %v5791_v4 = vmax.f32 %v5669_v60, 0.0 }
 0x68d   : > { %v5790_v1 = vmax.f32 %v5664_v55, 0.0  ;;  %v15467_v54 = vld [vmem:[#allocation3 + $0x90] sm:$0xff] }
 0x68e   : > { %5824 = vst.msk [vmem:[#allocation3 + $0xb0] sm:$0xff] %vm400_vm15, %v5791_v4  ;;  %6186 = vrot.lane.b32.xlu1 %v15467_v54, %s10070_s29  ;;  %v15472_v48 = vld [vmem:[#allocation3 + $0x88] sm:$0xff] }
 0x68f   : > { %5823 = vst.msk [vmem:[#allocation3 + $0xa8] sm:$0xff] %vm400_vm15, %v5790_v1  ;;  %6184 = vrot.lane.b32.xlu0 %v15472_v48, %s10070_s29 }
 0x691   : > { %v8595_v58 = vpop.f32.mrb[42].mxu0 }
 0x692   : > { %v5679_v53 = vadd.f32 %v8595_v58, %v15423_v19  ;;  %v5673_v12 = vpop.f32.mrb[43].mxu0 }
 0x693   : > { %v5674_v7 = vadd.f32 %v15423_v19, %v5673_v12 }
 0x694   : > { %v5793_v56 = vmax.f32 %v5679_v53, 0.0 }
 0x695   : > { %v5792_v62 = vmax.f32 %v5674_v7, 0.0  ;;  %v15479_v40 = vld [vmem:[#allocation3 + $0xb0] sm:$0xff] }
 0x696   : > { %5826 = vst.msk [vmem:[#allocation3 + $0xd0] sm:$0xff] %vm400_vm15, %v5793_v56  ;;  %6190 = vrot.lane.b32.xlu1 %v15479_v40, %s10070_s29  ;;  %v15484_v6 = vld [vmem:[#allocation3 + $0xa8] sm:$0xff] }
 0x697   : > { %5825 = vst.msk [vmem:[#allocation3 + $0xc8] sm:$0xff] %vm400_vm15, %v5792_v62  ;;  %6188 = vrot.lane.b32.xlu0 %v15484_v6, %s10070_s29 }
 0x699   : > { %v8598_v26 = vpop.f32.mrb[0].mxu1 }
 0x69a   : > { %v5689_v63 = vadd.f32 %v8598_v26, %v15423_v19  ;;  %v5683_v43 = vpop.f32.mrb[1].mxu1 }
 0x69b   : > { %v5684_v47 = vadd.f32 %v15423_v19, %v5683_v43 }
 0x69c   : > { %v5795_v15 = vmax.f32 %v5689_v63, 0.0 }
 0x69d   : > { %v5794_v8 = vmax.f32 %v5684_v47, 0.0  ;;  %v5892_v21 = vld [vmem:[#allocation3 + $0xd0] sm:$0xff] }
 0x69e   : > { %5828 = vst.msk [vmem:[#allocation3 + $0xf0] sm:$0xff] %vm400_vm15, %v5795_v15  ;;  %6194 = vrot.lane.b32.xlu1 %v5892_v21, %s10070_s29  ;;  %v5891_v10 = vld [vmem:[#allocation3 + $0xc8] sm:$0xff] }
 0x69f   : > { %5827 = vst.msk [vmem:[#allocation3 + $0xe8] sm:$0xff] %vm400_vm15, %v5794_v8  ;;  %6192 = vrot.lane.b32.xlu0 %v5891_v10, %s10070_s29 }
 0x6a1   : > { %v8601_v45 = vpop.f32.mrb[2].mxu1 }
 0x6a2   : > { %v5699_v31 = vadd.f32 %v8601_v45, %v15423_v19  ;;  %v5693_v39 = vpop.f32.mrb[3].mxu1 }
 0x6a3   : > { %v5694_v51 = vadd.f32 %v15423_v19, %v5693_v39 }
 0x6a4   : > { %v5797_v27 = vmax.f32 %v5699_v31, 0.0 }
 0x6a5   : > { %v5796_v46 = vmax.f32 %v5694_v51, 0.0  ;;  %v5894_v24 = vld [vmem:[#allocation3 + $0xf0] sm:$0xff] }
 0x6a6   : > { %5830 = vst.msk [vmem:[#allocation3 + $0x110] sm:$0xff] %vm400_vm15, %v5797_v27  ;;  %6198 = vrot.lane.b32.xlu1 %v5894_v24, %s10070_s29  ;;  %v5893_v36 = vld [vmem:[#allocation3 + $0xe8] sm:$0xff] }
 0x6a7   : > { %5829 = vst.msk [vmem:[#allocation3 + $0x108] sm:$0xff] %vm400_vm15, %v5796_v46  ;;  %6196 = vrot.lane.b32.xlu0 %v5893_v36, %s10070_s29 }
 0x6a9   : > { %v8604_v16 = vpop.f32.mrb[4].mxu1 }
 0x6aa   : > { %v5709_v30 = vadd.f32 %v8604_v16, %v15423_v19  ;;  %v5703_v25 = vpop.f32.mrb[5].mxu1 }
 0x6ab   : > { %v5704_v44 = vadd.f32 %v15423_v19, %v5703_v25 }
 0x6ac   : > { %v5799_v32 = vmax.f32 %v5709_v30, 0.0 }
 0x6ad   : > { %v5798_v20 = vmax.f32 %v5704_v44, 0.0  ;;  %v5896_v57 = vld [vmem:[#allocation3 + $0x110] sm:$0xff] }
 0x6ae   : > { %5832 = vst.msk [vmem:[#allocation3 + $0x130] sm:$0xff] %vm400_vm15, %v5799_v32  ;;  %6202 = vrot.lane.b32.xlu1 %v5896_v57, %s10070_s29  ;;  %v5895_v34 = vld [vmem:[#allocation3 + $0x108] sm:$0xff] }
 0x6af   : > { %5831 = vst.msk [vmem:[#allocation3 + $0x128] sm:$0xff] %vm400_vm15, %v5798_v20  ;;  %6200 = vrot.lane.b32.xlu0 %v5895_v34, %s10070_s29 }
 0x6b1   : > { %v8607_v33 = vpop.f32.mrb[6].mxu1 }
 0x6b2   : > { %v5719_v59 = vadd.f32 %v8607_v33, %v15423_v19  ;;  %v5713_v0 = vpop.f32.mrb[7].mxu1 }
 0x6b3   : > { %v5714_v35 = vadd.f32 %v15423_v19, %v5713_v0 }
 0x6b4   : > { %v5801_v5 = vmax.f32 %v5719_v59, 0.0 }
 0x6b5   : > { %v5800_v50 = vmax.f32 %v5714_v35, 0.0  ;;  %v5898_v9 = vld [vmem:[#allocation3 + $0x130] sm:$0xff] }
 0x6b6   : > { %5834 = vst.msk [vmem:[#allocation3 + $0x150] sm:$0xff] %vm400_vm15, %v5801_v5  ;;  %6206 = vrot.lane.b32.xlu1 %v5898_v9, %s10070_s29  ;;  %v5897_v17 = vld [vmem:[#allocation3 + $0x128] sm:$0xff]  ;;  %v5912_v35 = vld [vmem:[#allocation3 + $0x11] sm:$0xff] }
 0x6b7   : > { %5833 = vst.msk [vmem:[#allocation3 + $0x148] sm:$0xff] %vm400_vm15, %v5800_v50  ;;  %6204 = vrot.lane.b32.xlu0 %v5897_v17, %s10070_s29  ;;  %v5911_v5 = vld [vmem:[#allocation3 + $0x9] sm:$0xff]  ;;  %v15551_v50 = vld [vmem:[#allocation3 + $0x31] sm:$0xff] }
 0x6b8   : > { %v15559_v9 = vld [vmem:[#allocation3 + $0x51] sm:$0xff]  ;;  %v15563_v17 = vld [vmem:[#allocation3 + $0x49] sm:$0xff] }
 0x6b9   : > { %v8610_v22 = vpop.f32.mrb[8].mxu1 }
 0x6ba   : > { %v5729_v14 = vadd.f32 %v8610_v22, %v15423_v19  ;;  %v5723_v37 = vpop.f32.mrb[9].mxu1  ;;  %v15567_v22 = vld [vmem:[#allocation3 + $0x71] sm:$0xff] }
 0x6bb   : > { %v5724_v11 = vadd.f32 %v15423_v19, %v5723_v37  ;;  %v15575_v37 = vld [vmem:[#allocation3 + $0x91] sm:$0xff] }
 0x6bc   : > { %v5803_v52 = vmax.f32 %v5729_v14, 0.0  ;;  %v15571_v14 = vld [vmem:[#allocation3 + $0x69] sm:$0xff] }
 0x6bd   : > { %v5802_v18 = vmax.f32 %v5724_v11, 0.0  ;;  %v5900_v28 = vld [vmem:[#allocation3 + $0x150] sm:$0xff] }
 0x6be   : > { %5836 = vst.msk [vmem:[#allocation3 + $0x170] sm:$0xff] %vm400_vm15, %v5803_v52  ;;  %6210 = vrot.lane.b32.xlu1 %v5900_v28, %s10070_s29  ;;  %v5899_v3 = vld [vmem:[#allocation3 + $0x148] sm:$0xff]  ;;  %v15583_v52 = vld [vmem:[#allocation3 + $0xb1] sm:$0xff] }
 0x6bf   : > { %5835 = vst.msk [vmem:[#allocation3 + $0x168] sm:$0xff] %vm400_vm15, %v5802_v18  ;;  %6208 = vrot.lane.b32.xlu0 %v5899_v3, %s10070_s29  ;;  %v15579_v11 = vld [vmem:[#allocation3 + $0x89] sm:$0xff]  ;;  %v15591_v28 = vld [vmem:[#allocation3 + $0xd1] sm:$0xff] }
 0x6c0   : > { %v15587_v18 = vld [vmem:[#allocation3 + $0xa9] sm:$0xff] }
 0x6c1   : > { %v8613_v29 = vpop.f32.mrb[10].mxu1  ;;  %v15595_v3 = vld [vmem:[#allocation3 + $0xc9] sm:$0xff] }
 0x6c2   : > { %v5739_v49 = vadd.f32 %v8613_v29, %v15423_v19  ;;  %v5733_v60 = vpop.f32.mrb[11].mxu1  ;;  %v15599_v29 = vld [vmem:[#allocation3 + $0xf1] sm:$0xff] }
 0x6c3   : > { %v5734_v2 = vadd.f32 %v15423_v19, %v5733_v60  ;;  %v15607_v60 = vld [vmem:[#allocation3 + $0x111] sm:$0xff] }
 0x6c4   : > { %v5805_v55 = vmax.f32 %v5739_v49, 0.0  ;;  %v15603_v49 = vld [vmem:[#allocation3 + $0xe9] sm:$0xff] }
 0x6c5   : > { %v5804_v4 = vmax.f32 %v5734_v2, 0.0  ;;  %v5902_v1 = vld [vmem:[#allocation3 + $0x170] sm:$0xff] }
 0x6c6   : > { %5838 = vst.msk [vmem:[#allocation3 + $0x190] sm:$0xff] %vm400_vm15, %v5805_v55  ;;  %6214 = vrot.lane.b32.xlu1 %v5902_v1, %s10070_s29  ;;  %v5901_v58 = vld [vmem:[#allocation3 + $0x168] sm:$0xff]  ;;  %v15615_v55 = vld [vmem:[#allocation3 + $0x131] sm:$0xff] }
 0x6c7   : > { %5837 = vst.msk [vmem:[#allocation3 + $0x188] sm:$0xff] %vm400_vm15, %v5804_v4  ;;  %6212 = vrot.lane.b32.xlu0 %v5901_v58, %s10070_s29  ;;  %v15611_v2 = vld [vmem:[#allocation3 + $0x109] sm:$0xff]  ;;  %v5932_v1 = vld [vmem:[#allocation3 + $0x151] sm:$0xff] }
 0x6c8   : > { %v15619_v4 = vld [vmem:[#allocation3 + $0x129] sm:$0xff] }
 0x6c9   : > { %v8616_v53 = vpop.f32.mrb[12].mxu1  ;;  %v15624_v58 = vld [vmem:[#allocation3 + $0x149] sm:$0xff] }
 0x6ca   : > { %v5749_v12 = vadd.f32 %v8616_v53, %v15423_v19  ;;  %v5743_v7 = vpop.f32.mrb[13].mxu1  ;;  %v5934_v53 = vld [vmem:[#allocation3 + $0x171] sm:$0xff] }
 0x6cb   : > { %v5744_v56 = vadd.f32 %v15423_v19, %v5743_v7  ;;  %v5933_v7 = vld [vmem:[#allocation3 + $0x169] sm:$0xff] }
 0x6cc   : > { %v5807_v62 = vmax.f32 %v5749_v12, 0.0  ;;  %v15628_v12 = vpop.permute.xlu1 %6170 }
 0x6cd   : > { %v5806_v26 = vmax.f32 %v5744_v56, 0.0  ;;  %v5904_v63 = vld [vmem:[#allocation3 + $0x190] sm:$0xff]  ;;  %v15631_v56 = vpop.permute.xlu0 %6168 }
 0x6ce   : > { %5840 = vst.msk [vmem:[#allocation3 + $0x1b0] sm:$0xff] %vm400_vm15, %v5807_v62  ;;  %6218 = vrot.lane.b32.xlu1 %v5904_v63, %s10070_s29  ;;  %v5903_v43 = vld [vmem:[#allocation3 + $0x188] sm:$0xff]  ;;  %v5936_v62 = vld [vmem:[#allocation3 + $0x191] sm:$0xff] }
 0x6cf   : > { %5839 = vst.msk [vmem:[#allocation3 + $0x1a8] sm:$0xff] %vm400_vm15, %v5806_v26  ;;  %6216 = vrot.lane.b32.xlu0 %v5903_v43, %s10070_s29  ;;  %v5935_v26 = vld [vmem:[#allocation3 + $0x189] sm:$0xff] }
 0x6d1   : > { %v8619_v47 = vpop.f32.mrb[14].mxu1 }
 0x6d2   : > { %v5759_v15 = vadd.f32 %v8619_v47, %v15423_v19  ;;  %v5753_v8 = vpop.f32.mrb[15].mxu1 }
 0x6d3   : > { %v5754_v21 = vadd.f32 %v15423_v19, %v5753_v8 }
 0x6d4   : > { %v5809_v10 = vmax.f32 %v5759_v15, 0.0 }
 0x6d5   : > { %v5808_v45 = vmax.f32 %v5754_v21, 0.0  ;;  %v5906_v31 = vld [vmem:[#allocation3 + $0x1b0] sm:$0xff] }
 0x6d6   : > { %5842 = vst.msk [vmem:[#allocation3 + $0x1d0] sm:$0xff] %vm400_vm15, %v5809_v10  ;;  %6222 = vrot.lane.b32.xlu1 %v5906_v31, %s10070_s29  ;;  %v5905_v39 = vld [vmem:[#allocation3 + $0x1a8] sm:$0xff]  ;;  %v5938_v47 = vld [vmem:[#allocation3 + $0x1b1] sm:$0xff] }
 0x6d7   : > { %5841 = vst.msk [vmem:[#allocation3 + $0x1c8] sm:$0xff] %vm400_vm15, %v5808_v45  ;;  %6220 = vrot.lane.b32.xlu0 %v5905_v39, %s10070_s29  ;;  %v5937_v15 = vld [vmem:[#allocation3 + $0x1a9] sm:$0xff] }
 0x6d9   : > { %v8622_v51 = vpop.f32.mrb[16].mxu1 }
 0x6da   : > { %v5769_v27 = vadd.f32 %v8622_v51, %v15423_v19  ;;  %v5763_v46 = vpop.f32.mrb[17].mxu1 }
 0x6db   : > { %v5764_v24 = vadd.f32 %v15423_v19, %v5763_v46 }
 0x6dc   : > { %v5811_v36 = vmax.f32 %v5769_v27, 0.0  ;;  %v15652_v27 = vld [vmem:[#allocation3 + $0x2f] sm:$0xff] }
 0x6dd   : > { %v5810_v16 = vmax.f32 %v5764_v24, 0.0  ;;  %v5908_v30 = vld [vmem:[#allocation3 + $0x1d0] sm:$0xff]  ;;  %v15656_v24 = vld [vmem:[#allocation3 + $0x27] sm:$0xff] }
 0x6de   : > { %5844 = vst.msk [vmem:[#allocation3 + $0x1f0] sm:$0xff] %vm400_vm15, %v5811_v36  ;;  %6226 = vrot.lane.b32.xlu1 %v5908_v30, %s10070_s29  ;;  %v5907_v25 = vld [vmem:[#allocation3 + $0x1c8] sm:$0xff]  ;;  %v5940_v8 = vld [vmem:[#allocation3 + $0x1d1] sm:$0xff] }
 0x6df   : > { %5843 = vst.msk [vmem:[#allocation3 + $0x1e8] sm:$0xff] %vm400_vm15, %v5810_v16  ;;  %6224 = vrot.lane.b32.xlu0 %v5907_v25, %s10070_s29  ;;  %v5939_v10 = vld [vmem:[#allocation3 + $0x1c9] sm:$0xff] }
 0x6e0   : > { %v15664_v16 = vld [vmem:[#allocation3 + $0x4f] sm:$0xff]  ;;  %v15668_v25 = vld [vmem:[#allocation3 + $0x47] sm:$0xff] }
 0x6e1   : > { %v8625_v44 = vpop.f32.mrb[18].mxu1 }
 0x6e2   : > { %v5779_v32 = vadd.f32 %v8625_v44, %v15423_v19  ;;  %v5773_v20 = vpop.f32.mrb[19].mxu1 }
 0x6e3   : > { %v5774_v57 = vadd.f32 %v15423_v19, %v5773_v20  ;;  %v15555_v19 = vld [vmem:[#allocation3 + $0x29] sm:$0xff] }
 0x6e4   : > { %v5813_v34 = vmax.f32 %v5779_v32, 0.0  ;;  %v15676_v32 = vld [vmem:[#allocation3 + $0x6f] sm:$0xff] }
 0x6e5   : > { %v5812_v33 = vmax.f32 %v5774_v57, 0.0  ;;  %v5910_v59 = vld [vmem:[#allocation3 + $0x1f0] sm:$0xff]  ;;  %v15680_v57 = vld [vmem:[#allocation3 + $0x67] sm:$0xff] }
 0x6e6   : > { %5846 = vst.msk [vmem:[#allocation3 + $0x210] sm:$0xff] %vm400_vm15, %v5813_v34  ;;  %6230 = vrot.lane.b32.xlu1 %v5910_v59, %s10070_s29  ;;  %v5909_v0 = vld [vmem:[#allocation3 + $0x1e8] sm:$0xff]  ;;  %v5942_v31 = vld [vmem:[#allocation3 + $0x1f1] sm:$0xff] }
 0x6e7   : > { %5845 = vst.msk [vmem:[#allocation3 + $0x208] sm:$0xff] %vm400_vm15, %v5812_v33  ;;  %6228 = vrot.lane.b32.xlu0 %v5909_v0, %s10070_s29  ;;  %v5941_v39 = vld [vmem:[#allocation3 + $0x1e9] sm:$0xff] }
 0x6e8   : > { %v15688_v33 = vld [vmem:[#allocation3 + $0x8f] sm:$0xff]  ;;  %v15692_v0 = vld [vmem:[#allocation3 + $0x87] sm:$0xff] }
 0x6ea   : > { %6298 = vrot.lane.b32.xlu1 %v5912_v35, %s10054_s11 }
 0x6eb   : > { %6296 = vrot.lane.b32.xlu0 %v5911_v5, %s10054_s11  ;;  %v15700_v5 = vld [vmem:[#allocation3 + $0xaf] sm:$0xff] }
 0x6ee   : > { %6302 = vrot.lane.b32.xlu1 %v15551_v50, %s10054_s11 }
 0x6ef   : > { %6300 = vrot.lane.b32.xlu0 %v15555_v19, %s10054_s11 }
 0x6f0   : > { %v15636_v63 = vpop.permute.xlu1 %6174 }
 0x6f1   : > { %v15638_v43 = vpop.permute.xlu0 %6172 }
 0x6f2   : > { %6306 = vrot.lane.b32.xlu1 %v15559_v9, %s10054_s11 }
 0x6f3   : > { %6304 = vrot.lane.b32.xlu0 %v15563_v17, %s10054_s11 }
 0x6f4   : > { %v15642_v21 = vpop.permute.xlu1 %6178 }
 0x6f5   : > { %v15645_v45 = vpop.permute.xlu0 %6176 }
 0x6f6   : > { %6310 = vrot.lane.b32.xlu1 %v15567_v22, %s10054_s11 }
 0x6f7   : > { %6308 = vrot.lane.b32.xlu0 %v15571_v14, %s10054_s11 }
 0x6f8   : > { %v15650_v51 = vpop.permute.xlu1 %6182 }
 0x6f9   : > { %17604 = vst [vmem:[#allocation69_spill] sm:$0xff] %v15650_v51  ;;  %v15654_v46 = vpop.permute.xlu0 %6180 }
 0x6fa   : > { %6314 = vrot.lane.b32.xlu1 %v15575_v37, %s10054_s11 }
 0x6fb   : > { %6312 = vrot.lane.b32.xlu0 %v15579_v11, %s10054_s11 }
 0x6fe   : > { %6318 = vrot.lane.b32.xlu1 %v15583_v52, %s10054_s11 }
 0x6ff   : > { %6316 = vrot.lane.b32.xlu0 %v15587_v18, %s10054_s11 }
 0x700   : > { %v15662_v36 = vpop.permute.xlu1 %6186 }
 0x701   : > { %17605 = vst [vmem:[#allocation68_spill] sm:$0xff] %v15662_v36  ;;  %v15666_v30 = vpop.permute.xlu0 %6184  ;;  %v15776_v36 = vld [vmem:[#allocation3 + $0x167] sm:$0xff] }
 0x702   : > { %6322 = vrot.lane.b32.xlu1 %v15591_v28, %s10054_s11  ;;  %17606 = vst [vmem:[#allocation21_spill] sm:$0xff] %v15666_v30  ;;  %v7420_v30 = vld [vmem:[%s16673_s6 + $0x8] sm:$0xff] }
 0x703   : > { %6320 = vrot.lane.b32.xlu0 %v15595_v3, %s10054_s11 }
 0x706   : > { %6326 = vrot.lane.b32.xlu1 %v15599_v29, %s10054_s11 }
 0x707   : > { %6324 = vrot.lane.b32.xlu0 %v15603_v49, %s10054_s11 }
 0x708   : > { %v15674_v44 = vpop.permute.xlu1 %6190 }
 0x709   : > { %17607 = vst [vmem:[#allocation19_spill] sm:$0xff] %v15674_v44  ;;  %v15678_v20 = vpop.permute.xlu0 %6188  ;;  %v15764_v44 = vld [vmem:[#allocation3 + $0x147] sm:$0xff] }
 0x70a   : > { %6330 = vrot.lane.b32.xlu1 %v15607_v60, %s10054_s11  ;;  %17608 = vst [vmem:[#allocation72_spill] sm:$0xff] %v15678_v20 }
 0x70b   : > { %6328 = vrot.lane.b32.xlu0 %v15611_v2, %s10054_s11 }
 0x70e   : > { %6334 = vrot.lane.b32.xlu1 %v15615_v55, %s10054_s11 }
 0x70f   : > { %6332 = vrot.lane.b32.xlu0 %v15619_v4, %s10054_s11 }
 0x710   : > { %v15686_v34 = vpop.permute.xlu1 %6194 }
 0x711   : > { %17609 = vst [vmem:[#allocation71_spill] sm:$0xff] %v15686_v34  ;;  %v15690_v59 = vpop.permute.xlu0 %6192  ;;  %v15752_v34 = vld [vmem:[#allocation3 + $0x127] sm:$0xff] }
 0x712   : > { %6338 = vrot.lane.b32.xlu1 %v5932_v1, %s10054_s11  ;;  %17610 = vst [vmem:[#allocation24_spill] sm:$0xff] %v15690_v59 }
 0x713   : > { %6336 = vrot.lane.b32.xlu0 %v15624_v58, %s10054_s11 }
 0x716   : > { %6342 = vrot.lane.b32.xlu1 %v5934_v53, %s10054_s11  ;;  %v15704_v53 = vld [vmem:[#allocation3 + $0xa7] sm:$0xff] }
 0x717   : > { %6340 = vrot.lane.b32.xlu0 %v5933_v7, %s10054_s11 }
 0x718   : > { %v15698_v35 = vpop.permute.xlu1 %6198 }
 0x719   : > { %17611 = vst [vmem:[#allocation22_spill] sm:$0xff] %v15698_v35  ;;  %v15702_v1 = vpop.permute.xlu0 %6196  ;;  %v15740_v35 = vld [vmem:[#allocation3 + $0x107] sm:$0xff] }
 0x71a   : > { %6346 = vrot.lane.b32.xlu1 %v5936_v62, %s10054_s11  ;;  %17612 = vst [vmem:[#allocation76_spill] sm:$0xff] %v15702_v1  ;;  %v15712_v62 = vld [vmem:[#allocation3 + $0xcf] sm:$0xff] }
 0x71b   : > { %6344 = vrot.lane.b32.xlu0 %v5935_v26, %s10054_s11  ;;  %17614 = vst [vmem:[#allocation26_spill] sm:$0xff] %v15712_v62 }
 0x71e   : > { %6350 = vrot.lane.b32.xlu1 %v5938_v47, %s10054_s11  ;;  %v15716_v47 = vld [vmem:[#allocation3 + $0xc7] sm:$0xff] }
 0x71f   : > { %6348 = vrot.lane.b32.xlu0 %v5937_v15, %s10054_s11  ;;  %17616 = vst [vmem:[#allocation79_spill] sm:$0xff] %v15716_v47 }
 0x720   : > { %v15710_v7 = vpop.permute.xlu1 %6202 }
 0x721   : > { %17613 = vst [vmem:[#allocation75_spill] sm:$0xff] %v15710_v7  ;;  %v15714_v26 = vpop.permute.xlu0 %6200  ;;  %v15736_v7 = vld [vmem:[#allocation3 + $0x10f] sm:$0xff] }
 0x722   : > { %6354 = vrot.lane.b32.xlu1 %v5940_v8, %s10054_s11  ;;  %17615 = vst [vmem:[#allocation25_spill] sm:$0xff] %v15714_v26  ;;  %v15724_v8 = vld [vmem:[#allocation3 + $0xef] sm:$0xff] }
 0x723   : > { %6352 = vrot.lane.b32.xlu0 %v5939_v10, %s10054_s11  ;;  %17618 = vst [vmem:[#allocation28_spill] sm:$0xff] %v15724_v8 }
 0x726   : > { %6358 = vrot.lane.b32.xlu1 %v5942_v31, %s10054_s11  ;;  %v15728_v31 = vld [vmem:[#allocation3 + $0xe7] sm:$0xff] }
 0x727   : > { %6356 = vrot.lane.b32.xlu0 %v5941_v39, %s10054_s11  ;;  %17620 = vst [vmem:[#allocation80_spill] sm:$0xff] %v15728_v31 }
 0x728   : > { %v15722_v15 = vpop.permute.xlu1 %6206 }
 0x729   : > { %17617 = vst [vmem:[#allocation78_spill] sm:$0xff] %v15722_v15  ;;  %v15726_v10 = vpop.permute.xlu0 %6204 }
 0x72a   : > { %6426 = vrot.lane.b32.xlu1 %v15652_v27, %s10071_s18  ;;  %17619 = vst [vmem:[#allocation82_spill] sm:$0xff] %v15726_v10  ;;  %v15748_v10 = vld [vmem:[#allocation3 + $0x12f] sm:$0xff] }
 0x72b   : > { %6424 = vrot.lane.b32.xlu0 %v15656_v24, %s10071_s18 }
 0x72e   : > { %6430 = vrot.lane.b32.xlu1 %v15664_v16, %s10071_s18 }
 0x72f   : > { %6428 = vrot.lane.b32.xlu0 %v15668_v25, %s10071_s18 }
 0x730   : > { %v15734_v39 = vpop.permute.xlu1 %6210 }
 0x731   : > { %17621 = vst [vmem:[#allocation86_spill] sm:$0xff] %v15734_v39  ;;  %v15738_v26 = vpop.permute.xlu0 %6208 }
 0x732   : > { %6434 = vrot.lane.b32.xlu1 %v15676_v32, %s10071_s18  ;;  %17622 = vst [vmem:[#allocation84_spill] sm:$0xff] %v15738_v26  ;;  %v15760_v26 = vld [vmem:[#allocation3 + $0x14f] sm:$0xff] }
 0x733   : > { %6432 = vrot.lane.b32.xlu0 %v15680_v57, %s10071_s18 }
 0x736   : > { %6438 = vrot.lane.b32.xlu1 %v15688_v33, %s10071_s18 }
 0x737   : > { %6436 = vrot.lane.b32.xlu0 %v15692_v0, %s10071_s18 }
 0x738   : > { %v15746_v15 = vpop.permute.xlu1 %6214 }
 0x739   : > { %17623 = vst [vmem:[#allocation29_spill] sm:$0xff] %v15746_v15  ;;  %v15750_v1 = vpop.permute.xlu0 %6212 }
 0x73a   : > { %6442 = vrot.lane.b32.xlu1 %v15700_v5, %s10071_s18  ;;  %17624 = vst [vmem:[#allocation40_spill] sm:$0xff] %v15750_v1  ;;  %v15772_v1 = vld [vmem:[#allocation3 + $0x16f] sm:$0xff] }
 0x73b   : > { %6440 = vrot.lane.b32.xlu0 %v15704_v53, %s10071_s18 }
 0x73e   : > { %6446 = vrot.lane.b32.xlu1 %v15712_v62, %s10071_s18 }
 0x73f   : > { %6444 = vrot.lane.b32.xlu0 %v15716_v47, %s10071_s18 }
 0x740   : > { %v15758_v39 = vpop.permute.xlu1 %6218 }
 0x741   : > { %17625 = vst [vmem:[#allocation63_spill] sm:$0xff] %v15758_v39  ;;  %v15762_v59 = vpop.permute.xlu0 %6216 }
 0x742   : > { %6450 = vrot.lane.b32.xlu1 %v15724_v8, %s10071_s18  ;;  %17626 = vst [vmem:[#allocation73_spill] sm:$0xff] %v15762_v59 }
 0x743   : > { %6448 = vrot.lane.b32.xlu0 %v15728_v31, %s10071_s18 }
 0x746   : > { %6454 = vrot.lane.b32.xlu1 %v15736_v7, %s10071_s18 }
 0x747   : > { %6452 = vrot.lane.b32.xlu0 %v15740_v35, %s10071_s18 }
 0x748   : > { %v15770_v15 = vpop.permute.xlu1 %6222 }
 0x749   : > { %17627 = vst [vmem:[#allocation70_spill] sm:$0xff] %v15770_v15  ;;  %v15774_v20 = vpop.permute.xlu0 %6220 }
 0x74a   : > { %6458 = vrot.lane.b32.xlu1 %v15748_v10, %s10071_s18  ;;  %17628 = vst [vmem:[#allocation9_spill] sm:$0xff] %v15774_v20  ;;  %v7419_v20 = vld [vmem:[%s16673_s6] sm:$0xff] }
 0x74b   : > { %6456 = vrot.lane.b32.xlu0 %v15752_v34, %s10071_s18 }
 0x74e   : > { %6462 = vrot.lane.b32.xlu1 %v15760_v26, %s10071_s18 }
 0x74f   : > { %6460 = vrot.lane.b32.xlu0 %v15764_v44, %s10071_s18 }
 0x750   : > { %v15782_v39 = vpop.permute.xlu1 %6226 }
 0x751   : > { %17629 = vst [vmem:[#allocation7_spill] sm:$0xff] %v15782_v39  ;;  %v15784_v59 = vpop.permute.xlu0 %6224  ;;  %v8732_v39 = vpack.c.bf16 %v7420_v30, %v7419_v20 }
 0x752   : > { %6466 = vrot.lane.b32.xlu1 %v15772_v1, %s10071_s18  ;;  %17630 = vst [vmem:[#allocation131_spill] sm:$0xff] %v15784_v59 }
 0x753   : > { %6464 = vrot.lane.b32.xlu0 %v15776_v36, %s10071_s18  ;;  %8733 = vmatprep.subr.bf16.mxu1 %v8732_v39 }
 0x754   : > { %8735 = vmatpush3.bf16.msra.mxu1 %v8732_v39  ;;  %v7423_v39 = vld [vmem:[%s16673_s6 + $0x20] sm:$0xf] }
 0x756   : > { %6554 = vrot.lane.b32.xlu1 %v15435_v38, %s10055_s12 }
 0x757   : > { %6552 = vrot.lane.b32.xlu0 %v15440_v23, %s10055_s12  ;;  %v7421_v23 = vld [vmem:[%s16673_s6 + $0x10] sm:$0xff] }
 0x758   : > { %v15790_v15 = vpop.permute.xlu1 %6230 }
 0x759   : > { %17631 = vst [vmem:[#allocation130_spill] sm:$0xff] %v15790_v15  ;;  %v15798_v51 = vpop.permute.xlu0 %6228  ;;  %v7422_v15 = vld [vmem:[%s16673_s6 + $0x18] sm:$0xff] }
 0x75a   : > { %17632 = vst [vmem:[#allocation90_spill] sm:$0xff] %v15798_v51  ;;  %6682 = vrot.lane.b32.xlu1 %v15551_v50, %s10072_s19  ;;  %v8736_v20 = vpack.c.bf16 %v7422_v15, %v7421_v23 }
 0x75b   : > { %6680 = vrot.lane.b32.xlu0 %v15555_v19, %s10072_s19 }
 0x75c   : > { %v15804_v38 = vpop.permute.xlu1 %6298  ;;  %8737 = vmatprep.subr.bf16.mxu1 %v8736_v20 }
 0x75d   : > { %v15812_v30 = vpop.permute.xlu0 %6296  ;;  %8739 = vmatpush3.bf16.msra.mxu1 %v8736_v20 }
 0x75e   : > { %6810 = vrot.lane.b32.xlu1 %v15664_v16, %s10056_s13  ;;  %8634 = vmatprep.subr.msk.mxu1 %vm7528_vm4, %v7423_v39 }
 0x75f   : > { %6808 = vrot.lane.b32.xlu0 %v15668_v25, %s10056_s13 }
 0x760   : > { %v15818_v50 = vpop.permute.xlu1 %6302 }
 0x761   : > { %v15820_v19 = vpop.permute.xlu0 %6300  ;;  %8635 = vmatpush3.msk.msra.mxu1 %vm7528_vm4, %v7423_v39 }
 0x762   : > { %6556 = vrot.lane.b32.xlu1 %v15450_v61, %s10055_s12 }
 0x763   : > { %6936 = vrot.lane.b32.xlu0 %v15450_v61, %s10073_s23 }
 0x764   : > { %v15829_v15 = vpop.permute.xlu1 %6306 }
 0x765   : > { %v15831_v23 = vpop.permute.xlu0 %6304 }
 0x766   : > { %7064 = vrot.lane.b32.xlu1 %v15563_v17, %s10057_s14 }
 0x767   : > { %6938 = vrot.lane.b32.xlu0 %v15445_v13, %s10073_s23 }
 0x768   : > { %v15837_v20 = vpop.permute.xlu1 %6310 }
 0x769   : > { %17633 = vst [vmem:[#allocation88_spill] sm:$0xff] %v15837_v20  ;;  %v15839_v51 = vpop.permute.xlu0 %6308 }
 0x76a   : > { %6684 = vrot.lane.b32.xlu1 %v15563_v17, %s10072_s19 }
 0x76b   : > { %6558 = vrot.lane.b32.xlu0 %v15445_v13, %s10055_s12 }
 0x76c   : > { %v15845_v61 = vpop.permute.xlu1 %6314 }
 0x76d   : > { %v15847_v39 = vpop.permute.xlu0 %6312 }
 0x76e   : > { %6686 = vrot.lane.b32.xlu1 %v15559_v9, %s10072_s19 }
 0x76f   : > { %7066 = vrot.lane.b32.xlu0 %v15559_v9, %s10057_s14 }
 0x770   : > { %v15853_v59 = vpop.permute.xlu1 %6318 }
 0x771   : > { %17634 = vst [vmem:[#allocation32_spill] sm:$0xff] %v15853_v59  ;;  %v15855_v20 = vpop.permute.xlu0 %6316 }
 0x772   : > { %17635 = vst [vmem:[#allocation30_spill] sm:$0xff] %v15855_v20  ;;  %6814 = vrot.lane.b32.xlu1 %v15676_v32, %s10056_s13 }
 0x773   : > { %6812 = vrot.lane.b32.xlu0 %v15680_v57, %s10056_s13 }
 0x774   : > { %v15861_v13 = vpop.permute.xlu1 %6322 }
 0x775   : > { %17636 = vst [vmem:[#allocation62_spill] sm:$0xff] %v15861_v13  ;;  %v15863_v17 = vpop.permute.xlu0 %6320 }
 0x776   : > { %17637 = vst [vmem:[#allocation54_spill] sm:$0xff] %v15863_v17  ;;  %6560 = vrot.lane.b32.xlu1 %v15460_v41, %s10055_s12 }
 0x777   : > { %6940 = vrot.lane.b32.xlu0 %v15460_v41, %s10073_s23 }
 0x778   : > { %v15869_v9 = vpop.permute.xlu1 %6326 }
 0x779   : > { %17638 = vst [vmem:[#allocation77_spill] sm:$0xff] %v15869_v9  ;;  %v15871_v59 = vpop.permute.xlu0 %6324 }
 0x77a   : > { %17639 = vst [vmem:[#allocation74_spill] sm:$0xff] %v15871_v59  ;;  %7068 = vrot.lane.b32.xlu1 %v15571_v14, %s10057_s14 }
 0x77b   : > { %6942 = vrot.lane.b32.xlu0 %v15455_v42, %s10073_s23 }
 0x77c   : > { %v15877_v20 = vpop.permute.xlu1 %6330 }
 0x77d   : > { %17640 = vst [vmem:[#allocation13_spill] sm:$0xff] %v15877_v20  ;;  %v15879_v13 = vpop.permute.xlu0 %6328 }
 0x77e   : > { %17641 = vst [vmem:[#allocation11_spill] sm:$0xff] %v15879_v13  ;;  %6688 = vrot.lane.b32.xlu1 %v15571_v14, %s10072_s19  ;;  %v6081_v13 = vld [vmem:[#allocation3 + $0xd0] sm:$0xff] }
 0x77f   : > { %6562 = vrot.lane.b32.xlu0 %v15455_v42, %s10055_s12 }
 0x780   : > { %v15885_v41 = vpop.permute.xlu1 %6334 }
 0x781   : > { %17642 = vst [vmem:[#allocation133_spill] sm:$0xff] %v15885_v41  ;;  %v15887_v9 = vpop.permute.xlu0 %6332  ;;  %v5985_v41 = vld [vmem:[#allocation3 + $0xc8] sm:$0xff] }
 0x782   : > { %17643 = vst [vmem:[#allocation132_spill] sm:$0xff] %v15887_v9  ;;  %6690 = vrot.lane.b32.xlu1 %v15567_v22, %s10072_s19 }
 0x783   : > { %7070 = vrot.lane.b32.xlu0 %v15567_v22, %s10057_s14 }
 0x784   : > { %v15893_v59 = vpop.permute.xlu1 %6338 }
 0x785   : > { %17644 = vst [vmem:[#allocation94_spill] sm:$0xff] %v15893_v59  ;;  %v15895_v20 = vpop.permute.xlu0 %6336 }
 0x786   : > { %17645 = vst [vmem:[#allocation92_spill] sm:$0xff] %v15895_v20  ;;  %6818 = vrot.lane.b32.xlu1 %v15688_v33, %s10056_s13 }
 0x787   : > { %6816 = vrot.lane.b32.xlu0 %v15692_v0, %s10056_s13 }
 0x788   : > { %v15901_v42 = vpop.permute.xlu1 %6342 }
 0x789   : > { %17646 = vst [vmem:[#allocation46_spill] sm:$0xff] %v15901_v42  ;;  %v15903_v14 = vpop.permute.xlu0 %6340 }
 0x78a   : > { %17647 = vst [vmem:[#allocation33_spill] sm:$0xff] %v15903_v14  ;;  %6564 = vrot.lane.b32.xlu1 %v15472_v48, %s10055_s12 }
 0x78b   : > { %6944 = vrot.lane.b32.xlu0 %v15472_v48, %s10073_s23 }
 0x78c   : > { %v15909_v22 = vpop.permute.xlu1 %6346 }
 0x78d   : > { %17648 = vst [vmem:[#allocation57_spill] sm:$0xff] %v15909_v22  ;;  %v15911_v59 = vpop.permute.xlu0 %6344 }
 0x78e   : > { %17649 = vst [vmem:[#allocation43_spill] sm:$0xff] %v15911_v59  ;;  %7072 = vrot.lane.b32.xlu1 %v15579_v11, %s10057_s14 }
 0x78f   : > { %6946 = vrot.lane.b32.xlu0 %v15467_v54, %s10073_s23 }
 0x790   : > { %v15917_v20 = vpop.permute.xlu1 %6350 }
 0x791   : > { %17650 = vst [vmem:[#allocation83_spill] sm:$0xff] %v15917_v20  ;;  %v15919_v42 = vpop.permute.xlu0 %6348 }
 0x792   : > { %17651 = vst [vmem:[#allocation81_spill] sm:$0xff] %v15919_v42  ;;  %6692 = vrot.lane.b32.xlu1 %v15579_v11, %s10072_s19 }
 0x793   : > { %6566 = vrot.lane.b32.xlu0 %v15467_v54, %s10055_s12 }
 0x794   : > { %v15925_v48 = vpop.permute.xlu1 %6354 }
 0x795   : > { %17652 = vst [vmem:[#allocation18_spill] sm:$0xff] %v15925_v48  ;;  %v15927_v22 = vpop.permute.xlu0 %6352 }
 0x796   : > { %17653 = vst [vmem:[#allocation16_spill] sm:$0xff] %v15927_v22  ;;  %6694 = vrot.lane.b32.xlu1 %v15575_v37, %s10072_s19 }
 0x797   : > { %7074 = vrot.lane.b32.xlu0 %v15575_v37, %s10057_s14 }
 0x798   : > { %v15933_v59 = vpop.permute.xlu1 %6358 }
 0x799   : > { %17654 = vst [vmem:[#allocation135_spill] sm:$0xff] %v15933_v59  ;;  %v15935_v20 = vpop.permute.xlu0 %6356 }
 0x79a   : > { %17655 = vst [vmem:[#allocation134_spill] sm:$0xff] %v15935_v20  ;;  %6822 = vrot.lane.b32.xlu1 %v15700_v5, %s10056_s13 }
 0x79b   : > { %6820 = vrot.lane.b32.xlu0 %v15704_v53, %s10056_s13 }
 0x79c   : > { %v15941_v54 = vpop.permute.xlu1 %6426 }
 0x79d   : > { %v15943_v11 = vpop.permute.xlu0 %6424 }
 0x79e   : > { %6568 = vrot.lane.b32.xlu1 %v15484_v6, %s10055_s12 }
 0x79f   : > { %6948 = vrot.lane.b32.xlu0 %v15484_v6, %s10073_s23 }
 0x7a0   : > { %v15949_v37 = vpop.permute.xlu1 %6430 }
 0x7a1   : > { %v15951_v59 = vpop.permute.xlu0 %6428 }
 0x7a2   : > { %7076 = vrot.lane.b32.xlu1 %v15587_v18, %s10057_s14 }
 0x7a3   : > { %6950 = vrot.lane.b32.xlu0 %v15479_v40, %s10073_s23 }
 0x7a4   : > { %v15957_v20 = vpop.permute.xlu1 %6434 }
 0x7a5   : > { %v15959_v48 = vpop.permute.xlu0 %6432 }
 0x7a6   : > { %6696 = vrot.lane.b32.xlu1 %v15587_v18, %s10072_s19 }
 0x7a7   : > { %6570 = vrot.lane.b32.xlu0 %v15479_v40, %s10055_s12 }
 0x7a8   : > { %v15965_v6 = vpop.permute.xlu1 %6438 }
 0x7a9   : > { %v15967_v22 = vpop.permute.xlu0 %6436 }
 0x7aa   : > { %6698 = vrot.lane.b32.xlu1 %v15583_v52, %s10072_s19 }
 0x7ab   : > { %7078 = vrot.lane.b32.xlu0 %v15583_v52, %s10057_s14 }
 0x7ac   : > { %v15973_v42 = vpop.permute.xlu1 %6442 }
 0x7ad   : > { %v15975_v14 = vpop.permute.xlu0 %6440 }
 0x7ae   : > { %6826 = vrot.lane.b32.xlu1 %v15712_v62, %s10056_s13 }
 0x7af   : > { %6824 = vrot.lane.b32.xlu0 %v15716_v47, %s10056_s13 }
 0x7b0   : > { %v15981_v40 = vpop.permute.xlu1 %6446 }
 0x7b1   : > { %17656 = vst [vmem:[#allocation98_spill] sm:$0xff] %v15981_v40  ;;  %v15983_v18 = vpop.permute.xlu0 %6444 }
 0x7b2   : > { %6572 = vrot.lane.b32.xlu1 %v5985_v41, %s10055_s12 }
 0x7b3   : > { %6952 = vrot.lane.b32.xlu0 %v5985_v41, %s10073_s23 }
 0x7b4   : > { %v15987_v52 = vpop.permute.xlu1 %6450 }
 0x7b5   : > { %17657 = vst [vmem:[#allocation96_spill] sm:$0xff] %v15987_v52  ;;  %v15989_v9 = vpop.permute.xlu0 %6448 }
 0x7b6   : > { %17658 = vst [vmem:[#allocation48_spill] sm:$0xff] %v15989_v9  ;;  %7080 = vrot.lane.b32.xlu1 %v15595_v3, %s10057_s14 }
 0x7b7   : > { %6954 = vrot.lane.b32.xlu0 %v6081_v13, %s10073_s23 }
 0x7b8   : > { %v15994_v62 = vpop.permute.xlu1 %6454 }
 0x7b9   : > { %17659 = vst [vmem:[#allocation35_spill] sm:$0xff] %v15994_v62  ;;  %v15996_v17 = vpop.permute.xlu0 %6452 }
 0x7ba   : > { %17660 = vst [vmem:[#allocation56_spill] sm:$0xff] %v15996_v17  ;;  %6700 = vrot.lane.b32.xlu1 %v15595_v3, %s10072_s19 }
 0x7bb   : > { %6574 = vrot.lane.b32.xlu0 %v6081_v13, %s10055_s12 }
 0x7bc   : > { %v16001_v41 = vpop.permute.xlu1 %6458 }
 0x7bd   : > { %17661 = vst [vmem:[#allocation42_spill] sm:$0xff] %v16001_v41  ;;  %v16003_v52 = vpop.permute.xlu0 %6456  ;;  %v5987_v41 = vld [vmem:[#allocation3 + $0xe8] sm:$0xff] }
 0x7be   : > { %17662 = vst [vmem:[#allocation87_spill] sm:$0xff] %v16003_v52  ;;  %6702 = vrot.lane.b32.xlu1 %v15591_v28, %s10072_s19 }
 0x7bf   : > { %7082 = vrot.lane.b32.xlu0 %v15591_v28, %s10057_s14 }
 0x7c0   : > { %v16009_v9 = vpop.permute.xlu1 %6462 }
 0x7c1   : > { %17663 = vst [vmem:[#allocation85_spill] sm:$0xff] %v16009_v9  ;;  %v16011_v62 = vpop.permute.xlu0 %6460  ;;  %v6083_v9 = vld [vmem:[#allocation3 + $0xf0] sm:$0xff] }
 0x7c2   : > { %17664 = vst [vmem:[#allocation23_spill] sm:$0xff] %v16011_v62  ;;  %6830 = vrot.lane.b32.xlu1 %v15724_v8, %s10056_s13 }
 0x7c3   : > { %6828 = vrot.lane.b32.xlu0 %v15728_v31, %s10056_s13 }
 0x7c4   : > { %v16017_v3 = vpop.permute.xlu1 %6466 }
 0x7c5   : > { %17665 = vst [vmem:[#allocation20_spill] sm:$0xff] %v16017_v3  ;;  %v16019_v13 = vpop.permute.xlu0 %6464  ;;  %v5847_v3 = vld [vmem:[#allocation3 + $0x7] sm:$0xff] }
 0x7c6   : > { %17666 = vst [vmem:[#allocation137_spill] sm:$0xff] %v16019_v13  ;;  %6576 = vrot.lane.b32.xlu1 %v5987_v41, %s10055_s12 }
 0x7c7   : > { %6956 = vrot.lane.b32.xlu0 %v5987_v41, %s10073_s23  ;;  %v7160_v41 = vsel %vm400_vm15, %v5847_v3, %v15631_v56 }
 0x7c8   : > { %v6555_v28 = vpop.permute.xlu1 %6554  ;;  %v7192_v31 = vsel %vm326_vm0, %v7160_v41, %v15812_v30  ;;  %v5989_v41 = vld [vmem:[#allocation3 + $0x108] sm:$0xff] }
 0x7c9   : > { %v6553_v52 = vpop.permute.xlu0 %6552 }
 0x7ca   : > { %7084 = vrot.lane.b32.xlu1 %v15603_v49, %s10057_s14 }
 0x7cb   : > { %6958 = vrot.lane.b32.xlu0 %v6083_v9, %s10073_s23 }
 0x7cc   : > { %v6683_v62 = vpop.permute.xlu1 %6682 }
 0x7cd   : > { %v6681_v8 = vpop.permute.xlu0 %6680 }
 0x7ce   : > { %6704 = vrot.lane.b32.xlu1 %v15603_v49, %s10072_s19  ;;  %v7225_v49 = vsel %vm7224_vm5, %v7192_v31, %v15943_v11 }
 0x7cf   : > { %6578 = vrot.lane.b32.xlu0 %v6083_v9, %s10055_s12  ;;  %v7257_v47 = vsel %vm2941_vm1, %v7225_v49, %v6553_v52 }
 0x7d0   : > { %v6811_v13 = vpop.permute.xlu1 %6810  ;;  %v7290_v56 = vsel %vm7289_vm6, %v7257_v47, %v6681_v8 }
 0x7d1   : > { %v6809_v17 = vpop.permute.xlu0 %6808 }
 0x7d2   : > { %6706 = vrot.lane.b32.xlu1 %v15599_v29, %s10072_s19  ;;  %v7322_v3 = vsel %vm2974_vm2, %v7290_v56, %v6809_v17  ;;  %v6085_v56 = vld [vmem:[#allocation3 + $0x110] sm:$0xff] }
 0x7d3   : > { %7086 = vrot.lane.b32.xlu0 %v15599_v29, %s10057_s14  ;;  %v5848_v29 = vld [vmem:[#allocation3 + $0xf] sm:$0xff] }
 0x7d4   : > { %v6557_v9 = vpop.permute.xlu1 %6556 }
 0x7d5   : > { %v6937_v40 = vpop.permute.xlu0 %6936 }
 0x7d6   : > { %6834 = vrot.lane.b32.xlu1 %v15736_v7, %s10056_s13  ;;  %v7355_v30 = vsel %vm7354_vm7, %v7322_v3, %v6937_v40  ;;  %v7161_v7 = vsel %vm400_vm15, %v5848_v29, %v15628_v12 }
 0x7d7   : > { %6832 = vrot.lane.b32.xlu0 %v15740_v35, %s10056_s13  ;;  %v7193_v47 = vsel %vm326_vm0, %v7161_v7, %v15804_v38 }
 0x7d8   : > { %v7065_v31 = vpop.permute.xlu1 %7064  ;;  %v7226_v17 = vsel %vm7224_vm5, %v7193_v47, %v15941_v54  ;;  %v5991_v47 = vld [vmem:[#allocation3 + $0x128] sm:$0xff] }
 0x7d9   : > { %v7387_v11 = vsel %vm3007_vm3, %v7355_v30, %v7065_v31  ;;  %v6939_v52 = vpop.permute.xlu0 %6938  ;;  %v7258_v49 = vsel %vm2941_vm1, %v7226_v17, %v6555_v28 }
 0x7da   : > { %6580 = vrot.lane.b32.xlu1 %v5989_v41, %s10055_s12  ;;  %8636 = vmatprep.mubr.msk.f32.mxu1 %vm7431_vm8, %v7387_v11  ;;  %v7291_v3 = vsel %vm7289_vm6, %v7258_v49, %v6683_v62  ;;  %v7162_v62 = vsel %vm400_vm15, %v15656_v24, %v15638_v43 }
 0x7db   : > { %6960 = vrot.lane.b32.xlu0 %v5989_v41, %s10073_s23  ;;  %v7323_v12 = vsel %vm2974_vm2, %v7291_v3, %v6811_v13  ;;  %v7194_v13 = vsel %vm326_vm0, %v7162_v62, %v15820_v19 }
 0x7dc   : > { %v6685_v8 = vpop.permute.xlu1 %6684  ;;  %v7356_v38 = vsel %vm7354_vm7, %v7323_v12, %v6939_v52 }
 0x7dd   : > { %v6559_v40 = vpop.permute.xlu0 %6558 }
 0x7de   : > { %7088 = vrot.lane.b32.xlu1 %v15611_v2, %s10057_s14 }
 0x7df   : > { %6962 = vrot.lane.b32.xlu0 %v6085_v56, %s10073_s23 }
 0x7e0   : > { %v6687_v29 = vpop.permute.xlu1 %6686 }
 0x7e1   : > { %v7067_v30 = vpop.permute.xlu0 %7066 }
 0x7e2   : > { %v7388_v31 = vsel %vm3007_vm3, %v7356_v38, %v7067_v30  ;;  %6708 = vrot.lane.b32.xlu1 %v15611_v2, %s10072_s19  ;;  %v7227_v2 = vsel %vm7224_vm5, %v7194_v13, %v15951_v59  ;;  %v5993_v13 = vld [vmem:[#allocation3 + $0x148] sm:$0xff] }
 0x7e3   : > { %6582 = vrot.lane.b32.xlu0 %v6085_v56, %s10055_s12  ;;  %8637 = vmatmul.mubr.msk.f32.vlgmr.msra.gmra.mrb[20].mxu1 %vm7431_vm8, %v7388_v31  ;;  %v7259_v52 = vsel %vm2941_vm1, %v7227_v2, %v6557_v9  ;;  %v6087_v56 = vld [vmem:[#allocation3 + $0x130] sm:$0xff] }
 0x7e4   : > { %v6815_v54 = vpop.permute.xlu1 %6814  ;;  %v7292_v7 = vsel %vm7289_vm6, %v7259_v52, %v6685_v8 }
 0x7e5   : > { %v6813_v28 = vpop.permute.xlu0 %6812 }
 0x7e6   : > { %6710 = vrot.lane.b32.xlu1 %v15607_v60, %s10072_s19  ;;  %v7324_v43 = vsel %vm2974_vm2, %v7292_v7, %v6813_v28  ;;  %v6089_v7 = vld [vmem:[#allocation3 + $0x150] sm:$0xff] }
 0x7e7   : > { %7090 = vrot.lane.b32.xlu0 %v15607_v60, %s10057_s14 }
 0x7e8   : > { %v6561_v11 = vpop.permute.xlu1 %6560 }
 0x7e9   : > { %v6941_v41 = vpop.permute.xlu0 %6940 }
 0x7ea   : > { %6838 = vrot.lane.b32.xlu1 %v15748_v10, %s10056_s13  ;;  %v7357_v24 = vsel %vm7354_vm7, %v7324_v43, %v6941_v41  ;;  %v7163_v10 = vsel %vm400_vm15, %v15652_v27, %v15636_v63 }
 0x7eb   : > { %6836 = vrot.lane.b32.xlu0 %v15752_v34, %s10056_s13  ;;  %v7195_v34 = vsel %vm326_vm0, %v7163_v10, %v15818_v50 }
 0x7ec   : > { %v7069_v60 = vpop.permute.xlu1 %7068  ;;  %v7228_v8 = vsel %vm7224_vm5, %v7195_v34, %v15949_v37 }
 0x7ed   : > { %v7389_v19 = vsel %vm3007_vm3, %v7357_v24, %v7069_v60  ;;  %v6943_v59 = vpop.permute.xlu0 %6942  ;;  %v7260_v49 = vsel %vm2941_vm1, %v7228_v8, %v6559_v40 }
 0x7ee   : > { %6584 = vrot.lane.b32.xlu1 %v5991_v47, %s10055_s12  ;;  %8639 = vmatprep.mubr.msk.f32.mxu1 %vm7431_vm8, %v7389_v19  ;;  %v7293_v3 = vsel %vm7289_vm6, %v7260_v49, %v6687_v29  ;;  %v7164_v29 = vsel %vm400_vm15, %v15668_v25, %v15645_v45 }
 0x7ef   : > { %6964 = vrot.lane.b32.xlu0 %v5991_v47, %s10073_s23  ;;  %v7325_v63 = vsel %vm2974_vm2, %v7293_v3, %v6815_v54  ;;  %v7196_v30 = vsel %vm326_vm0, %v7164_v29, %v15831_v23  ;;  %v7166_v47 = vsel %vm400_vm15, %v15680_v57, %v15654_v46  ;;  %v17667_v3 = vld [vmem:[#allocation69_spill] sm:$0xff] }
 0x7f0   : > { %v6689_v9 = vpop.permute.xlu1 %6688  ;;  %v7358_v50 = vsel %vm7354_vm7, %v7325_v63, %v6943_v59  ;;  %v6026_v59 = vld [vmem:[#allocation3 + $0x151] sm:$0xff]  ;;  %v7198_v10 = vsel %vm326_vm0, %v7166_v47, %v15839_v51  ;;  %v17668_v63 = vld [vmem:[#allocation88_spill] sm:$0xff] }
 0x7f1   : > { %v6563_v17 = vpop.permute.xlu0 %6562 }
 0x7f2   : > { %7092 = vrot.lane.b32.xlu1 %v15619_v4, %s10057_s14 }
 0x7f3   : > { %6966 = vrot.lane.b32.xlu0 %v6087_v56, %s10073_s23 }
 0x7f4   : > { %v6691_v27 = vpop.permute.xlu1 %6690 }
 0x7f5   : > { %v7071_v12 = vpop.permute.xlu0 %7070 }
 0x7f6   : > { %v7390_v38 = vsel %vm3007_vm3, %v7358_v50, %v7071_v12  ;;  %6712 = vrot.lane.b32.xlu1 %v15619_v4, %s10072_s19  ;;  %v7229_v4 = vsel %vm7224_vm5, %v7196_v30, %v15959_v48 }
 0x7f7   : > { %6586 = vrot.lane.b32.xlu0 %v6087_v56, %s10055_s12  ;;  %8640 = vmatmul.mubr.msk.f32.gmra.mrb[22].mxu1 %vm7431_vm8, %v7390_v38  ;;  %v7261_v54 = vsel %vm2941_vm1, %v7229_v4, %v6561_v11  ;;  %v5995_v56 = vld [vmem:[#allocation3 + $0x168] sm:$0xff] }
 0x7f8   : > { %v6819_v37 = vpop.permute.xlu1 %6818  ;;  %v7294_v62 = vsel %vm7289_vm6, %v7261_v54, %v6689_v9  ;;  %v6122_v38 = vld [vmem:[#allocation3 + $0x169] sm:$0xff] }
 0x7f9   : > { %v6817_v40 = vpop.permute.xlu0 %6816 }
 0x7fa   : > { %6714 = vrot.lane.b32.xlu1 %v15615_v55, %s10072_s19  ;;  %v7326_v45 = vsel %vm2974_vm2, %v7294_v62, %v6817_v40  ;;  %v6091_v40 = vld [vmem:[#allocation3 + $0x170] sm:$0xff] }
 0x7fb   : > { %7094 = vrot.lane.b32.xlu0 %v15615_v55, %s10057_s14  ;;  %v6028_v62 = vld [vmem:[#allocation3 + $0x171] sm:$0xff] }
 0x7fc   : > { %v6565_v31 = vpop.permute.xlu1 %6564 }
 0x7fd   : > { %v6945_v28 = vpop.permute.xlu0 %6944 }
 0x7fe   : > { %6842 = vrot.lane.b32.xlu1 %v15760_v26, %s10056_s13  ;;  %v7359_v25 = vsel %vm7354_vm7, %v7326_v45, %v6945_v28  ;;  %v7165_v26 = vsel %vm400_vm15, %v15664_v16, %v15642_v21  ;;  %v17669_v45 = vld [vmem:[#allocation21_spill] sm:$0xff] }
 0x7ff   : > { %6840 = vrot.lane.b32.xlu0 %v15764_v44, %s10056_s13  ;;  %v7197_v44 = vsel %vm326_vm0, %v7165_v26, %v15829_v15 }
 0x800   : > { %v7073_v55 = vpop.permute.xlu1 %7072  ;;  %v7230_v11 = vsel %vm7224_vm5, %v7197_v44, %v15957_v20 }
 0x801   : > { %v7391_v23 = vsel %vm3007_vm3, %v7359_v25, %v7073_v55  ;;  %v6947_v48 = vpop.permute.xlu0 %6946  ;;  %v7262_v41 = vsel %vm2941_vm1, %v7230_v11, %v6563_v17  ;;  %v7168_v25 = vsel %vm400_vm15, %v15692_v0, %v17669_v45 }
 0x802   : > { %6588 = vrot.lane.b32.xlu1 %v5993_v13, %s10055_s12  ;;  %8642 = vmatprep.mubr.msk.f32.mxu1 %vm7431_vm8, %v7391_v23  ;;  %v7295_v43 = vsel %vm7289_vm6, %v7262_v41, %v6691_v27  ;;  %v7200_v55 = vsel %vm326_vm0, %v7168_v25, %v15847_v39  ;;  %v6092_v41 = vld [vmem:[#allocation3 + $0x188] sm:$0xff] }
 0x803   : > { %6968 = vrot.lane.b32.xlu0 %v5993_v13, %s10073_s23  ;;  %v7327_v21 = vsel %vm2974_vm2, %v7295_v43, %v6819_v37  ;;  %v7233_v23 = vsel %vm7224_vm5, %v7200_v55, %v15975_v14  ;;  %v16200_v13 = vld [vmem:[#allocation3 + $0x187] sm:$0xff] }
 0x804   : > { %v6693_v2 = vpop.permute.xlu1 %6692  ;;  %v7360_v15 = vsel %vm7354_vm7, %v7327_v21, %v6947_v48  ;;  %v17670_v43 = vld [vmem:[#allocation68_spill] sm:$0xff] }
 0x805   : > { %v6567_v52 = vpop.permute.xlu0 %6566  ;;  %v7169_v21 = vsel %vm400_vm15, %v15688_v33, %v17670_v43 }
 0x806   : > { %7096 = vrot.lane.b32.xlu1 %v15624_v58, %s10057_s14 }
 0x807   : > { %6970 = vrot.lane.b32.xlu0 %v6089_v7, %s10073_s23 }
 0x808   : > { %v6695_v16 = vpop.permute.xlu1 %6694 }
 0x809   : > { %v7075_v24 = vpop.permute.xlu0 %7074 }
 0x80a   : > { %v7392_v60 = vsel %vm3007_vm3, %v7360_v15, %v7075_v24  ;;  %6716 = vrot.lane.b32.xlu1 %v15624_v58, %s10072_s19  ;;  %v7231_v58 = vsel %vm7224_vm5, %v7198_v10, %v15967_v22  ;;  %v6124_v10 = vld [vmem:[#allocation3 + $0x189] sm:$0xff] }
 0x80b   : > { %6590 = vrot.lane.b32.xlu0 %v6089_v7, %s10055_s12  ;;  %8643 = vmatmul.mubr.msk.f32.gmra.mrb[24].mxu1 %vm7431_vm8, %v7392_v60  ;;  %v7263_v9 = vsel %vm2941_vm1, %v7231_v58, %v6565_v31  ;;  %v16211_v7 = vld [vmem:[#allocation3 + $0x18f] sm:$0xff] }
 0x80c   : > { %v6823_v20 = vpop.permute.xlu1 %6822  ;;  %v7296_v17 = vsel %vm7289_vm6, %v7263_v9, %v6693_v2 }
 0x80d   : > { %v6821_v19 = vpop.permute.xlu0 %6820 }
 0x80e   : > { %6718 = vrot.lane.b32.xlu1 %v6026_v59, %s10072_s19  ;;  %v7328_v46 = vsel %vm2974_vm2, %v7296_v17, %v6821_v19 }
 0x80f   : > { %7098 = vrot.lane.b32.xlu0 %v6026_v59, %s10057_s14 }
 0x810   : > { %v6569_v34 = vpop.permute.xlu1 %6568 }
 0x811   : > { %v6949_v8 = vpop.permute.xlu0 %6948  ;;  %v7265_v26 = vsel %vm2941_vm1, %v7233_v23, %v6569_v34 }
 0x812   : > { %6846 = vrot.lane.b32.xlu1 %v15772_v1, %s10056_s13  ;;  %v7361_v51 = vsel %vm7354_vm7, %v7328_v46, %v6949_v8  ;;  %v7167_v1 = vsel %vm400_vm15, %v15676_v32, %v17667_v3  ;;  %v17671_v8 = vld [vmem:[#allocation72_spill] sm:$0xff]  ;;  %v17672_v46 = vld [vmem:[#allocation30_spill] sm:$0xff] }
 0x813   : > { %6844 = vrot.lane.b32.xlu0 %v15776_v36, %s10056_s13  ;;  %v7199_v36 = vsel %vm326_vm0, %v7167_v1, %v17668_v63  ;;  %v7170_v17 = vsel %vm400_vm15, %v15704_v53, %v17671_v8  ;;  %v6030_v3 = vld [vmem:[#allocation3 + $0x191] sm:$0xff] }
 0x814   : > { %v7077_v57 = vpop.permute.xlu1 %7076  ;;  %v7232_v50 = vsel %vm7224_vm5, %v7199_v36, %v15965_v6 }
 0x815   : > { %v7393_v49 = vsel %vm3007_vm3, %v7361_v51, %v7077_v57  ;;  %v6951_v22 = vpop.permute.xlu0 %6950  ;;  %v7264_v37 = vsel %vm2941_vm1, %v7232_v50, %v6567_v52  ;;  %v7202_v51 = vsel %vm326_vm0, %v7170_v17, %v17672_v46  ;;  %v5969_v46 = vld [vmem:[#allocation3 + $0x1c7] sm:$0xff] }
 0x816   : > { %6592 = vrot.lane.b32.xlu1 %v5995_v56, %s10055_s12  ;;  %8645 = vmatprep.mubr.msk.f32.mxu1 %vm7431_vm8, %v7393_v49  ;;  %v7297_v29 = vsel %vm7289_vm6, %v7264_v37, %v6695_v16  ;;  %v7201_v16 = vsel %vm326_vm0, %v7169_v21, %v15845_v61  ;;  %v7235_v57 = vsel %vm7224_vm5, %v7202_v51, %v15983_v18  ;;  %v5967_v18 = vld [vmem:[#allocation3 + $0x1a7] sm:$0xff] }
 0x817   : > { %6972 = vrot.lane.b32.xlu0 %v5995_v56, %s10073_s23  ;;  %v7329_v32 = vsel %vm2974_vm2, %v7297_v29, %v6823_v20  ;;  %v7234_v24 = vsel %vm7224_vm5, %v7201_v16, %v15973_v42  ;;  %v6093_v42 = vld [vmem:[#allocation3 + $0x190] sm:$0xff]  ;;  %v17674_v37 = vld [vmem:[#allocation32_spill] sm:$0xff] }
 0x818   : > { %v6697_v27 = vpop.permute.xlu1 %6696  ;;  %v7362_v4 = vsel %vm7354_vm7, %v7329_v32, %v6951_v22  ;;  %v17675_v32 = vld [vmem:[#allocation98_spill] sm:$0xff] }
 0x819   : > { %v6571_v12 = vpop.permute.xlu0 %6570  ;;  %v7298_v2 = vsel %vm7289_vm6, %v7265_v26, %v6697_v27  ;;  %v6126_v26 = vld [vmem:[#allocation3 + $0x1a9] sm:$0xff] }
 0x81a   : > { %7100 = vrot.lane.b32.xlu1 %v6122_v38, %s10057_s14  ;;  %v7266_v20 = vsel %vm2941_vm1, %v7234_v24, %v6571_v12  ;;  %v17673_v12 = vld [vmem:[#allocation19_spill] sm:$0xff] }
 0x81b   : > { %6974 = vrot.lane.b32.xlu0 %v6091_v40, %s10073_s23 }
 0x81c   : > { %v6699_v30 = vpop.permute.xlu1 %6698 }
 0x81d   : > { %v7079_v31 = vpop.permute.xlu0 %7078  ;;  %v7299_v19 = vsel %vm7289_vm6, %v7266_v20, %v6699_v30 }
 0x81e   : > { %v7394_v54 = vsel %vm3007_vm3, %v7362_v4, %v7079_v31  ;;  %6720 = vrot.lane.b32.xlu1 %v6122_v38, %s10072_s19  ;;  %v7171_v38 = vsel %vm400_vm15, %v15700_v5, %v17673_v12  ;;  %v6094_v31 = vld [vmem:[#allocation3 + $0x1a8] sm:$0xff] }
 0x81f   : > { %6594 = vrot.lane.b32.xlu0 %v6091_v40, %s10055_s12  ;;  %8646 = vmatmul.mubr.msk.f32.gmra.mrb[26].mxu1 %vm7431_vm8, %v7394_v54  ;;  %v7203_v40 = vsel %vm326_vm0, %v7171_v38, %v17674_v37  ;;  %v17686_v38 = vld [vmem:[#allocation74_spill] sm:$0xff] }
 0x820   : > { %v6827_v6 = vpop.permute.xlu1 %6826  ;;  %v7236_v30 = vsel %vm7224_vm5, %v7203_v40, %v17675_v32  ;;  %v17687_v40 = vld [vmem:[#allocation56_spill] sm:$0xff] }
 0x821   : > { %v6825_v28 = vpop.permute.xlu0 %6824  ;;  %v7331_v33 = vsel %vm2974_vm2, %v7299_v19, %v6827_v6  ;;  %v6063_v6 = vld [vmem:[#allocation3 + $0x1af] sm:$0xff] }
 0x822   : > { %6722 = vrot.lane.b32.xlu1 %v6028_v62, %s10072_s19  ;;  %v7330_v0 = vsel %vm2974_vm2, %v7298_v2, %v6825_v28  ;;  %v17677_v2 = vld [vmem:[#allocation79_spill] sm:$0xff] }
 0x823   : > { %7102 = vrot.lane.b32.xlu0 %v6028_v62, %s10057_s14 }
 0x824   : > { %v6573_v48 = vpop.permute.xlu1 %6572 }
 0x825   : > { %v6953_v44 = vpop.permute.xlu0 %6952  ;;  %v7267_v22 = vsel %vm2941_vm1, %v7235_v57, %v6573_v48 }
 0x826   : > { %6468 = vrot.lane.b32.xlu1 %v16200_v13, %s10071_s18  ;;  %v7363_v39 = vsel %vm7354_vm7, %v7330_v0, %v6953_v44  ;;  %v17676_v44 = vld [vmem:[#allocation24_spill] sm:$0xff] }
 0x827   : > { %6848 = vrot.lane.b32.xlu0 %v16200_v13, %s10056_s13  ;;  %v7172_v0 = vsel %vm400_vm15, %v17677_v2, %v17676_v44 }
 0x828   : > { %v7081_v11 = vpop.permute.xlu1 %7080 }
 0x829   : > { %v7395_v14 = vsel %vm3007_vm3, %v7363_v39, %v7081_v11  ;;  %v6955_v52 = vpop.permute.xlu0 %6954  ;;  %v6095_v39 = vld [vmem:[#allocation3 + $0x1b0] sm:$0xff] }
 0x82a   : > { %6976 = vrot.lane.b32.xlu1 %v6092_v41, %s10073_s23  ;;  %8648 = vmatprep.mubr.msk.f32.mxu1 %vm7431_vm8, %v7395_v14  ;;  %v7364_v47 = vsel %vm7354_vm7, %v7331_v33, %v6955_v52  ;;  %v17678_v11 = vld [vmem:[#allocation54_spill] sm:$0xff]  ;;  %v17679_v52 = vld [vmem:[#allocation48_spill] sm:$0xff] }
 0x82b   : > { %6850 = vrot.lane.b32.xlu0 %v16211_v7, %s10056_s13  ;;  %v7204_v14 = vsel %vm326_vm0, %v7172_v0, %v17678_v11  ;;  %v17691_v0 = vld [vmem:[#allocation35_spill] sm:$0xff] }
 0x82c   : > { %v6701_v15 = vpop.permute.xlu1 %6700 }
 0x82d   : > { %v6575_v60 = vpop.permute.xlu0 %6574  ;;  %v7300_v1 = vsel %vm7289_vm6, %v7267_v22, %v6701_v15 }
 0x82e   : > { %6596 = vrot.lane.b32.xlu1 %v6092_v41, %s10055_s12  ;;  %v7268_v54 = vsel %vm2941_vm1, %v7236_v30, %v6575_v60  ;;  %v7237_v41 = vsel %vm7224_vm5, %v7204_v14, %v17679_v52  ;;  %v6034_v14 = vld [vmem:[#allocation3 + $0x1d1] sm:$0xff] }
 0x82f   : > { %6470 = vrot.lane.b32.xlu0 %v16211_v7, %s10071_s18 }
 0x830   : > { %v6703_v59 = vpop.permute.xlu1 %6702 }
 0x831   : > { %v7083_v61 = vpop.permute.xlu0 %7082  ;;  %v7301_v28 = vsel %vm7289_vm6, %v7268_v54, %v6703_v59  ;;  %v6032_v59 = vld [vmem:[#allocation3 + $0x1b1] sm:$0xff] }
 0x832   : > { %v7396_v58 = vsel %vm3007_vm3, %v7364_v47, %v7083_v61  ;;  %7104 = vrot.lane.b32.xlu1 %v6124_v10, %s10057_s14  ;;  %v17680_v47 = vld [vmem:[#allocation71_spill] sm:$0xff]  ;;  %v17681_v61 = vld [vmem:[#allocation26_spill] sm:$0xff] }
 0x833   : > { %6978 = vrot.lane.b32.xlu0 %v6093_v42, %s10073_s23  ;;  %8649 = vmatmul.mubr.msk.f32.gmra.mrb[28].mxu1 %vm7431_vm8, %v7396_v58  ;;  %v17682_v58 = vld [vmem:[#allocation62_spill] sm:$0xff] }
 0x834   : > { %v6831_v34 = vpop.permute.xlu1 %6830 }
 0x835   : > { %v6829_v9 = vpop.permute.xlu0 %6828  ;;  %v7333_v5 = vsel %vm2974_vm2, %v7301_v28, %v6831_v34 }
 0x836   : > { %6724 = vrot.lane.b32.xlu1 %v6124_v10, %s10072_s19  ;;  %v7332_v53 = vsel %vm2974_vm2, %v7300_v1, %v6829_v9  ;;  %v7173_v10 = vsel %vm400_vm15, %v17681_v61, %v17680_v47  ;;  %v17683_v9 = vld [vmem:[#allocation96_spill] sm:$0xff]  ;;  %v6096_v1 = vld [vmem:[#allocation3 + $0x1c8] sm:$0xff] }
 0x837   : > { %6598 = vrot.lane.b32.xlu0 %v6093_v42, %s10055_s12  ;;  %v7205_v42 = vsel %vm326_vm0, %v7173_v10, %v17682_v58  ;;  %v6067_v61 = vld [vmem:[#allocation3 + $0x1ef] sm:$0xff]  ;;  %v17693_v10 = vld [vmem:[#allocation11_spill] sm:$0xff] }
 0x838   : > { %v6577_v49 = vpop.permute.xlu1 %6576  ;;  %v7238_v8 = vsel %vm7224_vm5, %v7205_v42, %v17683_v9  ;;  %v17694_v42 = vld [vmem:[#allocation87_spill] sm:$0xff] }
 0x839   : > { %v6957_v56 = vpop.permute.xlu0 %6956  ;;  %v7269_v21 = vsel %vm2941_vm1, %v7237_v41, %v6577_v49 }
 0x83a   : > { %6726 = vrot.lane.b32.xlu1 %v6030_v3, %s10072_s19  ;;  %v7365_v63 = vsel %vm7354_vm7, %v7332_v53, %v6957_v56 }
 0x83b   : > { %7106 = vrot.lane.b32.xlu0 %v6030_v3, %s10057_s14 }
 0x83c   : > { %v7085_v36 = vpop.permute.xlu1 %7084 }
 0x83d   : > { %v7397_v27 = vsel %vm3007_vm3, %v7365_v63, %v7085_v36  ;;  %v6959_v50 = vpop.permute.xlu0 %6958  ;;  %v6065_v63 = vld [vmem:[#allocation3 + $0x1cf] sm:$0xff] }
 0x83e   : > { %6472 = vrot.lane.b32.xlu1 %v5967_v18, %s10071_s18  ;;  %8651 = vmatprep.mubr.msk.f32.mxu1 %vm7431_vm8, %v7397_v27  ;;  %v7366_v45 = vsel %vm7354_vm7, %v7333_v5, %v6959_v50  ;;  %v17684_v50 = vld [vmem:[#allocation76_spill] sm:$0xff] }
 0x83f   : > { %6852 = vrot.lane.b32.xlu0 %v5967_v18, %s10056_s13  ;;  %v17685_v18 = vld [vmem:[#allocation80_spill] sm:$0xff] }
 0x840   : > { %v6705_v29 = vpop.permute.xlu1 %6704  ;;  %v7174_v12 = vsel %vm400_vm15, %v17685_v18, %v17684_v50  ;;  %v17697_v18 = vld [vmem:[#allocation42_spill] sm:$0xff] }
 0x841   : > { %v6579_v4 = vpop.permute.xlu0 %6578  ;;  %v7302_v15 = vsel %vm7289_vm6, %v7269_v21, %v6705_v29  ;;  %v7206_v37 = vsel %vm326_vm0, %v7174_v12, %v17686_v38 }
 0x842   : > { %6980 = vrot.lane.b32.xlu1 %v6094_v31, %s10073_s23  ;;  %v7270_v51 = vsel %vm2941_vm1, %v7238_v8, %v6579_v4  ;;  %v7239_v29 = vsel %vm7224_vm5, %v7206_v37, %v17687_v40 }
 0x843   : > { %6854 = vrot.lane.b32.xlu0 %v6063_v6, %s10056_s13 }
 0x844   : > { %v6707_v62 = vpop.permute.xlu1 %6706 }
 0x845   : > { %v7087_v25 = vpop.permute.xlu0 %7086  ;;  %v7303_v57 = vsel %vm7289_vm6, %v7270_v51, %v6707_v62 }
 0x846   : > { %v7398_v55 = vsel %vm3007_vm3, %v7366_v45, %v7087_v25  ;;  %6600 = vrot.lane.b32.xlu1 %v6094_v31, %s10055_s12  ;;  %v6128_v31 = vld [vmem:[#allocation3 + $0x1c9] sm:$0xff] }
 0x847   : > { %6474 = vrot.lane.b32.xlu0 %v6063_v6, %s10071_s18  ;;  %8652 = vmatmul.mubr.msk.f32.gmra.mrb[30].mxu1 %vm7431_vm8, %v7398_v55  ;;  %v6097_v6 = vld [vmem:[#allocation3 + $0x1d0] sm:$0xff] }
 0x848   : > { %v6835_v23 = vpop.permute.xlu1 %6834  ;;  %v17688_v55 = vld [vmem:[#allocation22_spill] sm:$0xff] }
 0x849   : > { %v6833_v48 = vpop.permute.xlu0 %6832  ;;  %v7335_v49 = vsel %vm2974_vm2, %v7303_v57, %v6835_v23  ;;  %v17689_v23 = vld [vmem:[#allocation28_spill] sm:$0xff] }
 0x84a   : > { %7108 = vrot.lane.b32.xlu1 %v6126_v26, %s10057_s14  ;;  %v7334_v24 = vsel %vm2974_vm2, %v7302_v15, %v6833_v48  ;;  %v7175_v48 = vsel %vm400_vm15, %v17689_v23, %v17688_v55  ;;  %v17699_v55 = vld [vmem:[#allocation132_spill] sm:$0xff] }
 0x84b   : > { %6982 = vrot.lane.b32.xlu0 %v6095_v39, %s10073_s23 }
 0x84c   : > { %v6581_v43 = vpop.permute.xlu1 %6580 }
 0x84d   : > { %v6961_v16 = vpop.permute.xlu0 %6960  ;;  %v7271_v30 = vsel %vm2941_vm1, %v7239_v29, %v6581_v43 }
 0x84e   : > { %6728 = vrot.lane.b32.xlu1 %v6126_v26, %s10072_s19  ;;  %v7367_v60 = vsel %vm7354_vm7, %v7334_v24, %v6961_v16  ;;  %v17690_v26 = vld [vmem:[#allocation77_spill] sm:$0xff] }
 0x84f   : > { %6602 = vrot.lane.b32.xlu0 %v6095_v39, %s10055_s12  ;;  %v7207_v44 = vsel %vm326_vm0, %v7175_v48, %v17690_v26  ;;  %v5971_v24 = vld [vmem:[#allocation3 + $0x1e7] sm:$0xff]  ;;  %v17700_v48 = vld [vmem:[#allocation23_spill] sm:$0xff] }
 0x850   : > { %v7089_v20 = vpop.permute.xlu1 %7088  ;;  %v7240_v39 = vsel %vm7224_vm5, %v7207_v44, %v17691_v0 }
 0x851   : > { %v7399_v19 = vsel %vm3007_vm3, %v7367_v60, %v7089_v20  ;;  %v6963_v33 = vpop.permute.xlu0 %6962 }
 0x852   : > { %6730 = vrot.lane.b32.xlu1 %v6032_v59, %s10072_s19  ;;  %8654 = vmatprep.mubr.msk.f32.mxu1 %vm7431_vm8, %v7399_v19  ;;  %v7368_v56 = vsel %vm7354_vm7, %v7335_v49, %v6963_v33  ;;  %v6098_v33 = vld [vmem:[#allocation3 + $0x1e8] sm:$0xff] }
 0x853   : > { %7110 = vrot.lane.b32.xlu0 %v6032_v59, %s10057_s14  ;;  %v17692_v59 = vld [vmem:[#allocation25_spill] sm:$0xff] }
 0x854   : > { %v6709_v34 = vpop.permute.xlu1 %6708  ;;  %v7176_v47 = vsel %vm400_vm15, %v15740_v35, %v17692_v59  ;;  %v17703_v59 = vld [vmem:[#allocation85_spill] sm:$0xff] }
 0x855   : > { %v6583_v17 = vpop.permute.xlu0 %6582  ;;  %v7304_v54 = vsel %vm7289_vm6, %v7271_v30, %v6709_v34  ;;  %v7208_v58 = vsel %vm326_vm0, %v7176_v47, %v17693_v10  ;;  %v6132_v10 = vld [vmem:[#allocation3 + $0x209] sm:$0xff] }
 0x856   : > { %6476 = vrot.lane.b32.xlu1 %v5969_v46, %s10071_s18  ;;  %v7272_v52 = vsel %vm2941_vm1, %v7240_v39, %v6583_v17  ;;  %v7241_v34 = vsel %vm7224_vm5, %v7208_v58, %v17694_v42  ;;  %v6100_v39 = vld [vmem:[#allocation3 + $0x208] sm:$0xff]  ;;  %v6101_v42 = vld [vmem:[#allocation3 + $0x210] sm:$0xff] }
 0x857   : > { %6856 = vrot.lane.b32.xlu0 %v5969_v46, %s10056_s13 }
 0x858   : > { %v6711_v22 = vpop.permute.xlu1 %6710 }
 0x859   : > { %v7091_v3 = vpop.permute.xlu0 %7090  ;;  %v7305_v41 = vsel %vm7289_vm6, %v7272_v52, %v6711_v22 }
 0x85a   : > { %v7400_v53 = vsel %vm3007_vm3, %v7368_v56, %v7091_v3  ;;  %6984 = vrot.lane.b32.xlu1 %v6096_v1, %s10073_s23  ;;  %v6130_v56 = vld [vmem:[#allocation3 + $0x1e9] sm:$0xff] }
 0x85b   : > { %6858 = vrot.lane.b32.xlu0 %v6065_v63, %s10056_s13  ;;  %8655 = vmatmul.mubr.msk.f32.gmra.mrb[32].mxu1 %vm7431_vm8, %v7400_v53  ;;  %v6099_v3 = vld [vmem:[#allocation3 + $0x1f0] sm:$0xff]  ;;  %v17695_v53 = vld [vmem:[#allocation75_spill] sm:$0xff] }
 0x85c   : > { %v6839_v36 = vpop.permute.xlu1 %6838 }
 0x85d   : > { %v6837_v27 = vpop.permute.xlu0 %6836  ;;  %v7337_v43 = vsel %vm2974_vm2, %v7305_v41, %v6839_v36  ;;  %v17696_v36 = vld [vmem:[#allocation13_spill] sm:$0xff] }
 0x85e   : > { %6604 = vrot.lane.b32.xlu1 %v6096_v1, %s10055_s12  ;;  %v7336_v28 = vsel %vm2974_vm2, %v7304_v54, %v6837_v27  ;;  %v10039_v1 = vld [vmem:[#allocation3 + $0x10f] sm:$0xff] }
 0x85f   : > { %6478 = vrot.lane.b32.xlu0 %v6065_v63, %s10071_s18  ;;  %v7177_v63 = vsel %vm400_vm15, %v10039_v1, %v17695_v53  ;;  %v10042_v53 = vld [vmem:[#allocation3 + $0x147] sm:$0xff] }
 0x860   : > { %v6585_v32 = vpop.permute.xlu1 %6584  ;;  %v7209_v27 = vsel %vm326_vm0, %v7177_v63, %v17696_v36  ;;  %v17704_v63 = vld [vmem:[#allocation84_spill] sm:$0xff] }
 0x861   : > { %v6965_v4 = vpop.permute.xlu0 %6964  ;;  %v7273_v8 = vsel %vm2941_vm1, %v7241_v34, %v6585_v32  ;;  %v7242_v12 = vsel %vm7224_vm5, %v7209_v27, %v17697_v18  ;;  %v7180_v36 = vsel %vm400_vm15, %v10042_v53, %v17704_v63  ;;  %v17705_v27 = vld [vmem:[#allocation92_spill] sm:$0xff]  ;;  %v6103_v18 = vld [vmem:[#allocation3 + $0x230] sm:$0xff]  ;;  %v17712_v63 = vld [vmem:[#allocation29_spill] sm:$0xff] }
 0x862   : > { %7112 = vrot.lane.b32.xlu1 %v6128_v31, %s10057_s14  ;;  %v7369_v5 = vsel %vm7354_vm7, %v7336_v28, %v6965_v4  ;;  %v10045_v53 = vld [vmem:[#allocation3 + $0x16f] sm:$0xff] }
 0x863   : > { %6986 = vrot.lane.b32.xlu0 %v6097_v6, %s10073_s23 }
 0x864   : > { %v7093_v62 = vpop.permute.xlu1 %7092 }
 0x865   : > { %v7401_v45 = vsel %vm3007_vm3, %v7369_v5, %v7093_v62  ;;  %v6967_v25 = vpop.permute.xlu0 %6966  ;;  %v5973_v5 = vld [vmem:[#allocation3 + $0x207] sm:$0xff] }
 0x866   : > { %6732 = vrot.lane.b32.xlu1 %v6128_v31, %s10072_s19  ;;  %8657 = vmatprep.mubr.msk.f32.mxu1 %vm7431_vm8, %v7401_v45  ;;  %v7370_v16 = vsel %vm7354_vm7, %v7337_v43, %v6967_v25  ;;  %v6036_v31 = vld [vmem:[#allocation3 + $0x1f1] sm:$0xff]  ;;  %v10040_v62 = vld [vmem:[#allocation3 + $0x127] sm:$0xff] }
 0x867   : > { %6606 = vrot.lane.b32.xlu0 %v6097_v6, %s10055_s12  ;;  %v17698_v45 = vld [vmem:[#allocation82_spill] sm:$0xff] }
 0x868   : > { %v6713_v2 = vpop.permute.xlu1 %6712  ;;  %v7178_v25 = vsel %vm400_vm15, %v10040_v62, %v17698_v45  ;;  %v10043_v45 = vld [vmem:[#allocation3 + $0x14f] sm:$0xff] }
 0x869   : > { %v6587_v11 = vpop.permute.xlu0 %6586  ;;  %v7306_v46 = vsel %vm7289_vm6, %v7273_v8, %v6713_v2  ;;  %v7210_v23 = vsel %vm326_vm0, %v7178_v25, %v17699_v55  ;;  %v17707_v25 = vld [vmem:[#allocation86_spill] sm:$0xff] }
 0x86a   : > { %6734 = vrot.lane.b32.xlu1 %v6034_v14, %s10072_s19  ;;  %v7274_v37 = vsel %vm2941_vm1, %v7242_v12, %v6587_v11  ;;  %v7243_v26 = vsel %vm7224_vm5, %v7210_v23, %v17700_v48  ;;  %v17706_v12 = vld [vmem:[#allocation137_spill] sm:$0xff]  ;;  %v7181_v55 = vsel %vm400_vm15, %v10043_v45, %v17707_v25  ;;  %v17708_v23 = vld [vmem:[#allocation94_spill] sm:$0xff] }
 0x86b   : > { %7114 = vrot.lane.b32.xlu0 %v6034_v14, %s10057_s14  ;;  %v6069_v14 = vld [vmem:[#allocation3 + $0x20f] sm:$0xff]  ;;  %v7213_v48 = vsel %vm326_vm0, %v7181_v55, %v17708_v23 }
 0x86c   : > { %v6715_v21 = vpop.permute.xlu1 %6714 }
 0x86d   : > { %v7095_v15 = vpop.permute.xlu0 %7094  ;;  %v7307_v40 = vsel %vm7289_vm6, %v7274_v37, %v6715_v21 }
 0x86e   : > { %v7402_v60 = vsel %vm3007_vm3, %v7370_v16, %v7095_v15  ;;  %6480 = vrot.lane.b32.xlu1 %v5971_v24, %s10071_s18  ;;  %v10041_v15 = vld [vmem:[#allocation3 + $0x12f] sm:$0xff] }
 0x86f   : > { %6860 = vrot.lane.b32.xlu0 %v5971_v24, %s10056_s13  ;;  %8658 = vmatmul.mubr.msk.f32.gmra.mrb[34].mxu1 %vm7431_vm8, %v7402_v60  ;;  %v17701_v24 = vld [vmem:[#allocation78_spill] sm:$0xff] }
 0x870   : > { %v6843_v20 = vpop.permute.xlu1 %6842  ;;  %v7179_v60 = vsel %vm400_vm15, %v10041_v15, %v17701_v24 }
 0x871   : > { %v6841_v19 = vpop.permute.xlu0 %6840  ;;  %v7339_v29 = vsel %vm2974_vm2, %v7307_v40, %v6843_v20  ;;  %v17702_v20 = vld [vmem:[#allocation133_spill] sm:$0xff] }
 0x872   : > { %6988 = vrot.lane.b32.xlu1 %v6098_v33, %s10073_s23  ;;  %v7338_v35 = vsel %vm2974_vm2, %v7306_v46, %v6841_v19  ;;  %v7211_v19 = vsel %vm326_vm0, %v7179_v60, %v17702_v20  ;;  %v6102_v40 = vld [vmem:[#allocation3 + $0x228] sm:$0xff]  ;;  %v16447_v60 = vld [vmem:[%s16674_s7] ss:$0 sm:$0xff] }
 0x873   : > { %6862 = vrot.lane.b32.xlu0 %v6067_v61, %s10056_s13  ;;  %v7244_v47 = vsel %vm7224_vm5, %v7211_v19, %v17703_v59  ;;  %v10044_v19 = vld [vmem:[#allocation3 + $0x167] sm:$0xff] }
 0x874   : > { %v6589_v9 = vpop.permute.xlu1 %6588 }
 0x875   : > { %v6969_v17 = vpop.permute.xlu0 %6968  ;;  %v7275_v2 = vsel %vm2941_vm1, %v7243_v26, %v6589_v9 }
 0x876   : > { %6608 = vrot.lane.b32.xlu1 %v6098_v33, %s10055_s12  ;;  %v7371_v51 = vsel %vm7354_vm7, %v7338_v35, %v6969_v17 }
 0x877   : > { %6482 = vrot.lane.b32.xlu0 %v6067_v61, %s10071_s18 }
 0x878   : > { %v7097_v57 = vpop.permute.xlu1 %7096 }
 0x879   : > { %v7403_v49 = vsel %vm3007_vm3, %v7371_v51, %v7097_v57  ;;  %v6971_v22 = vpop.permute.xlu0 %6970 }
 0x87a   : > { %7116 = vrot.lane.b32.xlu1 %v6130_v56, %s10057_s14  ;;  %8660 = vmatprep.mubr.msk.f32.mxu1 %vm7431_vm8, %v7403_v49  ;;  %v7372_v30 = vsel %vm7354_vm7, %v7339_v29, %v6971_v22  ;;  %v6038_v49 = vld [vmem:[#allocation3 + $0x211] sm:$0xff] }
 0x87b   : > { %6990 = vrot.lane.b32.xlu0 %v6099_v3, %s10073_s23  ;;  %v6071_v22 = vld [vmem:[#allocation3 + $0x22f] sm:$0xff] }
 0x87c   : > { %v6717_v50 = vpop.permute.xlu1 %6716 }
 0x87d   : > { %v6591_v38 = vpop.permute.xlu0 %6590  ;;  %v7308_v11 = vsel %vm7289_vm6, %v7275_v2, %v6717_v50  ;;  %v7212_v50 = vsel %vm326_vm0, %v7180_v36, %v17705_v27  ;;  %v7183_v36 = vsel %vm400_vm15, %v10045_v53, %v17712_v63  ;;  %v17713_v27 = vld [vmem:[#allocation46_spill] sm:$0xff]  ;;  %v17718_v63 = vld [vmem:[#allocation9_spill] sm:$0xff] }
 0x87e   : > { %6736 = vrot.lane.b32.xlu1 %v6130_v56, %s10072_s19  ;;  %v7276_v58 = vsel %vm2941_vm1, %v7244_v47, %v6591_v38  ;;  %v7245_v38 = vsel %vm7224_vm5, %v7212_v50, %v17706_v12  ;;  %v7215_v50 = vsel %vm326_vm0, %v7183_v36, %v17713_v27  ;;  %v17719_v27 = vld [vmem:[#allocation81_spill] sm:$0xff] }
 0x87f   : > { %6610 = vrot.lane.b32.xlu0 %v6099_v3, %s10055_s12  ;;  %v6070_v3 = vld [vmem:[#allocation3 + $0x227] sm:$0xff] }
 0x880   : > { %v6719_v32 = vpop.permute.xlu1 %6718 }
 0x881   : > { %v7099_v4 = vpop.permute.xlu0 %7098  ;;  %v7309_v34 = vsel %vm7289_vm6, %v7276_v58, %v6719_v32 }
 0x882   : > { %v7404_v54 = vsel %vm3007_vm3, %v7372_v30, %v7099_v4  ;;  %6738 = vrot.lane.b32.xlu1 %v6036_v31, %s10072_s19 }
 0x883   : > { %7118 = vrot.lane.b32.xlu0 %v6036_v31, %s10057_s14  ;;  %8661 = vmatmul.mubr.msk.f32.gmra.mrb[36].mxu1 %vm7431_vm8, %v7404_v54  ;;  %v6135_v31 = vld [vmem:[#allocation3 + $0x231] sm:$0xff] }
 0x884   : > { %v6847_v6 = vpop.permute.xlu1 %6846 }
 0x885   : > { %v6845_v28 = vpop.permute.xlu0 %6844  ;;  %v7341_v9 = vsel %vm2974_vm2, %v7309_v34, %v6847_v6 }
 0x886   : > { %6484 = vrot.lane.b32.xlu1 %v5973_v5, %s10071_s18  ;;  %v7340_v52 = vsel %vm2974_vm2, %v7308_v11, %v6845_v28  ;;  %v6134_v28 = vld [vmem:[#allocation3 + $0x229] sm:$0xff] }
 0x887   : > { %6864 = vrot.lane.b32.xlu0 %v5973_v5, %s10056_s13 }
 0x888   : > { %v6593_v44 = vpop.permute.xlu1 %6592 }
 0x889   : > { %v6973_v0 = vpop.permute.xlu0 %6972  ;;  %v7277_v29 = vsel %vm2941_vm1, %v7245_v38, %v6593_v44  ;;  %v17709_v44 = vld [vmem:[#allocation20_spill] sm:$0xff] }
 0x88a   : > { %6992 = vrot.lane.b32.xlu1 %v6100_v39, %s10073_s23  ;;  %v7373_v41 = vsel %vm7354_vm7, %v7340_v52, %v6973_v0  ;;  %v7246_v2 = vsel %vm7224_vm5, %v7213_v48, %v17709_v44  ;;  %v17714_v48 = vld [vmem:[#allocation73_spill] sm:$0xff] }
 0x88b   : > { %6866 = vrot.lane.b32.xlu0 %v6069_v14, %s10056_s13 }
 0x88c   : > { %v7101_v43 = vpop.permute.xlu1 %7100 }
 0x88d   : > { %v7405_v21 = vsel %vm3007_vm3, %v7373_v41, %v7101_v43  ;;  %v6975_v16 = vpop.permute.xlu0 %6974 }
 0x88e   : > { %6612 = vrot.lane.b32.xlu1 %v6100_v39, %s10055_s12  ;;  %8663 = vmatprep.mubr.msk.f32.mxu1 %vm7431_vm8, %v7405_v21  ;;  %v7374_v17 = vsel %vm7354_vm7, %v7341_v9, %v6975_v16 }
 0x88f   : > { %6486 = vrot.lane.b32.xlu0 %v6069_v14, %s10071_s18 }
 0x890   : > { %v6721_v33 = vpop.permute.xlu1 %6720 }
 0x891   : > { %v6595_v61 = vpop.permute.xlu0 %6594  ;;  %v7310_v30 = vsel %vm7289_vm6, %v7277_v29, %v6721_v33  ;;  %v17710_v33 = vld [vmem:[#allocation40_spill] sm:$0xff] }
 0x892   : > { %7120 = vrot.lane.b32.xlu1 %v6132_v10, %s10057_s14  ;;  %v7278_v39 = vsel %vm2941_vm1, %v7246_v2, %v6595_v61  ;;  %v7182_v59 = vsel %vm400_vm15, %v10044_v19, %v17710_v33  ;;  %v17711_v61 = vld [vmem:[#allocation33_spill] sm:$0xff]  ;;  %v17715_v2 = vld [vmem:[#allocation43_spill] sm:$0xff] }
 0x893   : > { %6994 = vrot.lane.b32.xlu0 %v6101_v42, %s10073_s23  ;;  %v17717_v19 = vld [vmem:[#allocation57_spill] sm:$0xff] }
 0x894   : > { %v6723_v8 = vpop.permute.xlu1 %6722 }
 0x895   : > { %v7103_v46 = vpop.permute.xlu0 %7102  ;;  %v7311_v11 = vsel %vm7289_vm6, %v7278_v39, %v6723_v8 }
 0x896   : > { %v7406_v35 = vsel %vm3007_vm3, %v7374_v17, %v7103_v46  ;;  %6740 = vrot.lane.b32.xlu1 %v6132_v10, %s10072_s19  ;;  %v7214_v10 = vsel %vm326_vm0, %v7182_v59, %v17711_v61 }
 0x897   : > { %6614 = vrot.lane.b32.xlu0 %v6101_v42, %s10055_s12  ;;  %8664 = vmatmul.mubr.msk.f32.gmra.mrb[38].mxu1 %vm7431_vm8, %v7406_v35 }
 0x898   : > { %v6469_v51 = vpop.permute.xlu1 %6468 }
 0x899   : > { %v6849_v57 = vpop.permute.xlu0 %6848  ;;  %v7247_v34 = vsel %vm7224_vm5, %v7214_v10, %v6469_v51 }
 0x89a   : > { %6742 = vrot.lane.b32.xlu1 %v6038_v49, %s10072_s19  ;;  %v7342_v4 = vsel %vm2974_vm2, %v7310_v30, %v6849_v57 }
 0x89b   : > { %7122 = vrot.lane.b32.xlu0 %v6038_v49, %s10057_s14 }
 0x89c   : > { %v6977_v56 = vpop.permute.xlu1 %6976 }
 0x89d   : > { %v6851_v1 = vpop.permute.xlu0 %6850  ;;  %v7375_v54 = vsel %vm7354_vm7, %v7342_v4, %v6977_v56 }
 0x89e   : > { %6870 = vrot.lane.b32.xlu1 %v6071_v22, %s10056_s13  ;;  %v7343_v14 = vsel %vm2974_vm2, %v7311_v11, %v6851_v1 }
 0x89f   : > { %6868 = vrot.lane.b32.xlu0 %v6070_v3, %s10056_s13 }
 0x8a0   : > { %v6597_v37 = vpop.permute.xlu1 %6596 }
 0x8a1   : > { %v6471_v32 = vpop.permute.xlu0 %6470  ;;  %v7279_v17 = vsel %vm2941_vm1, %v7247_v34, %v6597_v37 }
 0x8a2   : > { %6998 = vrot.lane.b32.xlu1 %v6103_v18, %s10073_s23  ;;  %v7248_v12 = vsel %vm7224_vm5, %v7215_v50, %v6471_v32 }
 0x8a3   : > { %6996 = vrot.lane.b32.xlu0 %v6102_v40, %s10073_s23 }
 0x8a4   : > { %v7105_v6 = vpop.permute.xlu1 %7104 }
 0x8a5   : > { %v7407_v5 = vsel %vm3007_vm3, %v7375_v54, %v7105_v6  ;;  %v6979_v62 = vpop.permute.xlu0 %6978 }
 0x8a6   : > { %7126 = vrot.lane.b32.xlu1 %v6135_v31, %s10057_s14  ;;  %8666 = vmatprep.mubr.msk.f32.mxu1 %vm7431_vm8, %v7407_v5  ;;  %v7376_v41 = vsel %vm7354_vm7, %v7343_v14, %v6979_v62 }
 0x8a7   : > { %7124 = vrot.lane.b32.xlu0 %v6134_v28, %s10057_s14 }
 0x8a8   : > { %v6725_v26 = vpop.permute.xlu1 %6724 }
 0x8a9   : > { %v6599_v0 = vpop.permute.xlu0 %6598  ;;  %v7312_v57 = vsel %vm7289_vm6, %v7279_v17, %v6725_v26  ;;  %v7184_v26 = vsel %vm400_vm15, %v16200_v13, %v17714_v48 }
 0x8aa   : > { %v7280_v37 = vsel %vm2941_vm1, %v7248_v12, %v6599_v0  ;;  %v7216_v0 = vsel %vm326_vm0, %v7184_v26, %v17715_v2 }
 0x8ac   : > { %v6727_v52 = vpop.permute.xlu1 %6726 }
 0x8ad   : > { %v7107_v43 = vpop.permute.xlu0 %7106  ;;  %v7313_v40 = vsel %vm7289_vm6, %v7280_v37, %v6727_v52 }
 0x8ae   : > { %v7408_v21 = vsel %vm3007_vm3, %v7376_v41, %v7107_v43 }
 0x8af   : > { %8667 = vmatmul.mubr.msk.f32.gmra.mrb[40].mxu1 %vm7431_vm8, %v7408_v21 }
 0x8b0   : > { %v6473_v16 = vpop.permute.xlu1 %6472 }
 0x8b1   : > { %v6853_v15 = vpop.permute.xlu0 %6852  ;;  %v7249_v39 = vsel %vm7224_vm5, %v7216_v0, %v6473_v16 }
 0x8b2   : > { %v7344_v51 = vsel %vm2974_vm2, %v7312_v57, %v6853_v15 }
 0x8b4   : > { %v6981_v24 = vpop.permute.xlu1 %6980 }
 0x8b5   : > { %v6855_v20 = vpop.permute.xlu0 %6854  ;;  %v7377_v22 = vsel %vm7354_vm7, %v7344_v51, %v6981_v24 }
 0x8b6   : > { %v8638_v47 = vpop.f32.mrb[20].mxu1  ;;  %v7345_v29 = vsel %vm2974_vm2, %v7313_v40, %v6855_v20  ;;  %v17716_v20 = vld [vmem:[#allocation63_spill] sm:$0xff] }
 0x8b7   : > { %v7604_v58 = vadd.f32 %v8638_v47, %v16447_v60  ;;  %v7598_v42 = vpop.f32.mrb[21].mxu1  ;;  %v7185_v16 = vsel %vm400_vm15, %v16211_v7, %v17716_v20  ;;  %v5875_v20 = vld [vmem:[#allocation3 + $0x1c7] sm:$0xff] }
 0x8b8   : > { %v7599_v9 = vadd.f32 %v16447_v60, %v7598_v42  ;;  %v6601_v8 = vpop.permute.xlu1 %6600  ;;  %v7217_v33 = vsel %vm326_vm0, %v7185_v16, %v17717_v19  ;;  %v17722_v19 = vld [vmem:[#allocation131_spill] sm:$0xff] }
 0x8b9   : > { %v7758_v46 = vmax.f32 %v7604_v58, 0.0  ;;  %v6475_v35 = vpop.permute.xlu0 %6474  ;;  %v7281_v14 = vsel %vm2941_vm1, %v7249_v39, %v6601_v8 }
 0x8ba   : > { %v7757_v49 = vmax.f32 %v7599_v9, 0.0  ;;  %v7250_v47 = vsel %vm7224_vm5, %v7217_v33, %v6475_v35  ;;  %v7188_v33 = vsel %vm400_vm15, %v5875_v20, %v17722_v19 }
 0x8bb   : > { %7790 = vst.msk [vmem:[%s16460_s16 + $0x8] sm:$0xff] %vm400_vm15, %v7758_v46 }
 0x8bc   : > { %7789 = vst.msk [vmem:[%s16460_s16] sm:$0xff] %vm400_vm15, %v7757_v49  ;;  %v7109_v56 = vpop.permute.xlu1 %7108 }
 0x8bd   : > { %v7409_v3 = vsel %vm3007_vm3, %v7377_v22, %v7109_v56  ;;  %v6983_v1 = vpop.permute.xlu0 %6982 }
 0x8be   : > { %8669 = vmatprep.mubr.msk.f32.mxu1 %vm7431_vm8, %v7409_v3  ;;  %v7378_v4 = vsel %vm7354_vm7, %v7345_v29, %v6983_v1  ;;  %v5873_v1 = vld [vmem:[#allocation3 + $0x1a7] sm:$0xff] }
 0x8bf   : > { %v7186_v36 = vsel %vm400_vm15, %v5873_v1, %v17718_v63 }
 0x8c0   : > { %v6729_v18 = vpop.permute.xlu1 %6728  ;;  %v7218_v50 = vsel %vm326_vm0, %v7186_v36, %v17719_v27 }
 0x8c1   : > { %v6603_v38 = vpop.permute.xlu0 %6602  ;;  %v7314_v41 = vsel %vm7289_vm6, %v7281_v14, %v6729_v18 }
 0x8c2   : > { %v7282_v10 = vsel %vm2941_vm1, %v7250_v47, %v6603_v38 }
 0x8c4   : > { %v6731_v30 = vpop.permute.xlu1 %6730 }
 0x8c5   : > { %v7111_v31 = vpop.permute.xlu0 %7110  ;;  %v7315_v58 = vsel %vm7289_vm6, %v7282_v10, %v6731_v30 }
 0x8c6   : > { %v7410_v54 = vsel %vm3007_vm3, %v7378_v4, %v7111_v31 }
 0x8c7   : > { %8670 = vmatmul.mubr.msk.f32.gmra.mrb[42].mxu1 %vm7431_vm8, %v7410_v54 }
 0x8c8   : > { %v6477_v6 = vpop.permute.xlu1 %6476 }
 0x8c9   : > { %v6857_v28 = vpop.permute.xlu0 %6856  ;;  %v7251_v18 = vsel %vm7224_vm5, %v7218_v50, %v6477_v6 }
 0x8ca   : > { %v8641_v32 = vpop.f32.mrb[22].mxu1  ;;  %v7346_v43 = vsel %vm2974_vm2, %v7314_v41, %v6857_v28  ;;  %v5874_v28 = vld [vmem:[#allocation3 + $0x1af] sm:$0xff] }
 0x8cb   : > { %v7614_v5 = vadd.f32 %v8641_v32, %v16447_v60  ;;  %v7608_v62 = vpop.f32.mrb[23].mxu1  ;;  %v17720_v32 = vld [vmem:[#allocation70_spill] sm:$0xff] }
 0x8cc   : > { %v7609_v45 = vadd.f32 %v16447_v60, %v7608_v62  ;;  %v6985_v25 = vpop.permute.xlu1 %6984  ;;  %v7187_v6 = vsel %vm400_vm15, %v5874_v28, %v17720_v32  ;;  %v5877_v28 = vld [vmem:[#allocation3 + $0x1e7] sm:$0xff]  ;;  %v5878_v32 = vld [vmem:[#allocation3 + $0x1ef] sm:$0xff] }
 0x8cd   : > { %v7760_v55 = vmax.f32 %v7614_v5, 0.0  ;;  %v6859_v23 = vpop.permute.xlu0 %6858  ;;  %v7379_v13 = vsel %vm7354_vm7, %v7346_v43, %v6985_v25  ;;  %v17721_v5 = vld [vmem:[#allocation83_spill] sm:$0xff] }
 0x8ce   : > { %v7759_v44 = vmax.f32 %v7609_v45, 0.0  ;;  %v7347_v42 = vsel %vm2974_vm2, %v7315_v58, %v6859_v23  ;;  %v7219_v62 = vsel %vm326_vm0, %v7187_v6, %v17721_v5  ;;  %v17726_v6 = vld [vmem:[#allocation90_spill] sm:$0xff] }
 0x8cf   : > { %7792 = vst.msk [vmem:[%s16460_s16 + $0x18] sm:$0xff] %vm400_vm15, %v7760_v55  ;;  %v7190_v5 = vsel %vm400_vm15, %v5877_v28, %v17726_v6 }
 0x8d0   : > { %7791 = vst.msk [vmem:[%s16460_s16 + $0x10] sm:$0xff] %vm400_vm15, %v7759_v44  ;;  %v6605_v11 = vpop.permute.xlu1 %6604 }
 0x8d1   : > { %v6479_v52 = vpop.permute.xlu0 %6478  ;;  %v7283_v38 = vsel %vm2941_vm1, %v7251_v18, %v6605_v11 }
 0x8d2   : > { %v7252_v25 = vsel %vm7224_vm5, %v7219_v62, %v6479_v52  ;;  %v17727_v62 = vld [vmem:[#allocation130_spill] sm:$0xff] }
 0x8d4   : > { %v7113_v21 = vpop.permute.xlu1 %7112 }
 0x8d5   : > { %v7411_v15 = vsel %vm3007_vm3, %v7379_v13, %v7113_v21  ;;  %v6987_v24 = vpop.permute.xlu0 %6986 }
 0x8d6   : > { %8672 = vmatprep.mubr.msk.f32.mxu1 %vm7431_vm8, %v7411_v15  ;;  %v7380_v9 = vsel %vm7354_vm7, %v7347_v42, %v6987_v24 }
 0x8d8   : > { %v6733_v59 = vpop.permute.xlu1 %6732 }
 0x8d9   : > { %v6607_v61 = vpop.permute.xlu0 %6606  ;;  %v7316_v40 = vsel %vm7289_vm6, %v7283_v38, %v6733_v59  ;;  %v17723_v59 = vld [vmem:[#allocation16_spill] sm:$0xff] }
 0x8da   : > { %v7284_v23 = vsel %vm2941_vm1, %v7252_v25, %v6607_v61  ;;  %v7220_v47 = vsel %vm326_vm0, %v7188_v33, %v17723_v59  ;;  %v17728_v25 = vld [vmem:[#allocation134_spill] sm:$0xff] }
 0x8dc   : > { %v6735_v34 = vpop.permute.xlu1 %6734 }
 0x8dd   : > { %v7115_v8 = vpop.permute.xlu0 %7114  ;;  %v7317_v26 = vsel %vm7289_vm6, %v7284_v23, %v6735_v34 }
 0x8de   : > { %v7412_v7 = vsel %vm3007_vm3, %v7380_v9, %v7115_v8  ;;  %v8644_v17 = vpop.f32.mrb[24].mxu1 }
 0x8df   : > { %v7624_v46 = vadd.f32 %v8644_v17, %v16447_v60  ;;  %v7618_v57 = vpop.f32.mrb[25].mxu1  ;;  %8673 = vmatmul.mubr.msk.f32.gmra.mrb[44].mxu1 %vm7431_vm8, %v7412_v7 }
 0x8e0   : > { %v7619_v35 = vadd.f32 %v16447_v60, %v7618_v57  ;;  %v6481_v49 = vpop.permute.xlu1 %6480  ;;  %v5876_v57 = vld [vmem:[#allocation3 + $0x1cf] sm:$0xff] }
 0x8e1   : > { %v7762_v51 = vmax.f32 %v7624_v46, 0.0  ;;  %v6861_v22 = vpop.permute.xlu0 %6860  ;;  %v7253_v61 = vsel %vm7224_vm5, %v7220_v47, %v6481_v49  ;;  %v17724_v49 = vld [vmem:[#allocation7_spill] sm:$0xff] }
 0x8e2   : > { %v7761_v56 = vmax.f32 %v7619_v35, 0.0  ;;  %v7348_v29 = vsel %vm2974_vm2, %v7316_v40, %v6861_v22 }
 0x8e3   : > { %7794 = vst.msk [vmem:[%s16460_s16 + $0x28] sm:$0xff] %vm400_vm15, %v7762_v51  ;;  %v7189_v51 = vsel %vm400_vm15, %v5876_v57, %v17724_v49 }
 0x8e4   : > { %7793 = vst.msk [vmem:[%s16460_s16 + $0x20] sm:$0xff] %vm400_vm15, %v7761_v56  ;;  %v6989_v3 = vpop.permute.xlu1 %6988 }
 0x8e5   : > { %v6863_v53 = vpop.permute.xlu0 %6862  ;;  %v7381_v30 = vsel %vm7354_vm7, %v7348_v29, %v6989_v3  ;;  %v17725_v3 = vld [vmem:[#allocation18_spill] sm:$0xff] }
 0x8e6   : > { %v7349_v0 = vsel %vm2974_vm2, %v7317_v26, %v6863_v53  ;;  %v7221_v1 = vsel %vm326_vm0, %v7189_v51, %v17725_v3 }
 0x8e8   : > { %v6609_v12 = vpop.permute.xlu1 %6608 }
 0x8e9   : > { %v6483_v37 = vpop.permute.xlu0 %6482  ;;  %v7285_v58 = vsel %vm2941_vm1, %v7253_v61, %v6609_v12 }
 0x8ea   : > { %v7254_v36 = vsel %vm7224_vm5, %v7221_v1, %v6483_v37 }
 0x8ec   : > { %v7117_v4 = vpop.permute.xlu1 %7116 }
 0x8ed   : > { %v7413_v31 = vsel %vm3007_vm3, %v7381_v30, %v7117_v4  ;;  %v6991_v54 = vpop.permute.xlu0 %6990 }
 0x8ee   : > { %8675 = vmatprep.mubr.msk.f32.mxu1 %vm7431_vm8, %v7413_v31  ;;  %v7382_v14 = vsel %vm7354_vm7, %v7349_v0, %v6991_v54 }
 0x8f0   : > { %v6737_v45 = vpop.permute.xlu1 %6736 }
 0x8f1   : > { %v6611_v55 = vpop.permute.xlu0 %6610  ;;  %v7318_v34 = vsel %vm7289_vm6, %v7285_v58, %v6737_v45  ;;  %v7191_v45 = vsel %vm400_vm15, %v5878_v32, %v17727_v62 }
 0x8f2   : > { %v8647_v48 = vpop.f32.mrb[26].mxu1  ;;  %v7286_v18 = vsel %vm2941_vm1, %v7254_v36, %v6611_v55  ;;  %v7222_v55 = vsel %vm326_vm0, %v7190_v5, %v17728_v25 }
 0x8f3   : > { %v7634_v44 = vadd.f32 %v8647_v48, %v16447_v60  ;;  %v7628_v2 = vpop.f32.mrb[27].mxu1  ;;  %v17729_v48 = vld [vmem:[#allocation135_spill] sm:$0xff] }
 0x8f4   : > { %v7629_v39 = vadd.f32 %v16447_v60, %v7628_v2  ;;  %v6739_v11 = vpop.permute.xlu1 %6738  ;;  %v7223_v26 = vsel %vm326_vm0, %v7191_v45, %v17729_v48 }
 0x8f5   : > { %v7764_v41 = vmax.f32 %v7634_v44, 0.0  ;;  %v7119_v43 = vpop.permute.xlu0 %7118  ;;  %v7319_v38 = vsel %vm7289_vm6, %v7286_v18, %v6739_v11 }
 0x8f6   : > { %v7763_v52 = vmax.f32 %v7629_v39, 0.0  ;;  %v7414_v13 = vsel %vm3007_vm3, %v7382_v14, %v7119_v43 }
 0x8f7   : > { %7796 = vst.msk [vmem:[%s16460_s16 + $0x38] sm:$0xff] %vm400_vm15, %v7764_v41  ;;  %8676 = vmatmul.mubr.msk.f32.gmra.mrb[46].mxu1 %vm7431_vm8, %v7414_v13 }
 0x8f8   : > { %7795 = vst.msk [vmem:[%s16460_s16 + $0x30] sm:$0xff] %vm400_vm15, %v7763_v52  ;;  %v6485_v21 = vpop.permute.xlu1 %6484 }
 0x8f9   : > { %v6865_v15 = vpop.permute.xlu0 %6864  ;;  %v7255_v44 = vsel %vm7224_vm5, %v7222_v55, %v6485_v21 }
 0x8fa   : > { %v7350_v9 = vsel %vm2974_vm2, %v7318_v34, %v6865_v15 }
 0x8fc   : > { %v6993_v24 = vpop.permute.xlu1 %6992 }
 0x8fd   : > { %v6867_v16 = vpop.permute.xlu0 %6866  ;;  %v7383_v8 = vsel %vm7354_vm7, %v7350_v9, %v6993_v24 }
 0x8fe   : > { %v7351_v40 = vsel %vm2974_vm2, %v7319_v38, %v6867_v16 }
 0x900   : > { %v6613_v10 = vpop.permute.xlu1 %6612 }
 0x901   : > { %v6487_v42 = vpop.permute.xlu0 %6486  ;;  %v7287_v0 = vsel %vm2941_vm1, %v7255_v44, %v6613_v10 }
 0x902   : > { %v7256_v39 = vsel %vm7224_vm5, %v7223_v26, %v6487_v42 }
 0x904   : > { %v7121_v7 = vpop.permute.xlu1 %7120 }
 0x905   : > { %v7415_v17 = vsel %vm3007_vm3, %v7383_v8, %v7121_v7  ;;  %v6995_v46 = vpop.permute.xlu0 %6994 }
 0x906   : > { %v8650_v35 = vpop.f32.mrb[28].mxu1  ;;  %8678 = vmatprep.mubr.msk.f32.mxu1 %vm7431_vm8, %v7415_v17  ;;  %v7384_v30 = vsel %vm7354_vm7, %v7351_v40, %v6995_v46 }
 0x907   : > { %v7644_v22 = vadd.f32 %v8650_v35, %v16447_v60  ;;  %v7638_v56 = vpop.f32.mrb[29].mxu1 }
 0x908   : > { %v7639_v53 = vadd.f32 %v16447_v60, %v7638_v56  ;;  %v6741_v63 = vpop.permute.xlu1 %6740 }
 0x909   : > { %v7766_v27 = vmax.f32 %v7644_v22, 0.0  ;;  %v6615_v50 = vpop.permute.xlu0 %6614  ;;  %v7320_v11 = vsel %vm7289_vm6, %v7287_v0, %v6741_v63 }
 0x90a   : > { %v7765_v12 = vmax.f32 %v7639_v53, 0.0  ;;  %v7288_v14 = vsel %vm2941_vm1, %v7256_v39, %v6615_v50 }
 0x90b   : > { %7798 = vst.msk [vmem:[%s16460_s16 + $0x48] sm:$0xff] %vm400_vm15, %v7766_v27 }
 0x90c   : > { %7797 = vst.msk [vmem:[%s16460_s16 + $0x40] sm:$0xff] %vm400_vm15, %v7765_v12  ;;  %v6743_v29 = vpop.permute.xlu1 %6742 }
 0x90d   : > { %v7123_v4 = vpop.permute.xlu0 %7122  ;;  %v7321_v41 = vsel %vm7289_vm6, %v7288_v14, %v6743_v29 }
 0x90e   : > { %v7416_v31 = vsel %vm3007_vm3, %v7384_v30, %v7123_v4 }
 0x90f   : > { %8679 = vmatmul.mubr.msk.f32.gmra.mrb[48].mxu1 %vm7431_vm8, %v7416_v31 }
 0x910   : > { %v6871_v37 = vpop.permute.xlu1 %6870 }
 0x911   : > { %v6869_v54 = vpop.permute.xlu0 %6868  ;;  %v7353_v13 = vsel %vm2974_vm2, %v7321_v41, %v6871_v37 }
 0x912   : > { %v7352_v43 = vsel %vm2974_vm2, %v7320_v11, %v6869_v54 }
 0x914   : > { %v6999_v23 = vpop.permute.xlu1 %6998 }
 0x915   : > { %v6997_v2 = vpop.permute.xlu0 %6996  ;;  %v7386_v24 = vsel %vm7354_vm7, %v7353_v13, %v6999_v23 }
 0x916   : > { %v7385_v21 = vsel %vm7354_vm7, %v7352_v43, %v6997_v2 }
 0x918   : > { %v7127_v52 = vpop.permute.xlu1 %7126 }
 0x919   : > { %v7125_v15 = vpop.permute.xlu0 %7124  ;;  %v7418_v19 = vsel %vm3007_vm3, %v7386_v24, %v7127_v52 }
 0x91a   : > { %v7417_v20 = vsel %vm3007_vm3, %v7385_v21, %v7125_v15  ;;  %v8653_v16 = vpop.f32.mrb[30].mxu1 }
 0x91b   : > { %v7654_v33 = vadd.f32 %v8653_v16, %v16447_v60  ;;  %v7648_v59 = vpop.f32.mrb[31].mxu1  ;;  %8681 = vmatprep.mubr.msk.f32.mxu1 %vm7431_vm8, %v7417_v20 }
 0x91c   : > { %v7649_v47 = vadd.f32 %v16447_v60, %v7648_v59  ;;  %8682 = vmatmul.mubr.msk.f32.gmra.mrb[50].mxu1 %vm7431_vm8, %v7418_v19 }
 0x91d   : > { %v7768_v61 = vmax.f32 %v7654_v33, 0.0 }
 0x91e   : > { %v7767_v10 = vmax.f32 %v7649_v47, 0.0 }
 0x91f   : > { %7800 = vst.msk [vmem:[%s16460_s16 + $0x58] sm:$0xff] %vm400_vm15, %v7768_v61 }
 0x920   : > { %7799 = vst.msk [vmem:[%s16460_s16 + $0x50] sm:$0xff] %vm400_vm15, %v7767_v10 }
 0x92e   : > { %v8656_v58 = vpop.f32.mrb[32].mxu1 }
 0x92f   : > { %v7664_v42 = vadd.f32 %v8656_v58, %v16447_v60  ;;  %v7658_v34 = vpop.f32.mrb[33].mxu1 }
 0x930   : > { %v7659_v9 = vadd.f32 %v16447_v60, %v7658_v34 }
 0x931   : > { %v7770_v8 = vmax.f32 %v7664_v42, 0.0 }
 0x932   : > { %v7769_v7 = vmax.f32 %v7659_v9, 0.0 }
 0x933   : > { %7802 = vst.msk [vmem:[%s16460_s16 + $0x68] sm:$0xff] %vm400_vm15, %v7770_v8 }
 0x934   : > { %7801 = vst.msk [vmem:[%s16460_s16 + $0x60] sm:$0xff] %vm400_vm15, %v7769_v7 }
 0x942   : > { %v8659_v17 = vpop.f32.mrb[34].mxu1 }
 0x943   : > { %v7674_v46 = vadd.f32 %v8659_v17, %v16447_v60  ;;  %v7668_v57 = vpop.f32.mrb[35].mxu1 }
 0x944   : > { %v7669_v35 = vadd.f32 %v16447_v60, %v7668_v57 }
 0x945   : > { %v7772_v49 = vmax.f32 %v7674_v46, 0.0 }
 0x946   : > { %v7771_v51 = vmax.f32 %v7669_v35, 0.0 }
 0x947   : > { %7804 = vst.msk [vmem:[%s16460_s16 + $0x78] sm:$0xff] %vm400_vm15, %v7772_v49 }
 0x948   : > { %7803 = vst.msk [vmem:[%s16460_s16 + $0x70] sm:$0xff] %vm400_vm15, %v7771_v51 }
 0x956   : > { %v8662_v22 = vpop.f32.mrb[36].mxu1 }
 0x957   : > { %v7684_v56 = vadd.f32 %v8662_v22, %v16447_v60  ;;  %v7678_v3 = vpop.f32.mrb[37].mxu1 }
 0x958   : > { %v7679_v1 = vadd.f32 %v16447_v60, %v7678_v3 }
 0x959   : > { %v7774_v53 = vmax.f32 %v7684_v56, 0.0 }
 0x95a   : > { %v7773_v63 = vmax.f32 %v7679_v1, 0.0 }
 0x95b   : > { %7806 = vst.msk [vmem:[%s16460_s16 + $0x88] sm:$0xff] %vm400_vm15, %v7774_v53 }
 0x95c   : > { %7805 = vst.msk [vmem:[%s16460_s16 + $0x80] sm:$0xff] %vm400_vm15, %v7773_v63 }
 0x96a   : > { %v8665_v36 = vpop.f32.mrb[38].mxu1 }
 0x96b   : > { %v7694_v27 = vadd.f32 %v8665_v36, %v16447_v60  ;;  %v7688_v50 = vpop.f32.mrb[39].mxu1 }
 0x96c   : > { %v7689_v18 = vadd.f32 %v16447_v60, %v7688_v50 }
 0x96d   : > { %v7776_v12 = vmax.f32 %v7694_v27, 0.0 }
 0x96e   : > { %v7775_v38 = vmax.f32 %v7689_v18, 0.0 }
 0x96f   : > { %7808 = vst.msk [vmem:[%s16460_s16 + $0x98] sm:$0xff] %vm400_vm15, %v7776_v12 }
 0x970   : > { %7807 = vst.msk [vmem:[%s16460_s16 + $0x90] sm:$0xff] %vm400_vm15, %v7775_v38 }
 0x982   : > { %v8668_v40 = vpop.f32.mrb[40].mxu1 }
 0x983   : > { %v7704_v29 = vadd.f32 %v8668_v40, %v16447_v60  ;;  %v7698_v30 = vpop.f32.mrb[41].mxu1 }
 0x984   : > { %v7699_v4 = vadd.f32 %v16447_v60, %v7698_v30 }
 0x985   : > { %v7778_v31 = vmax.f32 %v7704_v29, 0.0 }
 0x986   : > { %v7777_v37 = vmax.f32 %v7699_v4, 0.0 }
 0x987   : > { %7810 = vst.msk [vmem:[%s16460_s16 + $0xa8] sm:$0xff] %vm400_vm15, %v7778_v31 }
 0x988   : > { %7809 = vst.msk [vmem:[%s16460_s16 + $0xa0] sm:$0xff] %vm400_vm15, %v7777_v37 }
 0x99a   : > { %v8671_v54 = vpop.f32.mrb[42].mxu1 }
 0x99b   : > { %v7714_v28 = vadd.f32 %v8671_v54, %v16447_v60  ;;  %v7708_v32 = vpop.f32.mrb[43].mxu1 }
 0x99c   : > { %v7709_v6 = vadd.f32 %v16447_v60, %v7708_v32 }
 0x99d   : > { %v7780_v5 = vmax.f32 %v7714_v28, 0.0 }
 0x99e   : > { %v7779_v62 = vmax.f32 %v7709_v6, 0.0 }
 0x99f   : > { %7812 = vst.msk [vmem:[%s16460_s16 + $0xb8] sm:$0xff] %vm400_vm15, %v7780_v5 }
 0x9a0   : > { %7811 = vst.msk [vmem:[%s16460_s16 + $0xb0] sm:$0xff] %vm400_vm15, %v7779_v62 }
 0x9b2   : > { %v8674_v45 = vpop.f32.mrb[44].mxu1 }
 0x9b3   : > { %v7724_v25 = vadd.f32 %v8674_v45, %v16447_v60  ;;  %v7718_v55 = vpop.f32.mrb[45].mxu1 }
 0x9b4   : > { %v7719_v23 = vadd.f32 %v16447_v60, %v7718_v55 }
 0x9b5   : > { %v7782_v48 = vmax.f32 %v7724_v25, 0.0 }
 0x9b6   : > { %v7781_v26 = vmax.f32 %v7719_v23, 0.0 }
 0x9b7   : > { %7814 = vst.msk [vmem:[%s16460_s16 + $0xc8] sm:$0xff] %vm400_vm15, %v7782_v48 }
 0x9b8   : > { %7813 = vst.msk [vmem:[%s16460_s16 + $0xc0] sm:$0xff] %vm400_vm15, %v7781_v26 }
 0x9ca   : > { %v8677_v44 = vpop.f32.mrb[46].mxu1 }
 0x9cb   : > { %v7734_v2 = vadd.f32 %v8677_v44, %v16447_v60  ;;  %v7728_v0 = vpop.f32.mrb[47].mxu1 }
 0x9cc   : > { %v7729_v39 = vadd.f32 %v16447_v60, %v7728_v0 }
 0x9cd   : > { %v7784_v11 = vmax.f32 %v7734_v2, 0.0 }
 0x9ce   : > { %v7783_v14 = vmax.f32 %v7729_v39, 0.0 }
 0x9cf   : > { %7816 = vst.msk [vmem:[%s16460_s16 + $0xd8] sm:$0xff] %vm400_vm15, %v7784_v11 }
 0x9d0   : > { %7815 = vst.msk [vmem:[%s16460_s16 + $0xd0] sm:$0xff] %vm400_vm15, %v7783_v14 }
 0x9e2   : > { %v8680_v41 = vpop.f32.mrb[48].mxu1 }
 0x9e3   : > { %v7744_v43 = vadd.f32 %v8680_v41, %v16447_v60  ;;  %v7738_v52 = vpop.f32.mrb[49].mxu1 }
 0x9e4   : > { %v7739_v13 = vadd.f32 %v16447_v60, %v7738_v52 }
 0x9e5   : > { %v7786_v21 = vmax.f32 %v7744_v43, 0.0 }
 0x9e6   : > { %v7785_v15 = vmax.f32 %v7739_v13, 0.0 }
 0x9e7   : > { %7818 = vst.msk [vmem:[%s16460_s16 + $0xe8] sm:$0xff] %vm400_vm15, %v7786_v21 }
 0x9e8   : > { %7817 = vst.msk [vmem:[%s16460_s16 + $0xe0] sm:$0xff] %vm400_vm15, %v7785_v15 }
 0x9ef   : > { %v8683_v24 = vpop.f32.mrb[50].mxu1 }
 0x9f0   : > { %v7754_v20 = vadd.f32 %v8683_v24, %v16447_v60  ;;  %v7748_v16 = vpop.f32.mrb[51].mxu1 }
 0x9f1   : > { %v7749_v19 = vadd.f32 %v16447_v60, %v7748_v16 }
 0x9f2   : > { %v7788_v33 = vmax.f32 %v7754_v20, 0.0 }
 0x9f3   : > { %v7787_v59 = vmax.f32 %v7749_v19, 0.0 }
 0x9f4   : > { %7820 = vst.msk [vmem:[%s16460_s16 + $0xf8] sm:$0xff] %vm400_vm15, %v7788_v33 }
 0x9f5   : > { %7819 = vst.msk [vmem:[%s16460_s16 + $0xf0] sm:$0xff] %vm400_vm15, %v7787_v59 }
 0x9f6 PF: > { %s18_s27 = sadd.s32 1, %s10052_s27  }
 0x9f7   : > { %p15_p4 = scmp.ge.s32.totalorder %s18_s27, 4  }
 0x9f9   :  { %17 = sbr.rel (!%p15_p4) target bundleno = 1 (0x1), region = 92 }

</bundles_post_ra>
